<compile_context>
chip_gen: v5e
topology: v5e:2x2
jax: 0.10.0
libtpu: 0.0.40
codegen_flags: <defaults>
</compile_context>

<pallas_src>
import math
from functools import partial

import jax
import jax.numpy as jnp
from jax.experimental import pallas as pl
from jax.experimental.pallas import tpu as pltpu


def _round_up(x, m):
    return ((x + m - 1) // m) * m


# ---------------------------------------------------------------------------
# Kernel: 4 hidden matmul+bias+ReLU layers (cached as bf16), final matmul+bias.
# Grid = (batch_tiles, out_col_tiles).
# ---------------------------------------------------------------------------
def mlp_kernel(x_ref,
               w1_ref, b1_ref,
               w2_ref, b2_ref,
               w3_ref, b3_ref,
               w4_ref, b4_ref,
               w5_ref, b5_ref,
               o_ref,
               h4_ref):
    j = pl.program_id(1)

    def hidden_layer(h_bf16, w_ref, b_ref):
        # bf16 x bf16 on the MXU with f32 accumulation; bias + ReLU in f32 on
        # the VPU; single cast back to bf16 so the next layer's operand (and
        # the VMEM intermediate) is half-width.
        y = jnp.dot(h_bf16, w_ref[...], preferred_element_type=jnp.float32)
        y = jnp.maximum(y + b_ref[...], 0.0)
        return y.astype(jnp.bfloat16)

    # Hidden stack runs once per batch tile (first column tile) and is cached.
    @pl.when(j == 0)
    def _():
        h = x_ref[...].astype(jnp.bfloat16)
        h = hidden_layer(h, w1_ref, b1_ref)
        h = hidden_layer(h, w2_ref, b2_ref)
        h = hidden_layer(h, w3_ref, b3_ref)
        h = hidden_layer(h, w4_ref, b4_ref)
        h4_ref[...] = h

    # Final layer: one output-column tile per grid step (w5 streams when big).
    y = jnp.dot(h4_ref[...], w5_ref[...], preferred_element_type=jnp.float32)
    o_ref[...] = (y + b5_ref[...]).astype(o_ref.dtype)


# ---------------------------------------------------------------------------
# Wrapper
# ---------------------------------------------------------------------------
def _pick_batch_tile(b8):
    """Pick a batch tile (multiple of 8) that minimizes padded rows."""
    if b8 <= 256:
        return b8
    best = None  # (tm, padded_rows)
    for tm in (8, 16, 32, 64, 128, 256):
        padded = _round_up(b8, tm)
        if best is None or padded < best[1] or (padded == best[1] and tm > best[0]):
            best = (tm, padded)
    return best[0]


def _resident_spec(shape, index_map):
    """Constant-index (resident) block -> single buffering saves VMEM."""
    try:
        return pl.BlockSpec(shape, index_map, pipeline_mode=pl.Buffered(1))
    except Exception:  # older jax without pipeline_mode support
        return pl.BlockSpec(shape, index_map)


def mlp_generator_forward(x, folded_params, output_shape):
    """x: [B, input_size] float32 -> [B, 1, H, W] float32 (eval-mode forward)."""
    B, in_dim = x.shape
    H, W = output_shape
    n_out = H * W

    (w1, b1, w2, b2, w3, b3, w4, b4, w5, b5) = folded_params
    k5, n_out_pad = w5.shape  # n_out_pad already lane-padded in fold_eval_params

    # ---- batch tiling: pad only to a multiple of 8; choose tm to minimize
    #      padded rows (B<=256 -> a single tile, no megacore split needed).
    b8 = _round_up(max(B, 1), 8)
    tm = _pick_batch_tile(b8)
    b_pad = _round_up(b8, tm)
    if b_pad != B:
        x = jnp.pad(x, ((0, b_pad - B), (0, 0)))
    n_bt = b_pad // tm

    # ---- final-layer column tiling: keep w5 resident while small, stream
    #      512-wide column blocks (double-buffered) once it gets big.
    if n_out_pad <= 2048:
        tn = n_out_pad
    else:
        tn = 512  # fold_eval_params guarantees divisibility
    n_ct = n_out_pad // tn
    grid = (n_bt, n_ct)

    x_spec = pl.BlockSpec((tm, in_dim), lambda i, j: (i, 0))
    out_spec = pl.BlockSpec((tm, tn), lambda i, j: (i, j))

    resident_args = (w1, b1, w2, b2, w3, b3, w4, b4)
    in_specs = [x_spec]
    in_specs += [_resident_spec(a.shape, lambda i, j: (0, 0)) for a in resident_args]
    if n_ct == 1:
        in_specs += [_resident_spec(w5.shape, lambda i, j: (0, 0)),
                     _resident_spec(b5.shape, lambda i, j: (0, 0))]
    else:
        in_specs += [pl.BlockSpec((k5, tn), lambda i, j: (0, j)),
                     pl.BlockSpec((1, tn), lambda i, j: (0, j))]

    # ---- VMEM budget derived from actual shapes (not a fixed limit).
    def nbytes(a):
        return int(a.size) * a.dtype.itemsize

    resident_bytes = sum(nbytes(a) for a in resident_args)
    if n_ct == 1:
        resident_bytes += nbytes(w5) + nbytes(b5)
        streamed_bytes = 0
    else:
        streamed_bytes = 2 * (k5 * tn * 2 + tn * 4)            # double-buffered w5/b5
    io_bytes = 2 * (tm * in_dim * 4) + 2 * (tm * tn * 4)        # x + out buffers
    scratch_bytes = tm * k5 * 2                                 # bf16 h4 cache
    live_f32 = tm * k5 * 4                                      # widest f32 temp
    # 2x resident covers the double-buffer fallback path; + slack for spills.
    vmem_limit = int(1.3 * (2 * resident_bytes + streamed_bytes + io_bytes
                            + scratch_bytes + live_f32)) + (8 << 20)
    vmem_limit = min(vmem_limit, 127 << 20)

    out = pl.pallas_call(
        mlp_kernel,
        out_shape=jax.ShapeDtypeStruct((b_pad, n_out_pad), jnp.float32),
        grid=grid,
        in_specs=in_specs,
        out_specs=out_spec,
        scratch_shapes=[pltpu.VMEM((tm, k5), jnp.bfloat16)],
        compiler_params=pltpu.CompilerParams(
            dimension_semantics=("parallel", "arbitrary"),
            vmem_limit_bytes=vmem_limit,
        ),
    )(x, w1, b1, w2, b2, w3, b3, w4, b4, w5, b5)

    return out[:B, :n_out].reshape(B, 1, H, W)


# ---------------------------------------------------------------------------
# Parameter construction (PyTorch-default-style init) + eval-mode BN folding
# ---------------------------------------------------------------------------
def init_raw_params(key, input_size, output_shape):
    """Returns (linears, bns) mimicking fresh PyTorch modules."""
    H, W = output_shape
    sizes = [input_size, 256, 512, 1024, 2048, H * W]
    linears, bns = [], []
    keys = jax.random.split(key, 2 * (len(sizes) - 1))
    for li in range(len(sizes) - 1):
        fan_in, fan_out = sizes[li], sizes[li + 1]
        bound = 1.0 / math.sqrt(fan_in)
        w = jax.random.uniform(keys[2 * li], (fan_in, fan_out),
                               minval=-bound, maxval=bound, dtype=jnp.float32)
        b = jax.random.uniform(keys[2 * li + 1], (fan_out,),
                               minval=-bound, maxval=bound, dtype=jnp.float32)
        linears.append((w, b))
        if li < len(sizes) - 2:
            gamma = jnp.ones((fan_out,), jnp.float32)
            beta = jnp.zeros((fan_out,), jnp.float32)
            running_mean = jnp.zeros((fan_out,), jnp.float32)
            running_var = jnp.ones((fan_out,), jnp.float32)
            bns.append((gamma, beta, running_mean, running_var))
    return linears, bns


def _pad_final_dim(n_out):
    n_pad = _round_up(n_out, 128)
    if n_pad > 2048:
        n_pad = _round_up(n_out, 512)   # column-tiled final layer: tn = 512
    return n_pad


def fold_eval_params(linears, bns, eps=1e-5, weight_dtype=jnp.bfloat16):
    """Fold eval-mode BN affine (after ReLU) of layer i into linear i+1.

    y_i = relu(z_i) * s_i + t_i  feeding  z_{i+1} = y_i @ W + b  becomes
    z_{i+1} = relu(z_i) @ (s_i[:,None] * W) + (t_i @ W + b)   -- exact.
    Last layer's output features are zero-padded so the final store is
    lane-dense (and divisible by the column tile when tiled).
    """
    folded = []
    s, t = None, None
    n_lin = len(linears)
    for li, (w, b) in enumerate(linears):
        w = w.astype(jnp.float32)
        b = b.astype(jnp.float32)
        if s is not None:
            b = b + t @ w           # uses original (unscaled) w
            w = w * s[:, None]
        if li == n_lin - 1:
            n_out = w.shape[1]
            n_pad = _pad_final_dim(n_out)
            if n_pad != n_out:
                w = jnp.pad(w, ((0, 0), (0, n_pad - n_out)))
                b = jnp.pad(b, ((0, n_pad - n_out),))
        folded.append(w.astype(weight_dtype))
        folded.append(b.reshape(1, -1).astype(jnp.float32))
        if li < len(bns):
            gamma, beta, mean, var = bns[li]
            s = gamma / jnp.sqrt(var + eps)
            t = beta - mean * s
        else:
            s, t = None, None
    return tuple(folded)


def reference_forward(x, linears, bns, output_shape, eps=1e-5):
    """Pure-JAX f32 eval-mode reference (Linear -> ReLU -> BN -> Dropout=id)."""
    h = x.astype(jnp.float32)
    for li, (w, b) in enumerate(linears):
        h = h @ w + b
        if li < len(bns):
            h = jnp.maximum(h, 0.0)
            gamma, beta, mean, var = bns[li]
            h = (h - mean) / jnp.sqrt(var + eps) * gamma + beta
            # Dropout(0.3) is identity in eval mode.
    B = x.shape[0]
    H, W = output_shape
    return h.reshape(B, 1, H, W)


if __name__ == "__main__":
    batch = 2
    input_size = 32          # latent / noise dimension
    output_shape = (8, 8)    # generated image H x W (single channel)

    key = jax.random.PRNGKey(0)
    k_x, k_p = jax.random.split(key)
    x = jax.random.normal(k_x, (batch, input_size), dtype=jnp.float32)

    linears, bns = init_raw_params(k_p, input_size, output_shape)
    folded = fold_eval_params(linears, bns)

    fwd = jax.jit(partial(mlp_generator_forward, output_shape=output_shape))
    out = fwd(x, folded)
    out = jax.block_until_ready(out)

    assert out.shape == (batch, 1, output_shape[0], output_shape[1]), out.shape
    assert out.dtype == jnp.float32
    assert bool(jnp.all(jnp.isfinite(out)))

    # Sanity check vs. the f32 reference (bf16 weights + bf16 intermediate
    # activations -> loose tolerance).
    ref = reference_forward(x, linears, bns, output_shape)
    max_err = float(jnp.max(jnp.abs(out - ref)))
    ref_scale = float(jnp.max(jnp.abs(ref))) + 1.0
    assert max_err < 0.06 * ref_scale, (max_err, ref_scale)

    print("KERNEL_OK")
</pallas_src>

<mosaic_0001>
module attributes {stable_mosaic.version = 11 : i64} {
  func.func @mlp_kernel(%arg0: i32, %arg1: i32, %arg2: memref<8x32xf32, #tpu.memory_space<vmem>>, %arg3: memref<32x256xbf16, #tpu.memory_space<vmem>>, %arg4: memref<1x256xf32, #tpu.memory_space<vmem>>, %arg5: memref<256x512xbf16, #tpu.memory_space<vmem>>, %arg6: memref<1x512xf32, #tpu.memory_space<vmem>>, %arg7: memref<512x1024xbf16, #tpu.memory_space<vmem>>, %arg8: memref<1x1024xf32, #tpu.memory_space<vmem>>, %arg9: memref<1024x2048xbf16, #tpu.memory_space<vmem>>, %arg10: memref<1x2048xf32, #tpu.memory_space<vmem>>, %arg11: memref<2048x128xbf16, #tpu.memory_space<vmem>>, %arg12: memref<1x128xf32, #tpu.memory_space<vmem>>, %arg13: memref<8x128xf32, #tpu.memory_space<vmem>>, %arg14: memref<8x2048xbf16, #tpu.memory_space<vmem>>) attributes {dimension_semantics = [#tpu.dimension_semantics<parallel>, #tpu.dimension_semantics<arbitrary>], iteration_bounds = array<i64: 1, 1>, scalar_prefetch = 0 : i64, scratch_operands = 1 : i64, tpu.core_type = #tpu.core_type<tc>, window_params = [{transform_indices = @transform_0, window_bounds = array<i64: 8, 32>}, {pipeline_mode = #tpu.pipeline_mode<synchronous>, transform_indices = @transform_1, window_bounds = array<i64: 32, 256>}, {pipeline_mode = #tpu.pipeline_mode<synchronous>, transform_indices = @transform_2, window_bounds = array<i64: 1, 256>}, {pipeline_mode = #tpu.pipeline_mode<synchronous>, transform_indices = @transform_3, window_bounds = array<i64: 256, 512>}, {pipeline_mode = #tpu.pipeline_mode<synchronous>, transform_indices = @transform_4, window_bounds = array<i64: 1, 512>}, {pipeline_mode = #tpu.pipeline_mode<synchronous>, transform_indices = @transform_5, window_bounds = array<i64: 512, 1024>}, {pipeline_mode = #tpu.pipeline_mode<synchronous>, transform_indices = @transform_6, window_bounds = array<i64: 1, 1024>}, {pipeline_mode = #tpu.pipeline_mode<synchronous>, transform_indices = @transform_7, window_bounds = array<i64: 1024, 2048>}, {pipeline_mode = #tpu.pipeline_mode<synchronous>, transform_indices = @transform_8, window_bounds = array<i64: 1, 2048>}, {pipeline_mode = #tpu.pipeline_mode<synchronous>, transform_indices = @transform_9, window_bounds = array<i64: 2048, 128>}, {pipeline_mode = #tpu.pipeline_mode<synchronous>, transform_indices = @transform_10, window_bounds = array<i64: 1, 128>}, {transform_indices = @transform_11, window_bounds = array<i64: 8, 128>}]} {
    %c0_i32 = arith.constant 0 : i32
    %0 = arith.cmpi eq, %arg1, %c0_i32 : i32
    %1 = arith.extui %0 : i1 to i32
    %c0_i32_0 = arith.constant 0 : i32
    %2 = arith.cmpi ne, %1, %c0_i32_0 : i32
    scf.if %2 {
      %c0_8 = arith.constant 0 : index
      %c0_9 = arith.constant 0 : index
      %10 = vector.load %arg2[%c0_8, %c0_9] : memref<8x32xf32, #tpu.memory_space<vmem>>, vector<8x32xf32>
      %11 = arith.truncf %10 : vector<8x32xf32> to vector<8x32xbf16>
      %c0_10 = arith.constant 0 : index
      %c0_11 = arith.constant 0 : index
      %12 = vector.load %arg3[%c0_10, %c0_11] : memref<32x256xbf16, #tpu.memory_space<vmem>>, vector<32x256xbf16>
      %cst_12 = arith.constant dense<0.000000e+00> : vector<8x256xf32>
      %13 = tpu.matmul %11, %12, %cst_12 {dimension_numbers = #tpu.dot_dimension_numbers<[1], [0], [0], [1], [0, 0, 1, 1], [], []>} : vector<8x32xbf16>, vector<32x256xbf16>, vector<8x256xf32> -> vector<8x256xf32>
      %c0_13 = arith.constant 0 : index
      %c0_14 = arith.constant 0 : index
      %14 = vector.load %arg4[%c0_13, %c0_14] : memref<1x256xf32, #tpu.memory_space<vmem>>, vector<1x256xf32>
      %15 = vector.broadcast %14 : vector<1x256xf32> to vector<8x256xf32>
      %16 = arith.addf %13, %15 : vector<8x256xf32>
      %cst_15 = arith.constant 0.000000e+00 : f32
      %17 = vector.broadcast %cst_15 : f32 to vector<8x256xf32>
      %18 = arith.maximumf %16, %17 : vector<8x256xf32>
      %19 = arith.truncf %18 : vector<8x256xf32> to vector<8x256xbf16>
      %c0_16 = arith.constant 0 : index
      %c0_17 = arith.constant 0 : index
      %20 = vector.load %arg5[%c0_16, %c0_17] : memref<256x512xbf16, #tpu.memory_space<vmem>>, vector<256x512xbf16>
      %cst_18 = arith.constant dense<0.000000e+00> : vector<8x512xf32>
      %21 = tpu.matmul %19, %20, %cst_18 {dimension_numbers = #tpu.dot_dimension_numbers<[1], [0], [0], [1], [0, 0, 1, 1], [], []>} : vector<8x256xbf16>, vector<256x512xbf16>, vector<8x512xf32> -> vector<8x512xf32>
      %c0_19 = arith.constant 0 : index
      %c0_20 = arith.constant 0 : index
      %22 = vector.load %arg6[%c0_19, %c0_20] : memref<1x512xf32, #tpu.memory_space<vmem>>, vector<1x512xf32>
      %23 = vector.broadcast %22 : vector<1x512xf32> to vector<8x512xf32>
      %24 = arith.addf %21, %23 : vector<8x512xf32>
      %cst_21 = arith.constant 0.000000e+00 : f32
      %25 = vector.broadcast %cst_21 : f32 to vector<8x512xf32>
      %26 = arith.maximumf %24, %25 : vector<8x512xf32>
      %27 = arith.truncf %26 : vector<8x512xf32> to vector<8x512xbf16>
      %c0_22 = arith.constant 0 : index
      %c0_23 = arith.constant 0 : index
      %28 = vector.load %arg7[%c0_22, %c0_23] : memref<512x1024xbf16, #tpu.memory_space<vmem>>, vector<512x1024xbf16>
      %cst_24 = arith.constant dense<0.000000e+00> : vector<8x1024xf32>
      %29 = tpu.matmul %27, %28, %cst_24 {dimension_numbers = #tpu.dot_dimension_numbers<[1], [0], [0], [1], [0, 0, 1, 1], [], []>} : vector<8x512xbf16>, vector<512x1024xbf16>, vector<8x1024xf32> -> vector<8x1024xf32>
      %c0_25 = arith.constant 0 : index
      %c0_26 = arith.constant 0 : index
      %30 = vector.load %arg8[%c0_25, %c0_26] : memref<1x1024xf32, #tpu.memory_space<vmem>>, vector<1x1024xf32>
      %31 = vector.broadcast %30 : vector<1x1024xf32> to vector<8x1024xf32>
      %32 = arith.addf %29, %31 : vector<8x1024xf32>
      %cst_27 = arith.constant 0.000000e+00 : f32
      %33 = vector.broadcast %cst_27 : f32 to vector<8x1024xf32>
      %34 = arith.maximumf %32, %33 : vector<8x1024xf32>
      %35 = arith.truncf %34 : vector<8x1024xf32> to vector<8x1024xbf16>
      %c0_28 = arith.constant 0 : index
      %c0_29 = arith.constant 0 : index
      %36 = vector.load %arg9[%c0_28, %c0_29] : memref<1024x2048xbf16, #tpu.memory_space<vmem>>, vector<1024x2048xbf16>
      %cst_30 = arith.constant dense<0.000000e+00> : vector<8x2048xf32>
      %37 = tpu.matmul %35, %36, %cst_30 {dimension_numbers = #tpu.dot_dimension_numbers<[1], [0], [0], [1], [0, 0, 1, 1], [], []>} : vector<8x1024xbf16>, vector<1024x2048xbf16>, vector<8x2048xf32> -> vector<8x2048xf32>
      %c0_31 = arith.constant 0 : index
      %c0_32 = arith.constant 0 : index
      %38 = vector.load %arg10[%c0_31, %c0_32] : memref<1x2048xf32, #tpu.memory_space<vmem>>, vector<1x2048xf32>
      %39 = vector.broadcast %38 : vector<1x2048xf32> to vector<8x2048xf32>
      %40 = arith.addf %37, %39 : vector<8x2048xf32>
      %cst_33 = arith.constant 0.000000e+00 : f32
      %41 = vector.broadcast %cst_33 : f32 to vector<8x2048xf32>
      %42 = arith.maximumf %40, %41 : vector<8x2048xf32>
      %43 = arith.truncf %42 : vector<8x2048xf32> to vector<8x2048xbf16>
      %c0_34 = arith.constant 0 : index
      %c0_35 = arith.constant 0 : index
      %44 = vector.load %arg14[%c0_34, %c0_35] : memref<8x2048xbf16, #tpu.memory_space<vmem>>, vector<8x2048xbf16>
      tpu.vector_store %arg14[%c0_34, %c0_35], %43 {strides = array<i32>} : memref<8x2048xbf16, #tpu.memory_space<vmem>>, vector<8x2048xbf16>,
    } else {
    }
    %c0 = arith.constant 0 : index
    %c0_1 = arith.constant 0 : index
    %3 = vector.load %arg14[%c0, %c0_1] : memref<8x2048xbf16, #tpu.memory_space<vmem>>, vector<8x2048xbf16>
    %c0_2 = arith.constant 0 : index
    %c0_3 = arith.constant 0 : index
    %4 = vector.load %arg11[%c0_2, %c0_3] : memref<2048x128xbf16, #tpu.memory_space<vmem>>, vector<2048x128xbf16>
    %cst = arith.constant dense<0.000000e+00> : vector<8x128xf32>
    %5 = tpu.matmul %3, %4, %cst {dimension_numbers = #tpu.dot_dimension_numbers<[1], [0], [0], [1], [0, 0, 1, 1], [], []>} : vector<8x2048xbf16>, vector<2048x128xbf16>, vector<8x128xf32> -> vector<8x128xf32>
    %c0_4 = arith.constant 0 : index
    %c0_5 = arith.constant 0 : index
    %6 = vector.load %arg12[%c0_4, %c0_5] : memref<1x128xf32, #tpu.memory_space<vmem>>, vector<1x128xf32>
    %7 = vector.broadcast %6 : vector<1x128xf32> to vector<8x128xf32>
    %8 = arith.addf %5, %7 : vector<8x128xf32>
    %c0_6 = arith.constant 0 : index
    %c0_7 = arith.constant 0 : index
    %9 = vector.load %arg13[%c0_6, %c0_7] : memref<8x128xf32, #tpu.memory_space<vmem>>, vector<8x128xf32>
    tpu.vector_store %arg13[%c0_6, %c0_7], %8 {strides = array<i32>} : memref<8x128xf32, #tpu.memory_space<vmem>>, vector<8x128xf32>,
    return
  }
  func.func @transform_0(%arg0: i32, %arg1: i32) -> (i32, i32) {
    %c0_i32 = arith.constant 0 : i32
    %c0_i32_0 = arith.constant 0 : i32
    return %arg0, %c0_i32 : i32, i32
  }
  func.func @transform_1(%arg0: i32, %arg1: i32) -> (i32, i32) {
    %c0_i32 = arith.constant 0 : i32
    %c0_i32_0 = arith.constant 0 : i32
    %c0_i32_1 = arith.constant 0 : i32
    return %c0_i32, %c0_i32_0 : i32, i32
  }
  func.func @transform_2(%arg0: i32, %arg1: i32) -> (i32, i32) {
    %c0_i32 = arith.constant 0 : i32
    %c0_i32_0 = arith.constant 0 : i32
    %c0_i32_1 = arith.constant 0 : i32
    return %c0_i32, %c0_i32_0 : i32, i32
  }
  func.func @transform_3(%arg0: i32, %arg1: i32) -> (i32, i32) {
    %c0_i32 = arith.constant 0 : i32
    %c0_i32_0 = arith.constant 0 : i32
    %c0_i32_1 = arith.constant 0 : i32
    return %c0_i32, %c0_i32_0 : i32, i32
  }
  func.func @transform_4(%arg0: i32, %arg1: i32) -> (i32, i32) {
    %c0_i32 = arith.constant 0 : i32
    %c0_i32_0 = arith.constant 0 : i32
    %c0_i32_1 = arith.constant 0 : i32
    return %c0_i32, %c0_i32_0 : i32, i32
  }
  func.func @transform_5(%arg0: i32, %arg1: i32) -> (i32, i32) {
    %c0_i32 = arith.constant 0 : i32
    %c0_i32_0 = arith.constant 0 : i32
    %c0_i32_1 = arith.constant 0 : i32
    return %c0_i32, %c0_i32_0 : i32, i32
  }
  func.func @transform_6(%arg0: i32, %arg1: i32) -> (i32, i32) {
    %c0_i32 = arith.constant 0 : i32
    %c0_i32_0 = arith.constant 0 : i32
    %c0_i32_1 = arith.constant 0 : i32
    return %c0_i32, %c0_i32_0 : i32, i32
  }
  func.func @transform_7(%arg0: i32, %arg1: i32) -> (i32, i32) {
    %c0_i32 = arith.constant 0 : i32
    %c0_i32_0 = arith.constant 0 : i32
    %c0_i32_1 = arith.constant 0 : i32
    return %c0_i32, %c0_i32_0 : i32, i32
  }
  func.func @transform_8(%arg0: i32, %arg1: i32) -> (i32, i32) {
    %c0_i32 = arith.constant 0 : i32
    %c0_i32_0 = arith.constant 0 : i32
    %c0_i32_1 = arith.constant 0 : i32
    return %c0_i32, %c0_i32_0 : i32, i32
  }
  func.func @transform_9(%arg0: i32, %arg1: i32) -> (i32, i32) {
    %c0_i32 = arith.constant 0 : i32
    %c0_i32_0 = arith.constant 0 : i32
    %c0_i32_1 = arith.constant 0 : i32
    return %c0_i32, %c0_i32_0 : i32, i32
  }
  func.func @transform_10(%arg0: i32, %arg1: i32) -> (i32, i32) {
    %c0_i32 = arith.constant 0 : i32
    %c0_i32_0 = arith.constant 0 : i32
    %c0_i32_1 = arith.constant 0 : i32
    return %c0_i32, %c0_i32_0 : i32, i32
  }
  func.func @transform_11(%arg0: i32, %arg1: i32) -> (i32, i32) {
    %c0_i32 = arith.constant 0 : i32
    return %arg0, %arg1 : i32, i32
  }
}

</mosaic_0001>

<bundles_post_ra>
// kernel: mlp_generator_forward.1
= control target key start
LH: loop header
LB: loop body
LE: loop exit
PB: predicated region body
PF: predicated region fallthrough
CT: control target
= control target key end

     0   :  { %16 = vsyncpa [#allocation4], 0  ;;  %s20283_s0 = inlined_call_operand.vmem [shape: f32[8,32], index: 0, kind: input, shape index: {}]   ;;  %s20284_s1 = inlined_call_operand.hbm [shape: bf16[32,256], index: 1, kind: input, shape index: {}]   ;;  %s20285_s2 = inlined_call_operand.hbm [shape: f32[1,256], index: 2, kind: input, shape index: {}]   ;;  %s20286_s3 = inlined_call_operand.hbm [shape: bf16[256,512], index: 3, kind: input, shape index: {}]   ;;  %s20287_s4 = inlined_call_operand.hbm [shape: f32[1,512], index: 4, kind: input, shape index: {}]   ;;  %s20288_s5 = inlined_call_operand.hbm [shape: bf16[512,1024], index: 5, kind: input, shape index: {}]   ;;  %s20289_s6 = inlined_call_operand.hbm [shape: f32[1,1024], index: 6, kind: input, shape index: {}]   ;;  %s20290_s7 = inlined_call_operand.hbm [shape: bf16[1024,2048], index: 7, kind: input, shape index: {}]   ;;  %s20291_s8 = inlined_call_operand.hbm [shape: f32[1,2048], index: 8, kind: input, shape index: {}]   ;;  %s20292_s9 = inlined_call_operand.hbm [shape: bf16[2048,128], index: 9, kind: input, shape index: {}]   ;;  %s20293_s10 = inlined_call_operand.hbm [shape: f32[1,128], index: 10, kind: input, shape index: {}]   ;;  %s20294_s11 = inlined_call_operand.vmem [shape: f32[8,128], index: 11, kind: output, shape index: {}]  }
   0x1   :  { %17 = vsyncpa [#allocation6], 0 }
   0x2   :  { %18 = vsyncpa [#allocation9], 0 }
   0x3   :  { %19 = vsyncpa [#allocation12], 0 }
   0x4   :  { %20 = vsyncpa [#allocation15], 0  ;;  %s42_s19 = sshll.u32 %s20285_s2, 4  ;;  %s43_s19 = int_to_ptr.hbm [resolvable:$true] %s42_s19 }
   0x5   :  { %21 = vsyncpa [#allocation18], 0  ;;  %s19595_s20 = smov [#allocation5]   ;;  %s66_s24 = sshll.u32 %s20287_s4, 4  ;;  %s67_s24 = int_to_ptr.hbm [resolvable:$true] %s66_s24 }
   0x6   :  { %s44_s21 = sshll.u32 %s19595_s20, 4  ;;  %s19596_s25 = smov [#allocation8]   ;;  %s45_s21 = int_to_ptr.vmem [resolvable:$true] %s44_s21 }
   0x7   :  { %47 = dma.hbm_to_vmem [thread:$0]  %s43_s19, 32, %s45_s21, [#allocation6]  }
   0x8   :  { %s68_s26 = sshll.u32 %s19596_s25, 4  ;;  %s90_s29 = sshll.u32 %s20289_s6, 4  ;;  %s69_s26 = int_to_ptr.vmem [resolvable:$true] %s68_s26  ;;  %s91_s29 = int_to_ptr.hbm [resolvable:$true] %s90_s29 }
   0x9   :  { %71 = dma.hbm_to_vmem [thread:$0]  %s67_s24, 64, %s69_s26, [#allocation9]  }
   0xa   :  { %s114_s12 = sshll.u32 %s20291_s8, 4  ;;  %s19597_s13 = smov [#allocation11]   ;;  %s115_s12 = int_to_ptr.hbm [resolvable:$true] %s114_s12 }
   0xb   :  { %s92_s14 = sshll.u32 %s19597_s13, 4  ;;  %s19598_s4 = smov [#allocation14]   ;;  %s93_s14 = int_to_ptr.vmem [resolvable:$true] %s92_s14 }
   0xc   :  { %95 = dma.hbm_to_vmem [thread:$0]  %s91_s29, 128, %s93_s14, [#allocation12]  }
   0xd   :  { %s116_s15 = sshll.u32 %s19598_s4, 4  ;;  %s28_s18 = sshll.u32 %s20284_s1, 4  ;;  %s117_s15 = int_to_ptr.vmem [resolvable:$true] %s116_s15  ;;  %s29_s18 = int_to_ptr.hbm [resolvable:$true] %s28_s18 }
   0xe   :  { %119 = dma.hbm_to_vmem [thread:$0]  %s115_s12, 256, %s117_s15, [#allocation15]  }
   0xf   :  { %s19599_s6 = smov [#allocation3]   ;;  %s52_s8 = sshll.u32 %s20286_s3, 4  ;;  %s53_s8 = int_to_ptr.hbm [resolvable:$true] %s52_s8 }
  0x10   :  { %s30_s19 = sshll.u32 %s19599_s6, 4  ;;  %s19600_s22 = smov 128   ;;  %s31_s19 = int_to_ptr.vmem [resolvable:$true] %s30_s19 }
  0x11   :  { %s19601_s23 = smov 8   ;;  %s19602_s24 = smov [#allocation7]  }
  0x12   :  { %36 = dma.hbm_to_vmem [thread:$0]  %s29_s18, 512, %s31_s19, [#allocation4], %s19600_s22, %s19600_s22, %s19601_s23  }
  0x13   :  { %s54_s25 = sshll.u32 %s19602_s24, 4  ;;  %s19603_s26 = smov 256   ;;  %s55_s25 = int_to_ptr.vmem [resolvable:$true] %s54_s25 }
  0x14   :  { %s19604_s27 = smov 16   ;;  %s76_s29 = sshll.u32 %s20288_s5, 4  ;;  %s77_s29 = int_to_ptr.hbm [resolvable:$true] %s76_s29 }
  0x15   :  { %60 = dma.hbm_to_vmem [thread:$0]  %s53_s8, 8192, %s55_s25, [#allocation6], %s19603_s26, %s19603_s26, %s19604_s27  }
  0x16   :  { %s19605_s2 = smov [#allocation10]   ;;  %s100_s13 = sshll.u32 %s20290_s7, 4  ;;  %s101_s13 = int_to_ptr.hbm [resolvable:$true] %s100_s13 }
  0x17   :  { %s78_s30 = sshll.u32 %s19605_s2, 4  ;;  %s19606_s14 = smov 512   ;;  %s79_s30 = int_to_ptr.vmem [resolvable:$true] %s78_s30 }
  0x18   :  { %s19607_s4 = smov 32   ;;  %s19608_s15 = smov [#allocation13]  }
  0x19   :  { %84 = dma.hbm_to_vmem [thread:$0]  %s77_s29, 32768, %s79_s30, [#allocation9], %s19606_s14, %s19606_s14, %s19607_s4  }
  0x1a   :  { %s102_s16 = sshll.u32 %s19608_s15, 4  ;;  %s19609_s17 = smov 1024   ;;  %s103_s16 = int_to_ptr.vmem [resolvable:$true] %s102_s16 }
  0x1b   :  { %s19610_s18 = smov 64   ;;  %s124_s19 = sshll.u32 %s20292_s9, 4  ;;  %s125_s19 = int_to_ptr.hbm [resolvable:$true] %s124_s19 }
  0x1c   :  { %108 = dma.hbm_to_vmem [thread:$0]  %s101_s13, 131072, %s103_s16, [#allocation12], %s19609_s17, %s19609_s17, %s19610_s18  }
  0x1d   :  { %s19611_s20 = smov [#allocation16]   ;;  %s19612_s8 = smov 4  }
  0x1e   :  { %s126_s21 = sshll.u32 %s19611_s20, 4  ;;  %s138_s23 = sshll.u32 %s20293_s10, 4  ;;  %s127_s21 = int_to_ptr.vmem [resolvable:$true] %s126_s21  ;;  %s139_s23 = int_to_ptr.hbm [resolvable:$true] %s138_s23 }
  0x1f   :  { %132 = dma.hbm_to_vmem [thread:$0]  %s125_s19, 16384, %s127_s21, [#allocation15], %s19610_s18, %s19610_s18, %s19612_s8  }
  0x20   :  { %s19613_s24 = smov [#allocation17]  }
  0x21   :  { %s140_s25 = sshll.u32 %s19613_s24, 4  ;;  %s141_s25 = int_to_ptr.vmem [resolvable:$true] %s140_s25 }
  0x22   :  { %143 = dma.hbm_to_vmem [thread:$0]  %s139_s23, 16, %s141_s25, [#allocation18]  }
  0x23   :  { %19583 = dma.done.wait [#allocation4], 512  }
  0x24   :  { %19584 = vsyncadd [#allocation4], 4294966784 }
  0x25   :  { %19585 = dma.done.wait [#allocation6], 8224  }
  0x26   :  { %19586 = vsyncadd [#allocation6], 4294959072 }
  0x27   :  { %19587 = dma.done.wait [#allocation9], 32832  }
  0x28   :  { %19588 = vsyncadd [#allocation9], 4294934464 }
  0x29   :  { %19589 = dma.done.wait [#allocation12], 131200  }
  0x2a   :  { %19590 = vsyncadd [#allocation12], 4294836096 }
  0x2b   :  { %19591 = dma.done.wait [#allocation15], 16640  }
  0x2c   :  { %19592 = vsyncadd [#allocation15], 4294950656 }
  0x2d   :  { %19593 = dma.done.wait [#allocation18], 16  }
  0x2e   :  { %19594 = vsyncadd [#allocation18], 4294967280  ;;  %v11944_v0 = vld [vmem:[#allocation3 + $0x10] sm:$0xf]  ;;  %v17843_v1 = vld [vmem:[#allocation3 + $0x14] sm:$0xf0] }
  0x2f   :  { %v17842_v2 = vld [vmem:[#allocation3 + $0x14] sm:$0xf]  ;;  %v11945_v3 = vor.u32 %v17843_v1, %v11944_v0  ;;  %v11946_v4 = vld [vmem:[#allocation3 + $0x18] sm:$0xf0]  ;;  %v11936_v5 = vld [vmem:[#allocation3] sm:$0xf] }
  0x30   :  { %v17841_v6 = vld [vmem:[#allocation3 + $0x4] sm:$0xf0]  ;;  %v11949_v7 = vor.u32 %v17842_v2, %v11946_v4  ;;  %v17840_v8 = vld [vmem:[#allocation3 + $0x4] sm:$0xf]  ;;  %v11938_v9 = vld [vmem:[#allocation3 + $0x8] sm:$0xf0] }
  0x31   :  { %v189_v10 = vld [vmem:[%s20283_s0] sm:$0xff]  ;;  %vm221_vm0 = vcmask 261120   ;;  %231 = vmatpush.bf16.msra.mxu0 %v11945_v3  ;;  %v11937_v11 = vor.u32 %v17841_v6, %v11936_v5  ;;  %v17874_v13 = vld [vmem:[#allocation7 + $0xec] sm:$0xf0]  ;;  %v11941_v15 = vor.u32 %v17840_v8, %v11938_v9  ;;  %v12068_v19 = vld [vmem:[#allocation7 + $0xf0] sm:$0xf0] }
  0x32   :  { %v12066_v12 = vld [vmem:[#allocation7 + $0xe0] sm:$0xf]  ;;  %244 = vmatpush.bf16.msra.mxu1 %v11949_v7  ;;  %v17906_v17 = vld [vmem:[#allocation7 + $0x1ec] sm:$0xf0]  ;;  %v17872_v18 = vld [vmem:[#allocation7 + $0xe4] sm:$0xf]  ;;  %v190_v25 = vpack.c.bf16 %v189_v10, %v189_v10 }
  0x33   :  { %v12194_v14 = vld [vmem:[#allocation7 + $0x1e0] sm:$0xf]  ;;  %v12067_v16 = vor.u32 %v17874_v13, %v12066_v12  ;;  %v12071_v21 = vor.u32 %v17872_v18, %v12068_v19  ;;  %v17904_v22 = vld [vmem:[#allocation7 + $0x1e4] sm:$0xf]  ;;  %v12196_v23 = vld [vmem:[#allocation7 + $0x1f0] sm:$0xf0] }
  0x34   :  { %v12195_v20 = vor.u32 %v17906_v17, %v12194_v14  ;;  %v12050_v24 = vld [vmem:[#allocation7 + $0xc0] sm:$0xf]  ;;  %v12199_v26 = vor.u32 %v17904_v22, %v12196_v23  ;;  %v17870_v27 = vld [vmem:[#allocation7 + $0xcc] sm:$0xf0]  ;;  %v17868_v32 = vld [vmem:[#allocation7 + $0xc4] sm:$0xf] }
  0x35   :  { %649 = vmatpush.bf16.msra.mxu2 %v12067_v16  ;;  %v12178_v28 = vld [vmem:[#allocation7 + $0x1c0] sm:$0xf]  ;;  %v17902_v29 = vld [vmem:[#allocation7 + $0x1cc] sm:$0xf0]  ;;  %232 = vmatpush.bf16.msra.mxu0 %v11937_v11  ;;  %v12051_v30 = vor.u32 %v17870_v27, %v12050_v24  ;;  %v12052_v33 = vld [vmem:[#allocation7 + $0xd0] sm:$0xf0] }
  0x36   :  { %662 = vmatpush.bf16.msra.mxu3 %v12195_v20  ;;  %v12179_v31 = vor.u32 %v17902_v29, %v12178_v28  ;;  %v17900_v34 = vld [vmem:[#allocation7 + $0x1c4] sm:$0xf]  ;;  %245 = vmatpush.bf16.msra.mxu1 %v11941_v15  ;;  %v12055_v35 = vor.u32 %v17868_v32, %v12052_v33  ;;  %v12180_v36 = vld [vmem:[#allocation7 + $0x1d0] sm:$0xf0]  ;;  %v12034_v37 = vld [vmem:[#allocation7 + $0xa0] sm:$0xf] }
  0x37   :  { %v17866_v38 = vld [vmem:[#allocation7 + $0xac] sm:$0xf0]  ;;  %v12183_v39 = vor.u32 %v17900_v34, %v12180_v36  ;;  %v12162_v40 = vld [vmem:[#allocation7 + $0x1a0] sm:$0xf]  ;;  %v17864_v42 = vld [vmem:[#allocation7 + $0xa4] sm:$0xf] }
  0x38   :  { %v17898_v41 = vld [vmem:[#allocation7 + $0x1ac] sm:$0xf0]  ;;  %11950 = vmatmul.msk.bf16.vlgmr.msra.gmra.mxu0 %vm221_vm0, %v190_v25  ;;  %v12035_v43 = vor.u32 %v17866_v38, %v12034_v37  ;;  %v12036_v44 = vld [vmem:[#allocation7 + $0xb0] sm:$0xf0]  ;;  %v17896_v45 = vld [vmem:[#allocation7 + $0x1a4] sm:$0xf] }
  0x39   :  { %675 = vmatpush.bf16.msrb.mxu0 %v12071_v21  ;;  %650 = vmatpush.bf16.msra.mxu2 %v12051_v30  ;;  %v12164_v46 = vld [vmem:[#allocation7 + $0x1b0] sm:$0xf0]  ;;  %v12163_v47 = vor.u32 %v17898_v41, %v12162_v40  ;;  %v12018_v48 = vld [vmem:[#allocation7 + $0x80] sm:$0xf]  ;;  %v17862_v49 = vld [vmem:[#allocation7 + $0x8c] sm:$0xf0]  ;;  %v12039_v50 = vor.u32 %v17864_v42, %v12036_v44 }
  0x3a   :  { %688 = vmatpush.bf16.msrb.mxu1 %v12199_v26  ;;  %663 = vmatpush.bf16.msra.mxu3 %v12179_v31  ;;  %v12146_v51 = vld [vmem:[#allocation7 + $0x180] sm:$0xf]  ;;  %v17894_v52 = vld [vmem:[#allocation7 + $0x18c] sm:$0xf0]  ;;  %v12167_v53 = vor.u32 %v17896_v45, %v12164_v46  ;;  %v17860_v54 = vld [vmem:[#allocation7 + $0x84] sm:$0xf]  ;;  %v12019_v56 = vor.u32 %v17862_v49, %v12018_v48 }
  0x3b   :  { %11951 = vmatmul.msk.bf16.vlgmr.msra.gmra.mxu1 %vm221_vm0, %v190_v25  ;;  %v12020_v55 = vld [vmem:[#allocation7 + $0x90] sm:$0xf0]  ;;  %v17892_v57 = vld [vmem:[#allocation7 + $0x184] sm:$0xf]  ;;  %v12147_v59 = vor.u32 %v17894_v52, %v12146_v51  ;;  %v12002_v60 = vld [vmem:[#allocation7 + $0x60] sm:$0xf] }
  0x3c   :  { %v12148_v58 = vld [vmem:[#allocation7 + $0x190] sm:$0xf0]  ;;  %v17858_v61 = vld [vmem:[#allocation7 + $0x6c] sm:$0xf0]  ;;  %v12023_v62 = vor.u32 %v17860_v54, %v12020_v55  ;;  %v12130_v63 = vld [vmem:[#allocation7 + $0x160] sm:$0xf] }
  0x3d   :  { %676 = vmatpush.bf16.msrb.mxu0 %v12055_v35  ;;  %651 = vmatpush.bf16.msra.mxu2 %v12035_v43  ;;  %v17890_v0 = vld [vmem:[#allocation7 + $0x16c] sm:$0xf0]  ;;  %v12151_v1 = vor.u32 %v17892_v57, %v12148_v58  ;;  %v17856_v2 = vld [vmem:[#allocation7 + $0x64] sm:$0xf]  ;;  %v12004_v3 = vld [vmem:[#allocation7 + $0x70] sm:$0xf0]  ;;  %v12003_v4 = vor.u32 %v17858_v61, %v12002_v60 }
  0x3e   :  { %689 = vmatpush.bf16.msrb.mxu1 %v12183_v39  ;;  %664 = vmatpush.bf16.msra.mxu3 %v12163_v47  ;;  %v17888_v5 = vld [vmem:[#allocation7 + $0x164] sm:$0xf]  ;;  %v12132_v6 = vld [vmem:[#allocation7 + $0x170] sm:$0xf0]  ;;  %v12131_v7 = vor.u32 %v17890_v0, %v12130_v63  ;;  %v11986_v8 = vld [vmem:[#allocation7 + $0x40] sm:$0xf]  ;;  %v12007_v10 = vor.u32 %v17856_v2, %v12004_v3 }
  0x3f   :  { %v17854_v9 = vld [vmem:[#allocation7 + $0x4c] sm:$0xf0]  ;;  %v12114_v11 = vld [vmem:[#allocation7 + $0x140] sm:$0xf]  ;;  %v12135_v13 = vor.u32 %v17888_v5, %v12132_v6  ;;  %v17852_v14 = vld [vmem:[#allocation7 + $0x44] sm:$0xf] }
  0x40   :  { %v17886_v12 = vld [vmem:[#allocation7 + $0x14c] sm:$0xf0]  ;;  %v11988_v15 = vld [vmem:[#allocation7 + $0x50] sm:$0xf0]  ;;  %v11987_v16 = vor.u32 %v17854_v9, %v11986_v8  ;;  %v17884_v17 = vld [vmem:[#allocation7 + $0x144] sm:$0xf] }
  0x41   :  { %677 = vmatpush.bf16.msrb.mxu0 %v12039_v50  ;;  %652 = vmatpush.bf16.msra.mxu2 %v12019_v56  ;;  %v12116_v18 = vld [vmem:[#allocation7 + $0x150] sm:$0xf0]  ;;  %v12115_v19 = vor.u32 %v17886_v12, %v12114_v11  ;;  %v11970_v20 = vld [vmem:[#allocation7 + $0x20] sm:$0xf]  ;;  %v17850_v21 = vld [vmem:[#allocation7 + $0x2c] sm:$0xf0]  ;;  %v11991_v22 = vor.u32 %v17852_v14, %v11988_v15 }
  0x42   :  { %690 = vmatpush.bf16.msrb.mxu1 %v12167_v53  ;;  %665 = vmatpush.bf16.msra.mxu3 %v12147_v59  ;;  %v12098_v23 = vld [vmem:[#allocation7 + $0x120] sm:$0xf]  ;;  %v17882_v24 = vld [vmem:[#allocation7 + $0x12c] sm:$0xf0]  ;;  %v17848_v25 = vld [vmem:[#allocation7 + $0x24] sm:$0xf]  ;;  %v12119_v26 = vor.u32 %v17884_v17, %v12116_v18  ;;  %v11971_v30 = vor.u32 %v17850_v21, %v11970_v20 }
  0x43   :  { %v11972_v27 = vld [vmem:[#allocation7 + $0x30] sm:$0xf0]  ;;  %v17880_v28 = vld [vmem:[#allocation7 + $0x124] sm:$0xf]  ;;  %v11954_v31 = vld [vmem:[#allocation7] sm:$0xf]  ;;  %v12099_v34 = vor.u32 %v17882_v24, %v12098_v23 }
  0x44   :  { %v12100_v29 = vld [vmem:[#allocation7 + $0x130] sm:$0xf0]  ;;  %v17846_v32 = vld [vmem:[#allocation7 + $0xc] sm:$0xf0]  ;;  %v12082_v33 = vld [vmem:[#allocation7 + $0x100] sm:$0xf]  ;;  %v11975_v38 = vor.u32 %v17848_v25, %v11972_v27 }
  0x45   :  { %678 = vmatpush.bf16.msrb.mxu0 %v12023_v62  ;;  %653 = vmatpush.bf16.msra.mxu2 %v12003_v4  ;;  %v17878_v35 = vld [vmem:[#allocation7 + $0x10c] sm:$0xf0]  ;;  %v17844_v36 = vld [vmem:[#allocation7 + $0x4] sm:$0xf]  ;;  %v11956_v37 = vld [vmem:[#allocation7 + $0x10] sm:$0xf0]  ;;  %v12103_v42 = vor.u32 %v17880_v28, %v12100_v29  ;;  %v11955_v46 = vor.u32 %v17846_v32, %v11954_v31 }
  0x46   :  { %691 = vmatpush.bf16.msrb.mxu1 %v12151_v1  ;;  %666 = vmatpush.bf16.msra.mxu3 %v12131_v7  ;;  %v17876_v39 = vld [vmem:[#allocation7 + $0x104] sm:$0xf]  ;;  %v12074_v40 = vld [vmem:[#allocation7 + $0xe8] sm:$0xf]  ;;  %v17875_v41 = vld [vmem:[#allocation7 + $0xf4] sm:$0xf0]  ;;  %v12083_v49 = vor.u32 %v17878_v35, %v12082_v33  ;;  %v11959_v53 = vor.u32 %v17844_v36, %v11956_v37 }
  0x47   :  { %v12084_v43 = vld [vmem:[#allocation7 + $0x110] sm:$0xf0]  ;;  %v12202_v44 = vld [vmem:[#allocation7 + $0x1e8] sm:$0xf]  ;;  %v17907_v45 = vld [vmem:[#allocation7 + $0x1f4] sm:$0xf0]  ;;  %v12075_v50 = vor.u32 %v17875_v41, %v12074_v40 }
  0x48   :  { %v17873_v47 = vld [vmem:[#allocation7 + $0xec] sm:$0xf]  ;;  %v12076_v48 = vld [vmem:[#allocation7 + $0xf8] sm:$0xf0]  ;;  %v12203_v54 = vor.u32 %v17907_v45, %v12202_v44  ;;  %v12058_v55 = vld [vmem:[#allocation7 + $0xc8] sm:$0xf]  ;;  %v12087_v57 = vor.u32 %v17876_v39, %v12084_v43 }
  0x49   :  { %679 = vmatpush.bf16.msrb.mxu0 %v12007_v10  ;;  %654 = vmatpush.bf16.msra.mxu2 %v11987_v16  ;;  %v17905_v51 = vld [vmem:[#allocation7 + $0x1ec] sm:$0xf]  ;;  %v12204_v52 = vld [vmem:[#allocation7 + $0x1f8] sm:$0xf0]  ;;  %v17871_v56 = vld [vmem:[#allocation7 + $0xd4] sm:$0xf0]  ;;  %v12079_v58 = vor.u32 %v17873_v47, %v12076_v48 }
  0x4a   :  { %692 = vmatpush.bf16.msrb.mxu1 %v12135_v13  ;;  %667 = vmatpush.bf16.msra.mxu3 %v12115_v19  ;;  %v12186_v59 = vld [vmem:[#allocation7 + $0x1c8] sm:$0xf]  ;;  %v17903_v60 = vld [vmem:[#allocation7 + $0x1d4] sm:$0xf0]  ;;  %v12207_v61 = vor.u32 %v17905_v51, %v12204_v52  ;;  %v17869_v62 = vld [vmem:[#allocation7 + $0xcc] sm:$0xf]  ;;  %v12059_v0 = vor.u32 %v17871_v56, %v12058_v55 }
  0x4b   :  { %v12060_v63 = vld [vmem:[#allocation7 + $0xd8] sm:$0xf0]  ;;  %v17901_v1 = vld [vmem:[#allocation7 + $0x1cc] sm:$0xf]  ;;  %v12187_v3 = vor.u32 %v17903_v60, %v12186_v59  ;;  %v12042_v6 = vld [vmem:[#allocation7 + $0xa8] sm:$0xf] }
  0x4c   :  { %v12188_v2 = vld [vmem:[#allocation7 + $0x1d8] sm:$0xf0]  ;;  %v12063_v4 = vor.u32 %v17869_v62, %v12060_v63  ;;  %v17867_v7 = vld [vmem:[#allocation7 + $0xb4] sm:$0xf0]  ;;  %v12170_v8 = vld [vmem:[#allocation7 + $0x1a8] sm:$0xf] }
  0x4d   :  { %680 = vmatpush.bf16.msrb.mxu0 %v11991_v22  ;;  %655 = vmatpush.bf16.msra.mxu2 %v11971_v30  ;;  %v12191_v5 = vor.u32 %v17901_v1, %v12188_v2  ;;  %v12043_v9 = vor.u32 %v17867_v7, %v12042_v6  ;;  %v17899_v10 = vld [vmem:[#allocation7 + $0x1b4] sm:$0xf0]  ;;  %v17865_v11 = vld [vmem:[#allocation7 + $0xac] sm:$0xf]  ;;  %v12044_v12 = vld [vmem:[#allocation7 + $0xb8] sm:$0xf0] }
  0x4e   :  { %693 = vmatpush.bf16.msrb.mxu1 %v12119_v26  ;;  %668 = vmatpush.bf16.msra.mxu3 %v12099_v34  ;;  %v12171_v13 = vor.u32 %v17899_v10, %v12170_v8  ;;  %v12047_v14 = vor.u32 %v17865_v11, %v12044_v12  ;;  %v17897_v15 = vld [vmem:[#allocation7 + $0x1ac] sm:$0xf]  ;;  %v12172_v16 = vld [vmem:[#allocation7 + $0x1b8] sm:$0xf0]  ;;  %v12026_v18 = vld [vmem:[#allocation7 + $0x88] sm:$0xf] }
  0x4f   :  { %v12175_v17 = vor.u32 %v17897_v15, %v12172_v16  ;;  %v17863_v19 = vld [vmem:[#allocation7 + $0x94] sm:$0xf0]  ;;  %v12154_v20 = vld [vmem:[#allocation7 + $0x188] sm:$0xf]  ;;  %v17861_v23 = vld [vmem:[#allocation7 + $0x8c] sm:$0xf] }
  0x50   :  { %v12027_v21 = vor.u32 %v17863_v19, %v12026_v18  ;;  %v17895_v22 = vld [vmem:[#allocation7 + $0x194] sm:$0xf0]  ;;  %v12028_v24 = vld [vmem:[#allocation7 + $0x98] sm:$0xf0]  ;;  %v17893_v27 = vld [vmem:[#allocation7 + $0x18c] sm:$0xf] }
  0x51   :  { %681 = vmatpush.bf16.msrb.mxu0 %v11975_v38  ;;  %656 = vmatpush.bf16.msra.mxu2 %v11955_v46  ;;  %v12155_v25 = vor.u32 %v17895_v22, %v12154_v20  ;;  %v12031_v26 = vor.u32 %v17861_v23, %v12028_v24  ;;  %v12156_v28 = vld [vmem:[#allocation7 + $0x198] sm:$0xf0]  ;;  %v12010_v30 = vld [vmem:[#allocation7 + $0x68] sm:$0xf]  ;;  %v17859_v31 = vld [vmem:[#allocation7 + $0x74] sm:$0xf0] }
  0x52   :  { %694 = vmatpush.bf16.msrb.mxu1 %v12103_v42  ;;  %669 = vmatpush.bf16.msra.mxu3 %v12083_v49  ;;  %v12159_v29 = vor.u32 %v17893_v27, %v12156_v28  ;;  %v12138_v32 = vld [vmem:[#allocation7 + $0x168] sm:$0xf]  ;;  %v12011_v33 = vor.u32 %v17859_v31, %v12010_v30  ;;  %v17891_v34 = vld [vmem:[#allocation7 + $0x174] sm:$0xf0]  ;;  %v17857_v35 = vld [vmem:[#allocation7 + $0x6c] sm:$0xf] }
  0x53   :  { %v12012_v36 = vld [vmem:[#allocation7 + $0x78] sm:$0xf0]  ;;  %v12139_v37 = vor.u32 %v17891_v34, %v12138_v32  ;;  %v17889_v39 = vld [vmem:[#allocation7 + $0x16c] sm:$0xf]  ;;  %v11994_v42 = vld [vmem:[#allocation7 + $0x48] sm:$0xf] }
  0x54   :  { %v12015_v38 = vor.u32 %v17857_v35, %v12012_v36  ;;  %v12140_v40 = vld [vmem:[#allocation7 + $0x178] sm:$0xf0]  ;;  %v17855_v43 = vld [vmem:[#allocation7 + $0x54] sm:$0xf0]  ;;  %v12122_v44 = vld [vmem:[#allocation7 + $0x148] sm:$0xf] }
  0x55   :  { %701 = vmatpush.bf16.msrb.mxu2 %v12075_v50  ;;  %682 = vmatpush.bf16.msrb.mxu0 %v11959_v53  ;;  %v12143_v41 = vor.u32 %v17889_v39, %v12140_v40  ;;  %v11995_v45 = vor.u32 %v17855_v43, %v11994_v42  ;;  %v17887_v46 = vld [vmem:[#allocation7 + $0x154] sm:$0xf0]  ;;  %v17853_v47 = vld [vmem:[#allocation7 + $0x4c] sm:$0xf]  ;;  %v11996_v48 = vld [vmem:[#allocation7 + $0x58] sm:$0xf0] }
  0x56   :  { %714 = vmatpush.bf16.msrb.mxu3 %v12203_v54  ;;  %695 = vmatpush.bf16.msrb.mxu1 %v12087_v57  ;;  %v12123_v49 = vor.u32 %v17887_v46, %v12122_v44  ;;  %v11999_v50 = vor.u32 %v17853_v47, %v11996_v48  ;;  %v17885_v51 = vld [vmem:[#allocation7 + $0x14c] sm:$0xf]  ;;  %v12124_v52 = vld [vmem:[#allocation7 + $0x158] sm:$0xf0]  ;;  %v11978_v53 = vld [vmem:[#allocation7 + $0x28] sm:$0xf] }
  0x57   :  { %v12127_v54 = vor.u32 %v17885_v51, %v12124_v52  ;;  %v17851_v55 = vld [vmem:[#allocation7 + $0x34] sm:$0xf0]  ;;  %v12106_v56 = vld [vmem:[#allocation7 + $0x128] sm:$0xf]  ;;  %v17849_v59 = vld [vmem:[#allocation7 + $0x2c] sm:$0xf] }
  0x58   :  { %v17883_v57 = vld [vmem:[#allocation7 + $0x134] sm:$0xf0]  ;;  %v11980_v60 = vld [vmem:[#allocation7 + $0x38] sm:$0xf0]  ;;  %v11962_v1 = vld [vmem:[#allocation7 + $0x8] sm:$0xf] }
  0x59   :  { %727 = vmatpush.bf16.msra.mxu0 %v12079_v58  ;;  %702 = vmatpush.bf16.msrb.mxu2 %v12059_v0  ;;  %v11979_v58 = vor.u32 %v17851_v55, %v11978_v53  ;;  %v12107_v62 = vor.u32 %v17883_v57, %v12106_v56  ;;  %v11983_v63 = vor.u32 %v17849_v59, %v11980_v60  ;;  %v12108_v0 = vld [vmem:[#allocation7 + $0x138] sm:$0xf0]  ;;  %v17847_v2 = vld [vmem:[#allocation7 + $0x14] sm:$0xf0]  ;;  %v17845_v6 = vld [vmem:[#allocation7 + $0xc] sm:$0xf] }
  0x5a   :  { %740 = vmatpush.bf16.msra.mxu1 %v12207_v61  ;;  %715 = vmatpush.bf16.msrb.mxu3 %v12187_v3  ;;  %v17881_v61 = vld [vmem:[#allocation7 + $0x12c] sm:$0xf]  ;;  %v11964_v7 = vld [vmem:[#allocation7 + $0x18] sm:$0xf0]  ;;  %v11963_v10 = vor.u32 %v17847_v2, %v11962_v1  ;;  %v12690_v20 = vld [vmem:[#allocation10 + $0x3c0] sm:$0xf] }
  0x5b   :  { %v12111_v3 = vor.u32 %v17881_v61, %v12108_v0  ;;  %v17877_v8 = vld [vmem:[#allocation7 + $0x10c] sm:$0xf]  ;;  %v11967_v12 = vor.u32 %v17845_v6, %v11964_v7  ;;  %v12434_v22 = vld [vmem:[#allocation10 + $0x1c0] sm:$0xf] }
  0x5c   :  { %v17968_v24 = vld [vmem:[#allocation10 + $0x1dc] sm:$0xf0] }
  0x5d   :  { %728 = vmatpush.bf16.msra.mxu0 %v12063_v4  ;;  %703 = vmatpush.bf16.msrb.mxu2 %v12043_v9  ;;  %v12090_v4 = vld [vmem:[#allocation7 + $0x108] sm:$0xf]  ;;  %v12092_v9 = vld [vmem:[#allocation7 + $0x118] sm:$0xf0]  ;;  %v12946_v28 = vld [vmem:[#allocation10 + $0x5c0] sm:$0xf]  ;;  %v12435_v35 = vor.u32 %v17968_v24, %v12434_v22 }
  0x5e   :  { %741 = vmatpush.bf16.msra.mxu1 %v12191_v5  ;;  %716 = vmatpush.bf16.msrb.mxu3 %v12171_v13  ;;  %v17879_v5 = vld [vmem:[#allocation7 + $0x114] sm:$0xf0]  ;;  %v12095_v13 = vor.u32 %v17877_v8, %v12092_v9  ;;  %v18024_v34 = vld [vmem:[#allocation10 + $0x39c] sm:$0xf0] }
  0x5f   :  { %v12091_v11 = vor.u32 %v17879_v5, %v12090_v4  ;;  %v13170_v40 = vld [vmem:[#allocation10 + $0x780] sm:$0xf] }
  0x60   :  { %v18152_v42 = vld [vmem:[#allocation10 + $0x79c] sm:$0xf0] }
  0x61   :  { %729 = vmatpush.bf16.msra.mxu0 %v12047_v14  ;;  %704 = vmatpush.bf16.msrb.mxu2 %v12027_v21  ;;  %v195_v14 = vld [vmem:[#allocation5] sm:$0x3]  ;;  %v18032_v21 = vld [vmem:[#allocation10 + $0x3dc] sm:$0xf0]  ;;  %v13171_v53 = vor.u32 %v18152_v42, %v13170_v40 }
  0x62   :  { %742 = vmatpush.bf16.msra.mxu1 %v12175_v17  ;;  %717 = vmatpush.bf16.msrb.mxu3 %v12155_v25  ;;  %v197_v15 = vperm.slane %v195_v14, 0  ;;  %v198_v16 = vperm.slane %v195_v14, 1  ;;  %v13202_v25 = vld [vmem:[#allocation10 + $0x7c0] sm:$0xf]  ;;  %v12691_v32 = vor.u32 %v18032_v21, %v12690_v20 }
  0x63   :  { %v12914_v43 = vld [vmem:[#allocation10 + $0x580] sm:$0xf] }
  0x64   :  { %v18088_v44 = vld [vmem:[#allocation10 + $0x59c] sm:$0xf0] }
  0x65   :  { %730 = vmatpush.bf16.msra.mxu0 %v12031_v26  ;;  %705 = vmatpush.bf16.msrb.mxu2 %v12011_v33  ;;  %v18160_v26 = vld [vmem:[#allocation10 + $0x7dc] sm:$0xf0]  ;;  %v12915_v55 = vor.u32 %v18088_v44, %v12914_v43 }
  0x66   :  { %743 = vmatpush.bf16.msra.mxu1 %v12159_v29  ;;  %718 = vmatpush.bf16.msrb.mxu3 %v12139_v37  ;;  %v18096_v29 = vld [vmem:[#allocation10 + $0x5dc] sm:$0xf0]  ;;  %v13203_v39 = vor.u32 %v18160_v26, %v13202_v25 }
  0x67   :  { %v12658_v33 = vld [vmem:[#allocation10 + $0x380] sm:$0xf] }
  0x68   :  { %v12402_v37 = vld [vmem:[#allocation10 + $0x180] sm:$0xf]  ;;  %v12659_v47 = vor.u32 %v18024_v34, %v12658_v33 }
  0x69   :  { %731 = vmatpush.bf16.msra.mxu0 %v12015_v38  ;;  %706 = vmatpush.bf16.msrb.mxu2 %v11995_v45  ;;  %v17960_v38 = vld [vmem:[#allocation10 + $0x19c] sm:$0xf0] }
  0x6a   :  { %744 = vmatpush.bf16.msra.mxu1 %v12143_v41  ;;  %719 = vmatpush.bf16.msrb.mxu3 %v12123_v49  ;;  %v12947_v41 = vor.u32 %v18096_v29, %v12946_v28  ;;  %v12626_v48 = vld [vmem:[#allocation10 + $0x340] sm:$0xf] }
  0x6b   :  { %v18016_v49 = vld [vmem:[#allocation10 + $0x35c] sm:$0xf0] }
  0x6c   :  { %v12370_v51 = vld [vmem:[#allocation10 + $0x140] sm:$0xf]  ;;  %v12627_v59 = vor.u32 %v18016_v49, %v12626_v48 }
  0x6d   :  { %732 = vmatpush.bf16.msra.mxu0 %v11999_v50  ;;  %707 = vmatpush.bf16.msrb.mxu2 %v11979_v58  ;;  %v12403_v50 = vor.u32 %v17960_v38, %v12402_v37  ;;  %v17952_v52 = vld [vmem:[#allocation10 + $0x15c] sm:$0xf0] }
  0x6e   :  { %745 = vmatpush.bf16.msra.mxu1 %v12127_v54  ;;  %720 = vmatpush.bf16.msrb.mxu3 %v12107_v62  ;;  %v13138_v54 = vld [vmem:[#allocation10 + $0x740] sm:$0xf]  ;;  %v12371_v62 = vor.u32 %v17952_v52, %v12370_v51  ;;  %v12692_v52 = vld [vmem:[#allocation10 + $0x3e0] sm:$0xf0] }
  0x6f   :  { %v18144_v56 = vld [vmem:[#allocation10 + $0x75c] sm:$0xf0] }
  0x70   :  { %v12882_v57 = vld [vmem:[#allocation10 + $0x540] sm:$0xf]  ;;  %v13139_v1 = vor.u32 %v18144_v56, %v13138_v54  ;;  %v12436_v54 = vld [vmem:[#allocation10 + $0x1e0] sm:$0xf0] }
  0x71   :  { %733 = vmatpush.bf16.msra.mxu0 %v11983_v63  ;;  %708 = vmatpush.bf16.msrb.mxu2 %v11963_v10  ;;  %v18080_v58 = vld [vmem:[#allocation10 + $0x55c] sm:$0xf0] }
  0x72   :  { %746 = vmatpush.bf16.msra.mxu1 %v12111_v3  ;;  %721 = vmatpush.bf16.msrb.mxu3 %v12091_v11  ;;  %v12594_v60 = vld [vmem:[#allocation10 + $0x300] sm:$0xf]  ;;  %v12883_v3 = vor.u32 %v18080_v58, %v12882_v57 }
  0x73   :  { %v18008_v61 = vld [vmem:[#allocation10 + $0x31c] sm:$0xf0] }
  0x74   :  { %v12338_v63 = vld [vmem:[#allocation10 + $0x100] sm:$0xf]  ;;  %v12595_v7 = vor.u32 %v18008_v61, %v12594_v60  ;;  %v13204_v60 = vld [vmem:[#allocation10 + $0x7e0] sm:$0xf0] }
  0x75   :  { %734 = vmatpush.bf16.msra.mxu0 %v11967_v12  ;;  %v17944_v0 = vld [vmem:[#allocation10 + $0x11c] sm:$0xf0] }
  0x76   :  { %747 = vmatpush.bf16.msra.mxu1 %v12095_v13  ;;  %v13106_v2 = vld [vmem:[#allocation10 + $0x700] sm:$0xf]  ;;  %v12339_v10 = vor.u32 %v17944_v0, %v12338_v63  ;;  %v12660_v0 = vld [vmem:[#allocation10 + $0x3a0] sm:$0xf0] }
  0x77   :  { %v18136_v4 = vld [vmem:[#allocation10 + $0x71c] sm:$0xf0] }
  0x78   :  { %v12850_v5 = vld [vmem:[#allocation10 + $0x500] sm:$0xf]  ;;  %v13107_v13 = vor.u32 %v18136_v4, %v13106_v2  ;;  %v12404_v2 = vld [vmem:[#allocation10 + $0x1a0] sm:$0xf0] }
  0x79   :  { %v18072_v6 = vld [vmem:[#allocation10 + $0x51c] sm:$0xf0] }
  0x7a   :  { %v12562_v8 = vld [vmem:[#allocation10 + $0x2c0] sm:$0xf] }
  0x7b   :  { %v18000_v9 = vld [vmem:[#allocation10 + $0x2dc] sm:$0xf0] }
  0x7c   :  { %v12306_v11 = vld [vmem:[#allocation10 + $0xc0] sm:$0xf] }
  0x7d   :  { %v17936_v12 = vld [vmem:[#allocation10 + $0xdc] sm:$0xf0] }
  0x7e   :  { %v13074_v14 = vld [vmem:[#allocation10 + $0x6c0] sm:$0xf]  ;;  %v12307_v22 = vor.u32 %v17936_v12, %v12306_v11  ;;  %v18004_v12 = vld [vmem:[#allocation10 + $0x304] sm:$0xf] }
  0x7f   :  { %v12530_v20 = vld [vmem:[#allocation10 + $0x280] sm:$0xf] }
  0x80   :  { %v17992_v21 = vld [vmem:[#allocation10 + $0x29c] sm:$0xf0] }
  0x81   :  { %v17928_v24 = vld [vmem:[#allocation10 + $0x9c] sm:$0xf0] }
  0x82   :  { %v13042_v26 = vld [vmem:[#allocation10 + $0x680] sm:$0xf] }
  0x83   :  { %v18120_v28 = vld [vmem:[#allocation10 + $0x69c] sm:$0xf0] }
  0x84   :  { %v12786_v29 = vld [vmem:[#allocation10 + $0x480] sm:$0xf] }
  0x85   :  { %v12498_v33 = vld [vmem:[#allocation10 + $0x240] sm:$0xf] }
  0x86   :  { %v17984_v34 = vld [vmem:[#allocation10 + $0x25c] sm:$0xf0] }
  0x87   :  { %v12242_v37 = vld [vmem:[#allocation10 + $0x40] sm:$0xf]  ;;  %v12499_v44 = vor.u32 %v17984_v34, %v12498_v33  ;;  %v12308_v33 = vld [vmem:[#allocation10 + $0xe0] sm:$0xf0] }
  0x88   :  { %v17920_v38 = vld [vmem:[#allocation10 + $0x5c] sm:$0xf0]  ;;  %v18092_v34 = vld [vmem:[#allocation10 + $0x5c4] sm:$0xf] }
  0x89   :  { %v13010_v40 = vld [vmem:[#allocation10 + $0x640] sm:$0xf] }
  0x8a   :  { %v12754_v42 = vld [vmem:[#allocation10 + $0x440] sm:$0xf] }
  0x8b   :  { %v18048_v43 = vld [vmem:[#allocation10 + $0x45c] sm:$0xf0] }
  0x8c   :  { %v12210_v48 = vld [vmem:[#allocation10] sm:$0xf]  ;;  %v12755_v51 = vor.u32 %v18048_v43, %v12754_v42  ;;  %v13140_v42 = vld [vmem:[#allocation10 + $0x760] sm:$0xf0] }
  0x8d   :  { %v17912_v49 = vld [vmem:[#allocation10 + $0x1c] sm:$0xf0] }
  0x8e   :  { %v18104_v56 = vld [vmem:[#allocation10 + $0x61c] sm:$0xf0]  ;;  %v12211_v58 = vor.u32 %v17912_v49, %v12210_v48  ;;  %v17972_v49 = vld [vmem:[#allocation10 + $0x204] sm:$0xf] }
  0xb5   :  { %v234_v17 = vpop.f32.mrf.mxu0 }
  0xb6   :  { %v235_v18 = vadd.f32 %v234_v17, %v197_v15  ;;  %v12851_v15 = vor.u32 %v18072_v6, %v12850_v5  ;;  %v12818_v17 = vld [vmem:[#allocation10 + $0x4c0] sm:$0xf]  ;;  %v18012_v6 = vld [vmem:[#allocation10 + $0x344] sm:$0xf] }
  0xb8   :  { %v247_v19 = vpop.f32.mrf.mxu1  ;;  %v251_v27 = vmax.f32 %v235_v18, 0.0  ;;  %v18064_v18 = vld [vmem:[#allocation10 + $0x4dc] sm:$0xf0] }
  0xb9   :  { %v248_v23 = vadd.f32 %v247_v19, %v198_v16  ;;  %v18128_v16 = vld [vmem:[#allocation10 + $0x6dc] sm:$0xf0]  ;;  %v12563_v19 = vor.u32 %v18000_v9, %v12562_v8  ;;  %v12628_v8 = vld [vmem:[#allocation10 + $0x360] sm:$0xf0] }
  0xba   :  { %v19709_v31 = vpack.c.bf16 %v251_v27, %v251_v27  ;;  %v13075_v25 = vor.u32 %v18128_v16, %v13074_v14  ;;  %v12819_v27 = vor.u32 %v18064_v18, %v12818_v17  ;;  %v17948_v9 = vld [vmem:[#allocation10 + $0x144] sm:$0xf]  ;;  %v12631_v11 = vor.u32 %v18012_v6, %v12628_v8 }
  0xbb   :  { %v252_v30 = vmax.f32 %v248_v23, 0.0  ;;  %v12274_v23 = vld [vmem:[#allocation10 + $0x80] sm:$0xf]  ;;  %v12596_v14 = vld [vmem:[#allocation10 + $0x320] sm:$0xf0] }
  0xbc   :  { %657 = vmatmul.bf16.vlgmr.msra.gmra.mxu2 %v19709_v31  ;;  %683 = vmatmul.bf16.vlgmr.msrb.gmra.mxu0 %v19709_v31  ;;  %v12340_v16 = vld [vmem:[#allocation10 + $0x120] sm:$0xf0]  ;;  %v12599_v17 = vor.u32 %v18004_v12, %v12596_v14 }
  0xbd   :  { %v19711_v36 = vpack.c.bf16 %v252_v30, %v252_v30  ;;  %v236_v45 = vpop.f32.mrf.mxu0  ;;  %2315 = vmatpush.bf16.msra.mxu2 %v12435_v35  ;;  %2341 = vmatpush.bf16.msrb.mxu0 %v12947_v41  ;;  %v18056_v30 = vld [vmem:[#allocation10 + $0x49c] sm:$0xf0]  ;;  %v12275_v35 = vor.u32 %v17928_v24, %v12274_v23  ;;  %v12532_v23 = vld [vmem:[#allocation10 + $0x2a0] sm:$0xf0] }
  0xbe   :  { %v18112_v41 = vld [vmem:[#allocation10 + $0x65c] sm:$0xf0]  ;;  %v18148_v24 = vld [vmem:[#allocation10 + $0x784] sm:$0xf] }
  0xbf   :  { %670 = vmatmul.bf16.vlgmr.msra.gmra.mxu3 %v19711_v36  ;;  %696 = vmatmul.bf16.vlgmr.msrb.gmra.mxu1 %v19711_v36  ;;  %v17976_v45 = vld [vmem:[#allocation10 + $0x21c] sm:$0xf0]  ;;  %v18116_v6 = vld [vmem:[#allocation10 + $0x684] sm:$0xf] }
  0xc0   :  { %v249_v46 = vpop.f32.mrf.mxu1  ;;  %2328 = vmatpush.bf16.msra.mxu3 %v12691_v32  ;;  %2354 = vmatpush.bf16.msrb.mxu1 %v13203_v39  ;;  %v12531_v32 = vor.u32 %v17992_v21, %v12530_v20  ;;  %v13043_v39 = vor.u32 %v18120_v28, %v13042_v26  ;;  %v12564_v20 = vld [vmem:[#allocation10 + $0x2e0] sm:$0xf0]  ;;  %v18040_v28 = vld [vmem:[#allocation10 + $0x41c] sm:$0xf0] }
  0xc1   :  { %2316 = vmatpush.bf16.msra.mxu2 %v12403_v50  ;;  %2342 = vmatpush.bf16.msrb.mxu0 %v12915_v55  ;;  %v12243_v46 = vor.u32 %v17920_v38, %v12242_v37  ;;  %v13011_v50 = vor.u32 %v18112_v41, %v13010_v40  ;;  %v12978_v55 = vld [vmem:[#allocation10 + $0x600] sm:$0xf]  ;;  %v13172_v26 = vld [vmem:[#allocation10 + $0x7a0] sm:$0xf0] }
  0xc2   :  { %v12948_v37 = vld [vmem:[#allocation10 + $0x5e0] sm:$0xf0] }
  0xc3   :  { %v12951_v38 = vor.u32 %v18092_v34, %v12948_v37  ;;  %v12500_v40 = vld [vmem:[#allocation10 + $0x260] sm:$0xf0]  ;;  %v18033_v37 = vld [vmem:[#allocation10 + $0x3e4] sm:$0xf0] }
  0xc4   :  { %2329 = vmatpush.bf16.msra.mxu3 %v12659_v47  ;;  %2355 = vmatpush.bf16.msrb.mxu1 %v13171_v53  ;;  %v18028_v47 = vld [vmem:[#allocation10 + $0x3c4] sm:$0xf] }
  0xc5   :  { %2317 = vmatpush.bf16.msra.mxu2 %v12371_v62  ;;  %2343 = vmatpush.bf16.msrb.mxu0 %v12883_v3  ;;  %v17964_v53 = vld [vmem:[#allocation10 + $0x1c4] sm:$0xf]  ;;  %v12695_v61 = vor.u32 %v18028_v47, %v12692_v52  ;;  %v12979_v3 = vor.u32 %v18104_v56, %v12978_v55 }
  0xc6   :  { %v18020_v62 = vld [vmem:[#allocation10 + $0x384] sm:$0xf]  ;;  %v12439_v63 = vor.u32 %v17964_v53, %v12436_v54 }
  0xc7   :  { %v12663_v5 = vor.u32 %v18020_v62, %v12660_v0  ;;  %v12916_v47 = vld [vmem:[#allocation10 + $0x5a0] sm:$0xf0] }
  0xc8   :  { %2330 = vmatpush.bf16.msra.mxu3 %v12627_v59  ;;  %2356 = vmatpush.bf16.msrb.mxu1 %v13139_v1  ;;  %v18156_v59 = vld [vmem:[#allocation10 + $0x7c4] sm:$0xf] }
  0xc9   :  { %2318 = vmatpush.bf16.msra.mxu2 %v12339_v10  ;;  %2344 = vmatpush.bf16.msrb.mxu0 %v12851_v15  ;;  %v17956_v1 = vld [vmem:[#allocation10 + $0x184] sm:$0xf]  ;;  %v13207_v4 = vor.u32 %v18156_v59, %v13204_v60 }
  0xca   :  { %v12372_v10 = vld [vmem:[#allocation10 + $0x160] sm:$0xf0] }
  0xcb   :  { %v17940_v15 = vld [vmem:[#allocation10 + $0x104] sm:$0xf] }
  0xcc   :  { %2331 = vmatpush.bf16.msra.mxu3 %v12595_v7  ;;  %2357 = vmatpush.bf16.msrb.mxu1 %v13107_v13  ;;  %v12407_v7 = vor.u32 %v17956_v1, %v12404_v2  ;;  %v12375_v13 = vor.u32 %v17948_v9, %v12372_v10  ;;  %v12343_v18 = vor.u32 %v17940_v15, %v12340_v16  ;;  %v18132_v52 = vld [vmem:[#allocation10 + $0x704] sm:$0xf] }
  0xcd   :  { %709 = vmatmul.bf16.vlgmr.msrb.gmra.mxu2 %v19709_v31  ;;  %735 = vmatmul.bf16.vlgmr.msra.gmra.mxu0 %v19709_v31  ;;  %v12787_v31 = vor.u32 %v18056_v30, %v12786_v29  ;;  %v13175_v29 = vor.u32 %v18148_v24, %v13172_v26  ;;  %v13108_v53 = vld [vmem:[#allocation10 + $0x720] sm:$0xf0]  ;;  %v19721_v24 = vld [vmem:[#allocation8] sm:$0xf] }
  0xce   :  { %2319 = vmatpush.bf16.msra.mxu2 %v12307_v22  ;;  %2345 = vmatpush.bf16.msrb.mxu0 %v12819_v27  ;;  %v17988_v22 = vld [vmem:[#allocation10 + $0x284] sm:$0xf]  ;;  %v12722_v27 = vld [vmem:[#allocation10 + $0x400] sm:$0xf]  ;;  %v13111_v54 = vor.u32 %v18132_v52, %v13108_v53  ;;  %v321_v34 = vperm.slane %v19721_v24, 0 }
  0xcf   :  { %722 = vmatmul.bf16.vlgmr.msrb.gmra.mxu3 %v19711_v36  ;;  %748 = vmatmul.bf16.vlgmr.msra.gmra.mxu1 %v19711_v36  ;;  %v12466_v36 = vld [vmem:[#allocation10 + $0x200] sm:$0xf]  ;;  %v12723_v30 = vor.u32 %v18040_v28, %v12722_v27  ;;  %v17916_v55 = vld [vmem:[#allocation10 + $0x44] sm:$0xf]  ;;  %v322_v27 = vperm.slane %v19721_v24, 1 }
  0xd0   :  { %2332 = vmatpush.bf16.msra.mxu3 %v12563_v19  ;;  %2358 = vmatpush.bf16.msrb.mxu1 %v13075_v25  ;;  %v12467_v57 = vor.u32 %v17976_v45, %v12466_v36  ;;  %v17996_v19 = vld [vmem:[#allocation10 + $0x2c4] sm:$0xf]  ;;  %v12535_v25 = vor.u32 %v17988_v22, %v12532_v23  ;;  %v18017_v52 = vld [vmem:[#allocation10 + $0x364] sm:$0xf0] }
  0xd1   :  { %v12567_v21 = vor.u32 %v17996_v19, %v12564_v20  ;;  %v12276_v36 = vld [vmem:[#allocation10 + $0xa0] sm:$0xf0] }
  0xd2   :  { %2320 = vmatpush.bf16.msra.mxu2 %v12275_v35  ;;  %2346 = vmatpush.bf16.msrb.mxu0 %v12787_v31  ;;  %v18140_v31 = vld [vmem:[#allocation10 + $0x744] sm:$0xf] }
  0xd3   :  { %v13143_v43 = vor.u32 %v18140_v31, %v13140_v42  ;;  %v18084_v45 = vld [vmem:[#allocation10 + $0x584] sm:$0xf] }
  0xd4   :  { %2333 = vmatpush.bf16.msra.mxu3 %v12531_v32  ;;  %2359 = vmatpush.bf16.msrb.mxu1 %v13043_v39  ;;  %v17932_v32 = vld [vmem:[#allocation10 + $0xc4] sm:$0xf]  ;;  %v12919_v48 = vor.u32 %v18084_v45, %v12916_v47  ;;  %v12442_v47 = vld [vmem:[#allocation10 + $0x1c8] sm:$0xf] }
  0xd5   :  { %v12311_v35 = vor.u32 %v17932_v32, %v12308_v33  ;;  %v17980_v39 = vld [vmem:[#allocation10 + $0x244] sm:$0xf] }
  0xd6   :  { %2321 = vmatpush.bf16.msra.mxu2 %v12243_v46  ;;  %2347 = vmatpush.bf16.msrb.mxu0 %v12755_v51  ;;  %v12503_v41 = vor.u32 %v17980_v39, %v12500_v40  ;;  %v12244_v56 = vld [vmem:[#allocation10 + $0x60] sm:$0xf0] }
  0xd7   :  { %v12884_v59 = vld [vmem:[#allocation10 + $0x560] sm:$0xf0] }
  0xd8   :  { %2334 = vmatpush.bf16.msra.mxu3 %v12499_v44  ;;  %2360 = vmatpush.bf16.msrb.mxu1 %v13011_v50  ;;  %v17924_v44 = vld [vmem:[#allocation10 + $0x84] sm:$0xf] }
  0xd9   :  { %v12279_v46 = vor.u32 %v17924_v44, %v12276_v36  ;;  %v12468_v50 = vld [vmem:[#allocation10 + $0x220] sm:$0xf0]  ;;  %v18025_v44 = vld [vmem:[#allocation10 + $0x3a4] sm:$0xf0] }
  0xda   :  { %2322 = vmatpush.bf16.msra.mxu2 %v12211_v58  ;;  %2348 = vmatpush.bf16.msrb.mxu0 %v12723_v30  ;;  %v12471_v51 = vor.u32 %v17972_v49, %v12468_v50  ;;  %v18076_v58 = vld [vmem:[#allocation10 + $0x544] sm:$0xf] }
  0xdb   :  { %v12887_v60 = vor.u32 %v18076_v58, %v12884_v59  ;;  %v13076_v62 = vld [vmem:[#allocation10 + $0x6e0] sm:$0xf0] }
  0xdc   :  { %2335 = vmatpush.bf16.msra.mxu3 %v12467_v57  ;;  %2361 = vmatpush.bf16.msrb.mxu1 %v12979_v3  ;;  %v12247_v57 = vor.u32 %v17916_v55, %v12244_v56  ;;  %v17908_v0 = vld [vmem:[#allocation10 + $0x4] sm:$0xf]  ;;  %v324_v55 = vperm.slane %v19721_v24, 3  ;;  %v12410_v56 = vld [vmem:[#allocation10 + $0x188] sm:$0xf] }
  0xdd   :  { %v12212_v1 = vld [vmem:[#allocation10 + $0x20] sm:$0xf0] }
  0xde   :  { %2367 = vmatpush.bf16.msrb.mxu2 %v12439_v63  ;;  %2393 = vmatpush.bf16.msra.mxu0 %v12951_v38  ;;  %v18068_v2 = vld [vmem:[#allocation10 + $0x504] sm:$0xf]  ;;  %v12215_v3 = vor.u32 %v17908_v0, %v12212_v1 }
  0xdf   :  { %v18060_v9 = vld [vmem:[#allocation10 + $0x4c4] sm:$0xf] }
  0xe0   :  { %2380 = vmatpush.bf16.msrb.mxu3 %v12695_v61  ;;  %2406 = vmatpush.bf16.msra.mxu1 %v13207_v4  ;;  %v18124_v61 = vld [vmem:[#allocation10 + $0x6c4] sm:$0xf] }
  0xe1   :  { %v13079_v63 = vor.u32 %v18124_v61, %v13076_v62  ;;  %v12852_v4 = vld [vmem:[#allocation10 + $0x520] sm:$0xf0]  ;;  %v12602_v61 = vld [vmem:[#allocation10 + $0x308] sm:$0xf] }
  0xe2   :  { %2368 = vmatpush.bf16.msrb.mxu2 %v12407_v7  ;;  %2394 = vmatpush.bf16.msra.mxu0 %v12919_v48  ;;  %v13044_v7 = vld [vmem:[#allocation10 + $0x6a0] sm:$0xf0]  ;;  %v17969_v48 = vld [vmem:[#allocation10 + $0x1e4] sm:$0xf0] }
  0xe3   :  { %v13047_v8 = vor.u32 %v18116_v6, %v13044_v7  ;;  %v12820_v10 = vld [vmem:[#allocation10 + $0x4e0] sm:$0xf0]  ;;  %v12443_v53 = vor.u32 %v17969_v48, %v12442_v47  ;;  %v18009_v62 = vld [vmem:[#allocation10 + $0x324] sm:$0xf0]  ;;  %v323_v6 = vperm.slane %v19721_v24, 2 }
  0xe4   :  { %2381 = vmatpush.bf16.msrb.mxu3 %v12663_v5  ;;  %2407 = vmatpush.bf16.msra.mxu1 %v13175_v29  ;;  %v12855_v5 = vor.u32 %v18068_v2, %v12852_v4  ;;  %v18108_v12 = vld [vmem:[#allocation10 + $0x644] sm:$0xf]  ;;  %v17953_v4 = vld [vmem:[#allocation10 + $0x164] sm:$0xf0] }
  0xe5   :  { %v18052_v15 = vld [vmem:[#allocation10 + $0x484] sm:$0xf]  ;;  %v12570_v7 = vld [vmem:[#allocation10 + $0x2c8] sm:$0xf] }
  0xe6   :  { %2369 = vmatpush.bf16.msrb.mxu2 %v12375_v13  ;;  %2395 = vmatpush.bf16.msra.mxu0 %v12887_v60  ;;  %v13012_v13 = vld [vmem:[#allocation10 + $0x660] sm:$0xf0]  ;;  %v13178_v24 = vld [vmem:[#allocation10 + $0x788] sm:$0xf] }
  0xe7   :  { %v13015_v14 = vor.u32 %v18108_v12, %v13012_v13  ;;  %v12788_v16 = vld [vmem:[#allocation10 + $0x4a0] sm:$0xf0]  ;;  %v12922_v47 = vld [vmem:[#allocation10 + $0x588] sm:$0xf] }
  0xe8   :  { %2382 = vmatpush.bf16.msrb.mxu3 %v12631_v11  ;;  %2408 = vmatpush.bf16.msra.mxu1 %v13143_v43  ;;  %v12823_v11 = vor.u32 %v18060_v9, %v12820_v10  ;;  %v12980_v19 = vld [vmem:[#allocation10 + $0x620] sm:$0xf0]  ;;  %v12666_v43 = vld [vmem:[#allocation10 + $0x388] sm:$0xf] }
  0xe9   :  { %v12756_v22 = vld [vmem:[#allocation10 + $0x460] sm:$0xf0]  ;;  %v12667_v49 = vor.u32 %v18025_v44, %v12666_v43  ;;  %v18001_v9 = vld [vmem:[#allocation10 + $0x2e4] sm:$0xf0] }
  0xea   :  { %2370 = vmatpush.bf16.msrb.mxu2 %v12343_v18  ;;  %2396 = vmatpush.bf16.msra.mxu0 %v12855_v5  ;;  %v18100_v18 = vld [vmem:[#allocation10 + $0x604] sm:$0xf]  ;;  %v12603_v5 = vor.u32 %v18009_v62, %v12602_v61  ;;  %v13210_v10 = vld [vmem:[#allocation10 + $0x7c8] sm:$0xf]  ;;  %v12700_v61 = vld [vmem:[#allocation10 + $0x3e8] sm:$0xf0] }
  0xeb   :  { %v12983_v20 = vor.u32 %v18100_v18, %v12980_v19  ;;  %v12724_v26 = vld [vmem:[#allocation10 + $0x420] sm:$0xf0]  ;;  %v12538_v19 = vld [vmem:[#allocation10 + $0x288] sm:$0xf] }
  0xec   :  { %2383 = vmatpush.bf16.msrb.mxu3 %v12599_v17  ;;  %2409 = vmatpush.bf16.msra.mxu1 %v13111_v54  ;;  %v12791_v17 = vor.u32 %v18052_v15, %v12788_v16  ;;  %v17945_v15 = vld [vmem:[#allocation10 + $0x124] sm:$0xf0] }
  0xed   :  { %v18089_v48 = vld [vmem:[#allocation10 + $0x5a4] sm:$0xf0] }
  0xee   :  { %2371 = vmatpush.bf16.msrb.mxu2 %v12311_v35  ;;  %2397 = vmatpush.bf16.msra.mxu0 %v12823_v11  ;;  %v12698_v35 = vld [vmem:[#allocation10 + $0x3c8] sm:$0xf] }
  0xef   :  { %v12699_v40 = vor.u32 %v18033_v37, %v12698_v35  ;;  %v18161_v11 = vld [vmem:[#allocation10 + $0x7e4] sm:$0xf0] }
  0xf0   :  { %2384 = vmatpush.bf16.msrb.mxu3 %v12567_v21  ;;  %2410 = vmatpush.bf16.msra.mxu1 %v13079_v63  ;;  %v18044_v21 = vld [vmem:[#allocation10 + $0x444] sm:$0xf]  ;;  %v13211_v18 = vor.u32 %v18161_v11, %v13210_v10  ;;  %v12250_v62 = vld [vmem:[#allocation10 + $0x48] sm:$0xf]  ;;  %v12668_v10 = vld [vmem:[#allocation10 + $0x3a8] sm:$0xf0] }
  0xf1   :  { %v12759_v23 = vor.u32 %v18044_v21, %v12756_v22  ;;  %v12218_v11 = vld [vmem:[#allocation10 + $0x8] sm:$0xf] }
  0xf2   :  { %2372 = vmatpush.bf16.msrb.mxu2 %v12279_v46  ;;  %2398 = vmatpush.bf16.msra.mxu0 %v12791_v17  ;;  %v12571_v17 = vor.u32 %v18001_v9, %v12570_v7  ;;  %v18021_v9 = vld [vmem:[#allocation10 + $0x38c] sm:$0xf] }
  0xf4   :  { %2385 = vmatpush.bf16.msrb.mxu3 %v12535_v25  ;;  %2411 = vmatpush.bf16.msra.mxu1 %v13047_v8  ;;  %v18036_v25 = vld [vmem:[#allocation10 + $0x404] sm:$0xf] }
  0xf5   :  { %v12727_v28 = vor.u32 %v18036_v25, %v12724_v26  ;;  %v18153_v25 = vld [vmem:[#allocation10 + $0x7a4] sm:$0xf0] }
  0xf6   :  { %2373 = vmatpush.bf16.msrb.mxu2 %v12247_v57  ;;  %2399 = vmatpush.bf16.msra.mxu0 %v12759_v23  ;;  %v17961_v57 = vld [vmem:[#allocation10 + $0x1a4] sm:$0xf0]  ;;  %v13179_v37 = vor.u32 %v18153_v25, %v13178_v24  ;;  %v18013_v24 = vld [vmem:[#allocation10 + $0x34c] sm:$0xf] }
  0xf7   :  { %v12411_v0 = vor.u32 %v17961_v57, %v12410_v56  ;;  %v17993_v23 = vld [vmem:[#allocation10 + $0x2a4] sm:$0xf0]  ;;  %v12636_v25 = vld [vmem:[#allocation10 + $0x368] sm:$0xf0] }
  0xf8   :  { %2386 = vmatpush.bf16.msrb.mxu3 %v12503_v41  ;;  %2412 = vmatpush.bf16.msra.mxu1 %v13015_v14  ;;  %v12346_v14 = vld [vmem:[#allocation10 + $0x108] sm:$0xf]  ;;  %v12539_v35 = vor.u32 %v17993_v23, %v12538_v19 }
  0xf9   :  { %v13114_v56 = vld [vmem:[#allocation10 + $0x708] sm:$0xf] }
  0xfa   :  { %2374 = vmatpush.bf16.msrb.mxu2 %v12215_v3  ;;  %2400 = vmatpush.bf16.msra.mxu0 %v12727_v28  ;;  %v12378_v3 = vld [vmem:[#allocation10 + $0x148] sm:$0xf] }
  0xfb   :  { %v12379_v12 = vor.u32 %v17953_v4, %v12378_v3  ;;  %v12314_v28 = vld [vmem:[#allocation10 + $0xc8] sm:$0xf] }
  0xfc   :  { %2387 = vmatpush.bf16.msrb.mxu3 %v12471_v51  ;;  %2413 = vmatpush.bf16.msra.mxu1 %v12983_v20  ;;  %v12634_v51 = vld [vmem:[#allocation10 + $0x348] sm:$0xf] }
  0xfd   :  { %v12635_v59 = vor.u32 %v18017_v52, %v12634_v51  ;;  %v12474_v52 = vld [vmem:[#allocation10 + $0x208] sm:$0xf] }
  0xfe   :  { %v18137_v57 = vld [vmem:[#allocation10 + $0x724] sm:$0xf0] }
  0xff   :  { %v13115_v3 = vor.u32 %v18137_v57, %v13114_v56  ;;  %v13050_v19 = vld [vmem:[#allocation10 + $0x688] sm:$0xf] }
 0x100   :  { %v12762_v56 = vld [vmem:[#allocation10 + $0x448] sm:$0xf] }
 0x101   :  { %v18049_v57 = vld [vmem:[#allocation10 + $0x464] sm:$0xf0] }
 0x139   :  { %v684_v29 = vpop.f32.mrf.mxu0 }
 0x13a   :  { %v685_v30 = vadd.f32 %v684_v29, %v322_v27  ;;  %v12347_v27 = vor.u32 %v17945_v15, %v12346_v14  ;;  %v18073_v14 = vld [vmem:[#allocation10 + $0x524] sm:$0xf0] }
 0x13c   :  { %v697_v32 = vpop.f32.mrf.mxu1 }
 0x13d   :  { %v698_v33 = vadd.f32 %v697_v32, %v685_v30  ;;  %v17937_v32 = vld [vmem:[#allocation10 + $0xe4] sm:$0xf0] }
 0x13e   :  { %v12315_v43 = vor.u32 %v17937_v32, %v12314_v28  ;;  %v18065_v28 = vld [vmem:[#allocation10 + $0x4e4] sm:$0xf0]  ;;  %v12412_v32 = vld [vmem:[#allocation10 + $0x1a8] sm:$0xf0] }
 0x13f   :  { %v754_v38 = vmax.f32 %v698_v33, 0.0  ;;  %v658_v39 = vpop.f32.mrf.mxu2  ;;  %v12954_v33 = vld [vmem:[#allocation10 + $0x5c8] sm:$0xf] }
 0x140   :  { %v659_v41 = vadd.f32 %v658_v39, %v321_v34  ;;  %v18097_v34 = vld [vmem:[#allocation10 + $0x5e4] sm:$0xf0] }
 0x141   :  { %v19725_v31 = vpack.c.bf16 %v754_v38, %v754_v38  ;;  %v686_v36 = vpop.f32.mrf.mxu0  ;;  %v12506_v38 = vld [vmem:[#allocation10 + $0x248] sm:$0xf]  ;;  %v12955_v44 = vor.u32 %v18097_v34, %v12954_v33  ;;  %v12639_v33 = vor.u32 %v18013_v24, %v12636_v25  ;;  %v12924_v24 = vld [vmem:[#allocation10 + $0x5a8] sm:$0xf0] }
 0x142   :  { %v671_v42 = vpop.f32.mrf.mxu3  ;;  %v17985_v39 = vld [vmem:[#allocation10 + $0x264] sm:$0xf0] }
 0x143   :  { %v672_v45 = vadd.f32 %v671_v42, %v659_v41  ;;  %2336 = vmatmul.bf16.vlgmr.msra.gmra.mxu3 %v19725_v31  ;;  %v13146_v41 = vld [vmem:[#allocation10 + $0x748] sm:$0xf] }
 0x144   :  { %v699_v46 = vpop.f32.mrf.mxu1  ;;  %2432 = vmatpush.bf16.msra.mxu3 %v12699_v40  ;;  %v18145_v42 = vld [vmem:[#allocation10 + $0x764] sm:$0xf0] }
 0x145   :  { %v753_v50 = vmax.f32 %v672_v45, 0.0  ;;  %v12282_v36 = vld [vmem:[#allocation10 + $0x88] sm:$0xf]  ;;  %v13147_v51 = vor.u32 %v18145_v42, %v13146_v41 }
 0x146   :  { %v17929_v46 = vld [vmem:[#allocation10 + $0xa4] sm:$0xf0] }
 0x147   :  { %v19728_v54 = vpack.c.bf16 %v753_v50, %v753_v50  ;;  %v660_v58 = vpop.f32.mrf.mxu2  ;;  %v12507_v50 = vor.u32 %v17985_v39, %v12506_v38  ;;  %v13018_v34 = vld [vmem:[#allocation10 + $0x648] sm:$0xf]  ;;  %v18005_v38 = vld [vmem:[#allocation10 + $0x30c] sm:$0xf] }
 0x148   :  { %2433 = vmatpush.bf16.msra.mxu3 %v12667_v49  ;;  %v12283_v58 = vor.u32 %v17929_v46, %v12282_v36  ;;  %v12604_v39 = vld [vmem:[#allocation10 + $0x328] sm:$0xf0]  ;;  %v12794_v41 = vld [vmem:[#allocation10 + $0x488] sm:$0xf] }
 0x149   :  { %2323 = vmatmul.bf16.vlgmr.msra.gmra.mxu2 %v19728_v54  ;;  %v18057_v42 = vld [vmem:[#allocation10 + $0x4a4] sm:$0xf0]  ;;  %v12380_v36 = vld [vmem:[#allocation10 + $0x168] sm:$0xf0]  ;;  %v12607_v46 = vor.u32 %v18005_v38, %v12604_v39 }
 0x14a   :  { %v673_v60 = vpop.f32.mrf.mxu3  ;;  %2419 = vmatpush.bf16.msra.mxu2 %v12443_v53  ;;  %v736_v63 = vpop.f32.mrf.mxu0  ;;  %v12252_v38 = vld [vmem:[#allocation10 + $0x68] sm:$0xf0] }
 0x14b   :  { %v737_v1 = vadd.f32 %v736_v63, %v324_v55  ;;  %v17977_v55 = vld [vmem:[#allocation10 + $0x224] sm:$0xf0]  ;;  %v18029_v60 = vld [vmem:[#allocation10 + $0x3cc] sm:$0xf] }
 0x14c   :  { %v749_v2 = vpop.f32.mrf.mxu1  ;;  %2434 = vmatpush.bf16.msra.mxu3 %v12635_v59  ;;  %v12923_v59 = vor.u32 %v18089_v48, %v12922_v47  ;;  %v17921_v63 = vld [vmem:[#allocation10 + $0x64] sm:$0xf0]  ;;  %v12703_v4 = vor.u32 %v18029_v60, %v12700_v61  ;;  %v12348_v60 = vld [vmem:[#allocation10 + $0x128] sm:$0xf0] }
 0x14d   :  { %v750_v8 = vadd.f32 %v749_v2, %v737_v1  ;;  %v18081_v1 = vld [vmem:[#allocation10 + $0x564] sm:$0xf0]  ;;  %v12475_v2 = vor.u32 %v17977_v55, %v12474_v52  ;;  %v12251_v7 = vor.u32 %v17921_v63, %v12250_v62  ;;  %v18157_v52 = vld [vmem:[#allocation10 + $0x7cc] sm:$0xf] }
 0x14e   :  { %2420 = vmatpush.bf16.msra.mxu2 %v12411_v0  ;;  %v12890_v0 = vld [vmem:[#allocation10 + $0x548] sm:$0xf]  ;;  %v17989_v63 = vld [vmem:[#allocation10 + $0x28c] sm:$0xf] }
 0x14f   :  { %v756_v13 = vmax.f32 %v750_v8, 0.0  ;;  %v12891_v8 = vor.u32 %v18081_v1, %v12890_v0  ;;  %v12986_v47 = vld [vmem:[#allocation10 + $0x608] sm:$0xf]  ;;  %v12763_v0 = vor.u32 %v18049_v57, %v12762_v56  ;;  %v12540_v1 = vld [vmem:[#allocation10 + $0x2a8] sm:$0xf0] }
 0x150   :  { %2435 = vmatpush.bf16.msra.mxu3 %v12603_v5  ;;  %v710_v16 = vpop.f32.mrf.mxu2  ;;  %v13082_v5 = vld [vmem:[#allocation10 + $0x6c8] sm:$0xf]  ;;  %v18077_v39 = vld [vmem:[#allocation10 + $0x54c] sm:$0xf]  ;;  %v12450_v56 = vld [vmem:[#allocation10 + $0x1d0] sm:$0xf] }
 0x151   :  { %v19733_v20 = vpack.c.bf16 %v756_v13, %v756_v13  ;;  %v711_v21 = vadd.f32 %v710_v16, %v323_v6  ;;  %v18129_v6 = vld [vmem:[#allocation10 + $0x6e4] sm:$0xf0]  ;;  %v17965_v16 = vld [vmem:[#allocation10 + $0x1cc] sm:$0xf]  ;;  %v17970_v57 = vld [vmem:[#allocation10 + $0x1ec] sm:$0xf0] }
 0x152   :  { %v723_v22 = vpop.f32.mrf.mxu3  ;;  %2421 = vmatpush.bf16.msra.mxu2 %v12379_v12  ;;  %v738_v26 = vpop.f32.mrf.mxu0  ;;  %v17913_v12 = vld [vmem:[#allocation10 + $0x24] sm:$0xf0]  ;;  %v13083_v15 = vor.u32 %v18129_v6, %v13082_v5 }
 0x153   :  { %v724_v29 = vadd.f32 %v723_v22, %v711_v21  ;;  %2362 = vmatmul.bf16.vlgmr.msrb.gmra.mxu1 %v19733_v20  ;;  %2388 = vmatmul.bf16.vlgmr.msrb.gmra.mxu3 %v19725_v31  ;;  %v12858_v13 = vld [vmem:[#allocation10 + $0x508] sm:$0xf]  ;;  %v12219_v22 = vor.u32 %v17913_v12, %v12218_v11  ;;  %v12543_v11 = vor.u32 %v17989_v63, %v12540_v1  ;;  %v12642_v63 = vld [vmem:[#allocation10 + $0x350] sm:$0xf] }
 0x154   :  { %v751_v30 = vpop.f32.mrf.mxu1  ;;  %2436 = vmatpush.bf16.msra.mxu3 %v12571_v17  ;;  %2458 = vmatpush.bf16.msrb.mxu1 %v13211_v18  ;;  %v12444_v17 = vld [vmem:[#allocation10 + $0x1e8] sm:$0xf0]  ;;  %v12671_v18 = vor.u32 %v18021_v9, %v12668_v10  ;;  %v18121_v21 = vld [vmem:[#allocation10 + $0x6a4] sm:$0xf0]  ;;  %v12859_v23 = vor.u32 %v18073_v14, %v12858_v13  ;;  %v12451_v1 = vor.u32 %v17970_v57, %v12450_v56 }
 0x155   :  { %v755_v40 = vmax.f32 %v724_v29, 0.0  ;;  %v12447_v26 = vor.u32 %v17965_v16, %v12444_v17  ;;  %v13051_v29 = vor.u32 %v18121_v21, %v13050_v19  ;;  %v17957_v30 = vld [vmem:[#allocation10 + $0x18c] sm:$0xf]  ;;  %v18105_v48 = vld [vmem:[#allocation10 + $0x624] sm:$0xf0] }
 0x156   :  { %2422 = vmatpush.bf16.msra.mxu2 %v12347_v27  ;;  %v12826_v27 = vld [vmem:[#allocation10 + $0x4c8] sm:$0xf]  ;;  %v18093_v9 = vld [vmem:[#allocation10 + $0x5cc] sm:$0xf] }
 0x157   :  { %v19737_v45 = vpack.c.bf16 %v755_v40, %v755_v40  ;;  %v12415_v40 = vor.u32 %v17957_v30, %v12412_v32  ;;  %v12730_v5 = vld [vmem:[#allocation10 + $0x408] sm:$0xf]  ;;  %v12956_v10 = vld [vmem:[#allocation10 + $0x5e8] sm:$0xf0] }
 0x158   :  { %2437 = vmatpush.bf16.msra.mxu3 %v12539_v35  ;;  %2459 = vmatpush.bf16.msrb.mxu1 %v13179_v37  ;;  %v712_v49 = vpop.f32.mrf.mxu2  ;;  %v18113_v35 = vld [vmem:[#allocation10 + $0x664] sm:$0xf0]  ;;  %v12827_v37 = vor.u32 %v18065_v28, %v12826_v27  ;;  %v17981_v13 = vld [vmem:[#allocation10 + $0x24c] sm:$0xf]  ;;  %v12959_v19 = vor.u32 %v18093_v9, %v12956_v10 }
 0x159   :  { %2349 = vmatmul.bf16.vlgmr.msrb.gmra.mxu0 %v19737_v45  ;;  %2375 = vmatmul.bf16.vlgmr.msrb.gmra.mxu2 %v19728_v54  ;;  %v17997_v49 = vld [vmem:[#allocation10 + $0x2cc] sm:$0xf]  ;;  %v18041_v6 = vld [vmem:[#allocation10 + $0x424] sm:$0xf0] }
 0x15a   :  { %v725_v53 = vpop.f32.mrf.mxu3  ;;  %2423 = vmatpush.bf16.msra.mxu2 %v12315_v43  ;;  %2445 = vmatpush.bf16.msrb.mxu0 %v12955_v44  ;;  %v13019_v43 = vor.u32 %v18113_v35, %v13018_v34  ;;  %v17949_v44 = vld [vmem:[#allocation10 + $0x14c] sm:$0xf]  ;;  %v12731_v14 = vor.u32 %v18041_v6, %v12730_v5  ;;  %v12706_v34 = vld [vmem:[#allocation10 + $0x3d0] sm:$0xf] }
 0x15b   :  { %v13212_v53 = vld [vmem:[#allocation10 + $0x7e8] sm:$0xf0]  ;;  %v12383_v55 = vor.u32 %v17949_v44, %v12380_v36  ;;  %v18034_v35 = vld [vmem:[#allocation10 + $0x3ec] sm:$0xf0] }
 0x15c   :  { %2438 = vmatpush.bf16.msra.mxu3 %v12507_v50  ;;  %2460 = vmatpush.bf16.msrb.mxu1 %v13147_v51  ;;  %v12795_v50 = vor.u32 %v18057_v42, %v12794_v41  ;;  %v12572_v51 = vld [vmem:[#allocation10 + $0x2e8] sm:$0xf0]  ;;  %v13215_v62 = vor.u32 %v18157_v52, %v13212_v53  ;;  %v12418_v5 = vld [vmem:[#allocation10 + $0x190] sm:$0xf] }
 0x15d   :  { %v12575_v61 = vor.u32 %v17997_v49, %v12572_v51  ;;  %v18141_v16 = vld [vmem:[#allocation10 + $0x74c] sm:$0xf]  ;;  %v18026_v49 = vld [vmem:[#allocation10 + $0x3ac] sm:$0xf0] }
 0x15e   :  { %2424 = vmatpush.bf16.msra.mxu2 %v12283_v58  ;;  %2446 = vmatpush.bf16.msrb.mxu0 %v12923_v59  ;;  %v12987_v58 = vor.u32 %v18105_v48, %v12986_v47  ;;  %v17941_v59 = vld [vmem:[#allocation10 + $0x10c] sm:$0xf]  ;;  %v12674_v48 = vld [vmem:[#allocation10 + $0x390] sm:$0xf] }
 0x15f   :  { %v13148_v17 = vld [vmem:[#allocation10 + $0x768] sm:$0xf0]  ;;  %v17962_v6 = vld [vmem:[#allocation10 + $0x1ac] sm:$0xf0] }
 0x160   :  { %2439 = vmatpush.bf16.msra.mxu3 %v12475_v2  ;;  %2461 = vmatpush.bf16.msrb.mxu1 %v13115_v3  ;;  %v18149_v2 = vld [vmem:[#allocation10 + $0x78c] sm:$0xf] }
 0x161   :  { %v13180_v3 = vld [vmem:[#allocation10 + $0x7a8] sm:$0xf0] }
 0x162   :  { %2425 = vmatpush.bf16.msra.mxu2 %v12251_v7  ;;  %2447 = vmatpush.bf16.msrb.mxu0 %v12891_v8  ;;  %v17933_v7 = vld [vmem:[#allocation10 + $0xcc] sm:$0xf]  ;;  %v13183_v12 = vor.u32 %v18149_v2, %v13180_v3 }
 0x163   :  { %2414 = vmatmul.bf16.vlgmr.msra.gmra.mxu1 %v19733_v20  ;;  %2440 = vmatmul.bf16.vlgmr.msra.gmra.mxu3 %v19725_v31  ;;  %v12316_v8 = vld [vmem:[#allocation10 + $0xe8] sm:$0xf0] }
 0x164   :  { %2484 = vmatpush.bf16.msrb.mxu3 %v12703_v4  ;;  %2462 = vmatpush.bf16.msrb.mxu1 %v13083_v15  ;;  %v12351_v4 = vor.u32 %v17941_v59, %v12348_v60  ;;  %v12508_v15 = vld [vmem:[#allocation10 + $0x268] sm:$0xf0] }
 0x165   :  { %v17925_v21 = vld [vmem:[#allocation10 + $0x8c] sm:$0xf]  ;;  %v12511_v25 = vor.u32 %v17981_v13, %v12508_v15  ;;  %v12419_v13 = vor.u32 %v17962_v6, %v12418_v5  ;;  %v18138_v5 = vld [vmem:[#allocation10 + $0x72c] sm:$0xf0] }
 0x166   :  { %2426 = vmatpush.bf16.msra.mxu2 %v12219_v22  ;;  %2448 = vmatpush.bf16.msrb.mxu0 %v12859_v23  ;;  %v12284_v22 = vld [vmem:[#allocation10 + $0xa8] sm:$0xf0] }
 0x167   :  { %v18085_v23 = vld [vmem:[#allocation10 + $0x58c] sm:$0xf]  ;;  %v12287_v32 = vor.u32 %v17925_v21, %v12284_v22 }
 0x168   :  { %2485 = vmatpush.bf16.msrb.mxu3 %v12671_v18  ;;  %2463 = vmatpush.bf16.msrb.mxu1 %v13051_v29  ;;  %v12319_v18 = vor.u32 %v17933_v7, %v12316_v8  ;;  %v17973_v27 = vld [vmem:[#allocation10 + $0x20c] sm:$0xf] }
 0x169   :  { %2401 = vmatmul.bf16.vlgmr.msra.gmra.mxu0 %v19737_v45  ;;  %2427 = vmatmul.bf16.vlgmr.msra.gmra.mxu2 %v19728_v54  ;;  %v12476_v28 = vld [vmem:[#allocation10 + $0x228] sm:$0xf0] }
 0x16a   :  { %2471 = vmatpush.bf16.msrb.mxu2 %v12447_v26  ;;  %2449 = vmatpush.bf16.msrb.mxu0 %v12827_v37  ;;  %v13151_v26 = vor.u32 %v18141_v16, %v13148_v17  ;;  %v18133_v29 = vld [vmem:[#allocation10 + $0x70c] sm:$0xf]  ;;  %v12479_v41 = vor.u32 %v17973_v27, %v12476_v28  ;;  %v12386_v17 = vld [vmem:[#allocation10 + $0x150] sm:$0xf] }
 0x16b   :  { %v13116_v30 = vld [vmem:[#allocation10 + $0x728] sm:$0xf0]  ;;  %v18162_v27 = vld [vmem:[#allocation10 + $0x7ec] sm:$0xf0] }
 0x16c   :  { %2486 = vmatpush.bf16.msrb.mxu3 %v12639_v33  ;;  %2464 = vmatpush.bf16.msrb.mxu1 %v13019_v43  ;;  %v12927_v33 = vor.u32 %v18085_v23, %v12924_v24  ;;  %v17917_v37 = vld [vmem:[#allocation10 + $0x4c] sm:$0xf]  ;;  %v13119_v42 = vor.u32 %v18133_v29, %v13116_v30  ;;  %v12707_v43 = vor.u32 %v18034_v35, %v12706_v34  ;;  %v12578_v23 = vld [vmem:[#allocation10 + $0x2d0] sm:$0xf] }
 0x16d   :  { %v18125_v44 = vld [vmem:[#allocation10 + $0x6cc] sm:$0xf]  ;;  %v17946_v34 = vld [vmem:[#allocation10 + $0x12c] sm:$0xf0] }
 0x16e   :  { %2472 = vmatpush.bf16.msrb.mxu2 %v12415_v40  ;;  %2450 = vmatpush.bf16.msrb.mxu0 %v12795_v50  ;;  %v12892_v40 = vld [vmem:[#allocation10 + $0x568] sm:$0xf0] }
 0x16f   :  { %v13084_v36 = vld [vmem:[#allocation10 + $0x6e8] sm:$0xf0]  ;;  %v12895_v47 = vor.u32 %v18077_v39, %v12892_v40  ;;  %v17994_v40 = vld [vmem:[#allocation10 + $0x2ac] sm:$0xf0] }
 0x170   :  { %2487 = vmatpush.bf16.msrb.mxu3 %v12607_v46  ;;  %2465 = vmatpush.bf16.msrb.mxu1 %v12987_v58  ;;  %v12255_v46 = vor.u32 %v17917_v37, %v12252_v38  ;;  %v17909_v50 = vld [vmem:[#allocation10 + $0xc] sm:$0xf]  ;;  %v12675_v58 = vor.u32 %v18026_v49, %v12674_v48  ;;  %v12546_v38 = vld [vmem:[#allocation10 + $0x290] sm:$0xf] }
 0x171   :  { %v12220_v51 = vld [vmem:[#allocation10 + $0x28] sm:$0xf0]  ;;  %v12962_v48 = vld [vmem:[#allocation10 + $0x5d0] sm:$0xf] }
 0x172   :  { %2473 = vmatpush.bf16.msrb.mxu2 %v12383_v55  ;;  %2451 = vmatpush.bf16.msrb.mxu0 %v12763_v0  ;;  %v18069_v52 = vld [vmem:[#allocation10 + $0x50c] sm:$0xf]  ;;  %v13087_v55 = vor.u32 %v18125_v44, %v13084_v36  ;;  %v18018_v0 = vld [vmem:[#allocation10 + $0x36c] sm:$0xf0] }
 0x173   :  { %2466 = vmatmul.bf16.vlgmr.msrb.gmra.mxu1 %v19733_v20  ;;  %v12860_v53 = vld [vmem:[#allocation10 + $0x528] sm:$0xf0]  ;;  %v12643_v7 = vor.u32 %v18018_v0, %v12642_v63  ;;  %v18098_v49 = vld [vmem:[#allocation10 + $0x5ec] sm:$0xf0] }
 0x174   :  { %2488 = vmatpush.bf16.msrb.mxu3 %v12575_v61  ;;  %2510 = vmatpush.bf16.msra.mxu1 %v13215_v62  ;;  %v18117_v59 = vld [vmem:[#allocation10 + $0x68c] sm:$0xf]  ;;  %v12223_v61 = vor.u32 %v17909_v50, %v12220_v51  ;;  %v12863_v62 = vor.u32 %v18069_v52, %v12860_v53  ;;  %v12547_v50 = vor.u32 %v17994_v40, %v12546_v38  ;;  %v12514_v53 = vld [vmem:[#allocation10 + $0x250] sm:$0xf]  ;;  %v18014_v38 = vld [vmem:[#allocation10 + $0x354] sm:$0xf] }
 0x175   :  { %v13052_v60 = vld [vmem:[#allocation10 + $0x6a8] sm:$0xf0]  ;;  %v12963_v57 = vor.u32 %v18098_v49, %v12962_v48  ;;  %v18090_v63 = vld [vmem:[#allocation10 + $0x5ac] sm:$0xf0]  ;;  %v12644_v40 = vld [vmem:[#allocation10 + $0x370] sm:$0xf0] }
 0x176   :  { %2474 = vmatpush.bf16.msrb.mxu2 %v12351_v4  ;;  %2452 = vmatpush.bf16.msrb.mxu0 %v12731_v14  ;;  %v18061_v2 = vld [vmem:[#allocation10 + $0x4cc] sm:$0xf]  ;;  %v13055_v4 = vor.u32 %v18117_v59, %v13052_v60  ;;  %v18146_v59 = vld [vmem:[#allocation10 + $0x76c] sm:$0xf0] }
 0x177   :  { %v12828_v3 = vld [vmem:[#allocation10 + $0x4e8] sm:$0xf0]  ;;  %v12290_v60 = vld [vmem:[#allocation10 + $0x90] sm:$0xf] }
 0x178   :  { %2489 = vmatpush.bf16.msrb.mxu3 %v12543_v11  ;;  %2511 = vmatpush.bf16.msra.mxu1 %v13183_v12  ;;  %v18109_v8 = vld [vmem:[#allocation10 + $0x64c] sm:$0xf]  ;;  %v12831_v10 = vor.u32 %v18061_v2, %v12828_v3  ;;  %v12610_v11 = vld [vmem:[#allocation10 + $0x310] sm:$0xf] }
 0x179   :  { %2453 = vmatmul.bf16.vlgmr.msrb.gmra.mxu0 %v19737_v45  ;;  %v13020_v9 = vld [vmem:[#allocation10 + $0x668] sm:$0xf0]  ;;  %v18010_v12 = vld [vmem:[#allocation10 + $0x32c] sm:$0xf0] }
 0x17a   :  { %2475 = vmatpush.bf16.msrb.mxu2 %v12319_v18  ;;  %2497 = vmatpush.bf16.msra.mxu0 %v12959_v19  ;;  %v18053_v14 = vld [vmem:[#allocation10 + $0x48c] sm:$0xf]  ;;  %v13023_v16 = vor.u32 %v18109_v8, %v13020_v9  ;;  %v17954_v18 = vld [vmem:[#allocation10 + $0x16c] sm:$0xf0]  ;;  %v12611_v19 = vor.u32 %v18010_v12, %v12610_v11  ;;  %v18030_v8 = vld [vmem:[#allocation10 + $0x3d4] sm:$0xf] }
 0x17b   :  { %v12796_v15 = vld [vmem:[#allocation10 + $0x4a8] sm:$0xf0]  ;;  %v12387_v28 = vor.u32 %v17954_v18, %v12386_v17  ;;  %v17978_v3 = vld [vmem:[#allocation10 + $0x22c] sm:$0xf0]  ;;  %v12708_v9 = vld [vmem:[#allocation10 + $0x3f0] sm:$0xf0] }
 0x17c   :  { %2490 = vmatpush.bf16.msrb.mxu3 %v12511_v25  ;;  %2512 = vmatpush.bf16.msra.mxu1 %v13151_v26  ;;  %v18101_v21 = vld [vmem:[#allocation10 + $0x60c] sm:$0xf]  ;;  %v12799_v24 = vor.u32 %v18053_v14, %v12796_v15  ;;  %v18002_v25 = vld [vmem:[#allocation10 + $0x2ec] sm:$0xf0] }
 0x17d   :  { %v12988_v22 = vld [vmem:[#allocation10 + $0x628] sm:$0xf0]  ;;  %v13218_v26 = vld [vmem:[#allocation10 + $0x7d0] sm:$0xf]  ;;  %v12579_v35 = vor.u32 %v18002_v25, %v12578_v23  ;;  %v12676_v23 = vld [vmem:[#allocation10 + $0x3b0] sm:$0xf0] }
 0x17e   :  { %2476 = vmatpush.bf16.msrb.mxu2 %v12287_v32  ;;  %2498 = vmatpush.bf16.msra.mxu0 %v12927_v33  ;;  %v18045_v29 = vld [vmem:[#allocation10 + $0x44c] sm:$0xf]  ;;  %v12991_v32 = vor.u32 %v18101_v21, %v12988_v22  ;;  %v12354_v33 = vld [vmem:[#allocation10 + $0x110] sm:$0xf]  ;;  %v13219_v37 = vor.u32 %v18162_v27, %v13218_v26  ;;  %v18022_v22 = vld [vmem:[#allocation10 + $0x394] sm:$0xf] }
 0x17f   :  { %v12764_v30 = vld [vmem:[#allocation10 + $0x468] sm:$0xf0]  ;;  %v17922_v11 = vld [vmem:[#allocation10 + $0x6c] sm:$0xf0] }
 0x180   :  { %2491 = vmatpush.bf16.msrb.mxu3 %v12479_v41  ;;  %2513 = vmatpush.bf16.msra.mxu1 %v13119_v42  ;;  %v12767_v39 = vor.u32 %v18045_v29, %v12764_v30  ;;  %v13186_v41 = vld [vmem:[#allocation10 + $0x790] sm:$0xf]  ;;  %v18037_v44 = vld [vmem:[#allocation10 + $0x40c] sm:$0xf]  ;;  %v12452_v29 = vld [vmem:[#allocation10 + $0x1f0] sm:$0xf0] }
 0x181   :  { %v18154_v42 = vld [vmem:[#allocation10 + $0x7ac] sm:$0xf0]  ;;  %v12732_v36 = vld [vmem:[#allocation10 + $0x428] sm:$0xf0] }
 0x182   :  { %2477 = vmatpush.bf16.msrb.mxu2 %v12255_v46  ;;  %2499 = vmatpush.bf16.msra.mxu0 %v12895_v47  ;;  %v12322_v46 = vld [vmem:[#allocation10 + $0xd0] sm:$0xf]  ;;  %v13187_v51 = vor.u32 %v18154_v42, %v13186_v41  ;;  %v12735_v52 = vor.u32 %v18037_v44, %v12732_v36  ;;  %v12420_v44 = vld [vmem:[#allocation10 + $0x1b0] sm:$0xf0] }
 0x183   :  { %2492 = vmatmul.bf16.vlgmr.msrb.gmra.mxu3 %v19725_v31  ;;  %v17938_v47 = vld [vmem:[#allocation10 + $0xec] sm:$0xf0] }
 0x184   :  { %2536 = vmatpush.bf16.msra.mxu3 %v12707_v43  ;;  %2514 = vmatpush.bf16.msra.mxu1 %v13087_v55  ;;  %v12355_v43 = vor.u32 %v17946_v34, %v12354_v33  ;;  %v17986_v55 = vld [vmem:[#allocation10 + $0x26c] sm:$0xf0]  ;;  %v12323_v56 = vor.u32 %v17938_v47, %v12322_v46  ;;  %v12647_v46 = vor.u32 %v18014_v38, %v12644_v40  ;;  %v12932_v38 = vld [vmem:[#allocation10 + $0x5b0] sm:$0xf0] }
 0x185   :  { %v12515_v0 = vor.u32 %v17986_v55, %v12514_v53  ;;  %v12898_v12 = vld [vmem:[#allocation10 + $0x550] sm:$0xf]  ;;  %v17974_v40 = vld [vmem:[#allocation10 + $0x214] sm:$0xf] }
 0x186   :  { %2478 = vmatpush.bf16.msrb.mxu2 %v12223_v61  ;;  %2500 = vmatpush.bf16.msra.mxu0 %v12863_v62  ;;  %v17930_v61 = vld [vmem:[#allocation10 + $0xac] sm:$0xf0] }
 0x187   :  { %v12930_v62 = vld [vmem:[#allocation10 + $0x590] sm:$0xf]  ;;  %v12291_v6 = vor.u32 %v17930_v61, %v12290_v60 }
 0x188   :  { %2537 = vmatpush.bf16.msra.mxu3 %v12675_v58  ;;  %2515 = vmatpush.bf16.msra.mxu1 %v13055_v4  ;;  %v13154_v58 = vld [vmem:[#allocation10 + $0x750] sm:$0xf] }
 0x189   :  { %2479 = vmatmul.bf16.vlgmr.msrb.gmra.mxu2 %v19728_v54  ;;  %v13155_v2 = vor.u32 %v18146_v59, %v13154_v58  ;;  %v13122_v4 = vld [vmem:[#allocation10 + $0x710] sm:$0xf] }
 0x18a   :  { %2523 = vmatpush.bf16.msra.mxu2 %v12451_v1  ;;  %2501 = vmatpush.bf16.msra.mxu0 %v12831_v10  ;;  %v12482_v1 = vld [vmem:[#allocation10 + $0x210] sm:$0xf]  ;;  %v13123_v15 = vor.u32 %v18138_v5, %v13122_v4 }
 0x18b   :  { %v12258_v10 = vld [vmem:[#allocation10 + $0x50] sm:$0xf]  ;;  %v12483_v14 = vor.u32 %v17978_v3, %v12482_v1  ;;  %v13220_v3 = vld [vmem:[#allocation10 + $0x7f0] sm:$0xf0] }
 0x18c   :  { %2538 = vmatpush.bf16.msra.mxu3 %v12643_v7  ;;  %2516 = vmatpush.bf16.msra.mxu1 %v13023_v16  ;;  %v12931_v7 = vor.u32 %v18090_v63, %v12930_v62  ;;  %v12711_v16 = vor.u32 %v18030_v8, %v12708_v9  ;;  %v13090_v17 = vld [vmem:[#allocation10 + $0x6d0] sm:$0xf]  ;;  %v17998_v63 = vld [vmem:[#allocation10 + $0x2d4] sm:$0xf] }
 0x18d   :  { %v18130_v18 = vld [vmem:[#allocation10 + $0x6ec] sm:$0xf0] }
 0x18e   :  { %2524 = vmatpush.bf16.msra.mxu2 %v12419_v13  ;;  %2502 = vmatpush.bf16.msra.mxu0 %v12799_v24  ;;  %v18082_v13 = vld [vmem:[#allocation10 + $0x56c] sm:$0xf0]  ;;  %v13091_v30 = vor.u32 %v18130_v18, %v13090_v17 }
 0x18f   :  { %v12899_v21 = vor.u32 %v18082_v13, %v12898_v12  ;;  %v12226_v24 = vld [vmem:[#allocation10 + $0x10] sm:$0xf]  ;;  %v12548_v12 = vld [vmem:[#allocation10 + $0x2b0] sm:$0xf0] }
 0x190   :  { %2539 = vmatpush.bf16.msra.mxu3 %v12611_v19  ;;  %2517 = vmatpush.bf16.msra.mxu1 %v12991_v32  ;;  %v12259_v19 = vor.u32 %v17922_v11, %v12258_v10  ;;  %v17914_v25 = vld [vmem:[#allocation10 + $0x2c] sm:$0xf0]  ;;  %v12679_v32 = vor.u32 %v18022_v22, %v12676_v23  ;;  %v17990_v11 = vld [vmem:[#allocation10 + $0x294] sm:$0xf] }
 0x191   :  { %v12866_v26 = vld [vmem:[#allocation10 + $0x510] sm:$0xf]  ;;  %v12227_v33 = vor.u32 %v17914_v25, %v12226_v24  ;;  %v18094_v22 = vld [vmem:[#allocation10 + $0x5d4] sm:$0xf]  ;;  %v12551_v24 = vor.u32 %v17990_v11, %v12548_v12  ;;  %v12650_v11 = vld [vmem:[#allocation10 + $0x358] sm:$0xf] }
 0x192   :  { %2525 = vmatpush.bf16.msra.mxu2 %v12387_v28  ;;  %2503 = vmatpush.bf16.msra.mxu0 %v12767_v39  ;;  %v18074_v27 = vld [vmem:[#allocation10 + $0x52c] sm:$0xf0]  ;;  %v17966_v28 = vld [vmem:[#allocation10 + $0x1d4] sm:$0xf] }
 0x193   :  { %2518 = vmatmul.bf16.vlgmr.msra.gmra.mxu1 %v19733_v20  ;;  %v12867_v34 = vor.u32 %v18074_v27, %v12866_v26  ;;  %v12455_v39 = vor.u32 %v17966_v28, %v12452_v29  ;;  %v12834_v41 = vld [vmem:[#allocation10 + $0x4d0] sm:$0xf]  ;;  %v12964_v23 = vld [vmem:[#allocation10 + $0x5f0] sm:$0xf0] }
 0x194   :  { %2540 = vmatpush.bf16.msra.mxu3 %v12579_v35  ;;  %2562 = vmatpush.bf16.msrb.mxu1 %v13219_v37  ;;  %v13058_v35 = vld [vmem:[#allocation10 + $0x690] sm:$0xf]  ;;  %v17982_v28 = vld [vmem:[#allocation10 + $0x254] sm:$0xf] }
 0x195   :  { %v18122_v37 = vld [vmem:[#allocation10 + $0x6ac] sm:$0xf0]  ;;  %v12516_v29 = vld [vmem:[#allocation10 + $0x270] sm:$0xf0] }
 0x196   :  { %2526 = vmatpush.bf16.msra.mxu2 %v12355_v43  ;;  %2504 = vmatpush.bf16.msra.mxu0 %v12735_v52  ;;  %v18066_v42 = vld [vmem:[#allocation10 + $0x4ec] sm:$0xf0]  ;;  %v17958_v43 = vld [vmem:[#allocation10 + $0x194] sm:$0xf]  ;;  %v13059_v36 = vor.u32 %v18122_v37, %v13058_v35 }
 0x197   :  { %v12835_v47 = vor.u32 %v18066_v42, %v12834_v41  ;;  %v13026_v48 = vld [vmem:[#allocation10 + $0x650] sm:$0xf]  ;;  %v12612_v52 = vld [vmem:[#allocation10 + $0x330] sm:$0xf0] }
 0x198   :  { %2541 = vmatpush.bf16.msra.mxu3 %v12547_v50  ;;  %2563 = vmatpush.bf16.msrb.mxu1 %v13187_v51  ;;  %v18114_v49 = vld [vmem:[#allocation10 + $0x66c] sm:$0xf0]  ;;  %v18006_v50 = vld [vmem:[#allocation10 + $0x314] sm:$0xf]  ;;  %v12423_v51 = vor.u32 %v17958_v43, %v12420_v44 }
 0x199   :  { %2505 = vmatmul.bf16.vlgmr.msra.gmra.mxu0 %v19737_v45  ;;  %v12802_v53 = vld [vmem:[#allocation10 + $0x490] sm:$0xf]  ;;  %v13027_v58 = vor.u32 %v18114_v49, %v13026_v48  ;;  %v12615_v60 = vor.u32 %v18006_v50, %v12612_v52  ;;  %v12292_v35 = vld [vmem:[#allocation10 + $0xb0] sm:$0xf0]  ;;  %v18035_v48 = vld [vmem:[#allocation10 + $0x3f4] sm:$0xf0] }
 0x19a   :  { %2527 = vmatpush.bf16.msra.mxu2 %v12323_v56  ;;  %2549 = vmatpush.bf16.msrb.mxu0 %v12963_v57  ;;  %v18058_v55 = vld [vmem:[#allocation10 + $0x4ac] sm:$0xf0]  ;;  %v17950_v56 = vld [vmem:[#allocation10 + $0x154] sm:$0xf] }
 0x19b   :  { %v12388_v57 = vld [vmem:[#allocation10 + $0x170] sm:$0xf0]  ;;  %v12994_v59 = vld [vmem:[#allocation10 + $0x610] sm:$0xf]  ;;  %v12803_v61 = vor.u32 %v18058_v55, %v12802_v53 }
 0x19c   :  { %2542 = vmatpush.bf16.msra.mxu3 %v12515_v0  ;;  %2564 = vmatpush.bf16.msrb.mxu1 %v13155_v2  ;;  %v18106_v62 = vld [vmem:[#allocation10 + $0x62c] sm:$0xf0]  ;;  %v12580_v0 = vld [vmem:[#allocation10 + $0x2f0] sm:$0xf0]  ;;  %v12391_v1 = vor.u32 %v17950_v56, %v12388_v57 }
 0x19d   :  { %v18158_v2 = vld [vmem:[#allocation10 + $0x7d4] sm:$0xf]  ;;  %v12770_v4 = vld [vmem:[#allocation10 + $0x450] sm:$0xf]  ;;  %v12995_v8 = vor.u32 %v18106_v62, %v12994_v59  ;;  %v12583_v9 = vor.u32 %v17998_v63, %v12580_v0  ;;  %v18027_v62 = vld [vmem:[#allocation10 + $0x3b4] sm:$0xf0] }
 0x19e   :  { %2528 = vmatpush.bf16.msra.mxu2 %v12291_v6  ;;  %2550 = vmatpush.bf16.msrb.mxu0 %v12931_v7  ;;  %v18050_v5 = vld [vmem:[#allocation10 + $0x46c] sm:$0xf0]  ;;  %v17942_v6 = vld [vmem:[#allocation10 + $0x114] sm:$0xf]  ;;  %v13223_v10 = vor.u32 %v18158_v2, %v13220_v3  ;;  %v12458_v3 = vld [vmem:[#allocation10 + $0x1d8] sm:$0xf] }
 0x19f   :  { %v12356_v7 = vld [vmem:[#allocation10 + $0x130] sm:$0xf0]  ;;  %v12771_v13 = vor.u32 %v18050_v5, %v12770_v4  ;;  %v12738_v17 = vld [vmem:[#allocation10 + $0x410] sm:$0xf]  ;;  %v17971_v4 = vld [vmem:[#allocation10 + $0x1f4] sm:$0xf0] }
 0x1a0   :  { %2543 = vmatpush.bf16.msra.mxu3 %v12483_v14  ;;  %2565 = vmatpush.bf16.msrb.mxu1 %v13123_v15  ;;  %v12359_v14 = vor.u32 %v17942_v6, %v12356_v7  ;;  %v18150_v15 = vld [vmem:[#allocation10 + $0x794] sm:$0xf]  ;;  %v18042_v18 = vld [vmem:[#allocation10 + $0x42c] sm:$0xf0]  ;;  %v12459_v12 = vor.u32 %v17971_v4, %v12458_v3 }
 0x1a1   :  { %v12739_v26 = vor.u32 %v18042_v18, %v12738_v17  ;;  %v18086_v37 = vld [vmem:[#allocation10 + $0x594] sm:$0xf]  ;;  %v17963_v17 = vld [vmem:[#allocation10 + $0x1b4] sm:$0xf0] }
 0x1a2   :  { %2529 = vmatpush.bf16.msra.mxu2 %v12259_v19  ;;  %2551 = vmatpush.bf16.msrb.mxu0 %v12899_v21  ;;  %v17934_v19 = vld [vmem:[#allocation10 + $0xd4] sm:$0xf] }
 0x1a3   :  { %2544 = vmatmul.bf16.vlgmr.msra.gmra.mxu3 %v19725_v31  ;;  %v12324_v21 = vld [vmem:[#allocation10 + $0xf0] sm:$0xf0] }
 0x1a4   :  { %2588 = vmatpush.bf16.msrb.mxu3 %v12711_v16  ;;  %2566 = vmatpush.bf16.msrb.mxu1 %v13091_v30  ;;  %v13188_v16 = vld [vmem:[#allocation10 + $0x7b0] sm:$0xf0]  ;;  %v12327_v27 = vor.u32 %v17934_v19, %v12324_v21 }
 0x1a5   :  { %v13191_v25 = vor.u32 %v18150_v15, %v13188_v16  ;;  %v18142_v30 = vld [vmem:[#allocation10 + $0x754] sm:$0xf]  ;;  %v12426_v16 = vld [vmem:[#allocation10 + $0x198] sm:$0xf] }
 0x1a6   :  { %2530 = vmatpush.bf16.msra.mxu2 %v12227_v33  ;;  %2552 = vmatpush.bf16.msrb.mxu0 %v12867_v34  ;;  %v13156_v33 = vld [vmem:[#allocation10 + $0x770] sm:$0xf0] }
 0x1a7   :  { %v17926_v34 = vld [vmem:[#allocation10 + $0x94] sm:$0xf]  ;;  %v13159_v41 = vor.u32 %v18142_v30, %v13156_v33  ;;  %v17955_v30 = vld [vmem:[#allocation10 + $0x174] sm:$0xf0] }
 0x1a8   :  { %2589 = vmatpush.bf16.msrb.mxu3 %v12679_v32  ;;  %2567 = vmatpush.bf16.msrb.mxu1 %v13059_v36  ;;  %v12967_v32 = vor.u32 %v18094_v22, %v12964_v23  ;;  %v12295_v42 = vor.u32 %v17926_v34, %v12292_v35  ;;  %v12484_v43 = vld [vmem:[#allocation10 + $0x230] sm:$0xf0] }
 0x1a9   :  { %2531 = vmatmul.bf16.vlgmr.msra.gmra.mxu2 %v19728_v54  ;;  %v18134_v44 = vld [vmem:[#allocation10 + $0x714] sm:$0xf]  ;;  %v12487_v53 = vor.u32 %v17974_v40, %v12484_v43 }
 0x1aa   :  { %2575 = vmatpush.bf16.msrb.mxu2 %v12455_v39  ;;  %2553 = vmatpush.bf16.msrb.mxu0 %v12835_v47  ;;  %v12519_v39 = vor.u32 %v17982_v28, %v12516_v29  ;;  %v13124_v36 = vld [vmem:[#allocation10 + $0x730] sm:$0xf0]  ;;  %v12714_v47 = vld [vmem:[#allocation10 + $0x3d8] sm:$0xf] }
 0x1ab   :  { %v17918_v49 = vld [vmem:[#allocation10 + $0x54] sm:$0xf]  ;;  %v13127_v55 = vor.u32 %v18134_v44, %v13124_v36  ;;  %v12715_v56 = vor.u32 %v18035_v48, %v12714_v47  ;;  %v12394_v29 = vld [vmem:[#allocation10 + $0x158] sm:$0xf] }
 0x1ac   :  { %2590 = vmatpush.bf16.msrb.mxu3 %v12647_v46  ;;  %2568 = vmatpush.bf16.msrb.mxu1 %v13027_v58  ;;  %v12935_v46 = vor.u32 %v18086_v37, %v12932_v38  ;;  %v12260_v50 = vld [vmem:[#allocation10 + $0x70] sm:$0xf0]  ;;  %v12586_v38 = vld [vmem:[#allocation10 + $0x2d8] sm:$0xf]  ;;  %v12395_v40 = vor.u32 %v17955_v30, %v12394_v29  ;;  %v18031_v29 = vld [vmem:[#allocation10 + $0x3dc] sm:$0xf] }
 0x1ad   :  { %v12900_v52 = vld [vmem:[#allocation10 + $0x570] sm:$0xf0]  ;;  %v12263_v59 = vor.u32 %v17918_v49, %v12260_v50  ;;  %v12362_v36 = vld [vmem:[#allocation10 + $0x118] sm:$0xf]  ;;  %v12716_v30 = vld [vmem:[#allocation10 + $0x3f8] sm:$0xf0] }
 0x1ae   :  { %2576 = vmatpush.bf16.msrb.mxu2 %v12423_v51  ;;  %2554 = vmatpush.bf16.msrb.mxu0 %v12803_v61  ;;  %v18078_v51 = vld [vmem:[#allocation10 + $0x554] sm:$0xf]  ;;  %v12682_v61 = vld [vmem:[#allocation10 + $0x398] sm:$0xf] }
 0x1af   :  { %v18126_v57 = vld [vmem:[#allocation10 + $0x6d4] sm:$0xf]  ;;  %v12683_v6 = vor.u32 %v18027_v62, %v12682_v61  ;;  %v12330_v61 = vld [vmem:[#allocation10 + $0xd8] sm:$0xf] }
 0x1b0   :  { %2591 = vmatpush.bf16.msrb.mxu3 %v12615_v60  ;;  %2569 = vmatpush.bf16.msrb.mxu1 %v12995_v8  ;;  %v13092_v58 = vld [vmem:[#allocation10 + $0x6f0] sm:$0xf0]  ;;  %v12903_v60 = vor.u32 %v18078_v51, %v12900_v52  ;;  %v12554_v51 = vld [vmem:[#allocation10 + $0x298] sm:$0xf] }
 0x1b1   :  { %v17910_v63 = vld [vmem:[#allocation10 + $0x14] sm:$0xf]  ;;  %v13095_v5 = vor.u32 %v18126_v57, %v13092_v58  ;;  %v17995_v52 = vld [vmem:[#allocation10 + $0x2b4] sm:$0xf0] }
 0x1b2   :  { %2577 = vmatpush.bf16.msrb.mxu2 %v12391_v1  ;;  %2555 = vmatpush.bf16.msrb.mxu0 %v12771_v13  ;;  %v12228_v0 = vld [vmem:[#allocation10 + $0x30] sm:$0xf0]  ;;  %v18019_v13 = vld [vmem:[#allocation10 + $0x374] sm:$0xf0] }
 0x1b3   :  { %2570 = vmatmul.bf16.vlgmr.msrb.gmra.mxu1 %v19733_v20  ;;  %v18070_v1 = vld [vmem:[#allocation10 + $0x514] sm:$0xf]  ;;  %v12231_v7 = vor.u32 %v17910_v63, %v12228_v0  ;;  %v12651_v19 = vor.u32 %v18019_v13, %v12650_v11  ;;  %v13194_v57 = vld [vmem:[#allocation10 + $0x798] sm:$0xf] }
 0x1b4   :  { %2592 = vmatpush.bf16.msrb.mxu3 %v12583_v9  ;;  %2614 = vmatpush.bf16.msra.mxu1 %v13223_v10  ;;  %v12868_v2 = vld [vmem:[#allocation10 + $0x530] sm:$0xf0]  ;;  %v18155_v58 = vld [vmem:[#allocation10 + $0x7b4] sm:$0xf0] }
 0x1b5   :  { %v12871_v8 = vor.u32 %v18070_v1, %v12868_v2  ;;  %v18118_v9 = vld [vmem:[#allocation10 + $0x694] sm:$0xf]  ;;  %v17939_v62 = vld [vmem:[#allocation10 + $0xf4] sm:$0xf0]  ;;  %v12555_v2 = vor.u32 %v17995_v52, %v12554_v51  ;;  %v13195_v3 = vor.u32 %v18155_v58, %v13194_v57 }
 0x1b6   :  { %2578 = vmatpush.bf16.msrb.mxu2 %v12359_v14  ;;  %2556 = vmatpush.bf16.msrb.mxu0 %v12739_v26  ;;  %v13060_v10 = vld [vmem:[#allocation10 + $0x6b0] sm:$0xf0]  ;;  %v18011_v26 = vld [vmem:[#allocation10 + $0x334] sm:$0xf0] }
 0x1b7   :  { %v18062_v14 = vld [vmem:[#allocation10 + $0x4d4] sm:$0xf]  ;;  %v13063_v18 = vor.u32 %v18118_v9, %v13060_v10  ;;  %v12970_v0 = vld [vmem:[#allocation10 + $0x5d8] sm:$0xf] }
 0x1b8   :  { %2593 = vmatpush.bf16.msrb.mxu3 %v12551_v24  ;;  %2615 = vmatpush.bf16.msra.mxu1 %v13191_v25  ;;  %v12836_v15 = vld [vmem:[#allocation10 + $0x4f0] sm:$0xf0]  ;;  %v12618_v24 = vld [vmem:[#allocation10 + $0x318] sm:$0xf]  ;;  %v12427_v25 = vor.u32 %v17963_v17, %v12426_v16 }
 0x1b9   :  { %2557 = vmatmul.bf16.vlgmr.msrb.gmra.mxu0 %v19737_v45  ;;  %v12839_v21 = vor.u32 %v18062_v14, %v12836_v15  ;;  %v18110_v22 = vld [vmem:[#allocation10 + $0x654] sm:$0xf]  ;;  %v12619_v34 = vor.u32 %v18011_v26, %v12618_v24  ;;  %v18099_v1 = vld [vmem:[#allocation10 + $0x5f4] sm:$0xf0] }
 0x1ba   :  { %2579 = vmatpush.bf16.msrb.mxu2 %v12327_v27  ;;  %2601 = vmatpush.bf16.msra.mxu0 %v12967_v32  ;;  %v13028_v23 = vld [vmem:[#allocation10 + $0x670] sm:$0xf0]  ;;  %v12971_v10 = vor.u32 %v18099_v1, %v12970_v0  ;;  %v18147_v11 = vld [vmem:[#allocation10 + $0x774] sm:$0xf0]  ;;  %v18015_v1 = vld [vmem:[#allocation10 + $0x35c] sm:$0xf] }
 0x1bb   :  { %v18054_v27 = vld [vmem:[#allocation10 + $0x494] sm:$0xf]  ;;  %v13031_v32 = vor.u32 %v18110_v22, %v13028_v23  ;;  %v17931_v13 = vld [vmem:[#allocation10 + $0xb4] sm:$0xf0] }
 0x1bc   :  { %2594 = vmatpush.bf16.msrb.mxu3 %v12519_v39  ;;  %2616 = vmatpush.bf16.msra.mxu1 %v13159_v41  ;;  %v12804_v28 = vld [vmem:[#allocation10 + $0x4b0] sm:$0xf0]  ;;  %v18003_v39 = vld [vmem:[#allocation10 + $0x2f4] sm:$0xf0] }
 0x1bd   :  { %v18102_v33 = vld [vmem:[#allocation10 + $0x614] sm:$0xf]  ;;  %v12807_v35 = vor.u32 %v18054_v27, %v12804_v28  ;;  %v13226_v41 = vld [vmem:[#allocation10 + $0x7d8] sm:$0xf]  ;;  %v12587_v49 = vor.u32 %v18003_v39, %v12586_v38  ;;  %v12719_v39 = vor.u32 %v18031_v29, %v12716_v30 }
 0x1be   :  { %2580 = vmatpush.bf16.msrb.mxu2 %v12295_v42  ;;  %2602 = vmatpush.bf16.msra.mxu0 %v12935_v46  ;;  %v12996_v37 = vld [vmem:[#allocation10 + $0x630] sm:$0xf0]  ;;  %v18163_v42 = vld [vmem:[#allocation10 + $0x7f4] sm:$0xf0] }
 0x1bf   :  { %v18046_v43 = vld [vmem:[#allocation10 + $0x454] sm:$0xf]  ;;  %v17947_v46 = vld [vmem:[#allocation10 + $0x134] sm:$0xf0]  ;;  %v12999_v47 = vor.u32 %v18102_v33, %v12996_v37  ;;  %v13227_v50 = vor.u32 %v18163_v42, %v13226_v41 }
 0x1c0   :  { %2595 = vmatpush.bf16.msrb.mxu3 %v12487_v53  ;;  %2617 = vmatpush.bf16.msra.mxu1 %v13127_v55  ;;  %v12772_v44 = vld [vmem:[#allocation10 + $0x470] sm:$0xf0]  ;;  %v19757_v53 = vld [vmem:[#allocation11] sm:$0xff]  ;;  %v12938_v15 = vld [vmem:[#allocation10 + $0x598] sm:$0xf] }
 0x1c1   :  { %v12775_v55 = vor.u32 %v18046_v43, %v12772_v44  ;;  %v1019_v63 = vperm.slane %v19757_v53, 0  ;;  %v18091_v16 = vld [vmem:[#allocation10 + $0x5b4] sm:$0xf0] }
 0x1c2   :  { %2581 = vmatpush.bf16.msrb.mxu2 %v12263_v59  ;;  %2603 = vmatpush.bf16.msra.mxu0 %v12903_v60  ;;  %v18038_v59 = vld [vmem:[#allocation10 + $0x414] sm:$0xf]  ;;  %v17979_v23 = vld [vmem:[#allocation10 + $0x234] sm:$0xf0]  ;;  %v12939_v28 = vor.u32 %v18091_v16, %v12938_v15  ;;  %v18007_v15 = vld [vmem:[#allocation10 + $0x31c] sm:$0xf] }
 0x1c3   :  { %2596 = vmatmul.bf16.vlgmr.msrb.gmra.mxu3 %v19725_v31  ;;  %v12740_v60 = vld [vmem:[#allocation10 + $0x430] sm:$0xf0]  ;;  %v13130_v24 = vld [vmem:[#allocation10 + $0x718] sm:$0xf] }
 0x1c4   :  { %2640 = vmatpush.bf16.msra.mxu3 %v12715_v56  ;;  %2618 = vmatpush.bf16.msra.mxu1 %v13095_v5  ;;  %v12363_v56 = vor.u32 %v17947_v46, %v12362_v36  ;;  %v12743_v4 = vor.u32 %v18038_v59, %v12740_v60  ;;  %v12331_v5 = vor.u32 %v17939_v62, %v12330_v61  ;;  %v17923_v33 = vld [vmem:[#allocation10 + $0x74] sm:$0xf0]  ;;  %v18023_v36 = vld [vmem:[#allocation10 + $0x39c] sm:$0xf] }
 0x1c5   :  { %v18131_v41 = vld [vmem:[#allocation10 + $0x6f4] sm:$0xf0]  ;;  %v12684_v46 = vld [vmem:[#allocation10 + $0x3b8] sm:$0xf0] }
 0x1c6   :  { %2582 = vmatpush.bf16.msrb.mxu2 %v12231_v7  ;;  %2604 = vmatpush.bf16.msra.mxu0 %v12871_v8  ;;  %v2337_v48 = vpop.f32.mrf.mxu3  ;;  %v17987_v7 = vld [vmem:[#allocation10 + $0x274] sm:$0xf0]  ;;  %v12687_v59 = vor.u32 %v18023_v36, %v12684_v46  ;;  %v17991_v46 = vld [vmem:[#allocation10 + $0x29c] sm:$0xf] }
 0x1c7   :  { %v13162_v8 = vld [vmem:[#allocation10 + $0x758] sm:$0xf] }
 0x1c8   :  { %2641 = vmatpush.bf16.msra.mxu3 %v12683_v6  ;;  %2619 = vmatpush.bf16.msra.mxu1 %v13063_v18  ;;  %v12522_v6 = vld [vmem:[#allocation10 + $0x258] sm:$0xf] }
 0x1c9   :  { %2583 = vmatmul.bf16.vlgmr.msrb.gmra.mxu2 %v19728_v54  ;;  %v12523_v18 = vor.u32 %v17987_v7, %v12522_v6  ;;  %v18123_v0 = vld [vmem:[#allocation10 + $0x6b4] sm:$0xf0]  ;;  %v17959_v7 = vld [vmem:[#allocation10 + $0x19c] sm:$0xf] }
 0x1ca   :  { %2627 = vmatpush.bf16.msra.mxu2 %v12459_v12  ;;  %2605 = vmatpush.bf16.msra.mxu0 %v12839_v21  ;;  %v12298_v12 = vld [vmem:[#allocation10 + $0x98] sm:$0xf]  ;;  %v13163_v21 = vor.u32 %v18147_v11, %v13162_v8  ;;  %v12428_v8 = vld [vmem:[#allocation10 + $0x1b8] sm:$0xf0] }
 0x1cb   :  { %v12299_v22 = vor.u32 %v17931_v13, %v12298_v12  ;;  %v18067_v6 = vld [vmem:[#allocation10 + $0x4f4] sm:$0xf0]  ;;  %v12431_v16 = vor.u32 %v17959_v7, %v12428_v8  ;;  %v18143_v7 = vld [vmem:[#allocation10 + $0x75c] sm:$0xf] }
 0x1cc   :  { %2642 = vmatpush.bf16.msra.mxu3 %v12651_v19  ;;  %2620 = vmatpush.bf16.msra.mxu1 %v13031_v32  ;;  %v2324_v9 = vpop.f32.mrf.mxu2  ;;  %v12490_v19 = vld [vmem:[#allocation10 + $0x218] sm:$0xf] }
 0x1cd   :  { %v2325_v14 = vadd.f32 %v2324_v9, %v1019_v63  ;;  %v12266_v32 = vld [vmem:[#allocation10 + $0x58] sm:$0xf]  ;;  %v12491_v37 = vor.u32 %v17979_v23, %v12490_v19  ;;  %v17951_v23 = vld [vmem:[#allocation10 + $0x15c] sm:$0xf] }
 0x1ce   :  { %2628 = vmatpush.bf16.msra.mxu2 %v12427_v25  ;;  %2606 = vmatpush.bf16.msra.mxu0 %v12807_v35  ;;  %v2339_v17 = vpop.f32.mrf.mxu3  ;;  %v18139_v25 = vld [vmem:[#allocation10 + $0x734] sm:$0xf0]  ;;  %v12267_v43 = vor.u32 %v17923_v33, %v12266_v32  ;;  %v17999_v32 = vld [vmem:[#allocation10 + $0x2dc] sm:$0xf] }
 0x1cf   :  { %v2338_v26 = vadd.f32 %v2337_v48, %v2325_v14  ;;  %v18083_v35 = vld [vmem:[#allocation10 + $0x574] sm:$0xf0]  ;;  %v13131_v38 = vor.u32 %v18139_v25, %v13130_v24  ;;  %v12620_v17 = vld [vmem:[#allocation10 + $0x338] sm:$0xf0] }
 0x1d0   :  { %2643 = vmatpush.bf16.msra.mxu3 %v12619_v34  ;;  %2621 = vmatpush.bf16.msra.mxu1 %v12999_v47  ;;  %v2363_v27 = vpop.f32.mrf.mxu1  ;;  %v12906_v34 = vld [vmem:[#allocation10 + $0x558] sm:$0xf]  ;;  %v12396_v24 = vld [vmem:[#allocation10 + $0x178] sm:$0xf0] }
 0x1d1   :  { %v12907_v44 = vor.u32 %v18083_v35, %v12906_v34  ;;  %v12234_v47 = vld [vmem:[#allocation10 + $0x18] sm:$0xf]  ;;  %v12588_v33 = vld [vmem:[#allocation10 + $0x2f8] sm:$0xf0]  ;;  %v12399_v34 = vor.u32 %v17951_v23, %v12396_v24 }
 0x1d2   :  { %2629 = vmatpush.bf16.msra.mxu2 %v12395_v40  ;;  %2607 = vmatpush.bf16.msra.mxu0 %v12775_v55  ;;  %v13098_v40 = vld [vmem:[#allocation10 + $0x6d8] sm:$0xf]  ;;  %v17967_v55 = vld [vmem:[#allocation10 + $0x1dc] sm:$0xf] }
 0x1d3   :  { %2622 = vmatmul.bf16.vlgmr.msra.gmra.mxu1 %v19733_v20  ;;  %v17915_v48 = vld [vmem:[#allocation10 + $0x34] sm:$0xf0]  ;;  %v13099_v58 = vor.u32 %v18131_v41, %v13098_v40  ;;  %v18159_v35 = vld [vmem:[#allocation10 + $0x7dc] sm:$0xf] }
 0x1d4   :  { %2644 = vmatpush.bf16.msra.mxu3 %v12587_v49  ;;  %2666 = vmatpush.bf16.msrb.mxu1 %v13227_v50  ;;  %v2326_v42 = vpop.f32.mrf.mxu2  ;;  %v12874_v49 = vld [vmem:[#allocation10 + $0x518] sm:$0xf]  ;;  %v12235_v61 = vor.u32 %v17915_v48, %v12234_v47  ;;  %v17943_v40 = vld [vmem:[#allocation10 + $0x11c] sm:$0xf] }
 0x1d5   :  { %v18075_v50 = vld [vmem:[#allocation10 + $0x534] sm:$0xf0]  ;;  %v12364_v41 = vld [vmem:[#allocation10 + $0x138] sm:$0xf0] }
 0x1d6   :  { %2630 = vmatpush.bf16.msra.mxu2 %v12363_v56  ;;  %2608 = vmatpush.bf16.msra.mxu0 %v12743_v4  ;;  %v2350_v51 = vpop.f32.mrf.mxu0  ;;  %v19762_v52 = vpop.f32.mrf.mxu3  ;;  %v12460_v56 = vld [vmem:[#allocation10 + $0x1f8] sm:$0xf0]  ;;  %v12875_v62 = vor.u32 %v18075_v50, %v12874_v49  ;;  %v13066_v63 = vld [vmem:[#allocation10 + $0x698] sm:$0xf]  ;;  %v12367_v49 = vor.u32 %v17943_v40, %v12364_v41 }
 0x1d7   :  { %v2351_v57 = vadd.f32 %v2350_v51, %v2338_v26  ;;  %v12652_v4 = vld [vmem:[#allocation10 + $0x378] sm:$0xf0]  ;;  %v13067_v9 = vor.u32 %v18123_v0, %v13066_v63  ;;  %v13034_v13 = vld [vmem:[#allocation10 + $0x658] sm:$0xf] }
 0x1d8   :  { %2645 = vmatpush.bf16.msra.mxu3 %v12555_v2  ;;  %2667 = vmatpush.bf16.msrb.mxu1 %v13195_v3  ;;  %v2365_v60 = vpop.f32.mrf.mxu1  ;;  %v12463_v3 = vor.u32 %v17967_v55, %v12460_v56  ;;  %v12655_v11 = vor.u32 %v18015_v1, %v12652_v4  ;;  %v18115_v14 = vld [vmem:[#allocation10 + $0x674] sm:$0xf0]  ;;  %v12556_v47 = vld [vmem:[#allocation10 + $0x2b8] sm:$0xf0] }
 0x1d9   :  { %2609 = vmatmul.bf16.vlgmr.msra.gmra.mxu0 %v19737_v45  ;;  %v19764_v2 = vadd.f32 %v2363_v27, %v2351_v57  ;;  %v18059_v19 = vld [vmem:[#allocation10 + $0x4b4] sm:$0xf0]  ;;  %v13035_v25 = vor.u32 %v18115_v14, %v13034_v13  ;;  %v18151_v50 = vld [vmem:[#allocation10 + $0x79c] sm:$0xf]  ;;  %v12559_v0 = vor.u32 %v17991_v46, %v12556_v47 }
 0x1da   :  { %2631 = vmatpush.bf16.msra.mxu2 %v12331_v5  ;;  %2653 = vmatpush.bf16.msrb.mxu0 %v12971_v10  ;;  %v12842_v5 = vld [vmem:[#allocation10 + $0x4d8] sm:$0xf]  ;;  %v13196_v51 = vld [vmem:[#allocation10 + $0x7b8] sm:$0xf0] }
 0x1db   :  { %v12843_v12 = vor.u32 %v18067_v6, %v12842_v5  ;;  %v13002_v26 = vld [vmem:[#allocation10 + $0x618] sm:$0xf]  ;;  %v12332_v60 = vld [vmem:[#allocation10 + $0xf8] sm:$0xf0]  ;;  %v13199_v1 = vor.u32 %v18151_v50, %v13196_v51  ;;  %v13682_v50 = vld [vmem:[#allocation13 + $0x380] sm:$0xf] }
 0x1dc   :  { %2646 = vmatpush.bf16.msra.mxu3 %v12523_v18  ;;  %2668 = vmatpush.bf16.msrb.mxu1 %v13163_v21  ;;  %v19767_v10 = vpop.f32.mrf.mxu2  ;;  %v12810_v18 = vld [vmem:[#allocation10 + $0x498] sm:$0xf]  ;;  %v17983_v5 = vld [vmem:[#allocation10 + $0x25c] sm:$0xf]  ;;  %v18284_v51 = vld [vmem:[#allocation13 + $0x3bc] sm:$0xf0] }
 0x1dd   :  { %v12811_v29 = vor.u32 %v18059_v19, %v12810_v18  ;;  %v18107_v30 = vld [vmem:[#allocation10 + $0x634] sm:$0xf0]  ;;  %v12524_v6 = vld [vmem:[#allocation10 + $0x278] sm:$0xf0] }
 0x1de   :  { %2632 = vmatpush.bf16.msra.mxu2 %v12299_v22  ;;  %2654 = vmatpush.bf16.msrb.mxu0 %v12939_v28  ;;  %v2352_v21 = vpop.f32.mrf.mxu0  ;;  %v2391_v22 = vpop.f32.mrf.mxu3  ;;  %v12623_v28 = vor.u32 %v18007_v15, %v12620_v17  ;;  %v13003_v42 = vor.u32 %v18107_v30, %v13002_v26  ;;  %v12746_v55 = vld [vmem:[#allocation10 + $0x418] sm:$0xf]  ;;  %v18087_v13 = vld [vmem:[#allocation10 + $0x59c] sm:$0xf]  ;;  %v12527_v15 = vor.u32 %v17983_v5, %v12524_v6 }
 0x1df   :  { %v12940_v14 = vld [vmem:[#allocation10 + $0x5b8] sm:$0xf0] }
 0x1e0   :  { %2647 = vmatpush.bf16.msra.mxu3 %v12491_v37  ;;  %2669 = vmatpush.bf16.msrb.mxu1 %v13131_v38  ;;  %v19770_v27 = vpop.f32.mrf.mxu1  ;;  %v13228_v37 = vld [vmem:[#allocation10 + $0x7f8] sm:$0xf0]  ;;  %v12778_v38 = vld [vmem:[#allocation10 + $0x458] sm:$0xf]  ;;  %v12943_v26 = vor.u32 %v18087_v13, %v12940_v14 }
 0x1e1   :  { %v13231_v36 = vor.u32 %v18159_v35, %v13228_v37  ;;  %v12492_v21 = vld [vmem:[#allocation10 + $0x238] sm:$0xf0] }
 0x1e2   :  { %2633 = vmatpush.bf16.msra.mxu2 %v12267_v43  ;;  %2655 = vmatpush.bf16.msrb.mxu0 %v12907_v44  ;;  %v12591_v44 = vor.u32 %v17999_v32, %v12588_v33  ;;  %v18135_v22 = vld [vmem:[#allocation10 + $0x71c] sm:$0xf] }
 0x1e3   :  { %2648 = vmatmul.bf16.vlgmr.msra.gmra.mxu3 %v19725_v31  ;;  %v13132_v23 = vld [vmem:[#allocation10 + $0x738] sm:$0xf0] }
 0x1e4   :  { %2692 = vmatpush.bf16.msrb.mxu3 %v12719_v39  ;;  %2670 = vmatpush.bf16.msrb.mxu1 %v13099_v58  ;;  %v18051_v39 = vld [vmem:[#allocation10 + $0x474] sm:$0xf0]  ;;  %v2378_v43 = vpop.f32.mrf.mxu2  ;;  %v17919_v30 = vld [vmem:[#allocation10 + $0x5c] sm:$0xf] }
 0x1e5   :  { %v12779_v48 = vor.u32 %v18051_v39, %v12778_v38  ;;  %v18043_v58 = vld [vmem:[#allocation10 + $0x434] sm:$0xf0]  ;;  %v12268_v32 = vld [vmem:[#allocation10 + $0x78] sm:$0xf0]  ;;  %v13135_v38 = vor.u32 %v18135_v22, %v13132_v23  ;;  %v13554_v22 = vld [vmem:[#allocation13 + $0x280] sm:$0xf] }
 0x1e6   :  { %2634 = vmatpush.bf16.msra.mxu2 %v12235_v61  ;;  %2656 = vmatpush.bf16.msrb.mxu0 %v12875_v62  ;;  %v19772_v56 = vpop.f32.mrf.mxu0  ;;  %v19774_v57 = vpop.f32.mrf.mxu3  ;;  %v18095_v61 = vld [vmem:[#allocation10 + $0x5dc] sm:$0xf]  ;;  %v18252_v23 = vld [vmem:[#allocation13 + $0x2bc] sm:$0xf0] }
 0x1e7   :  { %v12972_v62 = vld [vmem:[#allocation10 + $0x5f8] sm:$0xf0] }
 0x1e8   :  { %2693 = vmatpush.bf16.msrb.mxu3 %v12687_v59  ;;  %2671 = vmatpush.bf16.msrb.mxu1 %v13067_v9  ;;  %v17935_v59 = vld [vmem:[#allocation10 + $0xdc] sm:$0xf]  ;;  %v2417_v63 = vpop.f32.mrf.mxu1  ;;  %v12975_v8 = vor.u32 %v18095_v61, %v12972_v62 }
 0x1e9   :  { %2635 = vmatmul.bf16.vlgmr.msra.gmra.mxu2 %v19728_v54  ;;  %v12335_v4 = vor.u32 %v17935_v59, %v12332_v60  ;;  %v13164_v9 = vld [vmem:[#allocation10 + $0x778] sm:$0xf0] }
 0x1ea   :  { %2679 = vmatpush.bf16.msrb.mxu2 %v12463_v3  ;;  %2657 = vmatpush.bf16.msrb.mxu0 %v12843_v12  ;;  %v12747_v3 = vor.u32 %v18043_v58, %v12746_v55  ;;  %v12300_v12 = vld [vmem:[#allocation10 + $0xb8] sm:$0xf0]  ;;  %v13167_v18 = vor.u32 %v18143_v7, %v13164_v9  ;;  %v18268_v9 = vld [vmem:[#allocation13 + $0x33c] sm:$0xf0] }
 0x1eb   :  { %v18079_v33 = vld [vmem:[#allocation10 + $0x55c] sm:$0xf] }
 0x1ec   :  { %2694 = vmatpush.bf16.msrb.mxu3 %v12655_v11  ;;  %2672 = vmatpush.bf16.msrb.mxu1 %v13035_v25  ;;  %v17927_v11 = vld [vmem:[#allocation10 + $0x9c] sm:$0xf]  ;;  %v19777_v17 = vpop.f32.mrf.mxu2 }
 0x1ed   :  { %v12303_v19 = vor.u32 %v17927_v11, %v12300_v12  ;;  %v18127_v40 = vld [vmem:[#allocation10 + $0x6dc] sm:$0xf] }
 0x1ee   :  { %2680 = vmatpush.bf16.msrb.mxu2 %v12431_v16  ;;  %2658 = vmatpush.bf16.msrb.mxu0 %v12811_v29  ;;  %v17975_v16 = vld [vmem:[#allocation10 + $0x21c] sm:$0xf]  ;;  %v2404_v24 = vpop.f32.mrf.mxu0  ;;  %v2443_v25 = vpop.f32.mrf.mxu3  ;;  %v18412_v29 = vld [vmem:[#allocation13 + $0x7bc] sm:$0xf0] }
 0x1ef   :  { %v12495_v37 = vor.u32 %v17975_v16, %v12492_v21  ;;  %v13100_v41 = vld [vmem:[#allocation10 + $0x6f8] sm:$0xf0]  ;;  %v14002_v16 = vld [vmem:[#allocation13 + $0x600] sm:$0xf]  ;;  %v1020_v24 = vperm.slane %v19757_v53, 1 }
 0x1f0   :  { %2695 = vmatpush.bf16.msrb.mxu3 %v12623_v28  ;;  %2673 = vmatpush.bf16.msrb.mxu1 %v13003_v42  ;;  %v14194_v28 = vld [vmem:[#allocation13 + $0x780] sm:$0xf]  ;;  %v19780_v35 = vpop.f32.mrf.mxu1  ;;  %v12271_v42 = vor.u32 %v17919_v30, %v12268_v32  ;;  %v17911_v46 = vld [vmem:[#allocation10 + $0x1c] sm:$0xf]  ;;  %v13103_v58 = vor.u32 %v18127_v40, %v13100_v41 }
 0x1f1   :  { %v14195_v39 = vor.u32 %v18412_v29, %v14194_v28  ;;  %v12236_v47 = vld [vmem:[#allocation10 + $0x38] sm:$0xf0]  ;;  %v13938_v32 = vld [vmem:[#allocation13 + $0x580] sm:$0xf] }
 0x1f2   :  { %2681 = vmatpush.bf16.msrb.mxu2 %v12399_v34  ;;  %2659 = vmatpush.bf16.msrb.mxu0 %v12779_v48  ;;  %v12908_v34 = vld [vmem:[#allocation10 + $0x578] sm:$0xf0]  ;;  %v12239_v60 = vor.u32 %v17911_v46, %v12236_v47  ;;  %v13874_v47 = vld [vmem:[#allocation13 + $0x500] sm:$0xf] }
 0x1f3   :  { %2674 = vmatmul.bf16.vlgmr.msrb.gmra.mxu1 %v19733_v20  ;;  %v12911_v43 = vor.u32 %v18079_v33, %v12908_v34  ;;  %v18071_v48 = vld [vmem:[#allocation10 + $0x51c] sm:$0xf]  ;;  %v18348_v33 = vld [vmem:[#allocation13 + $0x5bc] sm:$0xf0] }
 0x1f4   :  { %2696 = vmatpush.bf16.msrb.mxu3 %v12591_v44  ;;  %2718 = vmatpush.bf16.msra.mxu1 %v13231_v36  ;;  %v14130_v44 = vld [vmem:[#allocation13 + $0x700] sm:$0xf]  ;;  %v2430_v55 = vpop.f32.mrf.mxu2  ;;  %v18119_v62 = vld [vmem:[#allocation10 + $0x69c] sm:$0xf] }
 0x1f5   :  { %v18396_v36 = vld [vmem:[#allocation13 + $0x73c] sm:$0xf0]  ;;  %v13068_v63 = vld [vmem:[#allocation10 + $0x6b8] sm:$0xf0] }
 0x1f6   :  { %2682 = vmatpush.bf16.msrb.mxu2 %v12367_v49  ;;  %2660 = vmatpush.bf16.msrb.mxu0 %v12747_v3  ;;  %v12876_v49 = vld [vmem:[#allocation10 + $0x538] sm:$0xf0]  ;;  %v14131_v59 = vor.u32 %v18396_v36, %v14130_v44  ;;  %v13683_v3 = vor.u32 %v18284_v51, %v13682_v50  ;;  %v13071_v11 = vor.u32 %v18119_v62, %v13068_v63  ;;  %v15154_v55 = vld [vmem:[#allocation13 + $0xf00] sm:$0xf] }
 0x1f7   :  { %v12879_v61 = vor.u32 %v18071_v48, %v12876_v49  ;;  %v18063_v5 = vld [vmem:[#allocation10 + $0x4dc] sm:$0xf]  ;;  %v13939_v36 = vor.u32 %v18348_v33, %v13938_v32  ;;  %v18332_v48 = vld [vmem:[#allocation13 + $0x53c] sm:$0xf0] }
 0x1f8   :  { %2697 = vmatpush.bf16.msrb.mxu3 %v12559_v0  ;;  %2719 = vmatpush.bf16.msra.mxu1 %v13199_v1  ;;  %v14066_v0 = vld [vmem:[#allocation13 + $0x680] sm:$0xf]  ;;  %v19783_v1 = vpop.f32.mrf.mxu0  ;;  %v12844_v6 = vld [vmem:[#allocation10 + $0x4f8] sm:$0xf0]  ;;  %v2469_v7 = vpop.f32.mrf.mxu1 }
 0x1f9   :  { %2661 = vmatmul.bf16.vlgmr.msrb.gmra.mxu0 %v19737_v45  ;;  %v12847_v13 = vor.u32 %v18063_v5, %v12844_v6  ;;  %v18111_v14 = vld [vmem:[#allocation10 + $0x65c] sm:$0xf]  ;;  %v18220_v62 = vld [vmem:[#allocation13 + $0x1bc] sm:$0xf0] }
 0x1fa   :  { %2683 = vmatpush.bf16.msrb.mxu2 %v12335_v4  ;;  %2705 = vmatpush.bf16.msra.mxu0 %v12975_v8  ;;  %v18380_v4 = vld [vmem:[#allocation13 + $0x6bc] sm:$0xf0]  ;;  %v12812_v21 = vld [vmem:[#allocation10 + $0x4b8] sm:$0xf0] }
 0x1fb   :  { %v13618_v8 = vld [vmem:[#allocation13 + $0x300] sm:$0xf]  ;;  %v14067_v12 = vor.u32 %v18380_v4, %v14066_v0  ;;  %v13004_v30 = vld [vmem:[#allocation10 + $0x638] sm:$0xf0] }
 0x1fc   :  { %2698 = vmatpush.bf16.msrb.mxu3 %v12527_v15  ;;  %2720 = vmatpush.bf16.msra.mxu1 %v13167_v18  ;;  %v13036_v15 = vld [vmem:[#allocation10 + $0x678] sm:$0xf0]  ;;  %v18364_v18 = vld [vmem:[#allocation13 + $0x63c] sm:$0xf0] }
 0x1fd   :  { %v13039_v25 = vor.u32 %v18111_v14, %v13036_v15  ;;  %v14003_v28 = vor.u32 %v18364_v18, %v14002_v16  ;;  %v18047_v40 = vld [vmem:[#allocation10 + $0x45c] sm:$0xf]  ;;  %v14706_v63 = vld [vmem:[#allocation13 + $0xb80] sm:$0xf] }
 0x1fe   :  { %2684 = vmatpush.bf16.msrb.mxu2 %v12303_v19  ;;  %2706 = vmatpush.bf16.msra.mxu0 %v12943_v26  ;;  %v18055_v19 = vld [vmem:[#allocation10 + $0x49c] sm:$0xf]  ;;  %v18540_v0 = vld [vmem:[#allocation13 + $0xbbc] sm:$0xf0] }
 0x1ff   :  { %v18103_v26 = vld [vmem:[#allocation10 + $0x61c] sm:$0xf]  ;;  %v12815_v29 = vor.u32 %v18055_v19, %v12812_v21  ;;  %v18204_v14 = vld [vmem:[#allocation13 + $0x13c] sm:$0xf0] }
 0x200   :  { %2699 = vmatpush.bf16.msrb.mxu3 %v12495_v37  ;;  %2721 = vmatpush.bf16.msra.mxu1 %v13135_v38  ;;  %v2456_v34 = vpop.f32.mrf.mxu0  ;;  %v13555_v37 = vor.u32 %v18252_v23, %v13554_v22  ;;  %v15218_v38 = vld [vmem:[#allocation13 + $0xf80] sm:$0xf]  ;;  %v12780_v41 = vld [vmem:[#allocation10 + $0x478] sm:$0xf0]  ;;  %v13007_v44 = vor.u32 %v18103_v26, %v13004_v30 }
 0x201   :  { %v12783_v50 = vor.u32 %v18047_v40, %v12780_v41  ;;  %v14642_v16 = vld [vmem:[#allocation13 + $0xb00] sm:$0xf]  ;;  %v1021_v40 = vperm.slane %v19757_v53, 2 }
 0x202   :  { %2685 = vmatpush.bf16.msrb.mxu2 %v12271_v42  ;;  %2707 = vmatpush.bf16.msra.mxu0 %v12911_v43  ;;  %v13490_v42 = vld [vmem:[#allocation13 + $0x200] sm:$0xf] }
 0x203   :  { %2700 = vmatmul.bf16.vlgmr.msrb.gmra.mxu3 %v19725_v31  ;;  %v13619_v31 = vor.u32 %v18268_v9, %v13618_v8  ;;  %v18236_v43 = vld [vmem:[#allocation13 + $0x23c] sm:$0xf0] }
 0x204   :  { %8940 = vmatpush.bf16.msra.mxu3 %v14195_v39  ;;  %2722 = vmatpush.bf16.msra.mxu1 %v13103_v58  ;;  %v18668_v39 = vld [vmem:[#allocation13 + $0xfbc] sm:$0xf0]  ;;  %v13491_v51 = vor.u32 %v18236_v43, %v13490_v42 }
 0x205   :  { %v15219_v46 = vor.u32 %v18668_v39, %v15218_v38  ;;  %v18652_v58 = vld [vmem:[#allocation13 + $0xf3c] sm:$0xf0] }
 0x206   :  { %2686 = vmatpush.bf16.msrb.mxu2 %v12239_v60  ;;  %2708 = vmatpush.bf16.msra.mxu0 %v12879_v61  ;;  %v19788_v49 = vpop.f32.mrf.mxu3  ;;  %v12748_v60 = vld [vmem:[#allocation10 + $0x438] sm:$0xf0]  ;;  %v13426_v61 = vld [vmem:[#allocation13 + $0x180] sm:$0xf]  ;;  %v15155_v4 = vor.u32 %v18652_v58, %v15154_v55 }
 0x207   :  { %v13427_v7 = vor.u32 %v18220_v62, %v13426_v61  ;;  %v13810_v8 = vld [vmem:[#allocation13 + $0x480] sm:$0xf]  ;;  %v2731_v61 = vmax.f32 %v19764_v2, 0.0 }
 0x208   :  { %8941 = vmatpush.bf16.msra.mxu3 %v14131_v59  ;;  %2723 = vmatpush.bf16.msra.mxu1 %v13071_v11  ;;  %v18039_v59 = vld [vmem:[#allocation10 + $0x41c] sm:$0xf]  ;;  %v18316_v9 = vld [vmem:[#allocation13 + $0x4bc] sm:$0xf0] }
 0x209   :  { %2687 = vmatmul.bf16.vlgmr.msrb.gmra.mxu2 %v19728_v54  ;;  %v2377_v54 = vadd.f32 %v19767_v10, %v1020_v24  ;;  %v12751_v6 = vor.u32 %v18039_v59, %v12748_v60  ;;  %v15090_v11 = vld [vmem:[#allocation13 + $0xe80] sm:$0xf]  ;;  %v13811_v18 = vor.u32 %v18316_v9, %v13810_v8  ;;  %v2429_v8 = vadd.f32 %v19777_v17, %v1021_v40 }
 0x20a   :  { %8927 = vmatpush.bf16.msra.mxu2 %v13683_v3  ;;  %2709 = vmatpush.bf16.msra.mxu0 %v12847_v13  ;;  %v13875_v3 = vor.u32 %v18332_v48, %v13874_v47  ;;  %v13362_v13 = vld [vmem:[#allocation13 + $0x100] sm:$0xf] }
 0x20b   :  { %v2390_v10 = vadd.f32 %v19762_v52, %v2377_v54  ;;  %v18636_v52 = vld [vmem:[#allocation13 + $0xebc] sm:$0xf0]  ;;  %v13363_v23 = vor.u32 %v18204_v14, %v13362_v13 }
 0x20c   :  { %8942 = vmatpush.bf16.msra.mxu3 %v14067_v12  ;;  %2724 = vmatpush.bf16.msra.mxu1 %v13039_v25  ;;  %v14707_v12 = vor.u32 %v18540_v0, %v14706_v63  ;;  %v2480_v15 = vpop.f32.mrf.mxu2  ;;  %v15091_v21 = vor.u32 %v18636_v52, %v15090_v11  ;;  %v18300_v24 = vld [vmem:[#allocation13 + $0x43c] sm:$0xf0] }
 0x20d   :  { %v2403_v5 = vadd.f32 %v19772_v56, %v2390_v10  ;;  %v13746_v56 = vld [vmem:[#allocation13 + $0x400] sm:$0xf] }
 0x20e   :  { %8928 = vmatpush.bf16.msra.mxu2 %v13619_v31  ;;  %2710 = vmatpush.bf16.msra.mxu0 %v12815_v29  ;;  %v18524_v31 = vld [vmem:[#allocation13 + $0xb3c] sm:$0xf0]  ;;  %v2495_v22 = vpop.f32.mrf.mxu3  ;;  %v13747_v38 = vor.u32 %v18300_v24, %v13746_v56 }
 0x20f   :  { %v2416_v19 = vadd.f32 %v19770_v27, %v2403_v5  ;;  %v18620_v25 = vld [vmem:[#allocation13 + $0xe3c] sm:$0xf0]  ;;  %v14643_v26 = vor.u32 %v18524_v31, %v14642_v16  ;;  %v1022_v27 = vperm.slane %v19757_v53, 3  ;;  %v19805_v16 = vpack.c.bf16 %v2731_v61, %v2731_v61 }
 0x210   :  { %8943 = vmatpush.bf16.msra.mxu3 %v14003_v28  ;;  %2725 = vmatpush.bf16.msra.mxu1 %v13007_v44  ;;  %v13298_v28 = vld [vmem:[#allocation13 + $0x80] sm:$0xf]  ;;  %v19794_v32 = vpop.f32.mrf.mxu1 }
 0x211   :  { %v18188_v29 = vld [vmem:[#allocation13 + $0xbc] sm:$0xf0]  ;;  %v2732_v39 = vmax.f32 %v2416_v19, 0.0  ;;  %v2481_v58 = vadd.f32 %v2480_v15, %v1022_v27 }
 0x212   :  { %8929 = vmatpush.bf16.msra.mxu2 %v13555_v37  ;;  %2711 = vmatpush.bf16.msra.mxu0 %v12783_v50  ;;  %v14578_v30 = vld [vmem:[#allocation13 + $0xa80] sm:$0xf]  ;;  %v13299_v42 = vor.u32 %v18188_v29, %v13298_v28 }
 0x213   :  { %2726 = vmatmul.bf16.vlgmr.msra.gmra.mxu1 %v19733_v20  ;;  %v15026_v20 = vld [vmem:[#allocation13 + $0xe00] sm:$0xf]  ;;  %v19800_v62 = vpack.c.bf16 %v2732_v39, %v2732_v39  ;;  %v2494_v13 = vadd.f32 %v19788_v49, %v2481_v58 }
 0x214   :  { %8944 = vmatpush.bf16.msra.mxu3 %v13939_v36  ;;  %8966 = vmatpush.bf16.msrb.mxu1 %v15219_v46  ;;  %v18508_v33 = vld [vmem:[#allocation13 + $0xabc] sm:$0xf0]  ;;  %v15027_v41 = vor.u32 %v18620_v25, %v15026_v20  ;;  %v2482_v50 = vpop.f32.mrf.mxu2 }
 0x215   :  { %v16242_v34 = vld [vmem:[#allocation13 + $0x1780] sm:$0xf]  ;;  %v14579_v44 = vor.u32 %v18508_v33, %v14578_v30 }
 0x216   :  { %8930 = vmatpush.bf16.msra.mxu2 %v13491_v51  ;;  %2712 = vmatpush.bf16.msra.mxu0 %v12751_v6  ;;  %v18924_v37 = vld [vmem:[#allocation13 + $0x17bc] sm:$0xf0]  ;;  %v2506_v63 = vpop.f32.mrf.mxu0 }
 0x217   :  { %v14962_v43 = vld [vmem:[#allocation13 + $0xd80] sm:$0xf]  ;;  %v16243_v48 = vor.u32 %v18924_v37, %v16242_v34 }
 0x218   :  { %8945 = vmatpush.bf16.msra.mxu3 %v13875_v3  ;;  %8967 = vmatpush.bf16.msrb.mxu1 %v15155_v4  ;;  %v18604_v54 = vld [vmem:[#allocation13 + $0xdbc] sm:$0xf0]  ;;  %v2521_v9 = vpop.f32.mrf.mxu1 }
 0x219   :  { %2713 = vmatmul.bf16.vlgmr.msra.gmra.mxu0 %v19737_v45  ;;  %v13234_v36 = vld [vmem:[#allocation13] sm:$0xf]  ;;  %v14963_v10 = vor.u32 %v18604_v54, %v14962_v43 }
 0x21a   :  { %8931 = vmatpush.bf16.msra.mxu2 %v13427_v7  ;;  %8953 = vmatpush.bf16.msrb.mxu0 %v14707_v12  ;;  %v18172_v46 = vld [vmem:[#allocation13 + $0x3c] sm:$0xf0] }
 0x21b   :  { %v14514_v47 = vld [vmem:[#allocation13 + $0xa00] sm:$0xf]  ;;  %v13235_v0 = vor.u32 %v18172_v46, %v13234_v36 }
 0x21c   :  { %8946 = vmatpush.bf16.msra.mxu3 %v13811_v18  ;;  %8968 = vmatpush.bf16.msrb.mxu1 %v15091_v21  ;;  %v18492_v51 = vld [vmem:[#allocation13 + $0xa3c] sm:$0xf0]  ;;  %v2507_v18 = vadd.f32 %v2506_v63, %v2494_v13 }
 0x21d   :  { %v15730_v45 = vld [vmem:[#allocation13 + $0x1380] sm:$0xf]  ;;  %v14515_v3 = vor.u32 %v18492_v51, %v14514_v47 }
 0x21e   :  { %8932 = vmatpush.bf16.msra.mxu2 %v13363_v23  ;;  %8954 = vmatpush.bf16.msrb.mxu0 %v14643_v26  ;;  %v18796_v55 = vld [vmem:[#allocation13 + $0x13bc] sm:$0xf0]  ;;  %v2442_v23 = vadd.f32 %v19774_v57, %v2429_v8  ;;  %v2508_v33 = vpop.f32.mrf.mxu0  ;;  %v2520_v34 = vadd.f32 %v19794_v32, %v2507_v18 }
 0x21f   :  { %v16178_v59 = vld [vmem:[#allocation13 + $0x1700] sm:$0xf]  ;;  %v15731_v4 = vor.u32 %v18796_v55, %v15730_v45 }
 0x220   :  { %8947 = vmatpush.bf16.msra.mxu3 %v13747_v38  ;;  %v18908_v60 = vld [vmem:[#allocation13 + $0x173c] sm:$0xf0]  ;;  %8969 = vmatpush.bf16.msrb.mxu1 %v15027_v41  ;;  %v2455_v29 = vadd.f32 %v19783_v1, %v2442_v23  ;;  %v2734_v46 = vmax.f32 %v2520_v34, 0.0 }
 0x221   :  { %v14898_v5 = vld [vmem:[#allocation13 + $0xd00] sm:$0xf]  ;;  %v16179_v52 = vor.u32 %v18908_v60, %v16178_v59 }
 0x222   :  { %8933 = vmatpush.bf16.msra.mxu2 %v13299_v42  ;;  %8955 = vmatpush.bf16.msrb.mxu0 %v14579_v44  ;;  %v18588_v6 = vld [vmem:[#allocation13 + $0xd3c] sm:$0xf0]  ;;  %v2468_v36 = vadd.f32 %v19780_v35, %v2455_v29  ;;  %v19814_v35 = vpack.c.bf16 %v2734_v46, %v2734_v46  ;;  %v18276_v29 = vld [vmem:[#allocation13 + $0x384] sm:$0xf] }
 0x223   :  { %v14450_v7 = vld [vmem:[#allocation13 + $0x980] sm:$0xf]  ;;  %8948 = vmatmul.bf16.vlgmr.msra.gmra.mxu3 %v19800_v62  ;;  %v14899_v31 = vor.u32 %v18588_v6, %v14898_v5  ;;  %v13620_v46 = vld [vmem:[#allocation13 + $0x340] sm:$0xf0] }
 0x224   :  { %8992 = vmatpush.bf16.msrb.mxu3 %v16243_v48  ;;  %v18476_v2 = vld [vmem:[#allocation13 + $0x9bc] sm:$0xf0]  ;;  %8970 = vmatpush.bf16.msrb.mxu1 %v14963_v10  ;;  %v2733_v63 = vmax.f32 %v2468_v36, 0.0 }
 0x225   :  { %v15666_v11 = vld [vmem:[#allocation13 + $0x1300] sm:$0xf]  ;;  %v14451_v17 = vor.u32 %v18476_v2, %v14450_v7 }
 0x226   :  { %v18780_v12 = vld [vmem:[#allocation13 + $0x133c] sm:$0xf0]  ;;  %8934 = vmatpush.bf16.msra.mxu2 %v13235_v0  ;;  %8956 = vmatpush.bf16.msrb.mxu0 %v14515_v3  ;;  %v19812_v32 = vpop.f32.mrf.mxu3 }
 0x227   :  { %v16114_v14 = vld [vmem:[#allocation13 + $0x1680] sm:$0xf]  ;;  %v15667_v56 = vor.u32 %v18780_v12, %v15666_v11 }
 0x228   :  { %v18892_v15 = vld [vmem:[#allocation13 + $0x16bc] sm:$0xf0]  ;;  %8993 = vmatpush.bf16.msrb.mxu3 %v16179_v52  ;;  %8971 = vmatpush.bf16.msrb.mxu1 %v14899_v31  ;;  %v1023_v52 = vperm.slane %v19757_v53, 4 }
 0x229   :  { %v14834_v19 = vld [vmem:[#allocation13 + $0xc80] sm:$0xf]  ;;  %v16115_v25 = vor.u32 %v18892_v15, %v16114_v14  ;;  %8935 = vmatmul.bf16.vlgmr.msra.gmra.mxu2 %v19805_v16  ;;  %v19818_v15 = vpack.c.bf16 %v2733_v63, %v2733_v63 }
 0x22a   :  { %8979 = vmatpush.bf16.msrb.mxu2 %v15731_v4  ;;  %v18572_v21 = vld [vmem:[#allocation13 + $0xcbc] sm:$0xf0]  ;;  %8957 = vmatpush.bf16.msrb.mxu0 %v14451_v17 }
 0x22b   :  { %v14386_v22 = vld [vmem:[#allocation13 + $0x900] sm:$0xf]  ;;  %v14835_v30 = vor.u32 %v18572_v21, %v14834_v19 }
 0x22c   :  { %v18460_v24 = vld [vmem:[#allocation13 + $0x93c] sm:$0xf0]  ;;  %8994 = vmatpush.bf16.msrb.mxu3 %v16115_v25  ;;  %v2532_v9 = vpop.f32.mrf.mxu2 }
 0x22d   :  { %v15602_v20 = vld [vmem:[#allocation13 + $0x1280] sm:$0xf]  ;;  %v14387_v37 = vor.u32 %v18460_v24, %v14386_v22  ;;  %8972 = vmatpush.bf16.msrb.mxu1 %v14835_v30  ;;  %v2533_v53 = vadd.f32 %v2532_v9, %v1023_v52 }
 0x22e   :  { %v18764_v49 = vld [vmem:[#allocation13 + $0x12bc] sm:$0xf0]  ;;  %8980 = vmatpush.bf16.msrb.mxu2 %v15667_v56  ;;  %v2547_v13 = vpop.f32.mrf.mxu3 }
 0x22f   :  { %v16050_v26 = vld [vmem:[#allocation13 + $0x1600] sm:$0xf]  ;;  %v15603_v57 = vor.u32 %v18764_v49, %v15602_v20  ;;  %8958 = vmatpush.bf16.msrb.mxu0 %v14387_v37  ;;  %v18404_v20 = vld [vmem:[#allocation13 + $0x784] sm:$0xf] }
 0x230   :  { %v18876_v28 = vld [vmem:[#allocation13 + $0x163c] sm:$0xf0]  ;;  %v2571_v24 = vpop.f32.mrf.mxu1  ;;  %v14196_v49 = vld [vmem:[#allocation13 + $0x7c0] sm:$0xf0] }
 0x231   :  { %v14770_v27 = vld [vmem:[#allocation13 + $0xc00] sm:$0xf]  ;;  %v16051_v43 = vor.u32 %v18876_v28, %v16050_v26  ;;  %v13684_v37 = vld [vmem:[#allocation13 + $0x3c0] sm:$0xf0] }
 0x232   :  { %v18556_v38 = vld [vmem:[#allocation13 + $0xc3c] sm:$0xf0]  ;;  %8981 = vmatpush.bf16.msrb.mxu2 %v15603_v57  ;;  %v14199_v57 = vor.u32 %v18404_v20, %v14196_v49  ;;  %v13492_v13 = vld [vmem:[#allocation13 + $0x240] sm:$0xf0] }
 0x233   :  { %v14322_v39 = vld [vmem:[#allocation13 + $0x880] sm:$0xf]  ;;  %v14771_v1 = vor.u32 %v18556_v38, %v14770_v27  ;;  %8995 = vmatpush.bf16.msrb.mxu3 %v16051_v43  ;;  %v18324_v20 = vld [vmem:[#allocation13 + $0x504] sm:$0xf] }
 0x234   :  { %v18444_v40 = vld [vmem:[#allocation13 + $0x8bc] sm:$0xf0]  ;;  %v2534_v34 = vpop.f32.mrf.mxu2  ;;  %v13876_v49 = vld [vmem:[#allocation13 + $0x540] sm:$0xf0] }
 0x235   :  { %v15538_v41 = vld [vmem:[#allocation13 + $0x1200] sm:$0xf]  ;;  %v14323_v47 = vor.u32 %v18444_v40, %v14322_v39  ;;  %8973 = vmatpush.bf16.msrb.mxu1 %v14771_v1  ;;  %v18388_v39 = vld [vmem:[#allocation13 + $0x704] sm:$0xf] }
 0x236   :  { %v18748_v42 = vld [vmem:[#allocation13 + $0x123c] sm:$0xf0]  ;;  %v14132_v40 = vld [vmem:[#allocation13 + $0x740] sm:$0xf0]  ;;  %v2558_v43 = vpop.f32.mrf.mxu0 }
 0x237   :  { %v15986_v54 = vld [vmem:[#allocation13 + $0x1580] sm:$0xf]  ;;  %v15539_v48 = vor.u32 %v18748_v42, %v15538_v41  ;;  %8959 = vmatpush.bf16.msrb.mxu0 %v14323_v47  ;;  %v2546_v41 = vadd.f32 %v19812_v32, %v2533_v53  ;;  %v14135_v47 = vor.u32 %v18388_v39, %v14132_v40  ;;  %v18532_v34 = vld [vmem:[#allocation13 + $0xb84] sm:$0xf] }
 0x238   :  { %v18860_v44 = vld [vmem:[#allocation13 + $0x15bc] sm:$0xf0]  ;;  %8974 = vmatmul.bf16.vlgmr.msrb.gmra.mxu1 %v19814_v35  ;;  %v18196_v40 = vld [vmem:[#allocation13 + $0x104] sm:$0xf] }
 0x239   :  { %v14258_v50 = vld [vmem:[#allocation13 + $0x800] sm:$0xf]  ;;  %v15987_v58 = vor.u32 %v18860_v44, %v15986_v54  ;;  %8982 = vmatpush.bf16.msrb.mxu2 %v15539_v48  ;;  %v13687_v54 = vor.u32 %v18276_v29, %v13684_v37  ;;  %v18260_v44 = vld [vmem:[#allocation13 + $0x304] sm:$0xf]  ;;  %v2559_v36 = vadd.f32 %v2558_v43, %v2546_v41 }
 0x23a   :  { %v18428_v51 = vld [vmem:[#allocation13 + $0x83c] sm:$0xf0]  ;;  %v13623_v32 = vor.u32 %v18260_v44, %v13620_v46  ;;  %v14708_v37 = vld [vmem:[#allocation13 + $0xbc0] sm:$0xf0] }
 0x23b   :  { %v15474_v45 = vld [vmem:[#allocation13 + $0x1180] sm:$0xf]  ;;  %v14259_v0 = vor.u32 %v18428_v51, %v14258_v50  ;;  %8996 = vmatpush.bf16.msrb.mxu3 %v15987_v58  ;;  %v2573_v51 = vpop.f32.mrf.mxu1  ;;  %v2572_v58 = vadd.f32 %v2571_v24, %v2559_v36  ;;  %v13428_v24 = vld [vmem:[#allocation13 + $0x1c0] sm:$0xf0] }
 0x23c   :  { %v18732_v55 = vld [vmem:[#allocation13 + $0x11bc] sm:$0xf0]  ;;  %v13364_v41 = vld [vmem:[#allocation13 + $0x140] sm:$0xf0] }
 0x23d   :  { %v15922_v59 = vld [vmem:[#allocation13 + $0x1500] sm:$0xf]  ;;  %v15475_v3 = vor.u32 %v18732_v55, %v15474_v45  ;;  %8960 = vmatpush.bf16.msrb.mxu0 %v14259_v0  ;;  %v18372_v45 = vld [vmem:[#allocation13 + $0x684] sm:$0xf] }
 0x23e   :  { %v18844_v60 = vld [vmem:[#allocation13 + $0x153c] sm:$0xf0]  ;;  %v14068_v55 = vld [vmem:[#allocation13 + $0x6c0] sm:$0xf0]  ;;  %v2560_v9 = vpop.f32.mrf.mxu0 }
 0x23f   :  { %v16754_v61 = vld [vmem:[#allocation13 + $0x1b80] sm:$0xf]  ;;  %v15923_v6 = vor.u32 %v18844_v60, %v15922_v59  ;;  %8983 = vmatpush.bf16.msrb.mxu2 %v15475_v3  ;;  %v18244_v59 = vld [vmem:[#allocation13 + $0x284] sm:$0xf]  ;;  %v14071_v63 = vor.u32 %v18372_v45, %v14068_v55  ;;  %v13367_v45 = vor.u32 %v18196_v40, %v13364_v41 }
 0x240   :  { %v19052_v10 = vld [vmem:[#allocation13 + $0x1bbc] sm:$0xf0]  ;;  %8961 = vmatmul.bf16.vlgmr.msrb.gmra.mxu0 %v19818_v15  ;;  %v13556_v60 = vld [vmem:[#allocation13 + $0x2c0] sm:$0xf0] }
 0x241   :  { %v15410_v4 = vld [vmem:[#allocation13 + $0x1100] sm:$0xf]  ;;  %v16755_v8 = vor.u32 %v19052_v10, %v16754_v61  ;;  %8997 = vmatpush.bf16.msrb.mxu3 %v15923_v6  ;;  %v2735_v10 = vmax.f32 %v2572_v58, 0.0  ;;  %v18308_v43 = vld [vmem:[#allocation13 + $0x484] sm:$0xf] }
 0x242   :  { %v18716_v5 = vld [vmem:[#allocation13 + $0x113c] sm:$0xf0]  ;;  %v13812_v44 = vld [vmem:[#allocation13 + $0x4c0] sm:$0xf0] }
 0x243   :  { %v15858_v7 = vld [vmem:[#allocation13 + $0x1480] sm:$0xf]  ;;  %v15411_v14 = vor.u32 %v18716_v5, %v15410_v4  ;;  %9005 = vmatpush.bf16.msra.mxu0 %v16755_v8  ;;  %v18356_v4 = vld [vmem:[#allocation13 + $0x604] sm:$0xf]  ;;  %v19822_v6 = vpack.c.bf16 %v2735_v10, %v2735_v10 }
 0x244   :  { %v18828_v2 = vld [vmem:[#allocation13 + $0x14bc] sm:$0xf0]  ;;  %v14004_v5 = vld [vmem:[#allocation13 + $0x640] sm:$0xf0] }
 0x245   :  { %v16690_v11 = vld [vmem:[#allocation13 + $0x1b00] sm:$0xf]  ;;  %v15859_v17 = vor.u32 %v18828_v2, %v15858_v7  ;;  %8984 = vmatpush.bf16.msrb.mxu2 %v15411_v14  ;;  %v13559_v2 = vor.u32 %v18244_v59, %v13556_v60  ;;  %v14007_v14 = vor.u32 %v18356_v4, %v14004_v5  ;;  %v14644_v36 = vld [vmem:[#allocation13 + $0xb40] sm:$0xf0]  ;;  %v13815_v60 = vor.u32 %v18308_v43, %v13812_v44 }
 0x246   :  { %v19036_v12 = vld [vmem:[#allocation13 + $0x1b3c] sm:$0xf0]  ;;  %v18180_v55 = vld [vmem:[#allocation13 + $0x84] sm:$0xf] }
 0x247   :  { %v15346_v31 = vld [vmem:[#allocation13 + $0x1080] sm:$0xf]  ;;  %v16691_v19 = vor.u32 %v19036_v12, %v16690_v11  ;;  %8998 = vmatpush.bf16.msrb.mxu3 %v15859_v17  ;;  %v18228_v11 = vld [vmem:[#allocation13 + $0x204] sm:$0xf] }
 0x248   :  { %v18700_v18 = vld [vmem:[#allocation13 + $0x10bc] sm:$0xf0]  ;;  %v18340_v17 = vld [vmem:[#allocation13 + $0x584] sm:$0xf] }
 0x249   :  { %v15794_v56 = vld [vmem:[#allocation13 + $0x1400] sm:$0xf]  ;;  %v15347_v25 = vor.u32 %v18700_v18, %v15346_v31  ;;  %9006 = vmatpush.bf16.msra.mxu0 %v16691_v19  ;;  %v18212_v19 = vld [vmem:[#allocation13 + $0x184] sm:$0xf] }
 0x24a   :  { %v18812_v21 = vld [vmem:[#allocation13 + $0x143c] sm:$0xf0]  ;;  %v13300_v58 = vld [vmem:[#allocation13 + $0xc0] sm:$0xf0] }
 0x24b   :  { %v16626_v22 = vld [vmem:[#allocation13 + $0x1a80] sm:$0xf]  ;;  %v15795_v30 = vor.u32 %v18812_v21, %v15794_v56  ;;  %8985 = vmatpush.bf16.msrb.mxu2 %v15347_v25  ;;  %v13940_v56 = vld [vmem:[#allocation13 + $0x5c0] sm:$0xf0]  ;;  %v13303_v9 = vor.u32 %v18180_v55, %v13300_v58 }
 0x24c   :  { %v19020_v23 = vld [vmem:[#allocation13 + $0x1abc] sm:$0xf0]  ;;  %v2584_v46 = vpop.f32.mrf.mxu2  ;;  %v13748_v10 = vld [vmem:[#allocation13 + $0x440] sm:$0xf0] }
 0x24d   :  { %v15282_v26 = vld [vmem:[#allocation13 + $0x1000] sm:$0xf]  ;;  %v16627_v33 = vor.u32 %v19020_v23, %v16626_v22  ;;  %8999 = vmatpush.bf16.msrb.mxu3 %v15795_v30  ;;  %v13495_v23 = vor.u32 %v18228_v11, %v13492_v13  ;;  %v18164_v11 = vld [vmem:[#allocation13 + $0x4] sm:$0xf] }
 0x24e   :  { %v18684_v28 = vld [vmem:[#allocation13 + $0x103c] sm:$0xf0]  ;;  %v16244_v40 = vld [vmem:[#allocation13 + $0x17c0] sm:$0xf0] }
 0x24f   :  { %v16562_v27 = vld [vmem:[#allocation13 + $0x1a00] sm:$0xf]  ;;  %v15283_v42 = vor.u32 %v18684_v28, %v15282_v26  ;;  %9007 = vmatpush.bf16.msra.mxu0 %v16627_v33  ;;  %v19825_v26 = vpop.f32.mrf.mxu3  ;;  %v13943_v28 = vor.u32 %v18340_v17, %v13940_v56  ;;  %v14516_v17 = vld [vmem:[#allocation13 + $0xa40] sm:$0xf0] }
 0x250   :  { %v19004_v38 = vld [vmem:[#allocation13 + $0x1a3c] sm:$0xf0]  ;;  %v18756_v41 = vld [vmem:[#allocation13 + $0x1284] sm:$0xf] }
 0x251   :  { %v16563_v1 = vor.u32 %v19004_v38, %v16562_v27  ;;  %9044 = vmatpush.bf16.msra.mxu3 %v14199_v57  ;;  %v16498_v48 = vld [vmem:[#allocation13 + $0x1980] sm:$0xf]  ;;  %8986 = vmatpush.bf16.msrb.mxu2 %v15283_v42  ;;  %v13431_v38 = vor.u32 %v18212_v19, %v13428_v24  ;;  %v13879_v42 = vor.u32 %v18324_v20, %v13876_v49  ;;  %v18772_v49 = vld [vmem:[#allocation13 + $0x1304] sm:$0xf] }
 0x252   :  { %v18988_v50 = vld [vmem:[#allocation13 + $0x19bc] sm:$0xf0]  ;;  %v15604_v43 = vld [vmem:[#allocation13 + $0x12c0] sm:$0xf0] }
 0x253   :  { %9008 = vmatpush.bf16.msra.mxu0 %v16563_v1  ;;  %v16499_v61 = vor.u32 %v18988_v50, %v16498_v48  ;;  %v16434_v0 = vld [vmem:[#allocation13 + $0x1900] sm:$0xf]  ;;  %v18516_v1 = vld [vmem:[#allocation13 + $0xb04] sm:$0xf]  ;;  %v19827_v50 = vld [vmem:[#allocation11] sm:$0xff]  ;;  %v15607_v58 = vor.u32 %v18756_v41, %v15604_v43 }
 0x254   :  { %v18972_v3 = vld [vmem:[#allocation13 + $0x193c] sm:$0xf0]  ;;  %8987 = vmatmul.bf16.vlgmr.msrb.gmra.mxu2 %v19822_v6  ;;  %v1024_v51 = vperm.slane %v19827_v50, 5  ;;  %v2586_v56 = vpop.f32.mrf.mxu2  ;;  %v14388_v44 = vld [vmem:[#allocation13 + $0x940] sm:$0xf0] }
 0x255   :  { %9031 = vmatpush.bf16.msra.mxu2 %v13687_v54  ;;  %9045 = vmatpush.bf16.msra.mxu3 %v14135_v47  ;;  %v17266_v7 = vld [vmem:[#allocation13 + $0x1f80] sm:$0xf]  ;;  %v16435_v12 = vor.u32 %v18972_v3, %v16434_v0  ;;  %v14711_v54 = vor.u32 %v18532_v34, %v14708_v37  ;;  %v18500_v0 = vld [vmem:[#allocation13 + $0xa84] sm:$0xf] }
 0x256   :  { %v19180_v8 = vld [vmem:[#allocation13 + $0x1fbc] sm:$0xf0]  ;;  %v14580_v3 = vld [vmem:[#allocation13 + $0xac0] sm:$0xf0] }
 0x257   :  { %9009 = vmatpush.bf16.msra.mxu0 %v16499_v61  ;;  %v17267_v52 = vor.u32 %v19180_v8, %v17266_v7  ;;  %v16370_v31 = vld [vmem:[#allocation13 + $0x1880] sm:$0xf]  ;;  %v2599_v59 = vpop.f32.mrf.mxu3  ;;  %v18292_v61 = vld [vmem:[#allocation13 + $0x404] sm:$0xf]  ;;  %v2623_v8 = vpop.f32.mrf.mxu1 }
 0x258   :  { %v18956_v18 = vld [vmem:[#allocation13 + $0x18bc] sm:$0xf0]  ;;  %v13751_v13 = vor.u32 %v18292_v61, %v13748_v10  ;;  %v15220_v61 = vld [vmem:[#allocation13 + $0xfc0] sm:$0xf0] }
 0x259   :  { %9032 = vmatpush.bf16.msra.mxu2 %v13623_v32  ;;  %9046 = vmatpush.bf16.msra.mxu3 %v14071_v63  ;;  %v17202_v21 = vld [vmem:[#allocation13 + $0x1f00] sm:$0xf]  ;;  %v16371_v53 = vor.u32 %v18956_v18, %v16370_v31  ;;  %v14647_v63 = vor.u32 %v18516_v1, %v14644_v36  ;;  %v15732_v31 = vld [vmem:[#allocation13 + $0x13c0] sm:$0xf0] }
 0x25a   :  { %9018 = vmatpush.bf16.msra.mxu1 %v17267_v52  ;;  %v19164_v22 = vld [vmem:[#allocation13 + $0x1f3c] sm:$0xf0]  ;;  %v18788_v52 = vld [vmem:[#allocation13 + $0x1384] sm:$0xf] }
 0x25b   :  { %9010 = vmatpush.bf16.msra.mxu0 %v16435_v12  ;;  %v17203_v25 = vor.u32 %v19164_v22, %v17202_v21  ;;  %v16306_v29 = vld [vmem:[#allocation13 + $0x1800] sm:$0xf]  ;;  %v13236_v12 = vld [vmem:[#allocation13 + $0x40] sm:$0xf0]  ;;  %v15735_v20 = vor.u32 %v18788_v52, %v15732_v31 }
 0x25c   :  { %v18940_v30 = vld [vmem:[#allocation13 + $0x183c] sm:$0xf0]  ;;  %v18484_v18 = vld [vmem:[#allocation13 + $0xa04] sm:$0xf]  ;;  %v13239_v22 = vor.u32 %v18164_v11, %v13236_v12 }
 0x25d   :  { %9033 = vmatpush.bf16.msra.mxu2 %v13559_v2  ;;  %9047 = vmatpush.bf16.msra.mxu3 %v14007_v14  ;;  %v17138_v33 = vld [vmem:[#allocation13 + $0x1e80] sm:$0xf]  ;;  %v16307_v39 = vor.u32 %v18940_v30, %v16306_v29  ;;  %v2585_v2 = vadd.f32 %v2584_v46, %v1024_v51  ;;  %v14583_v14 = vor.u32 %v18500_v0, %v14580_v3  ;;  %v18468_v29 = vld [vmem:[#allocation13 + $0x984] sm:$0xf] }
 0x25e   :  { %9019 = vmatpush.bf16.msra.mxu1 %v17203_v25  ;;  %v19148_v57 = vld [vmem:[#allocation13 + $0x1ebc] sm:$0xf0]  ;;  %v2610_v25 = vpop.f32.mrf.mxu0  ;;  %v14452_v30 = vld [vmem:[#allocation13 + $0x9c0] sm:$0xf0] }
 0x25f   :  { %v17139_v27 = vor.u32 %v19148_v57, %v17138_v33  ;;  %9011 = vmatpush.bf16.msra.mxu0 %v16371_v53  ;;  %v17074_v47 = vld [vmem:[#allocation13 + $0x1e00] sm:$0xf]  ;;  %v2598_v24 = vadd.f32 %v19825_v26, %v2585_v2  ;;  %v14519_v53 = vor.u32 %v18484_v18, %v14516_v17  ;;  %v2625_v57 = vpop.f32.mrf.mxu1  ;;  %v18916_v26 = vld [vmem:[#allocation13 + $0x1784] sm:$0xf] }
 0x260   :  { %v19132_v48 = vld [vmem:[#allocation13 + $0x1e3c] sm:$0xf0]  ;;  %v16180_v51 = vld [vmem:[#allocation13 + $0x1740] sm:$0xf0] }
 0x261   :  { %9034 = vmatpush.bf16.msra.mxu2 %v13495_v23  ;;  %9048 = vmatpush.bf16.msra.mxu3 %v13943_v28  ;;  %v17075_v32 = vor.u32 %v19132_v48, %v17074_v47  ;;  %v17010_v4 = vld [vmem:[#allocation13 + $0x1d80] sm:$0xf]  ;;  %v15668_v28 = vld [vmem:[#allocation13 + $0x1340] sm:$0xf0]  ;;  %v2611_v33 = vadd.f32 %v2610_v25, %v2598_v24  ;;  %v16247_v47 = vor.u32 %v18916_v26, %v16244_v40  ;;  %v1025_v26 = vperm.slane %v19827_v50, 6 }
 0x262   :  { %9020 = vmatpush.bf16.msra.mxu1 %v17139_v27  ;;  %v19116_v5 = vld [vmem:[#allocation13 + $0x1dbc] sm:$0xf0]  ;;  %v18900_v48 = vld [vmem:[#allocation13 + $0x1704] sm:$0xf] }
 0x263   :  { %9012 = vmatpush.bf16.msra.mxu0 %v16307_v39  ;;  %v17011_v7 = vor.u32 %v19116_v5, %v17010_v4  ;;  %v16946_v19 = vld [vmem:[#allocation13 + $0x1d00] sm:$0xf]  ;;  %v15671_v39 = vor.u32 %v18772_v49, %v15668_v28  ;;  %v18436_v0 = vld [vmem:[#allocation13 + $0x884] sm:$0xf]  ;;  %v16183_v5 = vor.u32 %v18900_v48, %v16180_v51 }
 0x264   :  { %v19100_v21 = vld [vmem:[#allocation13 + $0x1d3c] sm:$0xf0]  ;;  %v14324_v3 = vld [vmem:[#allocation13 + $0x8c0] sm:$0xf0] }
 0x265   :  { %9035 = vmatpush.bf16.msra.mxu2 %v13431_v38  ;;  %9049 = vmatpush.bf16.msra.mxu3 %v13879_v42  ;;  %v16947_v23 = vor.u32 %v19100_v21, %v16946_v19  ;;  %v16882_v34 = vld [vmem:[#allocation13 + $0x1c80] sm:$0xf]  ;;  %v2624_v38 = vadd.f32 %v2623_v8, %v2611_v33  ;;  %v14455_v42 = vor.u32 %v18468_v29, %v14452_v30  ;;  %v18644_v8 = vld [vmem:[#allocation13 + $0xf04] sm:$0xf] }
 0x266   :  { %9021 = vmatpush.bf16.msra.mxu1 %v17075_v32  ;;  %v19084_v37 = vld [vmem:[#allocation13 + $0x1cbc] sm:$0xf0]  ;;  %v18740_v32 = vld [vmem:[#allocation13 + $0x1204] sm:$0xf]  ;;  %v2612_v10 = vpop.f32.mrf.mxu0  ;;  %v2649_v56 = vpop.f32.mrf.mxu3 }
 0x267   :  { %9057 = vmatpush.bf16.msrb.mxu0 %v14711_v54  ;;  %v16883_v27 = vor.u32 %v19084_v37, %v16882_v34  ;;  %v18452_v54 = vld [vmem:[#allocation13 + $0x904] sm:$0xf]  ;;  %v2736_v1 = vmax.f32 %v2624_v38, 0.0  ;;  %v16818_v36 = vld [vmem:[#allocation13 + $0x1c00] sm:$0xf] }
 0x268   :  { %v19068_v46 = vld [vmem:[#allocation13 + $0x1c3c] sm:$0xf0]  ;;  %v14391_v59 = vor.u32 %v18452_v54, %v14388_v44  ;;  %v16116_v11 = vld [vmem:[#allocation13 + $0x16c0] sm:$0xf0] }
 0x269   :  { %9036 = vmatpush.bf16.msra.mxu2 %v13367_v45  ;;  %9050 = vmatpush.bf16.msra.mxu3 %v13815_v60  ;;  %v16819_v45 = vor.u32 %v19068_v46, %v16818_v36  ;;  %v19832_v55 = vpack.c.bf16 %v2736_v1, %v2736_v1  ;;  %v18660_v60 = vld [vmem:[#allocation13 + $0xf84] sm:$0xf] }
 0x26a   :  { %9022 = vmatpush.bf16.msra.mxu1 %v17011_v7  ;;  %v15223_v4 = vor.u32 %v18660_v60, %v15220_v61  ;;  %v18884_v7 = vld [vmem:[#allocation13 + $0x1684] sm:$0xf] }
 0x26b   :  { %9058 = vmatpush.bf16.msrb.mxu0 %v14647_v63  ;;  %v15540_v63 = vld [vmem:[#allocation13 + $0x1240] sm:$0xf0]  ;;  %9000 = vmatmul.bf16.vlgmr.msrb.gmra.mxu3 %v19832_v55  ;;  %v16119_v21 = vor.u32 %v18884_v7, %v16116_v11  ;;  %v13626_v7 = vld [vmem:[#allocation13 + $0x308] sm:$0xf] }
 0x26c   :  { %v15543_v2 = vor.u32 %v18740_v32, %v15540_v63  ;;  %v18724_v12 = vld [vmem:[#allocation13 + $0x1184] sm:$0xf]  ;;  %v2636_v33 = vpop.f32.mrf.mxu2 }
 0x26d   :  { %9037 = vmatpush.bf16.msra.mxu2 %v13303_v9  ;;  %9051 = vmatpush.bf16.msra.mxu3 %v13751_v13  ;;  %v15156_v9 = vld [vmem:[#allocation13 + $0xf40] sm:$0xf0]  ;;  %v14327_v13 = vor.u32 %v18436_v0, %v14324_v3  ;;  %v2637_v51 = vadd.f32 %v2636_v33, %v1025_v26  ;;  %v18237_v26 = vld [vmem:[#allocation13 + $0x244] sm:$0xf0] }
 0x26e   :  { %9023 = vmatpush.bf16.msra.mxu1 %v16947_v23  ;;  %v15476_v52 = vld [vmem:[#allocation13 + $0x11c0] sm:$0xf0]  ;;  %v2651_v40 = vpop.f32.mrf.mxu3 }
 0x26f   :  { %9059 = vmatpush.bf16.msrb.mxu0 %v14583_v14  ;;  %v15159_v14 = vor.u32 %v18644_v8, %v15156_v9  ;;  %v18420_v31 = vld [vmem:[#allocation13 + $0x804] sm:$0xf]  ;;  %v15479_v23 = vor.u32 %v18724_v12, %v15476_v52  ;;  %v18269_v8 = vld [vmem:[#allocation13 + $0x344] sm:$0xf0] }
 0x270   :  { %v14260_v18 = vld [vmem:[#allocation13 + $0x840] sm:$0xf0]  ;;  %v2675_v46 = vpop.f32.mrf.mxu1 }
 0x271   :  { %9038 = vmatpush.bf16.msra.mxu2 %v13239_v22  ;;  %9096 = vmatpush.bf16.msrb.mxu3 %v16247_v47  ;;  %v18628_v17 = vld [vmem:[#allocation13 + $0xe84] sm:$0xf]  ;;  %v14263_v49 = vor.u32 %v18420_v31, %v14260_v18 }
 0x272   :  { %9024 = vmatpush.bf16.msra.mxu1 %v16883_v27  ;;  %v15092_v19 = vld [vmem:[#allocation13 + $0xec0] sm:$0xf0] }
 0x273   :  { %9060 = vmatpush.bf16.msrb.mxu0 %v14519_v53  ;;  %v15095_v22 = vor.u32 %v18628_v17, %v15092_v19  ;;  %v18868_v24 = vld [vmem:[#allocation13 + $0x1604] sm:$0xf]  ;;  %v13627_v17 = vor.u32 %v18269_v8, %v13626_v7  ;;  %v13946_v8 = vld [vmem:[#allocation13 + $0x588] sm:$0xf] }
 0x274   :  { %9039 = vmatmul.bf16.vlgmr.msra.gmra.mxu2 %v19805_v16  ;;  %v18708_v53 = vld [vmem:[#allocation13 + $0x1104] sm:$0xf]  ;;  %v2638_v61 = vpop.f32.mrf.mxu2 }
 0x275   :  { %9083 = vmatpush.bf16.msrb.mxu2 %v15735_v20  ;;  %9097 = vmatpush.bf16.msrb.mxu3 %v16183_v5  ;;  %v16052_v20 = vld [vmem:[#allocation13 + $0x1640] sm:$0xf0]  ;;  %v2650_v5 = vadd.f32 %v2649_v56, %v2637_v51  ;;  %v18365_v61 = vld [vmem:[#allocation13 + $0x644] sm:$0xf0] }
 0x276   :  { %9025 = vmatpush.bf16.msra.mxu1 %v16819_v45  ;;  %v15412_v25 = vld [vmem:[#allocation13 + $0x1140] sm:$0xf0]  ;;  %v16055_v28 = vor.u32 %v18868_v24, %v16052_v20  ;;  %v13690_v45 = vld [vmem:[#allocation13 + $0x388] sm:$0xf]  ;;  %v2662_v9 = vpop.f32.mrf.mxu0 }
 0x277   :  { %9061 = vmatpush.bf16.msrb.mxu0 %v14455_v42  ;;  %v18612_v29 = vld [vmem:[#allocation13 + $0xe04] sm:$0xf]  ;;  %v15415_v34 = vor.u32 %v18708_v53, %v15412_v25  ;;  %v2663_v52 = vadd.f32 %v2662_v9, %v2650_v5  ;;  %v13562_v24 = vld [vmem:[#allocation13 + $0x288] sm:$0xf] }
 0x278   :  { %v15028_v30 = vld [vmem:[#allocation13 + $0xe40] sm:$0xf0]  ;;  %v2677_v18 = vpop.f32.mrf.mxu1  ;;  %v18253_v20 = vld [vmem:[#allocation13 + $0x2c4] sm:$0xf0] }
 0x279   :  { %9084 = vmatpush.bf16.msrb.mxu2 %v15671_v39  ;;  %9098 = vmatpush.bf16.msrb.mxu3 %v16119_v21  ;;  %v18852_v37 = vld [vmem:[#allocation13 + $0x1584] sm:$0xf]  ;;  %v15031_v27 = vor.u32 %v18612_v29, %v15028_v30  ;;  %v14202_v21 = vld [vmem:[#allocation13 + $0x788] sm:$0xf]  ;;  %v2676_v56 = vadd.f32 %v2675_v46, %v2663_v52  ;;  %v13563_v33 = vor.u32 %v18253_v20, %v13562_v24 }
 0x27a   :  { %9070 = vmatpush.bf16.msrb.mxu1 %v15223_v4  ;;  %v15988_v57 = vld [vmem:[#allocation13 + $0x15c0] sm:$0xf0]  ;;  %v18349_v9 = vld [vmem:[#allocation13 + $0x5c4] sm:$0xf0] }
 0x27b   :  { %9062 = vmatpush.bf16.msrb.mxu0 %v14391_v59  ;;  %v18692_v38 = vld [vmem:[#allocation13 + $0x1084] sm:$0xf]  ;;  %v15991_v41 = vor.u32 %v18852_v37, %v15988_v57  ;;  %9052 = vmatmul.bf16.vlgmr.msra.gmra.mxu3 %v19800_v62  ;;  %v14138_v37 = vld [vmem:[#allocation13 + $0x708] sm:$0xf] }
 0x27c   :  { %v15348_v39 = vld [vmem:[#allocation13 + $0x10c0] sm:$0xf0]  ;;  %v18397_v57 = vld [vmem:[#allocation13 + $0x744] sm:$0xf0] }
 0x27d   :  { %9085 = vmatpush.bf16.msrb.mxu2 %v15607_v58  ;;  %9099 = vmatpush.bf16.msrb.mxu3 %v16055_v28  ;;  %v18596_v42 = vld [vmem:[#allocation13 + $0xd84] sm:$0xf]  ;;  %v15351_v54 = vor.u32 %v18692_v38, %v15348_v39  ;;  %v18285_v58 = vld [vmem:[#allocation13 + $0x3c4] sm:$0xf0]  ;;  %v2737_v28 = vmax.f32 %v2676_v56, 0.0 }
 0x27e   :  { %9071 = vmatpush.bf16.msrb.mxu1 %v15159_v14  ;;  %v14964_v43 = vld [vmem:[#allocation13 + $0xdc0] sm:$0xf0]  ;;  %v13691_v4 = vor.u32 %v18285_v58, %v13690_v45  ;;  %v13498_v39 = vld [vmem:[#allocation13 + $0x208] sm:$0xf] }
 0x27f   :  { %9063 = vmatpush.bf16.msrb.mxu0 %v14327_v13  ;;  %v18836_v44 = vld [vmem:[#allocation13 + $0x1504] sm:$0xf]  ;;  %v14967_v36 = vor.u32 %v18596_v42, %v14964_v43  ;;  %v14139_v42 = vor.u32 %v18397_v57, %v14138_v37  ;;  %v18189_v52 = vld [vmem:[#allocation13 + $0xc4] sm:$0xf0] }
 0x280   :  { %v15924_v1 = vld [vmem:[#allocation13 + $0x1540] sm:$0xf0]  ;;  %v18173_v24 = vld [vmem:[#allocation13 + $0x44] sm:$0xf0] }
 0x281   :  { %9086 = vmatpush.bf16.msrb.mxu2 %v15543_v2  ;;  %v18676_v47 = vld [vmem:[#allocation13 + $0x1004] sm:$0xf]  ;;  %9100 = vmatpush.bf16.msrb.mxu3 %v15991_v41  ;;  %v15927_v32 = vor.u32 %v18836_v44, %v15924_v1  ;;  %v2664_v41 = vpop.f32.mrf.mxu0  ;;  %v14074_v1 = vld [vmem:[#allocation13 + $0x688] sm:$0xf] }
 0x282   :  { %9072 = vmatpush.bf16.msrb.mxu1 %v15095_v22  ;;  %v15284_v48 = vld [vmem:[#allocation13 + $0x1040] sm:$0xf0]  ;;  %v18413_v22 = vld [vmem:[#allocation13 + $0x7c4] sm:$0xf0] }
 0x283   :  { %9064 = vmatpush.bf16.msrb.mxu0 %v14263_v49  ;;  %v18580_v59 = vld [vmem:[#allocation13 + $0xd04] sm:$0xf]  ;;  %v15287_v10 = vor.u32 %v18676_v47, %v15284_v48  ;;  %v14203_v29 = vor.u32 %v18413_v22, %v14202_v21  ;;  %v13434_v47 = vld [vmem:[#allocation13 + $0x188] sm:$0xf] }
 0x284   :  { %v14900_v60 = vld [vmem:[#allocation13 + $0xd40] sm:$0xf0]  ;;  %v18221_v48 = vld [vmem:[#allocation13 + $0x1c4] sm:$0xf0] }
 0x285   :  { %9087 = vmatpush.bf16.msrb.mxu2 %v15479_v23  ;;  %v18820_v63 = vld [vmem:[#allocation13 + $0x1484] sm:$0xf]  ;;  %v14903_v3 = vor.u32 %v18580_v59, %v14900_v60  ;;  %9101 = vmatpush.bf16.msrb.mxu3 %v15927_v32  ;;  %v13435_v32 = vor.u32 %v18221_v48, %v13434_v47  ;;  %v14010_v60 = vld [vmem:[#allocation13 + $0x608] sm:$0xf] }
 0x286   :  { %9073 = vmatpush.bf16.msrb.mxu1 %v15031_v27  ;;  %v15860_v0 = vld [vmem:[#allocation13 + $0x14c0] sm:$0xf0]  ;;  %v19838_v27 = vpack.c.bf16 %v2737_v28, %v2737_v28  ;;  %v2701_v51 = vpop.f32.mrf.mxu3  ;;  %v13882_v21 = vld [vmem:[#allocation13 + $0x508] sm:$0xf] }
 0x287   :  { %v15863_v2 = vor.u32 %v18820_v63, %v15860_v0  ;;  %v18564_v11 = vld [vmem:[#allocation13 + $0xc84] sm:$0xf]  ;;  %v13370_v63 = vld [vmem:[#allocation13 + $0x108] sm:$0xf] }
 0x288   :  { %v14836_v12 = vld [vmem:[#allocation13 + $0xcc0] sm:$0xf0]  ;;  %9013 = vmatmul.bf16.vlgmr.msra.gmra.mxu0 %v19838_v27  ;;  %v18205_v0 = vld [vmem:[#allocation13 + $0x144] sm:$0xf0] }
 0x289   :  { %9088 = vmatpush.bf16.msrb.mxu2 %v15415_v34  ;;  %v18804_v13 = vld [vmem:[#allocation13 + $0x1404] sm:$0xf]  ;;  %v14839_v31 = vor.u32 %v18564_v11, %v14836_v12  ;;  %9102 = vmatpush.bf16.msrb.mxu3 %v15863_v2  ;;  %v13371_v5 = vor.u32 %v18205_v0, %v13370_v63  ;;  %v13306_v12 = vld [vmem:[#allocation13 + $0x88] sm:$0xf] }
 0x28a   :  { %9074 = vmatpush.bf16.msrb.mxu1 %v14967_v36  ;;  %v15796_v14 = vld [vmem:[#allocation13 + $0x1440] sm:$0xf0]  ;;  %v18381_v36 = vld [vmem:[#allocation13 + $0x6c4] sm:$0xf0] }
 0x28b   :  { %v19044_v19 = vld [vmem:[#allocation13 + $0x1b84] sm:$0xf]  ;;  %v15799_v49 = vor.u32 %v18804_v13, %v15796_v14  ;;  %v14075_v45 = vor.u32 %v18381_v36, %v14074_v1  ;;  %v1026_v13 = vperm.slane %v19827_v50, 7  ;;  %v18333_v22 = vld [vmem:[#allocation13 + $0x544] sm:$0xf0] }
 0x28c   :  { %v16756_v23 = vld [vmem:[#allocation13 + $0x1bc0] sm:$0xf0]  ;;  %v2688_v2 = vpop.f32.mrf.mxu2  ;;  %v13883_v50 = vor.u32 %v18333_v22, %v13882_v21  ;;  %v18301_v1 = vld [vmem:[#allocation13 + $0x444] sm:$0xf0] }
 0x28d   :  { %9089 = vmatpush.bf16.msrb.mxu2 %v15351_v54  ;;  %v18548_v53 = vld [vmem:[#allocation13 + $0xc04] sm:$0xf]  ;;  %v16759_v30 = vor.u32 %v19044_v19, %v16756_v23  ;;  %9103 = vmatpush.bf16.msrb.mxu3 %v15799_v49  ;;  %v13499_v54 = vor.u32 %v18237_v26, %v13498_v39  ;;  %v13242_v23 = vld [vmem:[#allocation13 + $0x8] sm:$0xf] }
 0x28e   :  { %9075 = vmatpush.bf16.msrb.mxu1 %v14903_v3  ;;  %v14772_v25 = vld [vmem:[#allocation13 + $0xc40] sm:$0xf0]  ;;  %v14011_v3 = vor.u32 %v18365_v61, %v14010_v60  ;;  %v2703_v14 = vpop.f32.mrf.mxu3  ;;  %v15738_v49 = vld [vmem:[#allocation13 + $0x1388] sm:$0xf] }
 0x28f   :  { %v19028_v34 = vld [vmem:[#allocation13 + $0x1b04] sm:$0xf]  ;;  %v14775_v40 = vor.u32 %v18548_v53, %v14772_v25  ;;  %9109 = vmatpush.bf16.msra.mxu0 %v16759_v30  ;;  %v18797_v53 = vld [vmem:[#allocation13 + $0x13c4] sm:$0xf0]  ;;  %v2689_v25 = vadd.f32 %v2688_v2, %v1026_v13 }
 0x290   :  { %v16692_v38 = vld [vmem:[#allocation13 + $0x1b40] sm:$0xf0]  ;;  %9104 = vmatmul.bf16.vlgmr.msrb.gmra.mxu3 %v19832_v55  ;;  %v2727_v20 = vpop.f32.mrf.mxu1  ;;  %v13818_v30 = vld [vmem:[#allocation13 + $0x488] sm:$0xf]  ;;  %v15739_v37 = vor.u32 %v18797_v53, %v15738_v49 }
 0x291   :  { %9090 = vmatpush.bf16.msrb.mxu2 %v15287_v10  ;;  %9148 = vmatpush.bf16.msra.mxu3 %v14203_v29  ;;  %v16695_v43 = vor.u32 %v19028_v34, %v16692_v38  ;;  %v19012_v44 = vld [vmem:[#allocation13 + $0x1a84] sm:$0xf]  ;;  %v13243_v29 = vor.u32 %v18173_v24, %v13242_v23  ;;  %v15674_v39 = vld [vmem:[#allocation13 + $0x1308] sm:$0xf] }
 0x292   :  { %9076 = vmatpush.bf16.msrb.mxu1 %v14839_v31  ;;  %v16628_v46 = vld [vmem:[#allocation13 + $0x1ac0] sm:$0xf0]  ;;  %v13947_v31 = vor.u32 %v18349_v9, %v13946_v8  ;;  %v18781_v26 = vld [vmem:[#allocation13 + $0x1344] sm:$0xf0] }
 0x293   :  { %9110 = vmatpush.bf16.msra.mxu0 %v16695_v43  ;;  %v16631_v58 = vor.u32 %v19012_v44, %v16628_v46  ;;  %v18996_v59 = vld [vmem:[#allocation13 + $0x1a04] sm:$0xf]  ;;  %v13754_v44 = vld [vmem:[#allocation13 + $0x408] sm:$0xf]  ;;  %v15675_v46 = vor.u32 %v18781_v26, %v15674_v39 }
 0x294   :  { %9091 = vmatmul.bf16.vlgmr.msrb.gmra.mxu2 %v19822_v6  ;;  %v16564_v10 = vld [vmem:[#allocation13 + $0x1a40] sm:$0xf0]  ;;  %v2690_v34 = vpop.f32.mrf.mxu2  ;;  %v16250_v48 = vld [vmem:[#allocation13 + $0x1788] sm:$0xf]  ;;  %v13755_v61 = vor.u32 %v18301_v1, %v13754_v44 }
 0x295   :  { %9135 = vmatpush.bf16.msra.mxu2 %v13691_v4  ;;  %9149 = vmatpush.bf16.msra.mxu3 %v14139_v42  ;;  %v16567_v4 = vor.u32 %v18996_v59, %v16564_v10  ;;  %v18980_v7 = vld [vmem:[#allocation13 + $0x1984] sm:$0xf]  ;;  %v14714_v59 = vld [vmem:[#allocation13 + $0xb88] sm:$0xf] }
 0x296   :  { %9077 = vmatpush.bf16.msrb.mxu1 %v14775_v40  ;;  %v16500_v11 = vld [vmem:[#allocation13 + $0x19c0] sm:$0xf0]  ;;  %v2702_v40 = vadd.f32 %v2701_v51, %v2689_v25  ;;  %v2714_v42 = vpop.f32.mrf.mxu0  ;;  %v18541_v60 = vld [vmem:[#allocation13 + $0xbc4] sm:$0xf0] }
 0x297   :  { %9111 = vmatpush.bf16.msra.mxu0 %v16631_v58  ;;  %v16503_v18 = vor.u32 %v18980_v7, %v16500_v11  ;;  %v18964_v19 = vld [vmem:[#allocation13 + $0x1904] sm:$0xf]  ;;  %v15610_v63 = vld [vmem:[#allocation13 + $0x1288] sm:$0xf]  ;;  %v14715_v7 = vor.u32 %v18541_v60, %v14714_v59 }
 0x298   :  { %v16436_v56 = vld [vmem:[#allocation13 + $0x1940] sm:$0xf0]  ;;  %9065 = vmatmul.bf16.vlgmr.msrb.gmra.mxu0 %v19818_v15  ;;  %v2715_v36 = vadd.f32 %v2714_v42, %v2702_v40  ;;  %v2729_v58 = vpop.f32.mrf.mxu1  ;;  %v18765_v0 = vld [vmem:[#allocation13 + $0x12c4] sm:$0xf0] }
 0x299   :  { %9136 = vmatpush.bf16.msra.mxu2 %v13627_v17  ;;  %9150 = vmatpush.bf16.msra.mxu3 %v14075_v45  ;;  %v13307_v17 = vor.u32 %v18189_v52, %v13306_v12  ;;  %v16439_v28 = vor.u32 %v18964_v19, %v16436_v56  ;;  %v18948_v57 = vld [vmem:[#allocation13 + $0x1884] sm:$0xf]  ;;  %v18925_v45 = vld [vmem:[#allocation13 + $0x17c4] sm:$0xf0]  ;;  %v15611_v11 = vor.u32 %v18765_v0, %v15610_v63 }
 0x29a   :  { %v16372_v38 = vld [vmem:[#allocation13 + $0x18c0] sm:$0xf0]  ;;  %v2728_v51 = vadd.f32 %v2727_v20, %v2715_v36  ;;  %v16186_v8 = vld [vmem:[#allocation13 + $0x1708] sm:$0xf] }
 0x29b   :  { %9112 = vmatpush.bf16.msra.mxu0 %v16567_v4  ;;  %v16375_v43 = vor.u32 %v18948_v57, %v16372_v38  ;;  %v16308_v47 = vld [vmem:[#allocation13 + $0x1840] sm:$0xf0]  ;;  %v16251_v4 = vor.u32 %v18925_v45, %v16250_v48  ;;  %v18909_v9 = vld [vmem:[#allocation13 + $0x1744] sm:$0xf0] }
 0x29c   :  { %v17268_v10 = vld [vmem:[#allocation13 + $0x1fc0] sm:$0xf0]  ;;  %v14650_v52 = vld [vmem:[#allocation13 + $0xb08] sm:$0xf]  ;;  %v16187_v21 = vor.u32 %v18909_v9, %v16186_v8 }
 0x29d   :  { %9137 = vmatpush.bf16.msra.mxu2 %v13563_v33  ;;  %9151 = vmatpush.bf16.msra.mxu3 %v14011_v3  ;;  %v18317_v33 = vld [vmem:[#allocation13 + $0x4c4] sm:$0xf0]  ;;  %v19156_v12 = vld [vmem:[#allocation13 + $0x1f04] sm:$0xf] }
 0x29e   :  { %v13819_v41 = vor.u32 %v18317_v33, %v13818_v30  ;;  %v18525_v13 = vld [vmem:[#allocation13 + $0xb44] sm:$0xf0]  ;;  %v2716_v19 = vpop.f32.mrf.mxu0  ;;  %v19140_v56 = vld [vmem:[#allocation13 + $0x1e84] sm:$0xf] }
 0x29f   :  { %9113 = vmatpush.bf16.msra.mxu0 %v16503_v18  ;;  %v15546_v18 = vld [vmem:[#allocation13 + $0x1208] sm:$0xf]  ;;  %v14651_v22 = vor.u32 %v18525_v13, %v14650_v52  ;;  %v19108_v59 = vld [vmem:[#allocation13 + $0x1d84] sm:$0xf] }
 0x2a0   :  { %v16122_v23 = vld [vmem:[#allocation13 + $0x1688] sm:$0xf] }
 0x2a1   :  { %9138 = vmatpush.bf16.msra.mxu2 %v13499_v54  ;;  %9152 = vmatpush.bf16.msra.mxu3 %v13947_v31  ;;  %v18932_v54 = vld [vmem:[#allocation13 + $0x1804] sm:$0xf]  ;;  %v18893_v24 = vld [vmem:[#allocation13 + $0x16c4] sm:$0xf0] }
 0x2a2   :  { %v16311_v3 = vor.u32 %v18932_v54, %v16308_v47  ;;  %v17204_v31 = vld [vmem:[#allocation13 + $0x1f40] sm:$0xf0]  ;;  %v14586_v53 = vld [vmem:[#allocation13 + $0xa88] sm:$0xf]  ;;  %v16123_v33 = vor.u32 %v18893_v24, %v16122_v23 }
 0x2a3   :  { %9114 = vmatpush.bf16.msra.mxu0 %v16439_v28  ;;  %v17207_v20 = vor.u32 %v19156_v12, %v17204_v31  ;;  %v18509_v25 = vld [vmem:[#allocation13 + $0xac4] sm:$0xf0]  ;;  %v17140_v28 = vld [vmem:[#allocation13 + $0x1ec0] sm:$0xf0] }
 0x2a4   :  { %v18733_v30 = vld [vmem:[#allocation13 + $0x11c4] sm:$0xf0]  ;;  %v17143_v26 = vor.u32 %v19140_v56, %v17140_v28  ;;  %v17076_v54 = vld [vmem:[#allocation13 + $0x1e40] sm:$0xf0]  ;;  %v13692_v56 = vld [vmem:[#allocation13 + $0x3c8] sm:$0xf0] }
 0x2a5   :  { %9139 = vmatpush.bf16.msra.mxu2 %v13435_v32  ;;  %9153 = vmatpush.bf16.msra.mxu3 %v13883_v50  ;;  %v19172_v32 = vld [vmem:[#allocation13 + $0x1f84] sm:$0xf]  ;;  %v16058_v38 = vld [vmem:[#allocation13 + $0x1608] sm:$0xf] }
 0x2a6   :  { %v17271_v2 = vor.u32 %v19172_v32, %v17268_v10  ;;  %v19848_v50 = vld [vmem:[#allocation14] sm:$0xff]  ;;  %v8949_v34 = vpop.f32.mrf.mxu3  ;;  %v18877_v39 = vld [vmem:[#allocation13 + $0x1644] sm:$0xf0] }
 0x2a7   :  { %9115 = vmatpush.bf16.msra.mxu0 %v16375_v43  ;;  %v3775_v57 = vperm.slane %v19848_v50, 0  ;;  %v14522_v42 = vld [vmem:[#allocation13 + $0xa08] sm:$0xf]  ;;  %v16059_v36 = vor.u32 %v18877_v39, %v16058_v38  ;;  %v17012_v10 = vld [vmem:[#allocation13 + $0x1dc0] sm:$0xf0] }
 0x2a8   :  { %v18493_v43 = vld [vmem:[#allocation13 + $0xa44] sm:$0xf0]  ;;  %v19092_v12 = vld [vmem:[#allocation13 + $0x1d04] sm:$0xf]  ;;  %v13628_v38 = vld [vmem:[#allocation13 + $0x348] sm:$0xf0] }
 0x2a9   :  { %9140 = vmatpush.bf16.msra.mxu2 %v13371_v5  ;;  %9154 = vmatpush.bf16.msra.mxu3 %v13819_v41  ;;  %v2738_v5 = vmax.f32 %v2728_v51, 0.0  ;;  %v19124_v41 = vld [vmem:[#allocation13 + $0x1e04] sm:$0xf]  ;;  %v15418_v44 = vld [vmem:[#allocation13 + $0x1108] sm:$0xf] }
 0x2aa   :  { %v18717_v1 = vld [vmem:[#allocation13 + $0x1144] sm:$0xf0]  ;;  %v17079_v58 = vor.u32 %v19124_v41, %v17076_v54  ;;  %v16948_v31 = vld [vmem:[#allocation13 + $0x1d40] sm:$0xf0] }
 0x2ab   :  { %v19845_v14 = vpack.c.bf16 %v2738_v5, %v2738_v5  ;;  %9116 = vmatpush.bf16.msra.mxu0 %v16311_v3  ;;  %v15994_v47 = vld [vmem:[#allocation13 + $0x1588] sm:$0xf]  ;;  %v15419_v32 = vor.u32 %v18717_v1, %v15418_v44  ;;  %v16820_v41 = vld [vmem:[#allocation13 + $0x1c40] sm:$0xf0] }
 0x2ac   :  { %v18861_v48 = vld [vmem:[#allocation13 + $0x15c4] sm:$0xf0]  ;;  %v8936_v45 = vpop.f32.mrf.mxu2 }
 0x2ad   :  { %9141 = vmatpush.bf16.msra.mxu2 %v13307_v17  ;;  %9155 = vmatpush.bf16.msra.mxu3 %v13755_v61  ;;  %v18749_v17 = vld [vmem:[#allocation13 + $0x1244] sm:$0xf0]  ;;  %v8937_v61 = vadd.f32 %v8936_v45, %v3775_v57  ;;  %v15995_v3 = vor.u32 %v18861_v48, %v15994_v47  ;;  %v18261_v57 = vld [vmem:[#allocation13 + $0x30c] sm:$0xf] }
 0x2ae   :  { %9026 = vmatmul.bf16.vlgmr.msra.gmra.mxu1 %v19845_v14  ;;  %v15547_v49 = vor.u32 %v18749_v17, %v15546_v18  ;;  %9117 = vmatmul.bf16.vlgmr.msra.gmra.mxu0 %v19838_v27  ;;  %v14458_v60 = vld [vmem:[#allocation13 + $0x988] sm:$0xf]  ;;  %v14204_v47 = vld [vmem:[#allocation13 + $0x7c8] sm:$0xf0]  ;;  %v13631_v48 = vor.u32 %v18261_v57, %v13628_v38 }
 0x2af   :  { %9161 = vmatpush.bf16.msrb.mxu0 %v14715_v7  ;;  %9122 = vmatpush.bf16.msra.mxu1 %v17271_v2  ;;  %v18477_v51 = vld [vmem:[#allocation13 + $0x9c4] sm:$0xf0]  ;;  %v8950_v7 = vadd.f32 %v8949_v34, %v8937_v61  ;;  %v17015_v2 = vor.u32 %v19108_v59, %v17012_v10  ;;  %v16884_v34 = vld [vmem:[#allocation13 + $0x1cc0] sm:$0xf0]  ;;  %v18245_v61 = vld [vmem:[#allocation13 + $0x28c] sm:$0xf] }
 0x2b0   :  { %9156 = vmatmul.bf16.vlgmr.msra.gmra.mxu3 %v19800_v62  ;;  %v15354_v63 = vld [vmem:[#allocation13 + $0x1088] sm:$0xf]  ;;  %v14459_v5 = vor.u32 %v18477_v51, %v14458_v60  ;;  %v13564_v10 = vld [vmem:[#allocation13 + $0x2c8] sm:$0xf0] }
 0x2b1   :  { %9142 = vmatpush.bf16.msra.mxu2 %v13243_v29  ;;  %9200 = vmatpush.bf16.msrb.mxu3 %v16251_v4  ;;  %v15482_v29 = vld [vmem:[#allocation13 + $0x1188] sm:$0xf]  ;;  %v8951_v4 = vpop.f32.mrf.mxu3 }
 0x2b2   :  { %v15483_v40 = vor.u32 %v18733_v30, %v15482_v29  ;;  %v18701_v0 = vld [vmem:[#allocation13 + $0x10c4] sm:$0xf0] }
 0x2b3   :  { %9162 = vmatpush.bf16.msrb.mxu0 %v14651_v22  ;;  %9123 = vmatpush.bf16.msra.mxu1 %v17207_v20  ;;  %v15930_v8 = vld [vmem:[#allocation13 + $0x1508] sm:$0xf]  ;;  %v18277_v22 = vld [vmem:[#allocation13 + $0x38c] sm:$0xf] }
 0x2b4   :  { %9143 = vmatmul.bf16.vlgmr.msra.gmra.mxu2 %v19805_v16  ;;  %v18845_v9 = vld [vmem:[#allocation13 + $0x1544] sm:$0xf0]  ;;  %v13695_v30 = vor.u32 %v18277_v22, %v13692_v56  ;;  %v18373_v22 = vld [vmem:[#allocation13 + $0x68c] sm:$0xf] }
 0x2b5   :  { %9187 = vmatpush.bf16.msrb.mxu2 %v15739_v37  ;;  %9201 = vmatpush.bf16.msrb.mxu3 %v16187_v21  ;;  %v14587_v37 = vor.u32 %v18509_v25, %v14586_v53  ;;  %v14394_v52 = vld [vmem:[#allocation13 + $0x908] sm:$0xf]  ;;  %v8975_v19 = vpop.f32.mrf.mxu1  ;;  %v15931_v21 = vor.u32 %v18845_v9, %v15930_v8  ;;  %v16951_v53 = vor.u32 %v19092_v12, %v16948_v31  ;;  %v14140_v8 = vld [vmem:[#allocation13 + $0x748] sm:$0xf0] }
 0x2b6   :  { %v18461_v13 = vld [vmem:[#allocation13 + $0x944] sm:$0xf0]  ;;  %v18229_v31 = vld [vmem:[#allocation13 + $0x20c] sm:$0xf] }
 0x2b7   :  { %9163 = vmatpush.bf16.msrb.mxu0 %v14587_v37  ;;  %9124 = vmatpush.bf16.msra.mxu1 %v17143_v26  ;;  %v15290_v18 = vld [vmem:[#allocation13 + $0x1008] sm:$0xf]  ;;  %v14395_v23 = vor.u32 %v18461_v13, %v14394_v52  ;;  %v14076_v56 = vld [vmem:[#allocation13 + $0x6c8] sm:$0xf0] }
 0x2b8   :  { %v18685_v17 = vld [vmem:[#allocation13 + $0x1044] sm:$0xf0] }
 0x2b9   :  { %9188 = vmatpush.bf16.msrb.mxu2 %v15675_v46  ;;  %9202 = vmatpush.bf16.msrb.mxu3 %v16123_v33  ;;  %v14523_v46 = vor.u32 %v18493_v43, %v14522_v42  ;;  %v15866_v24 = vld [vmem:[#allocation13 + $0x1488] sm:$0xf]  ;;  %v15291_v25 = vor.u32 %v18685_v17, %v15290_v18  ;;  %v19076_v33 = vld [vmem:[#allocation13 + $0x1c84] sm:$0xf]  ;;  %v13500_v18 = vld [vmem:[#allocation13 + $0x248] sm:$0xf0] }
 0x2ba   :  { %v18829_v20 = vld [vmem:[#allocation13 + $0x14c4] sm:$0xf0]  ;;  %v16887_v1 = vor.u32 %v19076_v33, %v16884_v34  ;;  %v18357_v34 = vld [vmem:[#allocation13 + $0x60c] sm:$0xf] }
 0x2bb   :  { %9164 = vmatpush.bf16.msrb.mxu0 %v14523_v46  ;;  %9125 = vmatpush.bf16.msra.mxu1 %v17079_v58  ;;  %v14330_v28 = vld [vmem:[#allocation13 + $0x888] sm:$0xf]  ;;  %v15867_v37 = vor.u32 %v18829_v20, %v15866_v24  ;;  %v18405_v46 = vld [vmem:[#allocation13 + $0x78c] sm:$0xf]  ;;  %v13503_v24 = vor.u32 %v18229_v31, %v13500_v18 }
 0x2bc   :  { %v18445_v29 = vld [vmem:[#allocation13 + $0x8c4] sm:$0xf0]  ;;  %v18789_v31 = vld [vmem:[#allocation13 + $0x138c] sm:$0xf] }
 0x2bd   :  { %9189 = vmatpush.bf16.msrb.mxu2 %v15611_v11  ;;  %9203 = vmatpush.bf16.msrb.mxu3 %v16059_v36  ;;  %v15355_v11 = vor.u32 %v18701_v0, %v15354_v63  ;;  %v8962_v39 = vpop.f32.mrf.mxu0  ;;  %v14331_v26 = vor.u32 %v18445_v29, %v14330_v28  ;;  %v14266_v42 = vld [vmem:[#allocation13 + $0x808] sm:$0xf]  ;;  %v8977_v59 = vpop.f32.mrf.mxu1  ;;  %v18213_v28 = vld [vmem:[#allocation13 + $0x18c] sm:$0xf] }
 0x2be   :  { %9078 = vmatmul.bf16.vlgmr.msrb.gmra.mxu1 %v19814_v35  ;;  %v15802_v43 = vld [vmem:[#allocation13 + $0x1408] sm:$0xf]  ;;  %v8963_v44 = vadd.f32 %v8962_v39, %v8950_v7  ;;  %v18389_v7 = vld [vmem:[#allocation13 + $0x70c] sm:$0xf] }
 0x2bf   :  { %9165 = vmatpush.bf16.msrb.mxu0 %v14459_v5  ;;  %9126 = vmatpush.bf16.msra.mxu1 %v17015_v2  ;;  %v18813_v54 = vld [vmem:[#allocation13 + $0x1444] sm:$0xf0]  ;;  %v13567_v2 = vor.u32 %v18245_v61, %v13564_v10  ;;  %v13436_v29 = vld [vmem:[#allocation13 + $0x1c8] sm:$0xf0] }
 0x2c0   :  { %v18429_v36 = vld [vmem:[#allocation13 + $0x844] sm:$0xf0]  ;;  %v15803_v60 = vor.u32 %v18813_v54, %v15802_v43  ;;  %v19854_v63 = vadd.f32 %v8975_v19, %v8963_v44  ;;  %v14143_v19 = vor.u32 %v18389_v7, %v14140_v8  ;;  %v13439_v38 = vor.u32 %v18213_v28, %v13436_v29  ;;  %v13372_v43 = vld [vmem:[#allocation13 + $0x148] sm:$0xf0] }
 0x2c1   :  { %9190 = vmatpush.bf16.msrb.mxu2 %v15547_v49  ;;  %9204 = vmatpush.bf16.msrb.mxu3 %v15995_v3  ;;  %v8938_v49 = vpop.f32.mrf.mxu2  ;;  %v15226_v45 = vld [vmem:[#allocation13 + $0xf88] sm:$0xf]  ;;  %v14267_v0 = vor.u32 %v18429_v36, %v14266_v42  ;;  %v14207_v3 = vor.u32 %v18405_v46, %v14204_v47  ;;  %v18197_v42 = vld [vmem:[#allocation13 + $0x10c] sm:$0xf] }
 0x2c2   :  { %v16762_v58 = vld [vmem:[#allocation13 + $0x1b88] sm:$0xf]  ;;  %v13948_v36 = vld [vmem:[#allocation13 + $0x5c8] sm:$0xf0]  ;;  %v13375_v47 = vor.u32 %v18197_v42, %v13372_v43 }
 0x2c3   :  { %9166 = vmatpush.bf16.msrb.mxu0 %v14395_v23  ;;  %9127 = vmatpush.bf16.msra.mxu1 %v16951_v53  ;;  %v18669_v51 = vld [vmem:[#allocation13 + $0xfc4] sm:$0xf0]  ;;  %v18181_v59 = vld [vmem:[#allocation13 + $0x8c] sm:$0xf] }
 0x2c4   :  { %v15227_v9 = vor.u32 %v18669_v51, %v15226_v45  ;;  %v16698_v12 = vld [vmem:[#allocation13 + $0x1b08] sm:$0xf]  ;;  %v15740_v18 = vld [vmem:[#allocation13 + $0x13c8] sm:$0xf0] }
 0x2c5   :  { %9191 = vmatpush.bf16.msrb.mxu2 %v15483_v40  ;;  %9205 = vmatpush.bf16.msrb.mxu3 %v15931_v21  ;;  %v19060_v40 = vld [vmem:[#allocation13 + $0x1c04] sm:$0xf]  ;;  %v19037_v52 = vld [vmem:[#allocation13 + $0x1b44] sm:$0xf0]  ;;  %v8964_v17 = vpop.f32.mrf.mxu0  ;;  %v15676_v28 = vld [vmem:[#allocation13 + $0x1348] sm:$0xf0] }
 0x2c6   :  { %v16823_v4 = vor.u32 %v19060_v40, %v16820_v41  ;;  %v18653_v13 = vld [vmem:[#allocation13 + $0xf44] sm:$0xf0]  ;;  %v16699_v21 = vor.u32 %v19037_v52, %v16698_v12  ;;  %v18165_v12 = vld [vmem:[#allocation13 + $0xc] sm:$0xf] }
 0x2c7   :  { %9167 = vmatpush.bf16.msrb.mxu0 %v14331_v26  ;;  %9128 = vmatpush.bf16.msra.mxu1 %v16887_v1  ;;  %v15098_v20 = vld [vmem:[#allocation13 + $0xe88] sm:$0xf]  ;;  %v18341_v1 = vld [vmem:[#allocation13 + $0x58c] sm:$0xf] }
 0x2c8   :  { %v16634_v49 = vld [vmem:[#allocation13 + $0x1a88] sm:$0xf]  ;;  %v13951_v51 = vor.u32 %v18341_v1, %v13948_v36  ;;  %v13244_v52 = vld [vmem:[#allocation13 + $0x48] sm:$0xf0] }
 0x2c9   :  { %9192 = vmatpush.bf16.msrb.mxu2 %v15419_v32  ;;  %v19053_v32 = vld [vmem:[#allocation13 + $0x1bc4] sm:$0xf0]  ;;  %9206 = vmatpush.bf16.msrb.mxu3 %v15867_v37  ;;  %v14012_v37 = vld [vmem:[#allocation13 + $0x648] sm:$0xf0] }
 0x2ca   :  { %v16763_v5 = vor.u32 %v19053_v32, %v16762_v58  ;;  %v19021_v53 = vld [vmem:[#allocation13 + $0x1ac4] sm:$0xf0]  ;;  %v14015_v54 = vor.u32 %v18357_v34, %v14012_v37 }
 0x2cb   :  { %9168 = vmatpush.bf16.msrb.mxu0 %v14267_v0  ;;  %9129 = vmatpush.bf16.msra.mxu1 %v16823_v4  ;;  %v16635_v33 = vor.u32 %v19021_v53, %v16634_v49  ;;  %v15034_v39 = vld [vmem:[#allocation13 + $0xe08] sm:$0xf]  ;;  %v18325_v0 = vld [vmem:[#allocation13 + $0x50c] sm:$0xf] }
 0x2cc   :  { %v16570_v26 = vld [vmem:[#allocation13 + $0x1a08] sm:$0xf] }
 0x2cd   :  { %9193 = vmatpush.bf16.msrb.mxu2 %v15355_v11  ;;  %v15162_v11 = vld [vmem:[#allocation13 + $0xf08] sm:$0xf]  ;;  %9207 = vmatpush.bf16.msrb.mxu3 %v15803_v60  ;;  %v13308_v60 = vld [vmem:[#allocation13 + $0xc8] sm:$0xf0] }
 0x2ce   :  { %v15163_v23 = vor.u32 %v18653_v13, %v15162_v11  ;;  %9169 = vmatmul.bf16.vlgmr.msrb.gmra.mxu0 %v19818_v15  ;;  %9130 = vmatmul.bf16.vlgmr.msra.gmra.mxu1 %v19845_v14  ;;  %v19005_v40 = vld [vmem:[#allocation13 + $0x1a44] sm:$0xf0]  ;;  %v13311_v7 = vor.u32 %v18181_v59, %v13308_v60  ;;  %v18901_v59 = vld [vmem:[#allocation13 + $0x170c] sm:$0xf] }
 0x2cf   :  { %9213 = vmatpush.bf16.msra.mxu0 %v16763_v5  ;;  %9174 = vmatpush.bf16.msrb.mxu1 %v15227_v9  ;;  %v18621_v41 = vld [vmem:[#allocation13 + $0xe44] sm:$0xf0]  ;;  %v16571_v44 = vor.u32 %v19005_v40, %v16570_v26  ;;  %v18917_v40 = vld [vmem:[#allocation13 + $0x178c] sm:$0xf] }
 0x2d0   :  { %9208 = vmatmul.bf16.vlgmr.msrb.gmra.mxu3 %v19832_v55  ;;  %v15035_v46 = vor.u32 %v18621_v41, %v15034_v39  ;;  %v16506_v45 = vld [vmem:[#allocation13 + $0x1988] sm:$0xf]  ;;  %v16252_v41 = vld [vmem:[#allocation13 + $0x17c8] sm:$0xf0] }
 0x2d1   :  { %9194 = vmatpush.bf16.msrb.mxu2 %v15291_v25  ;;  %9252 = vmatpush.bf16.msra.mxu3 %v14207_v3  ;;  %v18637_v25 = vld [vmem:[#allocation13 + $0xec4] sm:$0xf0]  ;;  %v13884_v3 = vld [vmem:[#allocation13 + $0x548] sm:$0xf0] }
 0x2d2   :  { %v15099_v57 = vor.u32 %v18637_v25, %v15098_v20  ;;  %v18989_v58 = vld [vmem:[#allocation13 + $0x19c4] sm:$0xf0]  ;;  %v13887_v13 = vor.u32 %v18325_v0, %v13884_v3  ;;  %v18773_v25 = vld [vmem:[#allocation13 + $0x130c] sm:$0xf] }
 0x2d3   :  { %9214 = vmatpush.bf16.msra.mxu0 %v16699_v21  ;;  %9175 = vmatpush.bf16.msrb.mxu1 %v15163_v23  ;;  %v18605_v32 = vld [vmem:[#allocation13 + $0xdc4] sm:$0xf0]  ;;  %v16507_v10 = vor.u32 %v18989_v58, %v16506_v45  ;;  %v13820_v21 = vld [vmem:[#allocation13 + $0x4c8] sm:$0xf0]  ;;  %v15679_v42 = vor.u32 %v18773_v25, %v15676_v28  ;;  %v16255_v45 = vor.u32 %v18917_v40, %v16252_v41 }
 0x2d4   :  { %9195 = vmatmul.bf16.vlgmr.msrb.gmra.mxu2 %v19822_v6  ;;  %v14906_v8 = vld [vmem:[#allocation13 + $0xd08] sm:$0xf]  ;;  %v16188_v60 = vld [vmem:[#allocation13 + $0x1748] sm:$0xf0] }
 0x2d5   :  { %9239 = vmatpush.bf16.msra.mxu2 %v13695_v30  ;;  %9253 = vmatpush.bf16.msra.mxu3 %v14143_v19  ;;  %v14079_v30 = vor.u32 %v18373_v22, %v14076_v56  ;;  %v16442_v9 = vld [vmem:[#allocation13 + $0x1908] sm:$0xf]  ;;  %v18309_v19 = vld [vmem:[#allocation13 + $0x48c] sm:$0xf]  ;;  %v13247_v22 = vor.u32 %v18165_v12, %v13244_v52 }
 0x2d6   :  { %v18589_v11 = vld [vmem:[#allocation13 + $0xd44] sm:$0xf0]  ;;  %v13823_v53 = vor.u32 %v18309_v19, %v13820_v21  ;;  %v18517_v0 = vld [vmem:[#allocation13 + $0xb0c] sm:$0xf] }
 0x2d7   :  { %9215 = vmatpush.bf16.msra.mxu0 %v16635_v33  ;;  %9176 = vmatpush.bf16.msrb.mxu1 %v15099_v57  ;;  %v8988_v61 = vpop.f32.mrf.mxu2  ;;  %v16378_v56 = vld [vmem:[#allocation13 + $0x1888] sm:$0xf]  ;;  %v18293_v57 = vld [vmem:[#allocation13 + $0x40c] sm:$0xf] }
 0x2d8   :  { %v19861_v4 = vadd.f32 %v8988_v61, %v19854_v63  ;;  %v14907_v63 = vor.u32 %v18589_v11, %v14906_v8  ;;  %v18957_v23 = vld [vmem:[#allocation13 + $0x18c4] sm:$0xf0]  ;;  %v14652_v3 = vld [vmem:[#allocation13 + $0xb48] sm:$0xf0] }
 0x2d9   :  { %9240 = vmatpush.bf16.msra.mxu2 %v13631_v48  ;;  %9254 = vmatpush.bf16.msra.mxu3 %v14079_v30  ;;  %v14970_v48 = vld [vmem:[#allocation13 + $0xd88] sm:$0xf]  ;;  %v16379_v30 = vor.u32 %v18957_v23, %v16378_v56  ;;  %v15548_v8 = vld [vmem:[#allocation13 + $0x1248] sm:$0xf0] }
 0x2da   :  { %v14971_v5 = vor.u32 %v18605_v32, %v14970_v48  ;;  %v14842_v20 = vld [vmem:[#allocation13 + $0xc88] sm:$0xf]  ;;  %v18885_v11 = vld [vmem:[#allocation13 + $0x168c] sm:$0xf] }
 0x2db   :  { %9216 = vmatpush.bf16.msra.mxu0 %v16571_v44  ;;  %9177 = vmatpush.bf16.msrb.mxu1 %v15035_v46  ;;  %v18573_v49 = vld [vmem:[#allocation13 + $0xcc4] sm:$0xf0]  ;;  %v14716_v44 = vld [vmem:[#allocation13 + $0xbc8] sm:$0xf0] }
 0x2dc   :  { %v14778_v33 = vld [vmem:[#allocation13 + $0xc08] sm:$0xf]  ;;  %v14843_v39 = vor.u32 %v18573_v49, %v14842_v20  ;;  %v18757_v46 = vld [vmem:[#allocation13 + $0x128c] sm:$0xf] }
 0x2dd   :  { %9241 = vmatpush.bf16.msra.mxu2 %v13567_v2  ;;  %9255 = vmatpush.bf16.msra.mxu3 %v14015_v54  ;;  %v18973_v2 = vld [vmem:[#allocation13 + $0x1944] sm:$0xf0]  ;;  %v18533_v54 = vld [vmem:[#allocation13 + $0xb8c] sm:$0xf] }
 0x2de   :  { %v16443_v17 = vor.u32 %v18973_v2, %v16442_v9  ;;  %v18557_v34 = vld [vmem:[#allocation13 + $0xc44] sm:$0xf0]  ;;  %v14719_v32 = vor.u32 %v18533_v54, %v14716_v44  ;;  %v16191_v9 = vor.u32 %v18901_v59, %v16188_v60  ;;  %v14655_v2 = vor.u32 %v18517_v0, %v14652_v3  ;;  %v16124_v12 = vld [vmem:[#allocation13 + $0x16c8] sm:$0xf0] }
 0x2df   :  { %9217 = vmatpush.bf16.msra.mxu0 %v16507_v10  ;;  %9178 = vmatpush.bf16.msrb.mxu1 %v14971_v5  ;;  %v8990_v29 = vpop.f32.mrf.mxu2  ;;  %v16314_v37 = vld [vmem:[#allocation13 + $0x1808] sm:$0xf]  ;;  %v14779_v58 = vor.u32 %v18557_v34, %v14778_v33  ;;  %v18725_v21 = vld [vmem:[#allocation13 + $0x118c] sm:$0xf] }
 0x2e0   :  { %v18941_v26 = vld [vmem:[#allocation13 + $0x1844] sm:$0xf0]  ;;  %v18869_v23 = vld [vmem:[#allocation13 + $0x160c] sm:$0xf] }
 0x2e1   :  { %9242 = vmatpush.bf16.msra.mxu2 %v13503_v24  ;;  %9256 = vmatpush.bf16.msra.mxu3 %v13951_v51  ;;  %v15743_v24 = vor.u32 %v18789_v31, %v15740_v18  ;;  %v17274_v43 = vld [vmem:[#allocation13 + $0x1f88] sm:$0xf]  ;;  %v16315_v48 = vor.u32 %v18941_v26, %v16314_v37  ;;  %v18501_v18 = vld [vmem:[#allocation13 + $0xa8c] sm:$0xf] }
 0x2e2   :  { %v19181_v36 = vld [vmem:[#allocation13 + $0x1fc4] sm:$0xf0]  ;;  %v18485_v25 = vld [vmem:[#allocation13 + $0xa0c] sm:$0xf] }
 0x2e3   :  { %9218 = vmatpush.bf16.msra.mxu0 %v16443_v17  ;;  %9179 = vmatpush.bf16.msrb.mxu1 %v14907_v63  ;;  %v17275_v51 = vor.u32 %v19181_v36, %v17274_v43  ;;  %v17210_v10 = vld [vmem:[#allocation13 + $0x1f08] sm:$0xf]  ;;  %v14588_v17 = vld [vmem:[#allocation13 + $0xac8] sm:$0xf0] }
 0x2e4   :  { %v19165_v5 = vld [vmem:[#allocation13 + $0x1f44] sm:$0xf0]  ;;  %v15484_v63 = vld [vmem:[#allocation13 + $0x11c8] sm:$0xf0]  ;;  %v14591_v56 = vor.u32 %v18501_v18, %v14588_v17 }
 0x2e5   :  { %9243 = vmatpush.bf16.msra.mxu2 %v13439_v38  ;;  %9257 = vmatpush.bf16.msra.mxu3 %v13887_v13  ;;  %v13756_v38 = vld [vmem:[#allocation13 + $0x448] sm:$0xf0]  ;;  %v17211_v52 = vor.u32 %v19165_v5, %v17210_v10  ;;  %v17146_v31 = vld [vmem:[#allocation13 + $0x1e88] sm:$0xf]  ;;  %v15487_v49 = vor.u32 %v18725_v21, %v15484_v63  ;;  %v13634_v63 = vld [vmem:[#allocation13 + $0x310] sm:$0xf] }
 0x2e6   :  { %v13759_v1 = vor.u32 %v18293_v57, %v13756_v38  ;;  %v19149_v19 = vld [vmem:[#allocation13 + $0x1ec4] sm:$0xf0]  ;;  %v14524_v28 = vld [vmem:[#allocation13 + $0xa48] sm:$0xf0] }
 0x2e7   :  { %9219 = vmatpush.bf16.msra.mxu0 %v16379_v30  ;;  %9180 = vmatpush.bf16.msrb.mxu1 %v14843_v39  ;;  %v17147_v20 = vor.u32 %v19149_v19, %v17146_v31  ;;  %v19133_v29 = vld [vmem:[#allocation13 + $0x1e44] sm:$0xf0]  ;;  %v18709_v30 = vld [vmem:[#allocation13 + $0x110c] sm:$0xf]  ;;  %v14527_v37 = vor.u32 %v18485_v25, %v14524_v28 }
 0x2e8   :  { %v15420_v33 = vld [vmem:[#allocation13 + $0x1148] sm:$0xf0]  ;;  %v17018_v41 = vld [vmem:[#allocation13 + $0x1d88] sm:$0xf] }
 0x2e9   :  { %9244 = vmatpush.bf16.msra.mxu2 %v13375_v47  ;;  %9258 = vmatpush.bf16.msra.mxu3 %v13823_v53  ;;  %v15612_v47 = vld [vmem:[#allocation13 + $0x12c8] sm:$0xf0]  ;;  %v17082_v53 = vld [vmem:[#allocation13 + $0x1e08] sm:$0xf]  ;;  %v15423_v40 = vor.u32 %v18709_v30, %v15420_v33  ;;  %v14210_v30 = vld [vmem:[#allocation13 + $0x790] sm:$0xf] }
 0x2ea   :  { %v15615_v61 = vor.u32 %v18757_v46, %v15612_v47  ;;  %v18853_v57 = vld [vmem:[#allocation13 + $0x158c] sm:$0xf]  ;;  %v17083_v26 = vor.u32 %v19133_v29, %v17082_v53  ;;  %v19117_v54 = vld [vmem:[#allocation13 + $0x1dc4] sm:$0xf0]  ;;  %v18414_v33 = vld [vmem:[#allocation13 + $0x7cc] sm:$0xf0] }
 0x2eb   :  { %9220 = vmatpush.bf16.msra.mxu0 %v16315_v48  ;;  %9181 = vmatpush.bf16.msrb.mxu1 %v14779_v58  ;;  %v15996_v38 = vld [vmem:[#allocation13 + $0x15c8] sm:$0xf0]  ;;  %v17019_v58 = vor.u32 %v19117_v54, %v17018_v41  ;;  %v16954_v59 = vld [vmem:[#allocation13 + $0x1d08] sm:$0xf]  ;;  %v13570_v41 = vld [vmem:[#allocation13 + $0x290] sm:$0xf] }
 0x2ec   :  { %v14460_v43 = vld [vmem:[#allocation13 + $0x9c8] sm:$0xf0]  ;;  %v15999_v36 = vor.u32 %v18853_v57, %v15996_v38  ;;  %v19101_v10 = vld [vmem:[#allocation13 + $0x1d44] sm:$0xf0] }
 0x2ed   :  { %9245 = vmatpush.bf16.msra.mxu2 %v13311_v7  ;;  %9259 = vmatpush.bf16.msra.mxu3 %v13759_v1  ;;  %v18741_v7 = vld [vmem:[#allocation13 + $0x120c] sm:$0xf]  ;;  %v16890_v17 = vld [vmem:[#allocation13 + $0x1c88] sm:$0xf] }
 0x2ee   :  { %v15551_v13 = vor.u32 %v18741_v7, %v15548_v8  ;;  %9221 = vmatmul.bf16.vlgmr.msra.gmra.mxu0 %v19838_v27  ;;  %9182 = vmatmul.bf16.vlgmr.msrb.gmra.mxu1 %v19814_v35  ;;  %v18693_v44 = vld [vmem:[#allocation13 + $0x108c] sm:$0xf]  ;;  %v13698_v7 = vld [vmem:[#allocation13 + $0x390] sm:$0xf]  ;;  %v19085_v19 = vld [vmem:[#allocation13 + $0x1cc4] sm:$0xf0] }
 0x2ef   :  { %9265 = vmatpush.bf16.msrb.mxu0 %v14719_v32  ;;  %9226 = vmatpush.bf16.msra.mxu1 %v17275_v51  ;;  %v15356_v1 = vld [vmem:[#allocation13 + $0x10c8] sm:$0xf0]  ;;  %v18286_v8 = vld [vmem:[#allocation13 + $0x3cc] sm:$0xf0]  ;;  %v16891_v28 = vor.u32 %v19085_v19, %v16890_v17 }
 0x2f0   :  { %9260 = vmatmul.bf16.vlgmr.msra.gmra.mxu3 %v19800_v62  ;;  %v18837_v47 = vld [vmem:[#allocation13 + $0x150c] sm:$0xf]  ;;  %v15359_v32 = vor.u32 %v18693_v44, %v15356_v1  ;;  %v14211_v44 = vor.u32 %v18414_v33, %v14210_v30  ;;  %v14018_v19 = vld [vmem:[#allocation13 + $0x610] sm:$0xf] }
 0x2f1   :  { %9246 = vmatpush.bf16.msra.mxu2 %v13247_v22  ;;  %9304 = vmatpush.bf16.msrb.mxu3 %v16255_v45  ;;  %v16127_v22 = vor.u32 %v18885_v11, %v16124_v12  ;;  %v15932_v48 = vld [vmem:[#allocation13 + $0x1548] sm:$0xf0]  ;;  %v9001_v45 = vpop.f32.mrf.mxu3  ;;  %v13954_v33 = vld [vmem:[#allocation13 + $0x590] sm:$0xf] }
 0x2f2   :  { %v18453_v60 = vld [vmem:[#allocation13 + $0x90c] sm:$0xf]  ;;  %v15935_v5 = vor.u32 %v18837_v47, %v15932_v48  ;;  %v18398_v47 = vld [vmem:[#allocation13 + $0x74c] sm:$0xf0] }
 0x2f3   :  { %9266 = vmatpush.bf16.msrb.mxu0 %v14655_v2  ;;  %9227 = vmatpush.bf16.msra.mxu1 %v17211_v52  ;;  %v14396_v51 = vld [vmem:[#allocation13 + $0x948] sm:$0xf0]  ;;  %v16955_v52 = vor.u32 %v19101_v10, %v16954_v59 }
 0x2f4   :  { %9247 = vmatmul.bf16.vlgmr.msra.gmra.mxu2 %v19805_v16  ;;  %v18677_v0 = vld [vmem:[#allocation13 + $0x100c] sm:$0xf] }
 0x2f5   :  { %9291 = vmatpush.bf16.msrb.mxu2 %v15743_v24  ;;  %9305 = vmatpush.bf16.msrb.mxu3 %v16191_v9  ;;  %v16060_v24 = vld [vmem:[#allocation13 + $0x1648] sm:$0xf0]  ;;  %v14399_v9 = vor.u32 %v18453_v60, %v14396_v51  ;;  %v13506_v51 = vld [vmem:[#allocation13 + $0x210] sm:$0xf] }
 0x2f6   :  { %v16063_v34 = vor.u32 %v18869_v23, %v16060_v24  ;;  %v15292_v3 = vld [vmem:[#allocation13 + $0x1048] sm:$0xf0]  ;;  %v16826_v23 = vld [vmem:[#allocation13 + $0x1c08] sm:$0xf] }
 0x2f7   :  { %9267 = vmatpush.bf16.msrb.mxu0 %v14591_v56  ;;  %9228 = vmatpush.bf16.msra.mxu1 %v17147_v20  ;;  %v19867_v39 = vpop.f32.mrf.mxu2  ;;  %v18821_v2 = vld [vmem:[#allocation13 + $0x148c] sm:$0xf]  ;;  %v19069_v24 = vld [vmem:[#allocation13 + $0x1c44] sm:$0xf0] }
 0x2f8   :  { %v15868_v11 = vld [vmem:[#allocation13 + $0x14c8] sm:$0xf0]  ;;  %v16827_v1 = vor.u32 %v19069_v24, %v16826_v23 }
 0x2f9   :  { %9292 = vmatpush.bf16.msrb.mxu2 %v15679_v42  ;;  %9306 = vmatpush.bf16.msrb.mxu3 %v16127_v22  ;;  %v18469_v42 = vld [vmem:[#allocation13 + $0x98c] sm:$0xf]  ;;  %v15871_v21 = vor.u32 %v18821_v2, %v15868_v11  ;;  %v18270_v22 = vld [vmem:[#allocation13 + $0x34c] sm:$0xf0]  ;;  %v9003_v25 = vpop.f32.mrf.mxu3 }
 0x2fa   :  { %v14463_v46 = vor.u32 %v18469_v42, %v14460_v43  ;;  %v18437_v31 = vld [vmem:[#allocation13 + $0x88c] sm:$0xf]  ;;  %v18254_v42 = vld [vmem:[#allocation13 + $0x2cc] sm:$0xf0]  ;;  %v3776_v43 = vperm.slane %v19848_v50, 1 }
 0x2fb   :  { %9268 = vmatpush.bf16.msrb.mxu0 %v14527_v37  ;;  %9229 = vmatpush.bf16.msra.mxu1 %v17083_v26  ;;  %v14332_v18 = vld [vmem:[#allocation13 + $0x8c8] sm:$0xf0]  ;;  %v18238_v50 = vld [vmem:[#allocation13 + $0x24c] sm:$0xf0] }
 0x2fc   :  { %v14335_v56 = vor.u32 %v18437_v31, %v14332_v18  ;;  %v18421_v20 = vld [vmem:[#allocation13 + $0x80c] sm:$0xf]  ;;  %v9041_v10 = vadd.f32 %v19867_v39, %v3776_v43  ;;  %v13507_v11 = vor.u32 %v18238_v50, %v13506_v51  ;;  %v13442_v31 = vld [vmem:[#allocation13 + $0x190] sm:$0xf] }
 0x2fd   :  { %9293 = vmatpush.bf16.msrb.mxu2 %v15615_v61  ;;  %9307 = vmatpush.bf16.msrb.mxu3 %v16063_v34  ;;  %v19870_v61 = vadd.f32 %v9001_v45, %v19861_v4  ;;  %v13699_v4 = vor.u32 %v18286_v8, %v13698_v7  ;;  %v15804_v53 = vld [vmem:[#allocation13 + $0x1448] sm:$0xf0]  ;;  %v13635_v34 = vor.u32 %v18270_v22, %v13634_v63  ;;  %v14082_v7 = vld [vmem:[#allocation13 + $0x690] sm:$0xf] }
 0x2fe   :  { %v14268_v29 = vld [vmem:[#allocation13 + $0x848] sm:$0xf0]  ;;  %v13571_v45 = vor.u32 %v18254_v42, %v13570_v41  ;;  %v18382_v8 = vld [vmem:[#allocation13 + $0x6cc] sm:$0xf0] }
 0x2ff   :  { %9269 = vmatpush.bf16.msrb.mxu0 %v14463_v46  ;;  %9230 = vmatpush.bf16.msra.mxu1 %v17019_v58  ;;  %v9042_v12 = vpop.f32.mrf.mxu2  ;;  %v18661_v37 = vld [vmem:[#allocation13 + $0xf8c] sm:$0xf]  ;;  %v14271_v54 = vor.u32 %v18421_v20, %v14268_v29  ;;  %v14146_v46 = vld [vmem:[#allocation13 + $0x710] sm:$0xf] }
 0x300   :  { %v19045_v57 = vld [vmem:[#allocation13 + $0x1b8c] sm:$0xf]  ;;  %v18222_v18 = vld [vmem:[#allocation13 + $0x1cc] sm:$0xf0] }
 0x301   :  { %9294 = vmatpush.bf16.msrb.mxu2 %v15551_v13  ;;  %9308 = vmatpush.bf16.msrb.mxu3 %v15999_v36  ;;  %v15295_v13 = vor.u32 %v18677_v0, %v15292_v3  ;;  %v16764_v38 = vld [vmem:[#allocation13 + $0x1bc8] sm:$0xf0]  ;;  %v14147_v0 = vor.u32 %v18398_v47, %v14146_v46  ;;  %v9053_v3 = vpop.f32.mrf.mxu3  ;;  %v13443_v22 = vor.u32 %v18222_v18, %v13442_v31  ;;  %v13890_v46 = vld [vmem:[#allocation13 + $0x510] sm:$0xf] }
 0x302   :  { %v16767_v36 = vor.u32 %v19045_v57, %v16764_v38  ;;  %v18645_v58 = vld [vmem:[#allocation13 + $0xf0c] sm:$0xf]  ;;  %v18334_v47 = vld [vmem:[#allocation13 + $0x54c] sm:$0xf0] }
 0x303   :  { %9270 = vmatpush.bf16.msrb.mxu0 %v14399_v9  ;;  %9231 = vmatpush.bf16.msra.mxu1 %v16955_v52  ;;  %v16700_v59 = vld [vmem:[#allocation13 + $0x1b48] sm:$0xf0]  ;;  %v19875_v9 = vadd.f32 %v9053_v3, %v9041_v10  ;;  %v18174_v51 = vld [vmem:[#allocation13 + $0x4c] sm:$0xf0]  ;;  %v13891_v50 = vor.u32 %v18334_v47, %v13890_v46 }
 0x304   :  { %v15164_v60 = vld [vmem:[#allocation13 + $0xf48] sm:$0xf0]  ;;  %v15746_v10 = vld [vmem:[#allocation13 + $0x1390] sm:$0xf] }
 0x305   :  { %9295 = vmatpush.bf16.msrb.mxu2 %v15487_v49  ;;  %9309 = vmatpush.bf16.msrb.mxu3 %v15935_v5  ;;  %v18805_v49 = vld [vmem:[#allocation13 + $0x140c] sm:$0xf]  ;;  %v15167_v2 = vor.u32 %v18645_v58, %v15164_v60  ;;  %v13250_v60 = vld [vmem:[#allocation13 + $0x10] sm:$0xf] }
 0x306   :  { %v15807_v26 = vor.u32 %v18805_v49, %v15804_v53  ;;  %v18629_v12 = vld [vmem:[#allocation13 + $0xe8c] sm:$0xf]  ;;  %v13378_v49 = vld [vmem:[#allocation13 + $0x110] sm:$0xf] }
 0x307   :  { %9271 = vmatpush.bf16.msrb.mxu0 %v14335_v56  ;;  %9232 = vmatpush.bf16.msra.mxu1 %v16891_v28  ;;  %v19013_v52 = vld [vmem:[#allocation13 + $0x1a8c] sm:$0xf]  ;;  %v18206_v53 = vld [vmem:[#allocation13 + $0x14c] sm:$0xf0]  ;;  %v9014_v28 = vpop.f32.mrf.mxu0 }
 0x308   :  { %v15100_v39 = vld [vmem:[#allocation13 + $0xec8] sm:$0xf0]  ;;  %v16194_v47 = vld [vmem:[#allocation13 + $0x1710] sm:$0xf] }
 0x309   :  { %9296 = vmatpush.bf16.msrb.mxu2 %v15423_v40  ;;  %9310 = vmatpush.bf16.msrb.mxu3 %v15871_v21  ;;  %v15228_v40 = vld [vmem:[#allocation13 + $0xfc8] sm:$0xf0]  ;;  %v18366_v21 = vld [vmem:[#allocation13 + $0x64c] sm:$0xf0]  ;;  %v15103_v63 = vor.u32 %v18629_v12, %v15100_v39  ;;  %v9055_v29 = vpop.f32.mrf.mxu3 }
 0x30a   :  { %v15231_v48 = vor.u32 %v18661_v37, %v15228_v40  ;;  %v18613_v56 = vld [vmem:[#allocation13 + $0xe0c] sm:$0xf]  ;;  %v14019_v25 = vor.u32 %v18366_v21, %v14018_v19  ;;  %v19881_v37 = vadd.f32 %v9014_v28, %v19870_v61  ;;  %v15682_v19 = vld [vmem:[#allocation13 + $0x1310] sm:$0xf] }
 0x30b   :  { %9272 = vmatpush.bf16.msrb.mxu0 %v14271_v54  ;;  %9233 = vmatpush.bf16.msra.mxu1 %v16827_v1  ;;  %v18997_v23 = vld [vmem:[#allocation13 + $0x1a0c] sm:$0xf]  ;;  %v13314_v54 = vld [vmem:[#allocation13 + $0x90] sm:$0xf] }
 0x30c   :  { %v16572_v24 = vld [vmem:[#allocation13 + $0x1a48] sm:$0xf0]  ;;  %v18782_v21 = vld [vmem:[#allocation13 + $0x134c] sm:$0xf0] }
 0x30d   :  { %9297 = vmatpush.bf16.msrb.mxu2 %v15359_v32  ;;  %v19029_v32 = vld [vmem:[#allocation13 + $0x1b0c] sm:$0xf]  ;;  %9311 = vmatpush.bf16.msrb.mxu3 %v15807_v26  ;;  %v16575_v30 = vor.u32 %v18997_v23, %v16572_v24  ;;  %v13379_v26 = vor.u32 %v18206_v53, %v13378_v49  ;;  %v13762_v24 = vld [vmem:[#allocation13 + $0x410] sm:$0xf]  ;;  %v15683_v29 = vor.u32 %v18782_v21, %v15682_v19 }
 0x30e   :  { %v16703_v5 = vor.u32 %v19029_v32, %v16700_v59  ;;  %9273 = vmatmul.bf16.vlgmr.msrb.gmra.mxu0 %v19818_v15  ;;  %9234 = vmatmul.bf16.vlgmr.msra.gmra.mxu1 %v19845_v14  ;;  %v15036_v20 = vld [vmem:[#allocation13 + $0xe48] sm:$0xf0]  ;;  %v18926_v28 = vld [vmem:[#allocation13 + $0x17cc] sm:$0xf0] }
 0x30f   :  { %9317 = vmatpush.bf16.msra.mxu0 %v16767_v36  ;;  %9278 = vmatpush.bf16.msrb.mxu1 %v15231_v48  ;;  %v15039_v38 = vor.u32 %v18613_v56, %v15036_v20  ;;  %v18597_v40 = vld [vmem:[#allocation13 + $0xd8c] sm:$0xf]  ;;  %v9016_v3 = vpop.f32.mrf.mxu0  ;;  %v18302_v20 = vld [vmem:[#allocation13 + $0x44c] sm:$0xf0] }
 0x310   :  { %9312 = vmatmul.bf16.vlgmr.msrb.gmra.mxu3 %v19832_v55  ;;  %v18981_v41 = vld [vmem:[#allocation13 + $0x198c] sm:$0xf]  ;;  %v18894_v3 = vld [vmem:[#allocation13 + $0x16cc] sm:$0xf0] }
 0x311   :  { %9298 = vmatpush.bf16.msrb.mxu2 %v15295_v13  ;;  %9356 = vmatpush.bf16.msra.mxu3 %v14211_v44  ;;  %v16636_v13 = vld [vmem:[#allocation13 + $0x1ac8] sm:$0xf0]  ;;  %v18190_v44 = vld [vmem:[#allocation13 + $0xcc] sm:$0xf0] }
 0x312   :  { %v16639_v17 = vor.u32 %v19013_v52, %v16636_v13  ;;  %v16508_v42 = vld [vmem:[#allocation13 + $0x19c8] sm:$0xf0]  ;;  %v13315_v48 = vor.u32 %v18190_v44, %v13314_v54  ;;  %v13251_v52 = vor.u32 %v18174_v51, %v13250_v60  ;;  %v15554_v51 = vld [vmem:[#allocation13 + $0x1210] sm:$0xf] }
 0x313   :  { %9318 = vmatpush.bf16.msra.mxu0 %v16703_v5  ;;  %9279 = vmatpush.bf16.msrb.mxu1 %v15167_v2  ;;  %v14972_v43 = vld [vmem:[#allocation13 + $0xdc8] sm:$0xf0]  ;;  %v16511_v36 = vor.u32 %v18981_v41, %v16508_v42  ;;  %v19885_v5 = vpop.f32.mrf.mxu3  ;;  %v18318_v2 = vld [vmem:[#allocation13 + $0x4cc] sm:$0xf0] }
 0x314   :  { %9299 = vmatmul.bf16.vlgmr.msrb.gmra.mxu2 %v19822_v6  ;;  %v14975_v61 = vor.u32 %v18597_v40, %v14972_v43  ;;  %v18965_v58 = vld [vmem:[#allocation13 + $0x190c] sm:$0xf]  ;;  %v15618_v40 = vld [vmem:[#allocation13 + $0x1290] sm:$0xf] }
 0x315   :  { %9343 = vmatpush.bf16.msra.mxu2 %v13699_v4  ;;  %9357 = vmatpush.bf16.msra.mxu3 %v14147_v0  ;;  %v14083_v4 = vor.u32 %v18382_v8, %v14082_v7  ;;  %v16444_v32 = vld [vmem:[#allocation13 + $0x1948] sm:$0xf0]  ;;  %v18798_v0 = vld [vmem:[#allocation13 + $0x13cc] sm:$0xf0] }
 0x316   :  { %v14908_v59 = vld [vmem:[#allocation13 + $0xd48] sm:$0xf0]  ;;  %v16447_v7 = vor.u32 %v18965_v58, %v16444_v32  ;;  %v13826_v8 = vld [vmem:[#allocation13 + $0x490] sm:$0xf]  ;;  %v15747_v31 = vor.u32 %v18798_v0, %v15746_v10 }
 0x317   :  { %9319 = vmatpush.bf16.msra.mxu0 %v16639_v17  ;;  %9280 = vmatpush.bf16.msrb.mxu1 %v15103_v63  ;;  %v19883_v57 = vpop.f32.mrf.mxu2  ;;  %v18949_v13 = vld [vmem:[#allocation13 + $0x188c] sm:$0xf]  ;;  %v13827_v17 = vor.u32 %v18318_v2, %v13826_v8  ;;  %v18766_v41 = vld [vmem:[#allocation13 + $0x12cc] sm:$0xf0]  ;;  %v9066_v42 = vpop.f32.mrf.mxu0 }
 0x318   :  { %v16380_v39 = vld [vmem:[#allocation13 + $0x18c8] sm:$0xf0]  ;;  %v14658_v32 = vld [vmem:[#allocation13 + $0xb10] sm:$0xf] }
 0x319   :  { %9344 = vmatpush.bf16.msra.mxu2 %v13635_v34  ;;  %9358 = vmatpush.bf16.msra.mxu3 %v14083_v4  ;;  %v18350_v34 = vld [vmem:[#allocation13 + $0x5cc] sm:$0xf0]  ;;  %v18565_v18 = vld [vmem:[#allocation13 + $0xc8c] sm:$0xf]  ;;  %v16383_v63 = vor.u32 %v18949_v13, %v16380_v39 }
 0x31a   :  { %v13955_v1 = vor.u32 %v18350_v34, %v13954_v33  ;;  %v14844_v4 = vld [vmem:[#allocation13 + $0xcc8] sm:$0xf0]  ;;  %v14722_v33 = vld [vmem:[#allocation13 + $0xb90] sm:$0xf] }
 0x31b   :  { %9320 = vmatpush.bf16.msra.mxu0 %v16575_v30  ;;  %9281 = vmatpush.bf16.msrb.mxu1 %v15039_v38  ;;  %v14780_v56 = vld [vmem:[#allocation13 + $0xc48] sm:$0xf0]  ;;  %v14847_v49 = vor.u32 %v18565_v18, %v14844_v4  ;;  %v18542_v34 = vld [vmem:[#allocation13 + $0xbcc] sm:$0xf0]  ;;  %v13763_v38 = vor.u32 %v18302_v20, %v13762_v24  ;;  %v9107_v43 = vpop.f32.mrf.mxu3 }
 0x31c   :  { %v18933_v23 = vld [vmem:[#allocation13 + $0x180c] sm:$0xf]  ;;  %v14723_v46 = vor.u32 %v18542_v34, %v14722_v33  ;;  %v16130_v0 = vld [vmem:[#allocation13 + $0x1690] sm:$0xf] }
 0x31d   :  { %9345 = vmatpush.bf16.msra.mxu2 %v13571_v45  ;;  %9359 = vmatpush.bf16.msra.mxu3 %v14019_v25  ;;  %v18581_v45 = vld [vmem:[#allocation13 + $0xd0c] sm:$0xf]  ;;  %v16258_v25 = vld [vmem:[#allocation13 + $0x1790] sm:$0xf]  ;;  %v16131_v18 = vor.u32 %v18894_v3, %v16130_v0  ;;  %v18278_v3 = vld [vmem:[#allocation13 + $0x394] sm:$0xf] }
 0x31e   :  { %v14911_v12 = vor.u32 %v18581_v45, %v14908_v59  ;;  %v16316_v53 = vld [vmem:[#allocation13 + $0x1848] sm:$0xf0]  ;;  %v16259_v44 = vor.u32 %v18926_v28, %v16258_v25  ;;  %v15619_v45 = vor.u32 %v18766_v41, %v15618_v40  ;;  %v18526_v59 = vld [vmem:[#allocation13 + $0xb4c] sm:$0xf0] }
 0x31f   :  { %9321 = vmatpush.bf16.msra.mxu0 %v16511_v36  ;;  %9282 = vmatpush.bf16.msrb.mxu1 %v14975_v61  ;;  %v19173_v30 = vld [vmem:[#allocation13 + $0x1f8c] sm:$0xf]  ;;  %v16319_v54 = vor.u32 %v18933_v23, %v16316_v53  ;;  %v18910_v61 = vld [vmem:[#allocation13 + $0x174c] sm:$0xf0] }
 0x320   :  { %v19157_v58 = vld [vmem:[#allocation13 + $0x1f0c] sm:$0xf]  ;;  %v16195_v10 = vor.u32 %v18910_v61, %v16194_v47  ;;  %v15490_v13 = vld [vmem:[#allocation13 + $0x1190] sm:$0xf]  ;;  %v19899_v47 = vld [vmem:[#allocation14] sm:$0xff] }
 0x321   :  { %9346 = vmatpush.bf16.msra.mxu2 %v13507_v11  ;;  %9360 = vmatpush.bf16.msra.mxu3 %v13955_v1  ;;  %v9094_v11 = vpop.f32.mrf.mxu2  ;;  %v19889_v1 = vadd.f32 %v9066_v42, %v19875_v9  ;;  %v17212_v60 = vld [vmem:[#allocation13 + $0x1f48] sm:$0xf0]  ;;  %v14659_v9 = vor.u32 %v18526_v59, %v14658_v32  ;;  %v18734_v39 = vld [vmem:[#allocation13 + $0x11cc] sm:$0xf0]  ;;  %v3777_v61 = vperm.slane %v19899_v47, 2 }
 0x322   :  { %v19141_v2 = vld [vmem:[#allocation13 + $0x1e8c] sm:$0xf]  ;;  %v14594_v11 = vld [vmem:[#allocation13 + $0xa90] sm:$0xf] }
 0x323   :  { %9322 = vmatpush.bf16.msra.mxu0 %v16447_v7  ;;  %9283 = vmatpush.bf16.msrb.mxu1 %v14911_v12  ;;  %v17215_v7 = vor.u32 %v19157_v58, %v17212_v60  ;;  %v18510_v12 = vld [vmem:[#allocation13 + $0xacc] sm:$0xf0]  ;;  %v17084_v24 = vld [vmem:[#allocation13 + $0x1e48] sm:$0xf0] }
 0x324   :  { %v14595_v4 = vor.u32 %v18510_v12, %v14594_v11  ;;  %v18878_v19 = vld [vmem:[#allocation13 + $0x164c] sm:$0xf0]  ;;  %v17020_v43 = vld [vmem:[#allocation13 + $0x1dc8] sm:$0xf0] }
 0x325   :  { %9347 = vmatpush.bf16.msra.mxu2 %v13443_v22  ;;  %9361 = vmatpush.bf16.msra.mxu3 %v13891_v50  ;;  %v18549_v22 = vld [vmem:[#allocation13 + $0xc0c] sm:$0xf]  ;;  %v18750_v50 = vld [vmem:[#allocation13 + $0x124c] sm:$0xf0] }
 0x326   :  { %v14783_v36 = vor.u32 %v18549_v22, %v14780_v56  ;;  %v15555_v8 = vor.u32 %v18750_v50, %v15554_v51  ;;  %v19125_v22 = vld [vmem:[#allocation13 + $0x1e0c] sm:$0xf]  ;;  %v14530_v56 = vld [vmem:[#allocation13 + $0xa10] sm:$0xf] }
 0x327   :  { %9323 = vmatpush.bf16.msra.mxu0 %v16383_v63  ;;  %9284 = vmatpush.bf16.msrb.mxu1 %v14847_v49  ;;  %v15491_v63 = vor.u32 %v18734_v39, %v15490_v13  ;;  %v18494_v23 = vld [vmem:[#allocation13 + $0xa4c] sm:$0xf0]  ;;  %v17087_v34 = vor.u32 %v19125_v22, %v17084_v24  ;;  %v19093_v59 = vld [vmem:[#allocation13 + $0x1d0c] sm:$0xf]  ;;  %v18262_v24 = vld [vmem:[#allocation13 + $0x314] sm:$0xf] }
 0x328   :  { %v15426_v20 = vld [vmem:[#allocation13 + $0x1110] sm:$0xf]  ;;  %v14531_v25 = vor.u32 %v18494_v23, %v14530_v56  ;;  %v16956_v50 = vld [vmem:[#allocation13 + $0x1d48] sm:$0xf0] }
 0x329   :  { %9348 = vmatpush.bf16.msra.mxu2 %v13379_v26  ;;  %9362 = vmatpush.bf16.msra.mxu3 %v13827_v17  ;;  %v17276_v26 = vld [vmem:[#allocation13 + $0x1fc8] sm:$0xf0]  ;;  %v16066_v17 = vld [vmem:[#allocation13 + $0x1610] sm:$0xf]  ;;  %v16959_v39 = vor.u32 %v19093_v59, %v16956_v50  ;;  %v14148_v50 = vld [vmem:[#allocation13 + $0x750] sm:$0xf0] }
 0x32a   :  { %v18718_v49 = vld [vmem:[#allocation13 + $0x114c] sm:$0xf0]  ;;  %v16067_v53 = vor.u32 %v18878_v19, %v16066_v17  ;;  %v16892_v22 = vld [vmem:[#allocation13 + $0x1cc8] sm:$0xf0] }
 0x32b   :  { %9324 = vmatpush.bf16.msra.mxu0 %v16319_v54  ;;  %9285 = vmatpush.bf16.msrb.mxu1 %v14783_v36  ;;  %v16002_v28 = vld [vmem:[#allocation13 + $0x1590] sm:$0xf] }
 0x32c   :  { %v14466_v40 = vld [vmem:[#allocation13 + $0x990] sm:$0xf] }
 0x32d   :  { %9349 = vmatpush.bf16.msra.mxu2 %v13315_v48  ;;  %v17279_v48 = vor.u32 %v19173_v30, %v17276_v26  ;;  %9363 = vmatpush.bf16.msra.mxu3 %v13763_v38  ;;  %v9027_v30 = vpop.f32.mrf.mxu1  ;;  %v15427_v38 = vor.u32 %v18718_v49, %v15426_v20  ;;  %v19109_v26 = vld [vmem:[#allocation13 + $0x1d8c] sm:$0xf]  ;;  %v18478_v41 = vld [vmem:[#allocation13 + $0x9cc] sm:$0xf0]  ;;  %v13636_v20 = vld [vmem:[#allocation13 + $0x350] sm:$0xf0] }
 0x32e   :  { %9325 = vmatmul.bf16.vlgmr.msra.gmra.mxu0 %v19838_v27  ;;  %9286 = vmatmul.bf16.vlgmr.msrb.gmra.mxu1 %v19814_v35  ;;  %v19895_v42 = vadd.f32 %v9027_v30, %v19881_v37  ;;  %v15362_v54 = vld [vmem:[#allocation13 + $0x1090] sm:$0xf]  ;;  %v17023_v32 = vor.u32 %v19109_v26, %v17020_v43  ;;  %v14212_v26 = vld [vmem:[#allocation13 + $0x7d0] sm:$0xf0] }
 0x32f   :  { %9369 = vmatpush.bf16.msrb.mxu0 %v14723_v46  ;;  %9330 = vmatpush.bf16.msra.mxu1 %v17279_v48  ;;  %v14467_v48 = vor.u32 %v18478_v41, %v14466_v40  ;;  %v18846_v58 = vld [vmem:[#allocation13 + $0x154c] sm:$0xf0]  ;;  %v13639_v40 = vor.u32 %v18262_v24, %v13636_v20 }
 0x330   :  { %9364 = vmatmul.bf16.vlgmr.msra.gmra.mxu3 %v19800_v62  ;;  %v14402_v60 = vld [vmem:[#allocation13 + $0x910] sm:$0xf] }
 0x331   :  { %9350 = vmatpush.bf16.msra.mxu2 %v13251_v52  ;;  %9408 = vmatpush.bf16.msrb.mxu3 %v16259_v44  ;;  %v17148_v52 = vld [vmem:[#allocation13 + $0x1ec8] sm:$0xf0]  ;;  %v18702_v44 = vld [vmem:[#allocation13 + $0x10cc] sm:$0xf0] }
 0x332   :  { %v17151_v21 = vor.u32 %v19141_v2, %v17148_v52  ;;  %v15363_v37 = vor.u32 %v18702_v44, %v15362_v54  ;;  %v18462_v51 = vld [vmem:[#allocation13 + $0x94c] sm:$0xf0] }
 0x333   :  { %9370 = vmatpush.bf16.msrb.mxu0 %v14659_v9  ;;  %9331 = vmatpush.bf16.msra.mxu1 %v17215_v7  ;;  %v18686_v9 = vld [vmem:[#allocation13 + $0x104c] sm:$0xf0]  ;;  %v13700_v7 = vld [vmem:[#allocation13 + $0x3d0] sm:$0xf0]  ;;  %v14403_v2 = vor.u32 %v18462_v51, %v14402_v60  ;;  %v9157_v13 = vpop.f32.mrf.mxu3 }
 0x334   :  { %9351 = vmatmul.bf16.vlgmr.msra.gmra.mxu2 %v19805_v16  ;;  %v15874_v11 = vld [vmem:[#allocation13 + $0x1490] sm:$0xf]  ;;  %v18390_v51 = vld [vmem:[#allocation13 + $0x714] sm:$0xf] }
 0x335   :  { %9395 = vmatpush.bf16.msrb.mxu2 %v15747_v31  ;;  %v9068_v31 = vpop.f32.mrf.mxu0  ;;  %9409 = vmatpush.bf16.msrb.mxu3 %v16195_v10  ;;  %v15298_v10 = vld [vmem:[#allocation13 + $0x1010] sm:$0xf]  ;;  %v9029_v52 = vpop.f32.mrf.mxu1 }
 0x336   :  { %v18830_v12 = vld [vmem:[#allocation13 + $0x14cc] sm:$0xf0]  ;;  %v15299_v31 = vor.u32 %v18686_v9, %v15298_v10 }
 0x337   :  { %9371 = vmatpush.bf16.msrb.mxu0 %v14595_v4  ;;  %9332 = vmatpush.bf16.msra.mxu1 %v17151_v21  ;;  %v9144_v33 = vpop.f32.mrf.mxu2  ;;  %v18446_v4 = vld [vmem:[#allocation13 + $0x8cc] sm:$0xf0]  ;;  %v13703_v21 = vor.u32 %v18278_v3, %v13700_v7  ;;  %v15875_v23 = vor.u32 %v18830_v12, %v15874_v11  ;;  %v18230_v11 = vld [vmem:[#allocation13 + $0x214] sm:$0xf] }
 0x338   :  { %v18814_v30 = vld [vmem:[#allocation13 + $0x144c] sm:$0xf0]  ;;  %v13508_v12 = vld [vmem:[#allocation13 + $0x250] sm:$0xf0] }
 0x339   :  { %9396 = vmatpush.bf16.msrb.mxu2 %v15683_v29  ;;  %9410 = vmatpush.bf16.msrb.mxu3 %v16131_v18  ;;  %v18862_v29 = vld [vmem:[#allocation13 + $0x15cc] sm:$0xf0] }
 0x33a   :  { %v16003_v46 = vor.u32 %v18862_v29, %v16002_v28  ;;  %v14338_v18 = vld [vmem:[#allocation13 + $0x890] sm:$0xf] }
 0x33b   :  { %9372 = vmatpush.bf16.msrb.mxu0 %v14531_v25  ;;  %9333 = vmatpush.bf16.msra.mxu1 %v17087_v34  ;;  %v14339_v49 = vor.u32 %v18446_v4, %v14338_v18  ;;  %v16828_v25 = vld [vmem:[#allocation13 + $0x1c48] sm:$0xf0]  ;;  %v14274_v28 = vld [vmem:[#allocation13 + $0x810] sm:$0xf]  ;;  %v13511_v4 = vor.u32 %v18230_v11, %v13508_v12 }
 0x33c   :  { %v15810_v29 = vld [vmem:[#allocation13 + $0x1410] sm:$0xf] }
 0x33d   :  { %9397 = vmatpush.bf16.msrb.mxu2 %v15619_v45  ;;  %v19897_v36 = vpop.f32.mrf.mxu0  ;;  %9411 = vmatpush.bf16.msrb.mxu3 %v16067_v53  ;;  %v15938_v45 = vld [vmem:[#allocation13 + $0x1510] sm:$0xf]  ;;  %v19061_v53 = vld [vmem:[#allocation13 + $0x1c0c] sm:$0xf]  ;;  %v15811_v44 = vor.u32 %v18814_v30, %v15810_v29 }
 0x33e   :  { %v15939_v0 = vor.u32 %v18846_v58, %v15938_v45  ;;  %v18430_v34 = vld [vmem:[#allocation13 + $0x84c] sm:$0xf0]  ;;  %v16831_v59 = vor.u32 %v19061_v53, %v16828_v25  ;;  %v18358_v25 = vld [vmem:[#allocation13 + $0x614] sm:$0xf] }
 0x33f   :  { %9373 = vmatpush.bf16.msrb.mxu0 %v14467_v48  ;;  %9334 = vmatpush.bf16.msra.mxu1 %v17023_v32  ;;  %v9146_v19 = vpop.f32.mrf.mxu2  ;;  %v15234_v41 = vld [vmem:[#allocation13 + $0xf90] sm:$0xf]  ;;  %v13572_v48 = vld [vmem:[#allocation13 + $0x2d0] sm:$0xf0]  ;;  %v14275_v45 = vor.u32 %v18430_v34, %v14274_v28  ;;  %v9079_v32 = vpop.f32.mrf.mxu1 }
 0x340   :  { %v16770_v43 = vld [vmem:[#allocation13 + $0x1b90] sm:$0xf]  ;;  %v9080_v10 = vadd.f32 %v9079_v32, %v19889_v1  ;;  %v14084_v1 = vld [vmem:[#allocation13 + $0x6d0] sm:$0xf0] }
 0x341   :  { %9398 = vmatpush.bf16.msrb.mxu2 %v15555_v8  ;;  %9412 = vmatpush.bf16.msrb.mxu3 %v16003_v46  ;;  %v9145_v8 = vadd.f32 %v9144_v33, %v3777_v61  ;;  %v19054_v54 = vld [vmem:[#allocation13 + $0x1bcc] sm:$0xf0]  ;;  %v18246_v61 = vld [vmem:[#allocation13 + $0x294] sm:$0xf] }
 0x342   :  { %v18670_v46 = vld [vmem:[#allocation13 + $0xfcc] sm:$0xf0]  ;;  %v16771_v60 = vor.u32 %v19054_v54, %v16770_v43  ;;  %v9093_v52 = vadd.f32 %v19883_v57, %v9080_v10  ;;  %v14020_v28 = vld [vmem:[#allocation13 + $0x650] sm:$0xf0] }
 0x343   :  { %v19902_v17 = vadd.f32 %v9157_v13, %v9145_v8  ;;  %9374 = vmatpush.bf16.msrb.mxu0 %v14403_v2  ;;  %9335 = vmatpush.bf16.msra.mxu1 %v16959_v39  ;;  %v15235_v9 = vor.u32 %v18670_v46, %v15234_v41  ;;  %v15170_v3 = vld [vmem:[#allocation13 + $0xf10] sm:$0xf]  ;;  %v14151_v13 = vor.u32 %v18390_v51, %v14148_v50  ;;  %v13956_v54 = vld [vmem:[#allocation13 + $0x5d0] sm:$0xf0] }
 0x344   :  { %v16706_v7 = vld [vmem:[#allocation13 + $0x1b10] sm:$0xf]  ;;  %v14023_v41 = vor.u32 %v18358_v25, %v14020_v28 }
 0x345   :  { %9399 = vmatpush.bf16.msrb.mxu2 %v15491_v63  ;;  %v19077_v63 = vld [vmem:[#allocation13 + $0x1c8c] sm:$0xf]  ;;  %v9120_v56 = vpop.f32.mrf.mxu0  ;;  %9413 = vmatpush.bf16.msrb.mxu3 %v15939_v0  ;;  %v13575_v0 = vor.u32 %v18246_v61, %v13572_v48  ;;  %v19038_v8 = vld [vmem:[#allocation13 + $0x1b4c] sm:$0xf0] }
 0x346   :  { %v16895_v33 = vor.u32 %v19077_v63, %v16892_v22  ;;  %v18654_v2 = vld [vmem:[#allocation13 + $0xf4c] sm:$0xf0]  ;;  %v16707_v39 = vor.u32 %v19038_v8, %v16706_v7  ;;  %v9106_v22 = vadd.f32 %v19885_v5, %v9093_v52  ;;  %v18214_v56 = vld [vmem:[#allocation13 + $0x194] sm:$0xf] }
 0x347   :  { %9375 = vmatpush.bf16.msrb.mxu0 %v14339_v49  ;;  %v15171_v18 = vor.u32 %v18654_v2, %v15170_v3  ;;  %v15106_v19 = vld [vmem:[#allocation13 + $0xe90] sm:$0xf]  ;;  %v9081_v49 = vpop.f32.mrf.mxu1  ;;  %v13892_v3 = vld [vmem:[#allocation13 + $0x550] sm:$0xf0] }
 0x348   :  { %9336 = vmatpush.bf16.msra.mxu1 %v16895_v33  ;;  %v19022_v63 = vld [vmem:[#allocation13 + $0x1acc] sm:$0xf0]  ;;  %v9119_v20 = vadd.f32 %v19897_v36, %v9106_v22  ;;  %v18342_v36 = vld [vmem:[#allocation13 + $0x594] sm:$0xf] }
 0x349   :  { %9400 = vmatpush.bf16.msrb.mxu2 %v15427_v38  ;;  %v18406_v38 = vld [vmem:[#allocation13 + $0x794] sm:$0xf]  ;;  %9414 = vmatpush.bf16.msrb.mxu3 %v15875_v23  ;;  %v18638_v57 = vld [vmem:[#allocation13 + $0xecc] sm:$0xf0]  ;;  %v13959_v51 = vor.u32 %v18342_v36, %v13956_v54 }
 0x34a   :  { %v14215_v58 = vor.u32 %v18406_v38, %v14212_v26  ;;  %v13444_v23 = vld [vmem:[#allocation13 + $0x1d0] sm:$0xf0]  ;;  %v15107_v5 = vor.u32 %v18638_v57, %v15106_v19  ;;  %v15042_v30 = vld [vmem:[#allocation13 + $0xe10] sm:$0xf] }
 0x34b   :  { %9376 = vmatpush.bf16.msrb.mxu0 %v14275_v45  ;;  %v13447_v29 = vor.u32 %v18214_v56, %v13444_v23  ;;  %v16578_v33 = vld [vmem:[#allocation13 + $0x1a10] sm:$0xf]  ;;  %v18198_v26 = vld [vmem:[#allocation13 + $0x114] sm:$0xf] }
 0x34c   :  { %9337 = vmatpush.bf16.msra.mxu1 %v16831_v59  ;;  %v19006_v34 = vld [vmem:[#allocation13 + $0x1a4c] sm:$0xf0]  ;;  %v13316_v59 = vld [vmem:[#allocation13 + $0xd0] sm:$0xf0] }
 0x34d   :  { %9401 = vmatpush.bf16.msrb.mxu2 %v15363_v37  ;;  %v9159_v37 = vpop.f32.mrf.mxu3  ;;  %9415 = vmatpush.bf16.msrb.mxu3 %v15811_v44  ;;  %v18622_v38 = vld [vmem:[#allocation13 + $0xe4c] sm:$0xf0]  ;;  %v16579_v43 = vor.u32 %v19006_v34, %v16578_v33  ;;  %v15748_v19 = vld [vmem:[#allocation13 + $0x13d0] sm:$0xf0] }
 0x34e   :  { %9377 = vmatmul.bf16.vlgmr.msrb.gmra.mxu0 %v19818_v15  ;;  %v15043_v44 = vor.u32 %v18622_v38, %v15042_v30  ;;  %v14978_v61 = vld [vmem:[#allocation13 + $0xd90] sm:$0xf]  ;;  %v18182_v37 = vld [vmem:[#allocation13 + $0x94] sm:$0xf] }
 0x34f   :  { %9421 = vmatpush.bf16.msra.mxu0 %v16771_v60  ;;  %9338 = vmatmul.bf16.vlgmr.msra.gmra.mxu1 %v19845_v14  ;;  %v16514_v48 = vld [vmem:[#allocation13 + $0x1990] sm:$0xf]  ;;  %v9170_v60 = vpop.f32.mrf.mxu0  ;;  %v9131_v10 = vpop.f32.mrf.mxu1  ;;  %v13319_v2 = vor.u32 %v18182_v37, %v13316_v59  ;;  %v13828_v22 = vld [vmem:[#allocation13 + $0x4d0] sm:$0xf0] }
 0x350   :  { %9382 = vmatpush.bf16.msrb.mxu1 %v15235_v9  ;;  %9416 = vmatmul.bf16.vlgmr.msrb.gmra.mxu3 %v19832_v55  ;;  %v18990_v45 = vld [vmem:[#allocation13 + $0x19cc] sm:$0xf0]  ;;  %v19915_v50 = vadd.f32 %v9170_v60, %v19902_v17  ;;  %v9132_v7 = vadd.f32 %v9131_v10, %v9119_v20  ;;  %v18774_v30 = vld [vmem:[#allocation13 + $0x1314] sm:$0xf] }
 0x351   :  { %9402 = vmatpush.bf16.msrb.mxu2 %v15299_v31  ;;  %9460 = vmatpush.bf16.msra.mxu3 %v14215_v58  ;;  %v18374_v31 = vld [vmem:[#allocation13 + $0x694] sm:$0xf]  ;;  %v18606_v32 = vld [vmem:[#allocation13 + $0xdcc] sm:$0xf0]  ;;  %v16515_v9 = vor.u32 %v18990_v45, %v16514_v48 }
 0x352   :  { %v14087_v24 = vor.u32 %v18374_v31, %v14084_v1  ;;  %v14979_v8 = vor.u32 %v18606_v32, %v14978_v61  ;;  %v14914_v11 = vld [vmem:[#allocation13 + $0xd10] sm:$0xf]  ;;  %v13252_v31 = vld [vmem:[#allocation13 + $0x50] sm:$0xf0]  ;;  %v10591_v1 = vmax.f32 %v19895_v42, 0.0  ;;  %v10592_v17 = vmax.f32 %v9132_v7, 0.0 }
 0x353   :  { %9422 = vmatpush.bf16.msra.mxu0 %v16707_v39  ;;  %v16450_v12 = vld [vmem:[#allocation13 + $0x1910] sm:$0xf]  ;;  %v18166_v39 = vld [vmem:[#allocation13 + $0x14] sm:$0xf] }
 0x354   :  { %9403 = vmatmul.bf16.vlgmr.msrb.gmra.mxu2 %v19822_v6  ;;  %9383 = vmatpush.bf16.msrb.mxu1 %v15171_v18  ;;  %v18974_v52 = vld [vmem:[#allocation13 + $0x194c] sm:$0xf0]  ;;  %v19918_v57 = vpack.c.bf16 %v10592_v17, %v10591_v1  ;;  %v15684_v33 = vld [vmem:[#allocation13 + $0x1350] sm:$0xf0] }
 0x355   :  { %9447 = vmatpush.bf16.msra.mxu2 %v13703_v21  ;;  %v16642_v21 = vld [vmem:[#allocation13 + $0x1a90] sm:$0xf]  ;;  %9461 = vmatpush.bf16.msra.mxu3 %v14151_v13  ;;  %v19920_v56 = vpop.f32.mrf.mxu3  ;;  %v13764_v36 = vld [vmem:[#allocation13 + $0x450] sm:$0xf0]  ;;  %v15687_v48 = vor.u32 %v18774_v30, %v15684_v33 }
 0x356   :  { %v16643_v53 = vor.u32 %v19022_v63, %v16642_v21  ;;  %v18590_v13 = vld [vmem:[#allocation13 + $0xd4c] sm:$0xf0]  ;;  %v16451_v21 = vor.u32 %v18974_v52, %v16450_v12  ;;  %v18310_v63 = vld [vmem:[#allocation13 + $0x494] sm:$0xf] }
 0x357   :  { %v19912_v58 = vpop.f32.mrf.mxu2  ;;  %v14915_v23 = vor.u32 %v18590_v13, %v14914_v11  ;;  %v16386_v20 = vld [vmem:[#allocation13 + $0x1890] sm:$0xf]  ;;  %v9133_v34 = vpop.f32.mrf.mxu1  ;;  %v16260_v61 = vld [vmem:[#allocation13 + $0x17d0] sm:$0xf0] }
 0x358   :  { %9423 = vmatpush.bf16.msra.mxu0 %v16643_v53  ;;  %9384 = vmatpush.bf16.msrb.mxu1 %v15107_v5  ;;  %v18958_v49 = vld [vmem:[#allocation13 + $0x18cc] sm:$0xf0]  ;;  %v9172_v5 = vpop.f32.mrf.mxu0  ;;  %v18534_v32 = vld [vmem:[#allocation13 + $0xb94] sm:$0xf] }
 0x359   :  { %9448 = vmatpush.bf16.msra.mxu2 %v13639_v40  ;;  %v13380_v40 = vld [vmem:[#allocation13 + $0x150] sm:$0xf0]  ;;  %9462 = vmatpush.bf16.msra.mxu3 %v14087_v24  ;;  %v13255_v24 = vor.u32 %v18166_v39, %v13252_v31  ;;  %v14850_v25 = vld [vmem:[#allocation13 + $0xc90] sm:$0xf]  ;;  %v16387_v38 = vor.u32 %v18958_v49, %v16386_v20 }
 0x35a   :  { %v13383_v46 = vor.u32 %v18198_v26, %v13380_v40  ;;  %v18574_v28 = vld [vmem:[#allocation13 + $0xccc] sm:$0xf0]  ;;  %v14724_v37 = vld [vmem:[#allocation13 + $0xbd0] sm:$0xf0] }
 0x35b   :  { %v14786_v26 = vld [vmem:[#allocation13 + $0xc10] sm:$0xf]  ;;  %v14851_v54 = vor.u32 %v18574_v28, %v14850_v25  ;;  %v15620_v10 = vld [vmem:[#allocation13 + $0x12d0] sm:$0xf0] }
 0x35c   :  { %9424 = vmatpush.bf16.msra.mxu0 %v16579_v43  ;;  %9385 = vmatpush.bf16.msrb.mxu1 %v15043_v44  ;;  %v18558_v40 = vld [vmem:[#allocation13 + $0xc4c] sm:$0xf0]  ;;  %v18294_v43 = vld [vmem:[#allocation13 + $0x414] sm:$0xf] }
 0x35d   :  { %9449 = vmatpush.bf16.msra.mxu2 %v13575_v0  ;;  %9463 = vmatpush.bf16.msra.mxu3 %v14023_v41  ;;  %v18326_v0 = vld [vmem:[#allocation13 + $0x514] sm:$0xf]  ;;  %v16322_v41 = vld [vmem:[#allocation13 + $0x1810] sm:$0xf]  ;;  %v13767_v59 = vor.u32 %v18294_v43, %v13764_v36  ;;  %v14787_v7 = vor.u32 %v18558_v40, %v14786_v26 }
 0x35e   :  { %v13895_v18 = vor.u32 %v18326_v0, %v13892_v3  ;;  %v18942_v44 = vld [vmem:[#allocation13 + $0x184c] sm:$0xf0]  ;;  %v9211_v3 = vpop.f32.mrf.mxu3  ;;  %v16196_v11 = vld [vmem:[#allocation13 + $0x1750] sm:$0xf0] }
 0x35f   :  { %v9198_v42 = vpop.f32.mrf.mxu2  ;;  %v17282_v45 = vld [vmem:[#allocation13 + $0x1f90] sm:$0xf]  ;;  %v18518_v39 = vld [vmem:[#allocation13 + $0xb14] sm:$0xf] }
 0x360   :  { %9425 = vmatpush.bf16.msra.mxu0 %v16515_v9  ;;  %9386 = vmatpush.bf16.msrb.mxu1 %v14979_v8  ;;  %v19182_v60 = vld [vmem:[#allocation13 + $0x1fcc] sm:$0xf0]  ;;  %v16323_v9 = vor.u32 %v18942_v44, %v16322_v41  ;;  %v14727_v8 = vor.u32 %v18534_v32, %v14724_v37  ;;  %v14660_v31 = vld [vmem:[#allocation13 + $0xb50] sm:$0xf0] }
 0x361   :  { %9450 = vmatpush.bf16.msra.mxu2 %v13511_v4  ;;  %9464 = vmatpush.bf16.msra.mxu3 %v13959_v51  ;;  %v18790_v4 = vld [vmem:[#allocation13 + $0x1394] sm:$0xf]  ;;  %v17283_v12 = vor.u32 %v19182_v60, %v17282_v45  ;;  %v17218_v13 = vld [vmem:[#allocation13 + $0x1f10] sm:$0xf] }
 0x362   :  { %v15751_v53 = vor.u32 %v18790_v4, %v15748_v19  ;;  %v18758_v51 = vld [vmem:[#allocation13 + $0x1294] sm:$0xf]  ;;  %v19166_v1 = vld [vmem:[#allocation13 + $0x1f4c] sm:$0xf0]  ;;  %v14663_v19 = vor.u32 %v18518_v39, %v14660_v31 }
 0x363   :  { %v15623_v52 = vor.u32 %v18758_v51, %v15620_v10  ;;  %v18742_v17 = vld [vmem:[#allocation13 + $0x1214] sm:$0xf]  ;;  %v19150_v42 = vld [vmem:[#allocation13 + $0x1ecc] sm:$0xf0] }
 0x364   :  { %9426 = vmatpush.bf16.msra.mxu0 %v16451_v21  ;;  %9387 = vmatpush.bf16.msrb.mxu1 %v14915_v23  ;;  %v18886_v21 = vld [vmem:[#allocation13 + $0x1694] sm:$0xf]  ;;  %v19134_v41 = vld [vmem:[#allocation13 + $0x1e4c] sm:$0xf0] }
 0x365   :  { %9451 = vmatpush.bf16.msra.mxu2 %v13447_v29  ;;  %9465 = vmatpush.bf16.msra.mxu3 %v13895_v18  ;;  %v13831_v29 = vor.u32 %v18310_v63, %v13828_v22  ;;  %v15556_v18 = vld [vmem:[#allocation13 + $0x1250] sm:$0xf0]  ;;  %v17219_v22 = vor.u32 %v19166_v1, %v17218_v13  ;;  %v17026_v32 = vld [vmem:[#allocation13 + $0x1d90] sm:$0xf] }
 0x366   :  { %v16132_v63 = vld [vmem:[#allocation13 + $0x16d0] sm:$0xf0]  ;;  %v15559_v23 = vor.u32 %v18742_v17, %v15556_v18  ;;  %v19118_v51 = vld [vmem:[#allocation13 + $0x1dcc] sm:$0xf0] }
 0x367   :  { %v18502_v20 = vld [vmem:[#allocation13 + $0xa94] sm:$0xf]  ;;  %v16135_v28 = vor.u32 %v18886_v21, %v16132_v63  ;;  %v17027_v13 = vor.u32 %v19118_v51, %v17026_v32  ;;  %v16962_v31 = vld [vmem:[#allocation13 + $0x1d10] sm:$0xf]  ;;  %v13706_v63 = vld [vmem:[#allocation13 + $0x398] sm:$0xf] }
 0x368   :  { %9427 = vmatpush.bf16.msra.mxu0 %v16387_v38  ;;  %9388 = vmatpush.bf16.msrb.mxu1 %v14851_v54  ;;  %v14596_v49 = vld [vmem:[#allocation13 + $0xad0] sm:$0xf0]  ;;  %v17090_v38 = vld [vmem:[#allocation13 + $0x1e10] sm:$0xf] }
 0x369   :  { %9452 = vmatpush.bf16.msra.mxu2 %v13383_v46  ;;  %v18918_v46 = vld [vmem:[#allocation13 + $0x1794] sm:$0xf]  ;;  %9466 = vmatpush.bf16.msra.mxu3 %v13831_v29  ;;  %v14599_v5 = vor.u32 %v18502_v20, %v14596_v49  ;;  %v19102_v18 = vld [vmem:[#allocation13 + $0x1d4c] sm:$0xf0] }
 0x36a   :  { %v16263_v0 = vor.u32 %v18918_v46, %v16260_v61  ;;  %v15492_v25 = vld [vmem:[#allocation13 + $0x11d0] sm:$0xf0] }
 0x36b   :  { %v18870_v29 = vld [vmem:[#allocation13 + $0x1614] sm:$0xf] }
 0x36c   :  { %9428 = vmatpush.bf16.msra.mxu0 %v16323_v9  ;;  %9389 = vmatpush.bf16.msrb.mxu1 %v14787_v7  ;;  %v16068_v30 = vld [vmem:[#allocation13 + $0x1650] sm:$0xf0]  ;;  %v3778_v7 = vperm.slane %v19899_v47, 3 }
 0x36d   :  { %9453 = vmatpush.bf16.msra.mxu2 %v13319_v2  ;;  %v18902_v2 = vld [vmem:[#allocation13 + $0x1714] sm:$0xf]  ;;  %9467 = vmatpush.bf16.msra.mxu3 %v13767_v59  ;;  %v16071_v54 = vor.u32 %v18870_v29, %v16068_v30 }
 0x36e   :  { %v16199_v4 = vor.u32 %v18902_v2, %v16196_v11  ;;  %v18486_v26 = vld [vmem:[#allocation13 + $0xa14] sm:$0xf] }
 0x36f   :  { %9429 = vmatmul.bf16.vlgmr.msra.gmra.mxu0 %v19838_v27  ;;  %9390 = vmatmul.bf16.vlgmr.msrb.gmra.mxu1 %v19814_v35  ;;  %v14532_v40 = vld [vmem:[#allocation13 + $0xa50] sm:$0xf0] }
 0x370   :  { %9473 = vmatpush.bf16.msrb.mxu0 %v14727_v8  ;;  %9434 = vmatpush.bf16.msra.mxu1 %v17283_v12  ;;  %v18710_v43 = vld [vmem:[#allocation13 + $0x1114] sm:$0xf]  ;;  %v14535_v44 = vor.u32 %v18486_v26, %v14532_v40  ;;  %v9183_v8 = vpop.f32.mrf.mxu1 }
 0x371   :  { %9454 = vmatpush.bf16.msra.mxu2 %v13255_v24  ;;  %9512 = vmatpush.bf16.msrb.mxu3 %v16263_v0  ;;  %v17154_v24 = vld [vmem:[#allocation13 + $0x1e90] sm:$0xf]  ;;  %v15428_v36 = vld [vmem:[#allocation13 + $0x1150] sm:$0xf0]  ;;  %v9222_v0 = vpop.f32.mrf.mxu0 }
 0x372   :  { %9468 = vmatmul.bf16.vlgmr.msra.gmra.mxu3 %v19800_v62  ;;  %v17155_v33 = vor.u32 %v19150_v42, %v17154_v24  ;;  %v18854_v46 = vld [vmem:[#allocation13 + $0x1594] sm:$0xf]  ;;  %v15431_v45 = vor.u32 %v18710_v43, %v15428_v36 }
 0x373   :  { %v16004_v61 = vld [vmem:[#allocation13 + $0x15d0] sm:$0xf0]  ;;  %v9261_v42 = vpop.f32.mrf.mxu3 }
 0x374   :  { %9455 = vmatmul.bf16.vlgmr.msra.gmra.mxu2 %v19805_v16  ;;  %9474 = vmatpush.bf16.msrb.mxu0 %v14663_v19  ;;  %v18470_v37 = vld [vmem:[#allocation13 + $0x994] sm:$0xf]  ;;  %v16007_v3 = vor.u32 %v18854_v46, %v16004_v61 }
 0x375   :  { %9499 = vmatpush.bf16.msrb.mxu2 %v15751_v53  ;;  %v18726_v53 = vld [vmem:[#allocation13 + $0x1194] sm:$0xf]  ;;  %9513 = vmatpush.bf16.msrb.mxu3 %v16199_v4 }
 0x376   :  { %9435 = vmatpush.bf16.msra.mxu1 %v17219_v22  ;;  %v15495_v34 = vor.u32 %v18726_v53, %v15492_v25  ;;  %v14468_v59 = vld [vmem:[#allocation13 + $0x9d0] sm:$0xf0]  ;;  %v18287_v22 = vld [vmem:[#allocation13 + $0x3d4] sm:$0xf0]  ;;  %v16963_v53 = vor.u32 %v19102_v18, %v16962_v31 }
 0x377   :  { %v9248_v60 = vpop.f32.mrf.mxu2  ;;  %v18694_v10 = vld [vmem:[#allocation13 + $0x1094] sm:$0xf]  ;;  %v14471_v2 = vor.u32 %v18470_v37, %v14468_v59  ;;  %v13707_v30 = vor.u32 %v18287_v22, %v13706_v63  ;;  %v14218_v37 = vld [vmem:[#allocation13 + $0x798] sm:$0xf] }
 0x378   :  { %9475 = vmatpush.bf16.msrb.mxu0 %v14599_v5  ;;  %v15364_v9 = vld [vmem:[#allocation13 + $0x10d0] sm:$0xf0]  ;;  %v9185_v43 = vpop.f32.mrf.mxu1  ;;  %v18415_v59 = vld [vmem:[#allocation13 + $0x7d4] sm:$0xf0] }
 0x379   :  { %9500 = vmatpush.bf16.msrb.mxu2 %v15687_v48  ;;  %9514 = vmatpush.bf16.msrb.mxu3 %v16135_v28  ;;  %v17091_v48 = vor.u32 %v19134_v41, %v17090_v38  ;;  %v18838_v11 = vld [vmem:[#allocation13 + $0x1514] sm:$0xf]  ;;  %v15367_v39 = vor.u32 %v18694_v10, %v15364_v9  ;;  %v9224_v26 = vpop.f32.mrf.mxu0  ;;  %v13642_v41 = vld [vmem:[#allocation13 + $0x318] sm:$0xf] }
 0x37a   :  { %9436 = vmatpush.bf16.msra.mxu1 %v17155_v33  ;;  %v15940_v12 = vld [vmem:[#allocation13 + $0x1550] sm:$0xf0]  ;;  %v16898_v33 = vld [vmem:[#allocation13 + $0x1c90] sm:$0xf]  ;;  %v18399_v31 = vld [vmem:[#allocation13 + $0x754] sm:$0xf0] }
 0x37b   :  { %v18454_v1 = vld [vmem:[#allocation13 + $0x914] sm:$0xf]  ;;  %v15943_v47 = vor.u32 %v18838_v11, %v15940_v12  ;;  %v14219_v11 = vor.u32 %v18415_v59, %v14218_v37  ;;  %v9263_v12 = vpop.f32.mrf.mxu3  ;;  %v18239_v63 = vld [vmem:[#allocation13 + $0x254] sm:$0xf0] }
 0x37c   :  { %9476 = vmatpush.bf16.msrb.mxu0 %v14535_v44  ;;  %v14404_v17 = vld [vmem:[#allocation13 + $0x950] sm:$0xf0]  ;;  %v19070_v44 = vld [vmem:[#allocation13 + $0x1c4c] sm:$0xf0]  ;;  %v18367_v26 = vld [vmem:[#allocation13 + $0x654] sm:$0xf0] }
 0x37d   :  { %9501 = vmatpush.bf16.msrb.mxu2 %v15623_v52  ;;  %9515 = vmatpush.bf16.msrb.mxu3 %v16071_v54  ;;  %v9184_v52 = vadd.f32 %v9183_v8, %v19915_v50  ;;  %v18678_v4 = vld [vmem:[#allocation13 + $0x1014] sm:$0xf]  ;;  %v14407_v24 = vor.u32 %v18454_v1, %v14404_v17  ;;  %v16834_v54 = vld [vmem:[#allocation13 + $0x1c10] sm:$0xf]  ;;  %v18255_v8 = vld [vmem:[#allocation13 + $0x2d4] sm:$0xf0] }
 0x37e   :  { %9437 = vmatpush.bf16.msra.mxu1 %v17091_v48  ;;  %v15300_v19 = vld [vmem:[#allocation13 + $0x1050] sm:$0xf0] }
 0x37f   :  { %v9197_v21 = vadd.f32 %v19912_v58, %v9184_v52  ;;  %v18822_v50 = vld [vmem:[#allocation13 + $0x1494] sm:$0xf]  ;;  %v15303_v25 = vor.u32 %v18678_v4, %v15300_v19  ;;  %v9250_v58 = vpop.f32.mrf.mxu2  ;;  %v16835_v52 = vor.u32 %v19070_v44, %v16834_v54  ;;  %v13386_v44 = vld [vmem:[#allocation13 + $0x118] sm:$0xf] }
 0x380   :  { %9477 = vmatpush.bf16.msrb.mxu0 %v14471_v2  ;;  %v15876_v20 = vld [vmem:[#allocation13 + $0x14d0] sm:$0xf0]  ;;  %v18223_v58 = vld [vmem:[#allocation13 + $0x1d4] sm:$0xf0] }
 0x381   :  { %9502 = vmatpush.bf16.msrb.mxu2 %v15559_v23  ;;  %9516 = vmatpush.bf16.msrb.mxu3 %v16007_v3  ;;  %v9249_v23 = vadd.f32 %v9248_v60, %v3778_v7  ;;  %v9210_v49 = vadd.f32 %v19920_v56, %v9197_v21  ;;  %v18438_v28 = vld [vmem:[#allocation13 + $0x894] sm:$0xf]  ;;  %v15879_v40 = vor.u32 %v18822_v50, %v15876_v20  ;;  %v18271_v56 = vld [vmem:[#allocation13 + $0x354] sm:$0xf0] }
 0x382   :  { %9438 = vmatpush.bf16.msra.mxu1 %v17027_v13  ;;  %v14340_v5 = vld [vmem:[#allocation13 + $0x8d0] sm:$0xf0]  ;;  %v13643_v60 = vor.u32 %v18271_v56, %v13642_v41  ;;  %v13578_v7 = vld [vmem:[#allocation13 + $0x298] sm:$0xf] }
 0x383   :  { %v19930_v29 = vadd.f32 %v9261_v42, %v9249_v23  ;;  %v19932_v38 = vadd.f32 %v9222_v0, %v9210_v49  ;;  %v14343_v36 = vor.u32 %v18438_v28, %v14340_v5  ;;  %v18422_v46 = vld [vmem:[#allocation13 + $0x814] sm:$0xf]  ;;  %v13579_v17 = vor.u32 %v18255_v8, %v13578_v7  ;;  %v18383_v50 = vld [vmem:[#allocation13 + $0x6d4] sm:$0xf0] }
 0x384   :  { %9478 = vmatpush.bf16.msrb.mxu0 %v14407_v24  ;;  %v18806_v61 = vld [vmem:[#allocation13 + $0x1414] sm:$0xf]  ;;  %v14090_v24 = vld [vmem:[#allocation13 + $0x698] sm:$0xf] }
 0x385   :  { %9503 = vmatpush.bf16.msrb.mxu2 %v15495_v34  ;;  %v19086_v34 = vld [vmem:[#allocation13 + $0x1ccc] sm:$0xf0]  ;;  %9517 = vmatpush.bf16.msrb.mxu3 %v15943_v47  ;;  %v15812_v48 = vld [vmem:[#allocation13 + $0x1450] sm:$0xf0]  ;;  %v13514_v47 = vld [vmem:[#allocation13 + $0x218] sm:$0xf] }
 0x386   :  { %9439 = vmatpush.bf16.msra.mxu1 %v16963_v53  ;;  %v14276_v32 = vld [vmem:[#allocation13 + $0x850] sm:$0xf0]  ;;  %v15815_v0 = vor.u32 %v18806_v61, %v15812_v48  ;;  %v13515_v49 = vor.u32 %v18239_v63, %v13514_v47  ;;  %v13450_v5 = vld [vmem:[#allocation13 + $0x198] sm:$0xf] }
 0x387   :  { %v18662_v51 = vld [vmem:[#allocation13 + $0xf94] sm:$0xf]  ;;  %v14279_v2 = vor.u32 %v18422_v46, %v14276_v32  ;;  %v13451_v41 = vor.u32 %v18223_v58, %v13450_v5  ;;  %v18207_v46 = vld [vmem:[#allocation13 + $0x154] sm:$0xf0] }
 0x388   :  { %v19046_v10 = vld [vmem:[#allocation13 + $0x1b94] sm:$0xf]  ;;  %9479 = vmatpush.bf16.msrb.mxu0 %v14343_v36  ;;  %v18351_v32 = vld [vmem:[#allocation13 + $0x5d4] sm:$0xf0]  ;;  %v13387_v59 = vor.u32 %v18207_v46, %v13386_v44 }
 0x389   :  { %9504 = vmatpush.bf16.msrb.mxu2 %v15431_v45  ;;  %v16899_v45 = vor.u32 %v19086_v34, %v16898_v33  ;;  %v16772_v9 = vld [vmem:[#allocation13 + $0x1bd0] sm:$0xf0]  ;;  %9518 = vmatpush.bf16.msrb.mxu3 %v15879_v40  ;;  %v14026_v34 = vld [vmem:[#allocation13 + $0x618] sm:$0xf] }
 0x38a   :  { %v15236_v3 = vld [vmem:[#allocation13 + $0xfd0] sm:$0xf0]  ;;  %v16775_v13 = vor.u32 %v19046_v10, %v16772_v9  ;;  %v14027_v61 = vor.u32 %v18367_v26, %v14026_v34  ;;  %v18191_v7 = vld [vmem:[#allocation13 + $0xd4] sm:$0xf0] }
 0x38b   :  { %9440 = vmatpush.bf16.msra.mxu1 %v16899_v45  ;;  %v15239_v1 = vor.u32 %v18662_v51, %v15236_v3  ;;  %v18646_v18 = vld [vmem:[#allocation13 + $0xf14] sm:$0xf]  ;;  %v13962_v45 = vld [vmem:[#allocation13 + $0x598] sm:$0xf]  ;;  %v9274_v8 = vpop.f32.mrf.mxu0 }
 0x38c   :  { %v19030_v4 = vld [vmem:[#allocation13 + $0x1b14] sm:$0xf]  ;;  %9480 = vmatpush.bf16.msrb.mxu0 %v14279_v2  ;;  %v13322_v3 = vld [vmem:[#allocation13 + $0x98] sm:$0xf]  ;;  %v13963_v2 = vor.u32 %v18351_v32, %v13962_v45  ;;  %v19941_v12 = vadd.f32 %v9274_v8, %v19930_v29 }
 0x38d   :  { %9505 = vmatpush.bf16.msrb.mxu2 %v15367_v39  ;;  %v14154_v39 = vld [vmem:[#allocation13 + $0x718] sm:$0xf]  ;;  %v16708_v19 = vld [vmem:[#allocation13 + $0x1b50] sm:$0xf0]  ;;  %9519 = vmatpush.bf16.msrb.mxu3 %v15815_v0 }
 0x38e   :  { %v15172_v21 = vld [vmem:[#allocation13 + $0xf50] sm:$0xf0]  ;;  %v14155_v22 = vor.u32 %v18399_v31, %v14154_v39  ;;  %v16711_v23 = vor.u32 %v19030_v4, %v16708_v19  ;;  %v18335_v39 = vld [vmem:[#allocation13 + $0x554] sm:$0xf0] }
 0x38f   :  { %9441 = vmatpush.bf16.msra.mxu1 %v16835_v52  ;;  %v15175_v20 = vor.u32 %v18646_v18, %v15172_v21  ;;  %v18630_v42 = vld [vmem:[#allocation13 + $0xe94] sm:$0xf]  ;;  %9481 = vmatmul.bf16.vlgmr.msrb.gmra.mxu0 %v19818_v15  ;;  %v13258_v47 = vld [vmem:[#allocation13 + $0x18] sm:$0xf] }
 0x390   :  { %9525 = vmatpush.bf16.msra.mxu0 %v16775_v13  ;;  %v19014_v53 = vld [vmem:[#allocation13 + $0x1a94] sm:$0xf]  ;;  %9520 = vmatmul.bf16.vlgmr.msrb.gmra.mxu3 %v19832_v55  ;;  %v13898_v13 = vld [vmem:[#allocation13 + $0x518] sm:$0xf] }
 0x391   :  { %9506 = vmatpush.bf16.msrb.mxu2 %v15303_v25  ;;  %9564 = vmatpush.bf16.msra.mxu3 %v14219_v11  ;;  %v16644_v25 = vld [vmem:[#allocation13 + $0x1ad0] sm:$0xf0]  ;;  %v9235_v11 = vpop.f32.mrf.mxu1  ;;  %v18175_v63 = vld [vmem:[#allocation13 + $0x54] sm:$0xf0]  ;;  %v13899_v29 = vor.u32 %v18335_v39, %v13898_v13 }
 0x392   :  { %v15108_v28 = vld [vmem:[#allocation13 + $0xed0] sm:$0xf0]  ;;  %9442 = vmatmul.bf16.vlgmr.msra.gmra.mxu1 %v19845_v14  ;;  %v16647_v33 = vor.u32 %v19014_v53, %v16644_v25  ;;  %v19944_v31 = vadd.f32 %v9235_v11, %v19932_v38  ;;  %v15690_v26 = vld [vmem:[#allocation13 + $0x1318] sm:$0xf] }
 0x393   :  { %9486 = vmatpush.bf16.msrb.mxu1 %v15239_v1  ;;  %v15111_v40 = vor.u32 %v18630_v42, %v15108_v28  ;;  %v18614_v56 = vld [vmem:[#allocation13 + $0xe14] sm:$0xf]  ;;  %v19946_v38 = vpop.f32.mrf.mxu3  ;;  %v13259_v42 = vor.u32 %v18175_v63, %v13258_v47  ;;  %v13770_v44 = vld [vmem:[#allocation13 + $0x418] sm:$0xf] }
 0x394   :  { %9507 = vmatmul.bf16.vlgmr.msrb.gmra.mxu2 %v19822_v6  ;;  %9526 = vmatpush.bf16.msra.mxu0 %v16711_v23  ;;  %v18998_v43 = vld [vmem:[#allocation13 + $0x1a14] sm:$0xf]  ;;  %v18799_v23 = vld [vmem:[#allocation13 + $0x13d4] sm:$0xf0] }
 0x395   :  { %9551 = vmatpush.bf16.msra.mxu2 %v13707_v30  ;;  %9565 = vmatpush.bf16.msra.mxu3 %v14155_v22  ;;  %v14091_v30 = vor.u32 %v18383_v50, %v14090_v24  ;;  %v16580_v36 = vld [vmem:[#allocation13 + $0x1a50] sm:$0xf0]  ;;  %v15754_v22 = vld [vmem:[#allocation13 + $0x1398] sm:$0xf] }
 0x396   :  { %v15044_v54 = vld [vmem:[#allocation13 + $0xe50] sm:$0xf0]  ;;  %v16583_v48 = vor.u32 %v18998_v43, %v16580_v36  ;;  %v13834_v50 = vld [vmem:[#allocation13 + $0x498] sm:$0xf]  ;;  %v15755_v5 = vor.u32 %v18799_v23, %v15754_v22 }
 0x397   :  { %9487 = vmatpush.bf16.msrb.mxu1 %v15175_v20  ;;  %v15047_v37 = vor.u32 %v18614_v56, %v15044_v54  ;;  %v18982_v51 = vld [vmem:[#allocation13 + $0x1994] sm:$0xf]  ;;  %v19938_v9 = vpop.f32.mrf.mxu2  ;;  %v18319_v20 = vld [vmem:[#allocation13 + $0x4d4] sm:$0xf0] }
 0x398   :  { %9527 = vmatpush.bf16.msra.mxu0 %v16647_v33  ;;  %v16516_v10 = vld [vmem:[#allocation13 + $0x19d0] sm:$0xf0]  ;;  %v9276_v33 = vpop.f32.mrf.mxu0  ;;  %v13835_v34 = vor.u32 %v18319_v20, %v13834_v50  ;;  %v18303_v46 = vld [vmem:[#allocation13 + $0x454] sm:$0xf0] }
 0x399   :  { %9552 = vmatpush.bf16.msra.mxu2 %v13643_v60  ;;  %9566 = vmatpush.bf16.msra.mxu3 %v14091_v30  ;;  %v18598_v60 = vld [vmem:[#allocation13 + $0xd94] sm:$0xf]  ;;  %v16519_v52 = vor.u32 %v18982_v51, %v16516_v10  ;;  %v16266_v45 = vld [vmem:[#allocation13 + $0x1798] sm:$0xf]  ;;  %v13771_v10 = vor.u32 %v18303_v46, %v13770_v44 }
 0x39a   :  { %v14980_v0 = vld [vmem:[#allocation13 + $0xdd0] sm:$0xf0]  ;;  %v18927_v32 = vld [vmem:[#allocation13 + $0x17d4] sm:$0xf0] }
 0x39b   :  { %9488 = vmatpush.bf16.msrb.mxu1 %v15111_v40  ;;  %v14983_v1 = vor.u32 %v18598_v60, %v14980_v0  ;;  %v18582_v18 = vld [vmem:[#allocation13 + $0xd14] sm:$0xf]  ;;  %v18783_v40 = vld [vmem:[#allocation13 + $0x1354] sm:$0xf0]  ;;  %v9315_v11 = vpop.f32.mrf.mxu3 }
 0x39c   :  { %9528 = vmatpush.bf16.msra.mxu0 %v16583_v48  ;;  %v18966_v4 = vld [vmem:[#allocation13 + $0x1914] sm:$0xf]  ;;  %v14730_v60 = vld [vmem:[#allocation13 + $0xb98] sm:$0xf] }
 0x39d   :  { %9553 = vmatpush.bf16.msra.mxu2 %v13579_v17  ;;  %9567 = vmatpush.bf16.msra.mxu3 %v14027_v61  ;;  %v13323_v17 = vor.u32 %v18191_v7, %v13322_v3  ;;  %v16452_v19 = vld [vmem:[#allocation13 + $0x1950] sm:$0xf0]  ;;  %v18543_v51 = vld [vmem:[#allocation13 + $0xbd4] sm:$0xf0] }
 0x39e   :  { %v14916_v21 = vld [vmem:[#allocation13 + $0xd50] sm:$0xf0]  ;;  %v16455_v24 = vor.u32 %v18966_v4, %v16452_v19  ;;  %v15626_v3 = vld [vmem:[#allocation13 + $0x1298] sm:$0xf]  ;;  %v14731_v13 = vor.u32 %v18543_v51, %v14730_v60 }
 0x39f   :  { %9489 = vmatpush.bf16.msrb.mxu1 %v15047_v37  ;;  %v18950_v53 = vld [vmem:[#allocation13 + $0x1894] sm:$0xf]  ;;  %v9302_v28 = vpop.f32.mrf.mxu2  ;;  %v15691_v37 = vor.u32 %v18783_v40, %v15690_v26  ;;  %v18767_v7 = vld [vmem:[#allocation13 + $0x12d4] sm:$0xf0] }
 0x3a0   :  { %9529 = vmatpush.bf16.msra.mxu0 %v16519_v52  ;;  %v16388_v25 = vld [vmem:[#allocation13 + $0x18d0] sm:$0xf0]  ;;  %v16202_v39 = vld [vmem:[#allocation13 + $0x1718] sm:$0xf] }
 0x3a1   :  { %9554 = vmatpush.bf16.msra.mxu2 %v13515_v49  ;;  %9568 = vmatpush.bf16.msra.mxu3 %v13963_v2  ;;  %v14919_v49 = vor.u32 %v18582_v18, %v14916_v21  ;;  %v18566_v58 = vld [vmem:[#allocation13 + $0xc94] sm:$0xf]  ;;  %v16391_v56 = vor.u32 %v18950_v53, %v16388_v25  ;;  %v16267_v2 = vor.u32 %v18927_v32, %v16266_v45  ;;  %v14666_v19 = vld [vmem:[#allocation13 + $0xb18] sm:$0xf] }
 0x3a2   :  { %v14852_v30 = vld [vmem:[#allocation13 + $0xcd0] sm:$0xf0]  ;;  %v15627_v18 = vor.u32 %v18767_v7, %v15626_v3  ;;  %v18527_v21 = vld [vmem:[#allocation13 + $0xb54] sm:$0xf0] }
 0x3a3   :  { %9490 = vmatpush.bf16.msrb.mxu1 %v14983_v1  ;;  %v18550_v43 = vld [vmem:[#allocation13 + $0xc14] sm:$0xf]  ;;  %v14855_v61 = vor.u32 %v18566_v58, %v14852_v30  ;;  %v18911_v1 = vld [vmem:[#allocation13 + $0x1754] sm:$0xf0]  ;;  %v14667_v23 = vor.u32 %v18527_v21, %v14666_v19 }
 0x3a4   :  { %9530 = vmatpush.bf16.msra.mxu0 %v16455_v24  ;;  %v14788_v36 = vld [vmem:[#allocation13 + $0xc50] sm:$0xf0]  ;;  %v15562_v63 = vld [vmem:[#allocation13 + $0x1218] sm:$0xf]  ;;  %v16203_v22 = vor.u32 %v18911_v1, %v16202_v39 }
 0x3a5   :  { %9555 = vmatpush.bf16.msra.mxu2 %v13451_v41  ;;  %9569 = vmatpush.bf16.msra.mxu3 %v13899_v29  ;;  %v9237_v41 = vpop.f32.mrf.mxu1  ;;  %v18934_v54 = vld [vmem:[#allocation13 + $0x1814] sm:$0xf]  ;;  %v14791_v52 = vor.u32 %v18550_v43, %v14788_v36  ;;  %v18751_v29 = vld [vmem:[#allocation13 + $0x1254] sm:$0xf0] }
 0x3a6   :  { %v16324_v48 = vld [vmem:[#allocation13 + $0x1850] sm:$0xf0]  ;;  %v16138_v24 = vld [vmem:[#allocation13 + $0x1698] sm:$0xf] }
 0x3a7   :  { %9491 = vmatpush.bf16.msrb.mxu1 %v14919_v49  ;;  %v17284_v0 = vld [vmem:[#allocation13 + $0x1fd0] sm:$0xf0]  ;;  %v16327_v8 = vor.u32 %v18934_v54, %v16324_v48  ;;  %v18895_v50 = vld [vmem:[#allocation13 + $0x16d4] sm:$0xf0]  ;;  %v15563_v49 = vor.u32 %v18751_v29, %v15562_v63 }
 0x3a8   :  { %9531 = vmatpush.bf16.msra.mxu0 %v16391_v56  ;;  %v19158_v4 = vld [vmem:[#allocation13 + $0x1f14] sm:$0xf]  ;;  %v14602_v53 = vld [vmem:[#allocation13 + $0xa98] sm:$0xf]  ;;  %v16139_v30 = vor.u32 %v18895_v50, %v16138_v24 }
 0x3a9   :  { %9556 = vmatpush.bf16.msra.mxu2 %v13387_v59  ;;  %v19174_v59 = vld [vmem:[#allocation13 + $0x1f94] sm:$0xf]  ;;  %9570 = vmatpush.bf16.msra.mxu3 %v13835_v34  ;;  %v18511_v25 = vld [vmem:[#allocation13 + $0xad4] sm:$0xf0] }
 0x3aa   :  { %v17220_v47 = vld [vmem:[#allocation13 + $0x1f50] sm:$0xf0]  ;;  %v18735_v58 = vld [vmem:[#allocation13 + $0x11d4] sm:$0xf0]  ;;  %v14603_v33 = vor.u32 %v18511_v25, %v14602_v53 }
 0x3ab   :  { %9492 = vmatpush.bf16.msrb.mxu1 %v14855_v61  ;;  %v17223_v20 = vor.u32 %v19158_v4, %v17220_v47  ;;  %v17156_v28 = vld [vmem:[#allocation13 + $0x1ed0] sm:$0xf0]  ;;  %v16074_v34 = vld [vmem:[#allocation13 + $0x1618] sm:$0xf] }
 0x3ac   :  { %9532 = vmatpush.bf16.msra.mxu0 %v16327_v8  ;;  %v18879_v26 = vld [vmem:[#allocation13 + $0x1654] sm:$0xf0]  ;;  %v19126_v56 = vld [vmem:[#allocation13 + $0x1e14] sm:$0xf] }
 0x3ad   :  { %9557 = vmatpush.bf16.msra.mxu2 %v13323_v17  ;;  %v17287_v17 = vor.u32 %v19174_v59, %v17284_v0  ;;  %9571 = vmatpush.bf16.msra.mxu3 %v13771_v10  ;;  %v14538_v43 = vld [vmem:[#allocation13 + $0xa18] sm:$0xf]  ;;  %v17092_v54 = vld [vmem:[#allocation13 + $0x1e50] sm:$0xf0]  ;;  %v16075_v61 = vor.u32 %v18879_v26, %v16074_v34  ;;  %v9287_v39 = vpop.f32.mrf.mxu1 }
 0x3ae   :  { %v18495_v36 = vld [vmem:[#allocation13 + $0xa54] sm:$0xf0]  ;;  %v19110_v60 = vld [vmem:[#allocation13 + $0x1d94] sm:$0xf]  ;;  %v9288_v4 = vadd.f32 %v9287_v39, %v19941_v12 }
 0x3af   :  { %9493 = vmatpush.bf16.msrb.mxu1 %v14791_v52  ;;  %9533 = vmatmul.bf16.vlgmr.msra.gmra.mxu0 %v19838_v27  ;;  %v15434_v44 = vld [vmem:[#allocation13 + $0x1118] sm:$0xf]  ;;  %v14539_v48 = vor.u32 %v18495_v36, %v14538_v43  ;;  %v17028_v3 = vld [vmem:[#allocation13 + $0x1dd0] sm:$0xf0]  ;;  %v19952_v52 = vld [vmem:[#allocation14] sm:$0xff] }
 0x3b0   :  { %9577 = vmatpush.bf16.msrb.mxu0 %v14731_v13  ;;  %9572 = vmatmul.bf16.vlgmr.msra.gmra.mxu3 %v19800_v62  ;;  %v18719_v46 = vld [vmem:[#allocation13 + $0x1154] sm:$0xf0]  ;;  %v3779_v13 = vperm.slane %v19952_v52, 4  ;;  %v17031_v19 = vor.u32 %v19110_v60, %v17028_v3  ;;  %v19094_v47 = vld [vmem:[#allocation13 + $0x1d14] sm:$0xf]  ;;  %v9301_v50 = vadd.f32 %v19938_v9, %v9288_v4 }
 0x3b1   :  { %9558 = vmatpush.bf16.msra.mxu2 %v13259_v42  ;;  %9616 = vmatpush.bf16.msrb.mxu3 %v16267_v2  ;;  %v19142_v42 = vld [vmem:[#allocation13 + $0x1e94] sm:$0xf]  ;;  %v16010_v45 = vld [vmem:[#allocation13 + $0x1598] sm:$0xf]  ;;  %v15435_v59 = vor.u32 %v18719_v46, %v15434_v44  ;;  %v9326_v2 = vpop.f32.mrf.mxu0  ;;  %v18263_v46 = vld [vmem:[#allocation13 + $0x31c] sm:$0xf] }
 0x3b2   :  { %9494 = vmatmul.bf16.vlgmr.msrb.gmra.mxu1 %v19814_v35  ;;  %v17159_v40 = vor.u32 %v19142_v42, %v17156_v28  ;;  %v18863_v32 = vld [vmem:[#allocation13 + $0x15d4] sm:$0xf0]  ;;  %v13708_v42 = vld [vmem:[#allocation13 + $0x3d8] sm:$0xf0]  ;;  %v16900_v43 = vld [vmem:[#allocation13 + $0x1cd0] sm:$0xf0] }
 0x3b3   :  { %9538 = vmatpush.bf16.msra.mxu1 %v17287_v17  ;;  %v14474_v51 = vld [vmem:[#allocation13 + $0x998] sm:$0xf]  ;;  %v16011_v11 = vor.u32 %v18863_v32, %v16010_v45  ;;  %v19062_v45 = vld [vmem:[#allocation13 + $0x1c14] sm:$0xf]  ;;  %v14220_v3 = vld [vmem:[#allocation13 + $0x7d8] sm:$0xf0] }
 0x3b4   :  { %9559 = vmatmul.bf16.vlgmr.msra.gmra.mxu2 %v19805_v16  ;;  %9578 = vmatpush.bf16.msrb.mxu0 %v14667_v23  ;;  %v18479_v10 = vld [vmem:[#allocation13 + $0x9d4] sm:$0xf0]  ;;  %v16836_v32 = vld [vmem:[#allocation13 + $0x1c50] sm:$0xf0] }
 0x3b5   :  { %9603 = vmatpush.bf16.msrb.mxu2 %v15755_v5  ;;  %v15498_v5 = vld [vmem:[#allocation13 + $0x1198] sm:$0xf]  ;;  %9617 = vmatpush.bf16.msrb.mxu3 %v16203_v22  ;;  %v14475_v1 = vor.u32 %v18479_v10, %v14474_v51  ;;  %v16964_v22 = vld [vmem:[#allocation13 + $0x1d50] sm:$0xf0] }
 0x3b6   :  { %v15499_v41 = vor.u32 %v18735_v58, %v15498_v5  ;;  %v15370_v7 = vld [vmem:[#allocation13 + $0x1098] sm:$0xf]  ;;  %v9314_v5 = vadd.f32 %v19946_v38, %v9301_v50  ;;  %v9365_v58 = vpop.f32.mrf.mxu3  ;;  %v13644_v38 = vld [vmem:[#allocation13 + $0x358] sm:$0xf0] }
 0x3b7   :  { %9539 = vmatpush.bf16.msra.mxu1 %v17223_v20  ;;  %v9352_v0 = vpop.f32.mrf.mxu2  ;;  %v18703_v8 = vld [vmem:[#allocation13 + $0x10d4] sm:$0xf0] }
 0x3b8   :  { %9579 = vmatpush.bf16.msrb.mxu0 %v14603_v33  ;;  %v15946_v17 = vld [vmem:[#allocation13 + $0x1518] sm:$0xf]  ;;  %v15371_v21 = vor.u32 %v18703_v8, %v15370_v7  ;;  %v9353_v53 = vadd.f32 %v9352_v0, %v3779_v13  ;;  %v19960_v36 = vadd.f32 %v9326_v2, %v9314_v5  ;;  %v18407_v0 = vld [vmem:[#allocation13 + $0x79c] sm:$0xf]  ;;  %v13647_v7 = vor.u32 %v18263_v46, %v13644_v38 }
 0x3b9   :  { %9604 = vmatpush.bf16.msrb.mxu2 %v15691_v37  ;;  %9618 = vmatpush.bf16.msrb.mxu3 %v16139_v30  ;;  %v17095_v37 = vor.u32 %v19126_v56, %v17092_v54  ;;  %v14410_v63 = vld [vmem:[#allocation13 + $0x918] sm:$0xf]  ;;  %v16967_v30 = vor.u32 %v19094_v47, %v16964_v22  ;;  %v19078_v56 = vld [vmem:[#allocation13 + $0x1c94] sm:$0xf]  ;;  %v9328_v54 = vpop.f32.mrf.mxu0  ;;  %v14223_v4 = vor.u32 %v18407_v0, %v14220_v3  ;;  %v14092_v5 = vld [vmem:[#allocation13 + $0x6d8] sm:$0xf0] }
 0x3ba   :  { %v18463_v29 = vld [vmem:[#allocation13 + $0x954] sm:$0xf0]  ;;  %v16903_v51 = vor.u32 %v19078_v56, %v16900_v43  ;;  %v13452_v56 = vld [vmem:[#allocation13 + $0x1d8] sm:$0xf0] }
 0x3bb   :  { %9540 = vmatpush.bf16.msra.mxu1 %v17159_v40  ;;  %v15306_v23 = vld [vmem:[#allocation13 + $0x1018] sm:$0xf]  ;;  %v14411_v25 = vor.u32 %v18463_v29, %v14410_v63  ;;  %v19958_v40 = vadd.f32 %v9365_v58, %v9353_v53  ;;  %v18391_v63 = vld [vmem:[#allocation13 + $0x71c] sm:$0xf] }
 0x3bc   :  { %9580 = vmatpush.bf16.msrb.mxu0 %v14539_v48  ;;  %v18687_v24 = vld [vmem:[#allocation13 + $0x1054] sm:$0xf0]  ;;  %v14156_v29 = vld [vmem:[#allocation13 + $0x758] sm:$0xf0] }
 0x3bd   :  { %9605 = vmatpush.bf16.msrb.mxu2 %v15627_v18  ;;  %9619 = vmatpush.bf16.msrb.mxu3 %v16075_v61  ;;  %v18847_v18 = vld [vmem:[#allocation13 + $0x1554] sm:$0xf0]  ;;  %v15307_v33 = vor.u32 %v18687_v24, %v15306_v23  ;;  %v9289_v61 = vpop.f32.mrf.mxu1  ;;  %v13516_v53 = vld [vmem:[#allocation13 + $0x258] sm:$0xf0] }
 0x3be   :  { %v15947_v20 = vor.u32 %v18847_v18, %v15946_v17  ;;  %v15882_v12 = vld [vmem:[#allocation13 + $0x1498] sm:$0xf]  ;;  %v13580_v17 = vld [vmem:[#allocation13 + $0x2d8] sm:$0xf0] }
 0x3bf   :  { %9541 = vmatpush.bf16.msra.mxu1 %v17095_v37  ;;  %v18831_v28 = vld [vmem:[#allocation13 + $0x14d4] sm:$0xf0]  ;;  %v9354_v9 = vpop.f32.mrf.mxu2  ;;  %v14028_v46 = vld [vmem:[#allocation13 + $0x658] sm:$0xf0] }
 0x3c0   :  { %9581 = vmatpush.bf16.msrb.mxu0 %v14475_v1  ;;  %v14346_v34 = vld [vmem:[#allocation13 + $0x898] sm:$0xf]  ;;  %v15883_v44 = vor.u32 %v18831_v28, %v15882_v12  ;;  %v18247_v1 = vld [vmem:[#allocation13 + $0x29c] sm:$0xf] }
 0x3c1   :  { %9606 = vmatpush.bf16.msrb.mxu2 %v15563_v49  ;;  %9620 = vmatpush.bf16.msrb.mxu3 %v16011_v11  ;;  %v18279_v49 = vld [vmem:[#allocation13 + $0x39c] sm:$0xf]  ;;  %v18447_v26 = vld [vmem:[#allocation13 + $0x8d4] sm:$0xf0]  ;;  %v13583_v23 = vor.u32 %v18247_v1, %v13580_v17 }
 0x3c2   :  { %v14347_v48 = vor.u32 %v18447_v26, %v14346_v34  ;;  %v14282_v37 = vld [vmem:[#allocation13 + $0x818] sm:$0xf]  ;;  %v18375_v28 = vld [vmem:[#allocation13 + $0x69c] sm:$0xf] }
 0x3c3   :  { %9542 = vmatpush.bf16.msra.mxu1 %v17031_v19  ;;  %v18815_v60 = vld [vmem:[#allocation13 + $0x1454] sm:$0xf0]  ;;  %v9367_v19 = vpop.f32.mrf.mxu3  ;;  %v14095_v43 = vor.u32 %v18375_v28, %v14092_v5  ;;  %v18343_v0 = vld [vmem:[#allocation13 + $0x59c] sm:$0xf]  ;;  %v10593_v28 = vmax.f32 %v19944_v31, 0.0 }
 0x3c4   :  { %9582 = vmatpush.bf16.msrb.mxu0 %v14411_v25  ;;  %v18431_v10 = vld [vmem:[#allocation13 + $0x854] sm:$0xf0]  ;;  %v14159_v25 = vor.u32 %v18391_v63, %v14156_v29  ;;  %v13964_v3 = vld [vmem:[#allocation13 + $0x5d8] sm:$0xf0] }
 0x3c5   :  { %9607 = vmatpush.bf16.msrb.mxu2 %v15499_v41  ;;  %v13711_v41 = vor.u32 %v18279_v49, %v13708_v42  ;;  %9621 = vmatpush.bf16.msrb.mxu3 %v15947_v20  ;;  %v15242_v8 = vld [vmem:[#allocation13 + $0xf98] sm:$0xf]  ;;  %v14283_v18 = vor.u32 %v18431_v10, %v14282_v37  ;;  %v18231_v42 = vld [vmem:[#allocation13 + $0x21c] sm:$0xf]  ;;  %v13967_v19 = vor.u32 %v18343_v0, %v13964_v3 }
 0x3c6   :  { %v16778_v2 = vld [vmem:[#allocation13 + $0x1b98] sm:$0xf]  ;;  %v18183_v17 = vld [vmem:[#allocation13 + $0x9c] sm:$0xf] }
 0x3c7   :  { %9543 = vmatpush.bf16.msra.mxu1 %v16967_v30  ;;  %v19055_v11 = vld [vmem:[#allocation13 + $0x1bd4] sm:$0xf0]  ;;  %v13519_v30 = vor.u32 %v18231_v42, %v13516_v53  ;;  %v18327_v29 = vld [vmem:[#allocation13 + $0x51c] sm:$0xf] }
 0x3c8   :  { %v18671_v39 = vld [vmem:[#allocation13 + $0xfd4] sm:$0xf0]  ;;  %9583 = vmatpush.bf16.msrb.mxu0 %v14347_v48  ;;  %v16779_v47 = vor.u32 %v19055_v11, %v16778_v2  ;;  %v18295_v0 = vld [vmem:[#allocation13 + $0x41c] sm:$0xf] }
 0x3c9   :  { %9608 = vmatpush.bf16.msrb.mxu2 %v15435_v59  ;;  %v15818_v59 = vld [vmem:[#allocation13 + $0x1418] sm:$0xf]  ;;  %9622 = vmatpush.bf16.msrb.mxu3 %v15883_v44  ;;  %v15243_v22 = vor.u32 %v18671_v39, %v15242_v8  ;;  %v18359_v44 = vld [vmem:[#allocation13 + $0x61c] sm:$0xf] }
 0x3ca   :  { %v15819_v13 = vor.u32 %v18815_v60, %v15818_v59  ;;  %v15178_v24 = vld [vmem:[#allocation13 + $0xf18] sm:$0xf]  ;;  %v18199_v59 = vld [vmem:[#allocation13 + $0x11c] sm:$0xf] }
 0x3cb   :  { %9544 = vmatpush.bf16.msra.mxu1 %v16903_v51  ;;  %v16714_v50 = vld [vmem:[#allocation13 + $0x1b18] sm:$0xf]  ;;  %v13388_v60 = vld [vmem:[#allocation13 + $0x158] sm:$0xf0]  ;;  %v14031_v51 = vor.u32 %v18359_v44, %v14028_v46 }
 0x3cc   :  { %v19039_v20 = vld [vmem:[#allocation13 + $0x1b54] sm:$0xf0]  ;;  %9584 = vmatpush.bf16.msrb.mxu0 %v14283_v18  ;;  %v13391_v8 = vor.u32 %v18199_v59, %v13388_v60  ;;  %v13324_v18 = vld [vmem:[#allocation13 + $0xd8] sm:$0xf0] }
 0x3cd   :  { %9609 = vmatpush.bf16.msrb.mxu2 %v15371_v21  ;;  %v16839_v21 = vor.u32 %v19062_v45, %v16836_v32  ;;  %9623 = vmatpush.bf16.msrb.mxu3 %v15819_v13  ;;  %v18655_v49 = vld [vmem:[#allocation13 + $0xf54] sm:$0xf0]  ;;  %v16715_v12 = vor.u32 %v19039_v20, %v16714_v50  ;;  %v13327_v50 = vor.u32 %v18183_v17, %v13324_v18  ;;  %v13772_v3 = vld [vmem:[#allocation13 + $0x458] sm:$0xf0] }
 0x3ce   :  { %v15179_v58 = vor.u32 %v18655_v49, %v15178_v24  ;;  %v16650_v34 = vld [vmem:[#allocation13 + $0x1a98] sm:$0xf]  ;;  %v18535_v17 = vld [vmem:[#allocation13 + $0xb9c] sm:$0xf] }
 0x3cf   :  { %9545 = vmatpush.bf16.msra.mxu1 %v16839_v21  ;;  %v19023_v26 = vld [vmem:[#allocation13 + $0x1ad4] sm:$0xf0]  ;;  %9585 = vmatmul.bf16.vlgmr.msrb.gmra.mxu0 %v19818_v15  ;;  %v9339_v21 = vpop.f32.mrf.mxu1  ;;  %v14732_v18 = vld [vmem:[#allocation13 + $0xbd8] sm:$0xf0] }
 0x3d0   :  { %9629 = vmatpush.bf16.msra.mxu0 %v16779_v47  ;;  %9624 = vmatmul.bf16.vlgmr.msrb.gmra.mxu3 %v19832_v55  ;;  %v18639_v9 = vld [vmem:[#allocation13 + $0xed4] sm:$0xf0]  ;;  %v16651_v54 = vor.u32 %v19023_v26, %v16650_v34  ;;  %v13836_v34 = vld [vmem:[#allocation13 + $0x4d8] sm:$0xf0] }
 0x3d1   :  { %9610 = vmatpush.bf16.msrb.mxu2 %v15307_v33  ;;  %9668 = vmatpush.bf16.msra.mxu3 %v14223_v4  ;;  %v15114_v33 = vld [vmem:[#allocation13 + $0xe98] sm:$0xf]  ;;  %v9378_v4 = vpop.f32.mrf.mxu0 }
 0x3d2   :  { %9546 = vmatmul.bf16.vlgmr.msra.gmra.mxu1 %v19845_v14  ;;  %v15115_v38 = vor.u32 %v18639_v9, %v15114_v33  ;;  %v15050_v48 = vld [vmem:[#allocation13 + $0xe18] sm:$0xf]  ;;  %v19969_v47 = vadd.f32 %v9378_v4, %v19958_v40  ;;  %v13775_v4 = vor.u32 %v18295_v0, %v13772_v3  ;;  %v18711_v3 = vld [vmem:[#allocation13 + $0x111c] sm:$0xf] }
 0x3d3   :  { %9590 = vmatpush.bf16.msrb.mxu1 %v15243_v22  ;;  %v16586_v45 = vld [vmem:[#allocation13 + $0x1a18] sm:$0xf]  ;;  %v13900_v22 = vld [vmem:[#allocation13 + $0x558] sm:$0xf0]  ;;  %v19975_v9 = vpop.f32.mrf.mxu3 }
 0x3d4   :  { %9611 = vmatmul.bf16.vlgmr.msrb.gmra.mxu2 %v19822_v6  ;;  %9630 = vmatpush.bf16.msra.mxu0 %v16715_v12  ;;  %v19007_v32 = vld [vmem:[#allocation13 + $0x1a54] sm:$0xf0]  ;;  %v13260_v12 = vld [vmem:[#allocation13 + $0x58] sm:$0xf0]  ;;  %v13903_v5 = vor.u32 %v18327_v29, %v13900_v22 }
 0x3d5   :  { %9655 = vmatpush.bf16.msra.mxu2 %v13711_v41  ;;  %v18215_v41 = vld [vmem:[#allocation13 + $0x19c] sm:$0xf]  ;;  %9669 = vmatpush.bf16.msra.mxu3 %v14159_v25  ;;  %v18623_v37 = vld [vmem:[#allocation13 + $0xe54] sm:$0xf0]  ;;  %v16587_v10 = vor.u32 %v19007_v32, %v16586_v45 }
 0x3d6   :  { %v13455_v61 = vor.u32 %v18215_v41, %v13452_v56  ;;  %v14986_v2 = vld [vmem:[#allocation13 + $0xd98] sm:$0xf]  ;;  %v18167_v25 = vld [vmem:[#allocation13 + $0x1c] sm:$0xf] }
 0x3d7   :  { %9591 = vmatpush.bf16.msrb.mxu1 %v15179_v58  ;;  %v16522_v11 = vld [vmem:[#allocation13 + $0x1998] sm:$0xf]  ;;  %v19966_v39 = vpop.f32.mrf.mxu2  ;;  %v18791_v58 = vld [vmem:[#allocation13 + $0x139c] sm:$0xf]  ;;  %v13263_v56 = vor.u32 %v18167_v25, %v13260_v12 }
 0x3d8   :  { %9631 = vmatpush.bf16.msra.mxu0 %v16651_v54  ;;  %v18991_v13 = vld [vmem:[#allocation13 + $0x19d4] sm:$0xf0]  ;;  %v18775_v45 = vld [vmem:[#allocation13 + $0x131c] sm:$0xf] }
 0x3d9   :  { %9656 = vmatpush.bf16.msra.mxu2 %v13647_v7  ;;  %9670 = vmatpush.bf16.msra.mxu3 %v14095_v43  ;;  %v15051_v7 = vor.u32 %v18623_v37, %v15050_v48  ;;  %v18607_v1 = vld [vmem:[#allocation13 + $0xdd4] sm:$0xf0]  ;;  %v16523_v63 = vor.u32 %v18991_v13, %v16522_v11  ;;  %v15692_v32 = vld [vmem:[#allocation13 + $0x1358] sm:$0xf0]  ;;  %v9341_v37 = vpop.f32.mrf.mxu1 }
 0x3da   :  { %v14987_v24 = vor.u32 %v18607_v1, %v14986_v2  ;;  %v14922_v20 = vld [vmem:[#allocation13 + $0xd18] sm:$0xf]  ;;  %v18919_v2 = vld [vmem:[#allocation13 + $0x179c] sm:$0xf]  ;;  %v15695_v13 = vor.u32 %v18775_v45, %v15692_v32 }
 0x3db   :  { %9592 = vmatpush.bf16.msrb.mxu1 %v15115_v38  ;;  %v16458_v49 = vld [vmem:[#allocation13 + $0x1918] sm:$0xf]  ;;  %v16268_v11 = vld [vmem:[#allocation13 + $0x17d8] sm:$0xf0] }
 0x3dc   :  { %9632 = vmatpush.bf16.msra.mxu0 %v16587_v10  ;;  %v18975_v42 = vld [vmem:[#allocation13 + $0x1954] sm:$0xf0]  ;;  %v16271_v22 = vor.u32 %v18919_v2, %v16268_v11  ;;  %v18519_v12 = vld [vmem:[#allocation13 + $0xb1c] sm:$0xf] }
 0x3dd   :  { %9657 = vmatpush.bf16.msra.mxu2 %v13583_v23  ;;  %9671 = vmatpush.bf16.msra.mxu3 %v14031_v51  ;;  %v9340_v23 = vadd.f32 %v9339_v21, %v19960_v36  ;;  %v18591_v53 = vld [vmem:[#allocation13 + $0xd54] sm:$0xf0]  ;;  %v16459_v33 = vor.u32 %v18975_v42, %v16458_v49  ;;  %v18311_v36 = vld [vmem:[#allocation13 + $0x49c] sm:$0xf] }
 0x3de   :  { %v14923_v41 = vor.u32 %v18591_v53, %v14922_v20  ;;  %v16394_v43 = vld [vmem:[#allocation13 + $0x1898] sm:$0xf]  ;;  %v13839_v48 = vor.u32 %v18311_v36, %v13836_v34  ;;  %v18759_v21 = vld [vmem:[#allocation13 + $0x129c] sm:$0xf] }
 0x3df   :  { %9593 = vmatpush.bf16.msrb.mxu1 %v15051_v7  ;;  %v10594_v40 = vmax.f32 %v9340_v23, 0.0  ;;  %v18959_v54 = vld [vmem:[#allocation13 + $0x18d4] sm:$0xf0]  ;;  %v9406_v31 = vpop.f32.mrf.mxu2  ;;  %v9419_v23 = vpop.f32.mrf.mxu3  ;;  %v18903_v20 = vld [vmem:[#allocation13 + $0x171c] sm:$0xf] }
 0x3e0   :  { %9633 = vmatpush.bf16.msra.mxu0 %v16523_v63  ;;  %v14858_v46 = vld [vmem:[#allocation13 + $0xc98] sm:$0xf]  ;;  %v16395_v59 = vor.u32 %v18959_v54, %v16394_v43  ;;  %v15628_v63 = vld [vmem:[#allocation13 + $0x12d8] sm:$0xf0] }
 0x3e1   :  { %9658 = vmatpush.bf16.msra.mxu2 %v13519_v30  ;;  %9672 = vmatpush.bf16.msra.mxu3 %v13967_v19  ;;  %v15756_v30 = vld [vmem:[#allocation13 + $0x13d8] sm:$0xf0]  ;;  %v19973_v26 = vpack.c.bf16 %v10594_v40, %v10593_v28  ;;  %v18575_v38 = vld [vmem:[#allocation13 + $0xcd4] sm:$0xf0]  ;;  %v15631_v53 = vor.u32 %v18759_v21, %v15628_v63 }
 0x3e2   :  { %v15759_v44 = vor.u32 %v18791_v58, %v15756_v30  ;;  %v14794_v60 = vld [vmem:[#allocation13 + $0xc18] sm:$0xf]  ;;  %v14859_v7 = vor.u32 %v18575_v38, %v14858_v46  ;;  %v16204_v49 = vld [vmem:[#allocation13 + $0x1758] sm:$0xf0] }
 0x3e3   :  { %9594 = vmatpush.bf16.msrb.mxu1 %v14987_v24  ;;  %v18559_v51 = vld [vmem:[#allocation13 + $0xc54] sm:$0xf0]  ;;  %v14668_v28 = vld [vmem:[#allocation13 + $0xb58] sm:$0xf0]  ;;  %v16207_v30 = vor.u32 %v18903_v20, %v16204_v49 }
 0x3e4   :  { %9634 = vmatpush.bf16.msra.mxu0 %v16459_v33  ;;  %v16330_v10 = vld [vmem:[#allocation13 + $0x1818] sm:$0xf]  ;;  %v14795_v24 = vor.u32 %v18559_v51, %v14794_v60  ;;  %v15564_v58 = vld [vmem:[#allocation13 + $0x1258] sm:$0xf0]  ;;  %v14671_v33 = vor.u32 %v18519_v12, %v14668_v28 }
 0x3e5   :  { %9659 = vmatpush.bf16.msra.mxu2 %v13455_v61  ;;  %v9380_v61 = vpop.f32.mrf.mxu0  ;;  %9673 = vmatpush.bf16.msra.mxu3 %v13903_v5  ;;  %v17290_v1 = vld [vmem:[#allocation13 + $0x1f98] sm:$0xf]  ;;  %v18743_v5 = vld [vmem:[#allocation13 + $0x121c] sm:$0xf] }
 0x3e6   :  { %v19183_v19 = vld [vmem:[#allocation13 + $0x1fd4] sm:$0xf0]  ;;  %v18887_v36 = vld [vmem:[#allocation13 + $0x169c] sm:$0xf] }
 0x3e7   :  { %9595 = vmatpush.bf16.msrb.mxu1 %v14923_v41  ;;  %v17291_v42 = vor.u32 %v19183_v19, %v17290_v1  ;;  %v17226_v25 = vld [vmem:[#allocation13 + $0x1f18] sm:$0xf]  ;;  %v16140_v34 = vld [vmem:[#allocation13 + $0x16d8] sm:$0xf0] }
 0x3e8   :  { %9635 = vmatpush.bf16.msra.mxu0 %v16395_v59  ;;  %v19167_v40 = vld [vmem:[#allocation13 + $0x1f54] sm:$0xf0]  ;;  %v18503_v54 = vld [vmem:[#allocation13 + $0xa9c] sm:$0xf]  ;;  %v16143_v61 = vor.u32 %v18887_v36, %v16140_v34 }
 0x3e9   :  { %9660 = vmatpush.bf16.msra.mxu2 %v13391_v8  ;;  %v18943_v8 = vld [vmem:[#allocation13 + $0x1854] sm:$0xf0]  ;;  %9674 = vmatpush.bf16.msra.mxu3 %v13839_v48  ;;  %v17227_v41 = vor.u32 %v19167_v40, %v17226_v25  ;;  %v14604_v31 = vld [vmem:[#allocation13 + $0xad8] sm:$0xf0] }
 0x3ea   :  { %v16331_v29 = vor.u32 %v18943_v8, %v16330_v10  ;;  %v17162_v43 = vld [vmem:[#allocation13 + $0x1e98] sm:$0xf]  ;;  %v18727_v46 = vld [vmem:[#allocation13 + $0x119c] sm:$0xf]  ;;  %v14607_v48 = vor.u32 %v18503_v54, %v14604_v31 }
 0x3eb   :  { %9596 = vmatpush.bf16.msrb.mxu1 %v14859_v7  ;;  %v15500_v38 = vld [vmem:[#allocation13 + $0x11d8] sm:$0xf0]  ;;  %v17098_v60 = vld [vmem:[#allocation13 + $0x1e18] sm:$0xf] }
 0x3ec   :  { %9636 = vmatpush.bf16.msra.mxu0 %v16331_v29  ;;  %v18871_v45 = vld [vmem:[#allocation13 + $0x161c] sm:$0xf]  ;;  %v15503_v59 = vor.u32 %v18727_v46, %v15500_v38  ;;  %v19135_v0 = vld [vmem:[#allocation13 + $0x1e54] sm:$0xf0]  ;;  %v9391_v20 = vpop.f32.mrf.mxu1 }
 0x3ed   :  { %9661 = vmatpush.bf16.msra.mxu2 %v13327_v50  ;;  %v14735_v50 = vor.u32 %v18535_v17, %v14732_v18  ;;  %9675 = vmatpush.bf16.msra.mxu3 %v13775_v4  ;;  %v16076_v32 = vld [vmem:[#allocation13 + $0x1658] sm:$0xf0]  ;;  %v17099_v1 = vor.u32 %v19135_v0, %v17098_v60  ;;  %v17034_v18 = vld [vmem:[#allocation13 + $0x1d98] sm:$0xf]  ;;  %v9430_v23 = vpop.f32.mrf.mxu0  ;;  %v9392_v25 = vadd.f32 %v9391_v20, %v19969_v47  ;;  %v13586_v20 = vld [vmem:[#allocation13 + $0x2a0] sm:$0xf] }
 0x3ee   :  { %v18487_v51 = vld [vmem:[#allocation13 + $0xa1c] sm:$0xf]  ;;  %v16079_v8 = vor.u32 %v18871_v45, %v16076_v32  ;;  %v19119_v63 = vld [vmem:[#allocation13 + $0x1dd4] sm:$0xf0] }
 0x3ef   :  { %9597 = vmatpush.bf16.msrb.mxu1 %v14795_v24  ;;  %9637 = vmatmul.bf16.vlgmr.msra.gmra.mxu0 %v19838_v27  ;;  %v14540_v10 = vld [vmem:[#allocation13 + $0xa58] sm:$0xf0]  ;;  %v17035_v12 = vor.u32 %v19119_v63, %v17034_v18  ;;  %v16970_v40 = vld [vmem:[#allocation13 + $0x1d18] sm:$0xf]  ;;  %v9405_v34 = vadd.f32 %v19966_v39, %v9392_v25 }
 0x3f0   :  { %9681 = vmatpush.bf16.msrb.mxu0 %v14735_v50  ;;  %9676 = vmatmul.bf16.vlgmr.msra.gmra.mxu3 %v19800_v62  ;;  %v15436_v7 = vld [vmem:[#allocation13 + $0x1158] sm:$0xf0]  ;;  %v14543_v2 = vor.u32 %v18487_v51, %v14540_v10  ;;  %v3780_v50 = vperm.slane %v19952_v52, 5  ;;  %v19087_v60 = vld [vmem:[#allocation13 + $0x1cd4] sm:$0xf0] }
 0x3f1   :  { %9662 = vmatpush.bf16.msra.mxu2 %v13263_v56  ;;  %9720 = vmatpush.bf16.msrb.mxu3 %v16271_v22  ;;  %v15567_v56 = vor.u32 %v18743_v5, %v15564_v58  ;;  %v18855_v11 = vld [vmem:[#allocation13 + $0x159c] sm:$0xf]  ;;  %v15439_v17 = vor.u32 %v18711_v3, %v15436_v7  ;;  %v13650_v3 = vld [vmem:[#allocation13 + $0x320] sm:$0xf] }
 0x3f2   :  { %9598 = vmatmul.bf16.vlgmr.msrb.gmra.mxu1 %v19814_v35  ;;  %v18471_v4 = vld [vmem:[#allocation13 + $0x99c] sm:$0xf] }
 0x3f3   :  { %9642 = vmatpush.bf16.msra.mxu1 %v17291_v42  ;;  %v14476_v19 = vld [vmem:[#allocation13 + $0x9d8] sm:$0xf0] }
 0x3f4   :  { %9663 = vmatmul.bf16.vlgmr.msra.gmra.mxu2 %v19805_v16  ;;  %9682 = vmatpush.bf16.msrb.mxu0 %v14671_v33  ;;  %v18695_v29 = vld [vmem:[#allocation13 + $0x109c] sm:$0xf]  ;;  %v14479_v49 = vor.u32 %v18471_v4, %v14476_v19  ;;  %v9393_v7 = vpop.f32.mrf.mxu1  ;;  %v14226_v19 = vld [vmem:[#allocation13 + $0x7a0] sm:$0xf] }
 0x3f5   :  { %9707 = vmatpush.bf16.msrb.mxu2 %v15759_v44  ;;  %v19151_v44 = vld [vmem:[#allocation13 + $0x1ed4] sm:$0xf0]  ;;  %9721 = vmatpush.bf16.msrb.mxu3 %v16207_v30  ;;  %v15372_v22 = vld [vmem:[#allocation13 + $0x10d8] sm:$0xf0]  ;;  %v9469_v46 = vpop.f32.mrf.mxu3  ;;  %v9432_v10 = vpop.f32.mrf.mxu0 }
 0x3f6   :  { %v17163_v37 = vor.u32 %v19151_v44, %v17162_v43  ;;  %v18839_v42 = vld [vmem:[#allocation13 + $0x151c] sm:$0xf]  ;;  %v15375_v28 = vor.u32 %v18695_v29, %v15372_v22  ;;  %v19103_v30 = vld [vmem:[#allocation13 + $0x1d54] sm:$0xf0]  ;;  %v9418_v44 = vadd.f32 %v19975_v9, %v9405_v34  ;;  %v18272_v9 = vld [vmem:[#allocation13 + $0x35c] sm:$0xf0] }
 0x3f7   :  { %9643 = vmatpush.bf16.msra.mxu1 %v17227_v41  ;;  %v9456_v21 = vpop.f32.mrf.mxu2  ;;  %v18455_v5 = vld [vmem:[#allocation13 + $0x91c] sm:$0xf]  ;;  %v13714_v41 = vld [vmem:[#allocation13 + $0x3a0] sm:$0xf]  ;;  %v16971_v38 = vor.u32 %v19103_v30, %v16970_v40  ;;  %v13651_v63 = vor.u32 %v18272_v9, %v13650_v3 }
 0x3f8   :  { %9683 = vmatpush.bf16.msrb.mxu0 %v14607_v48  ;;  %v14412_v58 = vld [vmem:[#allocation13 + $0x958] sm:$0xf0]  ;;  %v9457_v43 = vadd.f32 %v9456_v21, %v3780_v50  ;;  %v19987_v51 = vadd.f32 %v9430_v23, %v9418_v44  ;;  %v18416_v21 = vld [vmem:[#allocation13 + $0x7dc] sm:$0xf0] }
 0x3f9   :  { %9708 = vmatpush.bf16.msrb.mxu2 %v15695_v13  ;;  %9722 = vmatpush.bf16.msrb.mxu3 %v16143_v61  ;;  %v16012_v13 = vld [vmem:[#allocation13 + $0x15d8] sm:$0xf0]  ;;  %v14415_v54 = vor.u32 %v18455_v5, %v14412_v58  ;;  %v14162_v40 = vld [vmem:[#allocation13 + $0x720] sm:$0xf] }
 0x3fa   :  { %v16015_v24 = vor.u32 %v18855_v11, %v16012_v13  ;;  %v18679_v33 = vld [vmem:[#allocation13 + $0x101c] sm:$0xf]  ;;  %v19985_v32 = vadd.f32 %v9469_v46, %v9457_v43  ;;  %v19071_v11 = vld [vmem:[#allocation13 + $0x1c54] sm:$0xf0]  ;;  %v18400_v5 = vld [vmem:[#allocation13 + $0x75c] sm:$0xf0] }
 0x3fb   :  { %9644 = vmatpush.bf16.msra.mxu1 %v17163_v37  ;;  %v15308_v36 = vld [vmem:[#allocation13 + $0x1058] sm:$0xf0]  ;;  %v14163_v43 = vor.u32 %v18400_v5, %v14162_v40  ;;  %v14034_v10 = vld [vmem:[#allocation13 + $0x620] sm:$0xf] }
 0x3fc   :  { %9684 = vmatpush.bf16.msrb.mxu0 %v14543_v2  ;;  %v18823_v47 = vld [vmem:[#allocation13 + $0x149c] sm:$0xf]  ;;  %v15311_v61 = vor.u32 %v18679_v33, %v15308_v36  ;;  %v16842_v2 = vld [vmem:[#allocation13 + $0x1c18] sm:$0xf]  ;;  %v13906_v40 = vld [vmem:[#allocation13 + $0x520] sm:$0xf] }
 0x3fd   :  { %9709 = vmatpush.bf16.msrb.mxu2 %v15631_v53  ;;  %9723 = vmatpush.bf16.msrb.mxu3 %v16079_v8  ;;  %v15948_v53 = vld [vmem:[#allocation13 + $0x1558] sm:$0xf0]  ;;  %v9471_v25 = vpop.f32.mrf.mxu3  ;;  %v18336_v5 = vld [vmem:[#allocation13 + $0x55c] sm:$0xf0] }
 0x3fe   :  { %v15951_v52 = vor.u32 %v18839_v42, %v15948_v53  ;;  %v15884_v31 = vld [vmem:[#allocation13 + $0x14d8] sm:$0xf0]  ;;  %v14227_v53 = vor.u32 %v18416_v21, %v14226_v19  ;;  %v18352_v19 = vld [vmem:[#allocation13 + $0x5dc] sm:$0xf0] }
 0x3ff   :  { %9645 = vmatpush.bf16.msra.mxu1 %v17099_v1  ;;  %v18439_v48 = vld [vmem:[#allocation13 + $0x89c] sm:$0xf]  ;;  %v9458_v39 = vpop.f32.mrf.mxu2  ;;  %v15887_v0 = vor.u32 %v18823_v47, %v15884_v31  ;;  %v14098_v47 = vld [vmem:[#allocation13 + $0x6a0] sm:$0xf] }
 0x400   :  { %9685 = vmatpush.bf16.msrb.mxu0 %v14479_v49  ;;  %v14348_v45 = vld [vmem:[#allocation13 + $0x8d8] sm:$0xf0]  ;;  %v18256_v49 = vld [vmem:[#allocation13 + $0x2dc] sm:$0xf0] }
 0x401   :  { %9710 = vmatpush.bf16.msrb.mxu2 %v15567_v56  ;;  %9724 = vmatpush.bf16.msrb.mxu3 %v16015_v24  ;;  %v18288_v56 = vld [vmem:[#allocation13 + $0x3dc] sm:$0xf0]  ;;  %v14351_v8 = vor.u32 %v18439_v48, %v14348_v45  ;;  %v18423_v13 = vld [vmem:[#allocation13 + $0x81c] sm:$0xf]  ;;  %v13587_v30 = vor.u32 %v18256_v49, %v13586_v20 }
 0x402   :  { %v13715_v37 = vor.u32 %v18288_v56, %v13714_v41  ;;  %v18807_v1 = vld [vmem:[#allocation13 + $0x141c] sm:$0xf]  ;;  %v13522_v41 = vld [vmem:[#allocation13 + $0x220] sm:$0xf] }
 0x403   :  { %9646 = vmatpush.bf16.msra.mxu1 %v17035_v12  ;;  %v14284_v4 = vld [vmem:[#allocation13 + $0x858] sm:$0xf0]  ;;  %v16843_v12 = vor.u32 %v19071_v11, %v16842_v2  ;;  %v18240_v56 = vld [vmem:[#allocation13 + $0x25c] sm:$0xf0] }
 0x404   :  { %9686 = vmatpush.bf16.msrb.mxu0 %v14415_v54  ;;  %v18663_v29 = vld [vmem:[#allocation13 + $0xf9c] sm:$0xf]  ;;  %v14287_v42 = vor.u32 %v18423_v13, %v14284_v4  ;;  %v18384_v31 = vld [vmem:[#allocation13 + $0x6dc] sm:$0xf0]  ;;  %v13523_v46 = vor.u32 %v18240_v56, %v13522_v41 }
 0x405   :  { %9711 = vmatpush.bf16.msrb.mxu2 %v15503_v59  ;;  %v16906_v59 = vld [vmem:[#allocation13 + $0x1c98] sm:$0xf]  ;;  %9725 = vmatpush.bf16.msrb.mxu3 %v15951_v52  ;;  %v19047_v22 = vld [vmem:[#allocation13 + $0x1b9c] sm:$0xf]  ;;  %v13458_v39 = vld [vmem:[#allocation13 + $0x1a0] sm:$0xf] }
 0x406   :  { %v16907_v18 = vor.u32 %v19087_v60, %v16906_v59  ;;  %v16780_v23 = vld [vmem:[#allocation13 + $0x1bd8] sm:$0xf0]  ;;  %v14099_v59 = vor.u32 %v18384_v31, %v14098_v47  ;;  %v13394_v13 = vld [vmem:[#allocation13 + $0x120] sm:$0xf] }
 0x407   :  { %9647 = vmatpush.bf16.msra.mxu1 %v16971_v38  ;;  %v15244_v50 = vld [vmem:[#allocation13 + $0xfd8] sm:$0xf0]  ;;  %v13970_v4 = vld [vmem:[#allocation13 + $0x5a0] sm:$0xf] }
 0x408   :  { %9687 = vmatpush.bf16.msrb.mxu0 %v14351_v8  ;;  %v15247_v58 = vor.u32 %v18663_v29, %v15244_v50  ;;  %v18647_v33 = vld [vmem:[#allocation13 + $0xf1c] sm:$0xf]  ;;  %v13330_v20 = vld [vmem:[#allocation13 + $0xa0] sm:$0xf] }
 0x409   :  { %9712 = vmatpush.bf16.msrb.mxu2 %v15439_v17  ;;  %v15820_v17 = vld [vmem:[#allocation13 + $0x1458] sm:$0xf0]  ;;  %9726 = vmatpush.bf16.msrb.mxu3 %v15887_v0  ;;  %v18368_v0 = vld [vmem:[#allocation13 + $0x65c] sm:$0xf0] }
 0x40a   :  { %v15823_v24 = vor.u32 %v18807_v1, %v15820_v17  ;;  %v19031_v36 = vld [vmem:[#allocation13 + $0x1b1c] sm:$0xf]  ;;  %v18208_v1 = vld [vmem:[#allocation13 + $0x15c] sm:$0xf0]  ;;  %v14035_v17 = vor.u32 %v18368_v0, %v14034_v10 }
 0x40b   :  { %9648 = vmatpush.bf16.msra.mxu1 %v16907_v18  ;;  %v16716_v34 = vld [vmem:[#allocation13 + $0x1b58] sm:$0xf0]  ;;  %v18192_v49 = vld [vmem:[#allocation13 + $0xdc] sm:$0xf0] }
 0x40c   :  { %v15180_v52 = vld [vmem:[#allocation13 + $0xf58] sm:$0xf0]  ;;  %9688 = vmatpush.bf16.msrb.mxu0 %v14287_v42  ;;  %v16719_v54 = vor.u32 %v19031_v36, %v16716_v34  ;;  %v9482_v42 = vpop.f32.mrf.mxu0  ;;  %v13266_v56 = vld [vmem:[#allocation13 + $0x20] sm:$0xf] }
 0x40d   :  { %9713 = vmatpush.bf16.msrb.mxu2 %v15375_v28  ;;  %v16783_v28 = vor.u32 %v19047_v22, %v16780_v23  ;;  %9727 = vmatpush.bf16.msrb.mxu3 %v15823_v24  ;;  %v15183_v44 = vor.u32 %v18647_v33, %v15180_v52  ;;  %v18631_v38 = vld [vmem:[#allocation13 + $0xe9c] sm:$0xf]  ;;  %v13331_v33 = vor.u32 %v18192_v49, %v13330_v20  ;;  %v18800_v47 = vld [vmem:[#allocation13 + $0x13dc] sm:$0xf0] }
 0x40e   :  { %v16652_v48 = vld [vmem:[#allocation13 + $0x1ad8] sm:$0xf0]  ;;  %v15634_v49 = vld [vmem:[#allocation13 + $0x12a0] sm:$0xf] }
 0x40f   :  { %9649 = vmatpush.bf16.msra.mxu1 %v16843_v12  ;;  %9689 = vmatmul.bf16.vlgmr.msrb.gmra.mxu0 %v19818_v15  ;;  %v15116_v45 = vld [vmem:[#allocation13 + $0xed8] sm:$0xf0]  ;;  %v9443_v25 = vpop.f32.mrf.mxu1  ;;  %v19996_v12 = vadd.f32 %v9482_v42, %v19985_v32  ;;  %v13907_v32 = vor.u32 %v18336_v5, %v13906_v40  ;;  %v18768_v42 = vld [vmem:[#allocation13 + $0x12dc] sm:$0xf0] }
 0x410   :  { %9733 = vmatpush.bf16.msra.mxu0 %v16783_v28  ;;  %9728 = vmatmul.bf16.vlgmr.msrb.gmra.mxu3 %v19832_v55  ;;  %v15119_v3 = vor.u32 %v18631_v38, %v15116_v45  ;;  %v18615_v7 = vld [vmem:[#allocation13 + $0xe1c] sm:$0xf] }
 0x411   :  { %9714 = vmatpush.bf16.msrb.mxu2 %v15311_v61  ;;  %9772 = vmatpush.bf16.msra.mxu3 %v14227_v53  ;;  %v19015_v61 = vld [vmem:[#allocation13 + $0x1a9c] sm:$0xf]  ;;  %v13971_v53 = vor.u32 %v18352_v19, %v13970_v4  ;;  %v16274_v19 = vld [vmem:[#allocation13 + $0x17a0] sm:$0xf] }
 0x412   :  { %9650 = vmatmul.bf16.vlgmr.msra.gmra.mxu1 %v19845_v14  ;;  %v16655_v60 = vor.u32 %v19015_v61, %v16652_v48  ;;  %v18999_v8 = vld [vmem:[#allocation13 + $0x1a1c] sm:$0xf] }
 0x413   :  { %9694 = vmatpush.bf16.msrb.mxu1 %v15247_v58  ;;  %v16588_v2 = vld [vmem:[#allocation13 + $0x1a58] sm:$0xf0]  ;;  %v19999_v58 = vadd.f32 %v9443_v25, %v19987_v51  ;;  %v20001_v51 = vpop.f32.mrf.mxu3 }
 0x414   :  { %9715 = vmatmul.bf16.vlgmr.msrb.gmra.mxu2 %v19822_v6  ;;  %9734 = vmatpush.bf16.msra.mxu0 %v16719_v54  ;;  %v15052_v11 = vld [vmem:[#allocation13 + $0xe58] sm:$0xf0]  ;;  %v16591_v18 = vor.u32 %v18999_v8, %v16588_v2  ;;  %v15762_v54 = vld [vmem:[#allocation13 + $0x13a0] sm:$0xf]  ;;  %v9484_v10 = vpop.f32.mrf.mxu0 }
 0x415   :  { %9759 = vmatpush.bf16.msra.mxu2 %v13715_v37  ;;  %v18224_v37 = vld [vmem:[#allocation13 + $0x1dc] sm:$0xf0]  ;;  %9773 = vmatpush.bf16.msra.mxu3 %v14163_v43  ;;  %v15055_v21 = vor.u32 %v18615_v7, %v15052_v11  ;;  %v18599_v29 = vld [vmem:[#allocation13 + $0xd9c] sm:$0xf] }
 0x416   :  { %v13459_v9 = vor.u32 %v18224_v37, %v13458_v39  ;;  %v18983_v22 = vld [vmem:[#allocation13 + $0x199c] sm:$0xf]  ;;  %v18176_v43 = vld [vmem:[#allocation13 + $0x5c] sm:$0xf0]  ;;  %v15763_v37 = vor.u32 %v18800_v47, %v15762_v54 }
 0x417   :  { %9695 = vmatpush.bf16.msrb.mxu1 %v15183_v44  ;;  %v16524_v23 = vld [vmem:[#allocation13 + $0x19d8] sm:$0xf0]  ;;  %v19993_v24 = vpop.f32.mrf.mxu2  ;;  %v13842_v44 = vld [vmem:[#allocation13 + $0x4a0] sm:$0xf]  ;;  %v13267_v61 = vor.u32 %v18176_v43, %v13266_v56  ;;  %v9445_v7 = vpop.f32.mrf.mxu1 }
 0x418   :  { %9735 = vmatpush.bf16.msra.mxu0 %v16655_v60  ;;  %v14988_v50 = vld [vmem:[#allocation13 + $0xdd8] sm:$0xf0]  ;;  %v16527_v28 = vor.u32 %v18983_v22, %v16524_v23  ;;  %v14738_v22 = vld [vmem:[#allocation13 + $0xba0] sm:$0xf] }
 0x419   :  { %9760 = vmatpush.bf16.msra.mxu2 %v13651_v63  ;;  %9774 = vmatpush.bf16.msra.mxu3 %v14099_v59  ;;  %v13395_v63 = vor.u32 %v18208_v1, %v13394_v13  ;;  %v18583_v36 = vld [vmem:[#allocation13 + $0xd1c] sm:$0xf]  ;;  %v13778_v1 = vld [vmem:[#allocation13 + $0x420] sm:$0xf] }
 0x41a   :  { %v18967_v34 = vld [vmem:[#allocation13 + $0x191c] sm:$0xf]  ;;  %v18544_v23 = vld [vmem:[#allocation13 + $0xbdc] sm:$0xf0] }
 0x41b   :  { %9696 = vmatpush.bf16.msrb.mxu1 %v15119_v3  ;;  %v16460_v52 = vld [vmem:[#allocation13 + $0x1958] sm:$0xf0]  ;;  %v15698_v3 = vld [vmem:[#allocation13 + $0x1320] sm:$0xf]  ;;  %v14739_v5 = vor.u32 %v18544_v23, %v14738_v22 }
 0x41c   :  { %9736 = vmatpush.bf16.msra.mxu0 %v16591_v18  ;;  %v14924_v41 = vld [vmem:[#allocation13 + $0xd58] sm:$0xf0]  ;;  %v16463_v31 = vor.u32 %v18967_v34, %v16460_v52  ;;  %v15635_v34 = vor.u32 %v18768_v42, %v15634_v49  ;;  %v18528_v56 = vld [vmem:[#allocation13 + $0xb5c] sm:$0xf0] }
 0x41d   :  { %9761 = vmatpush.bf16.msra.mxu2 %v13587_v30  ;;  %9775 = vmatpush.bf16.msra.mxu3 %v14035_v17  ;;  %v14991_v30 = vor.u32 %v18599_v29, %v14988_v50  ;;  %v14927_v38 = vor.u32 %v18583_v36, %v14924_v41  ;;  %v18951_v48 = vld [vmem:[#allocation13 + $0x189c] sm:$0xf]  ;;  %v18304_v17 = vld [vmem:[#allocation13 + $0x45c] sm:$0xf0] }
 0x41e   :  { %v16396_v45 = vld [vmem:[#allocation13 + $0x18d8] sm:$0xf0]  ;;  %v13779_v50 = vor.u32 %v18304_v17, %v13778_v1  ;;  %v14674_v41 = vld [vmem:[#allocation13 + $0xb20] sm:$0xf] }
 0x41f   :  { %9697 = vmatpush.bf16.msrb.mxu1 %v15055_v21  ;;  %v9510_v39 = vpop.f32.mrf.mxu2  ;;  %v18567_v59 = vld [vmem:[#allocation13 + $0xc9c] sm:$0xf]  ;;  %v16399_v8 = vor.u32 %v18951_v48, %v16396_v45  ;;  %v18928_v21 = vld [vmem:[#allocation13 + $0x17dc] sm:$0xf0] }
 0x420   :  { %9737 = vmatpush.bf16.msra.mxu0 %v16527_v28  ;;  %v14860_v60 = vld [vmem:[#allocation13 + $0xcd8] sm:$0xf0]  ;;  %v16275_v25 = vor.u32 %v18928_v21, %v16274_v19  ;;  %v9523_v28 = vpop.f32.mrf.mxu3  ;;  %v18752_v54 = vld [vmem:[#allocation13 + $0x125c] sm:$0xf0] }
 0x421   :  { %9762 = vmatpush.bf16.msra.mxu2 %v13523_v46  ;;  %9776 = vmatpush.bf16.msra.mxu3 %v13971_v53  ;;  %v18320_v46 = vld [vmem:[#allocation13 + $0x4dc] sm:$0xf0]  ;;  %v18551_v2 = vld [vmem:[#allocation13 + $0xc1c] sm:$0xf]  ;;  %v14863_v18 = vor.u32 %v18567_v59, %v14860_v60 }
 0x422   :  { %v13843_v0 = vor.u32 %v18320_v46, %v13842_v44  ;;  %v14796_v11 = vld [vmem:[#allocation13 + $0xc58] sm:$0xf0]  ;;  %v16146_v44 = vld [vmem:[#allocation13 + $0x16a0] sm:$0xf] }
 0x423   :  { %9698 = vmatpush.bf16.msrb.mxu1 %v14991_v30  ;;  %v18935_v13 = vld [vmem:[#allocation13 + $0x181c] sm:$0xf]  ;;  %v14799_v40 = vor.u32 %v18551_v2, %v14796_v11  ;;  %v16210_v30 = vld [vmem:[#allocation13 + $0x1720] sm:$0xf] }
 0x424   :  { %9738 = vmatpush.bf16.msra.mxu0 %v16463_v31  ;;  %v16332_v4 = vld [vmem:[#allocation13 + $0x1858] sm:$0xf0]  ;;  %v14675_v31 = vor.u32 %v18528_v56, %v14674_v41  ;;  %v18896_v46 = vld [vmem:[#allocation13 + $0x16dc] sm:$0xf0] }
 0x425   :  { %9763 = vmatpush.bf16.msra.mxu2 %v13459_v9  ;;  %9777 = vmatpush.bf16.msra.mxu3 %v13907_v32  ;;  %v18784_v9 = vld [vmem:[#allocation13 + $0x135c] sm:$0xf0]  ;;  %v19175_v29 = vld [vmem:[#allocation13 + $0x1f9c] sm:$0xf]  ;;  %v16335_v53 = vor.u32 %v18935_v13, %v16332_v4  ;;  %v16147_v10 = vor.u32 %v18896_v46, %v16146_v44 }
 0x426   :  { %v17292_v20 = vld [vmem:[#allocation13 + $0x1fd8] sm:$0xf0]  ;;  %v15570_v32 = vld [vmem:[#allocation13 + $0x1220] sm:$0xf] }
 0x427   :  { %9699 = vmatpush.bf16.msrb.mxu1 %v14927_v38  ;;  %v17295_v36 = vor.u32 %v19175_v29, %v17292_v20  ;;  %v19159_v52 = vld [vmem:[#allocation13 + $0x1f1c] sm:$0xf]  ;;  %v14610_v45 = vld [vmem:[#allocation13 + $0xaa0] sm:$0xf] }
 0x428   :  { %9739 = vmatpush.bf16.msra.mxu0 %v16399_v8  ;;  %v17228_v43 = vld [vmem:[#allocation13 + $0x1f58] sm:$0xf0]  ;;  %v18512_v39 = vld [vmem:[#allocation13 + $0xadc] sm:$0xf0] }
 0x429   :  { %9764 = vmatpush.bf16.msra.mxu2 %v13395_v63  ;;  %v15699_v63 = vor.u32 %v18784_v9, %v15698_v3  ;;  %9778 = vmatpush.bf16.msra.mxu3 %v13843_v0  ;;  %v17231_v38 = vor.u32 %v19159_v52, %v17228_v43  ;;  %v19143_v48 = vld [vmem:[#allocation13 + $0x1e9c] sm:$0xf]  ;;  %v15506_v59 = vld [vmem:[#allocation13 + $0x11a0] sm:$0xf]  ;;  %v14611_v0 = vor.u32 %v18512_v39, %v14610_v45  ;;  %v13716_v45 = vld [vmem:[#allocation13 + $0x3e0] sm:$0xf0] }
 0x42a   :  { %v18736_v60 = vld [vmem:[#allocation13 + $0x11dc] sm:$0xf0]  ;;  %v19127_v2 = vld [vmem:[#allocation13 + $0x1e1c] sm:$0xf] }
 0x42b   :  { %9700 = vmatpush.bf16.msrb.mxu1 %v14863_v18  ;;  %v16082_v3 = vld [vmem:[#allocation13 + $0x1620] sm:$0xf]  ;;  %v15507_v8 = vor.u32 %v18736_v60, %v15506_v59  ;;  %v17100_v1 = vld [vmem:[#allocation13 + $0x1e58] sm:$0xf0] }
 0x42c   :  { %9740 = vmatpush.bf16.msra.mxu0 %v16335_v53  ;;  %v18880_v9 = vld [vmem:[#allocation13 + $0x165c] sm:$0xf0]  ;;  %v17103_v29 = vor.u32 %v19127_v2, %v17100_v1  ;;  %v19111_v23 = vld [vmem:[#allocation13 + $0x1d9c] sm:$0xf]  ;;  %v9534_v28 = vpop.f32.mrf.mxu0 }
 0x42d   :  { %9765 = vmatpush.bf16.msra.mxu2 %v13331_v33  ;;  %v18912_v33 = vld [vmem:[#allocation13 + $0x175c] sm:$0xf0]  ;;  %9779 = vmatpush.bf16.msra.mxu3 %v13779_v50  ;;  %v16083_v4 = vor.u32 %v18880_v9, %v16082_v3  ;;  %v17036_v42 = vld [vmem:[#allocation13 + $0x1dd8] sm:$0xf0] }
 0x42e   :  { %v16211_v47 = vor.u32 %v18912_v33, %v16210_v30  ;;  %v14546_v11 = vld [vmem:[#allocation13 + $0xa20] sm:$0xf]  ;;  %v17039_v56 = vor.u32 %v19111_v23, %v17036_v42  ;;  %v18408_v42 = vld [vmem:[#allocation13 + $0x7a4] sm:$0xf] }
 0x42f   :  { %9701 = vmatpush.bf16.msrb.mxu1 %v14799_v40  ;;  %9741 = vmatmul.bf16.vlgmr.msra.gmra.mxu0 %v19838_v27  ;;  %v18496_v13 = vld [vmem:[#allocation13 + $0xa5c] sm:$0xf0]  ;;  %v9495_v33 = vpop.f32.mrf.mxu1 }
 0x430   :  { %9785 = vmatpush.bf16.msrb.mxu0 %v14739_v5  ;;  %9780 = vmatmul.bf16.vlgmr.msra.gmra.mxu3 %v19800_v62  ;;  %v15442_v17 = vld [vmem:[#allocation13 + $0x1120] sm:$0xf]  ;;  %v14547_v19 = vor.u32 %v18496_v13, %v14546_v11  ;;  %v9496_v41 = vadd.f32 %v9495_v33, %v19996_v12  ;;  %v19079_v11 = vld [vmem:[#allocation13 + $0x1c9c] sm:$0xf] }
 0x431   :  { %9766 = vmatpush.bf16.msra.mxu2 %v13267_v61  ;;  %9824 = vmatpush.bf16.msrb.mxu3 %v16275_v25  ;;  %v15571_v61 = vor.u32 %v18752_v54, %v15570_v32  ;;  %v18720_v18 = vld [vmem:[#allocation13 + $0x115c] sm:$0xf0]  ;;  %v19095_v32 = vld [vmem:[#allocation13 + $0x1d1c] sm:$0xf] }
 0x432   :  { %9702 = vmatmul.bf16.vlgmr.msrb.gmra.mxu1 %v19814_v35  ;;  %v16018_v21 = vld [vmem:[#allocation13 + $0x15a0] sm:$0xf]  ;;  %v15443_v22 = vor.u32 %v18720_v18, %v15442_v17  ;;  %v16908_v13 = vld [vmem:[#allocation13 + $0x1cd8] sm:$0xf0] }
 0x433   :  { %9746 = vmatpush.bf16.msra.mxu1 %v17295_v36  ;;  %v14482_v50 = vld [vmem:[#allocation13 + $0x9a0] sm:$0xf] }
 0x434   :  { %9767 = vmatmul.bf16.vlgmr.msra.gmra.mxu2 %v19805_v16  ;;  %9786 = vmatpush.bf16.msrb.mxu0 %v14675_v31  ;;  %v18480_v20 = vld [vmem:[#allocation13 + $0x9dc] sm:$0xf0]  ;;  %v16972_v31 = vld [vmem:[#allocation13 + $0x1d58] sm:$0xf0]  ;;  %v9536_v17 = vpop.f32.mrf.mxu0 }
 0x435   :  { %9811 = vmatpush.bf16.msrb.mxu2 %v15763_v37  ;;  %v17164_v37 = vld [vmem:[#allocation13 + $0x1ed8] sm:$0xf0]  ;;  %9825 = vmatpush.bf16.msrb.mxu3 %v16211_v47  ;;  %v15378_v53 = vld [vmem:[#allocation13 + $0x10a0] sm:$0xf]  ;;  %v14483_v36 = vor.u32 %v18480_v20, %v14482_v50  ;;  %v16911_v20 = vor.u32 %v19079_v11, %v16908_v13  ;;  %v18216_v11 = vld [vmem:[#allocation13 + $0x1a4] sm:$0xf] }
 0x436   :  { %v17167_v7 = vor.u32 %v19143_v48, %v17164_v37  ;;  %v18704_v25 = vld [vmem:[#allocation13 + $0x10dc] sm:$0xf0]  ;;  %v18280_v48 = vld [vmem:[#allocation13 + $0x3a4] sm:$0xf] }
 0x437   :  { %9747 = vmatpush.bf16.msra.mxu1 %v17231_v38  ;;  %v9560_v49 = vpop.f32.mrf.mxu2  ;;  %v20007_v5 = vld [vmem:[#allocation14] sm:$0xff]  ;;  %v15379_v43 = vor.u32 %v18704_v25, %v15378_v53  ;;  %v9509_v38 = vadd.f32 %v19993_v24, %v9496_v41  ;;  %v13719_v2 = vor.u32 %v18280_v48, %v13716_v45 }
 0x438   :  { %9787 = vmatpush.bf16.msrb.mxu0 %v14611_v0  ;;  %v3781_v30 = vperm.slane %v20007_v5, 6  ;;  %v18848_v52 = vld [vmem:[#allocation13 + $0x155c] sm:$0xf0]  ;;  %v16975_v0 = vor.u32 %v19095_v32, %v16972_v31  ;;  %v14228_v53 = vld [vmem:[#allocation13 + $0x7e0] sm:$0xf0] }
 0x439   :  { %9812 = vmatpush.bf16.msrb.mxu2 %v15699_v63  ;;  %9826 = vmatpush.bf16.msrb.mxu3 %v16147_v10  ;;  %v18864_v63 = vld [vmem:[#allocation13 + $0x15dc] sm:$0xf0]  ;;  %v9522_v60 = vadd.f32 %v20001_v51, %v9509_v38  ;;  %v9573_v10 = vpop.f32.mrf.mxu3  ;;  %v13652_v51 = vld [vmem:[#allocation13 + $0x360] sm:$0xf0] }
 0x43a   :  { %v16019_v40 = vor.u32 %v18864_v63, %v16018_v21  ;;  %v14418_v54 = vld [vmem:[#allocation13 + $0x920] sm:$0xf]  ;;  %v9561_v39 = vadd.f32 %v9560_v49, %v3781_v30  ;;  %v19063_v63 = vld [vmem:[#allocation13 + $0x1c1c] sm:$0xf]  ;;  %v14164_v31 = vld [vmem:[#allocation13 + $0x760] sm:$0xf0] }
 0x43b   :  { %9748 = vmatpush.bf16.msra.mxu1 %v17167_v7  ;;  %v18464_v47 = vld [vmem:[#allocation13 + $0x95c] sm:$0xf0]  ;;  %v20015_v1 = vadd.f32 %v9534_v28, %v9522_v60  ;;  %v18376_v60 = vld [vmem:[#allocation13 + $0x6a4] sm:$0xf] }
 0x43c   :  { %9788 = vmatpush.bf16.msrb.mxu0 %v14547_v19  ;;  %v15314_v44 = vld [vmem:[#allocation13 + $0x1020] sm:$0xf]  ;;  %v14419_v37 = vor.u32 %v18464_v47, %v14418_v54  ;;  %v9497_v19 = vpop.f32.mrf.mxu1  ;;  %v18392_v47 = vld [vmem:[#allocation13 + $0x724] sm:$0xf] }
 0x43d   :  { %9813 = vmatpush.bf16.msrb.mxu2 %v15635_v34  ;;  %9827 = vmatpush.bf16.msrb.mxu3 %v16083_v4  ;;  %v15954_v34 = vld [vmem:[#allocation13 + $0x1520] sm:$0xf]  ;;  %v18264_v4 = vld [vmem:[#allocation13 + $0x324] sm:$0xf] }
 0x43e   :  { %v18688_v46 = vld [vmem:[#allocation13 + $0x105c] sm:$0xf0]  ;;  %v13655_v25 = vor.u32 %v18264_v4, %v13652_v51  ;;  %v13460_v13 = vld [vmem:[#allocation13 + $0x1e0] sm:$0xf0] }
 0x43f   :  { %9749 = vmatpush.bf16.msra.mxu1 %v17103_v29  ;;  %v15890_v12 = vld [vmem:[#allocation13 + $0x14a0] sm:$0xf]  ;;  %v15315_v3 = vor.u32 %v18688_v46, %v15314_v44  ;;  %v9562_v24 = vpop.f32.mrf.mxu2  ;;  %v16844_v29 = vld [vmem:[#allocation13 + $0x1c58] sm:$0xf0]  ;;  %v18360_v4 = vld [vmem:[#allocation13 + $0x624] sm:$0xf] }
 0x440   :  { %9789 = vmatpush.bf16.msrb.mxu0 %v14483_v36  ;;  %v18832_v59 = vld [vmem:[#allocation13 + $0x14dc] sm:$0xf0]  ;;  %v16847_v32 = vor.u32 %v19063_v63, %v16844_v29  ;;  %v14036_v51 = vld [vmem:[#allocation13 + $0x660] sm:$0xf0] }
 0x441   :  { %9814 = vmatpush.bf16.msrb.mxu2 %v15571_v61  ;;  %9828 = vmatpush.bf16.msrb.mxu3 %v16019_v40  ;;  %v15955_v61 = vor.u32 %v18848_v52, %v15954_v34  ;;  %v14354_v9 = vld [vmem:[#allocation13 + $0x8a0] sm:$0xf]  ;;  %v15891_v18 = vor.u32 %v18832_v59, %v15890_v12  ;;  %v18248_v34 = vld [vmem:[#allocation13 + $0x2a4] sm:$0xf]  ;;  %v14167_v12 = vor.u32 %v18392_v47, %v14164_v31 }
 0x442   :  { %v18448_v7 = vld [vmem:[#allocation13 + $0x8dc] sm:$0xf0]  ;;  %v13588_v52 = vld [vmem:[#allocation13 + $0x2e0] sm:$0xf0] }
 0x443   :  { %9750 = vmatpush.bf16.msra.mxu1 %v17039_v56  ;;  %v14355_v21 = vor.u32 %v18448_v7, %v14354_v9  ;;  %v15826_v23 = vld [vmem:[#allocation13 + $0x1420] sm:$0xf]  ;;  %v14231_v56 = vor.u32 %v18408_v42, %v14228_v53  ;;  %v13591_v46 = vor.u32 %v18248_v34, %v13588_v52  ;;  %v18344_v53 = vld [vmem:[#allocation13 + $0x5a4] sm:$0xf] }
 0x444   :  { %9790 = vmatpush.bf16.msrb.mxu0 %v14419_v37  ;;  %v18816_v50 = vld [vmem:[#allocation13 + $0x145c] sm:$0xf0]  ;;  %v13524_v37 = vld [vmem:[#allocation13 + $0x260] sm:$0xf0] }
 0x445   :  { %9815 = vmatpush.bf16.msrb.mxu2 %v15507_v8  ;;  %v20013_v8 = vadd.f32 %v9573_v10, %v9561_v39  ;;  %9829 = vmatpush.bf16.msrb.mxu3 %v15955_v61  ;;  %v18432_v49 = vld [vmem:[#allocation13 + $0x85c] sm:$0xf0]  ;;  %v15827_v33 = vor.u32 %v18816_v50, %v15826_v23  ;;  %v18232_v39 = vld [vmem:[#allocation13 + $0x224] sm:$0xf] }
 0x446   :  { %v15250_v28 = vld [vmem:[#allocation13 + $0xfa0] sm:$0xf]  ;;  %v14100_v10 = vld [vmem:[#allocation13 + $0x6e0] sm:$0xf0] }
 0x447   :  { %9751 = vmatpush.bf16.msra.mxu1 %v16975_v0  ;;  %v16786_v40 = vld [vmem:[#allocation13 + $0x1ba0] sm:$0xf]  ;;  %v14103_v17 = vor.u32 %v18376_v60, %v14100_v10  ;;  %v18200_v50 = vld [vmem:[#allocation13 + $0x124] sm:$0xf]  ;;  %v10595_v10 = vmax.f32 %v19999_v58, 0.0 }
 0x448   :  { %v19056_v30 = vld [vmem:[#allocation13 + $0x1bdc] sm:$0xf0]  ;;  %9791 = vmatpush.bf16.msrb.mxu0 %v14355_v21  ;;  %v13463_v21 = vor.u32 %v18216_v11, %v13460_v13  ;;  %v13268_v60 = vld [vmem:[#allocation13 + $0x60] sm:$0xf0] }
 0x449   :  { %9816 = vmatpush.bf16.msrb.mxu2 %v15443_v22  ;;  %v14290_v22 = vld [vmem:[#allocation13 + $0x820] sm:$0xf]  ;;  %9830 = vmatpush.bf16.msrb.mxu3 %v15891_v18  ;;  %v16787_v54 = vor.u32 %v19056_v30, %v16786_v40 }
 0x44a   :  { %v18672_v36 = vld [vmem:[#allocation13 + $0xfdc] sm:$0xf0]  ;;  %v14291_v41 = vor.u32 %v18432_v49, %v14290_v22  ;;  %v14039_v49 = vor.u32 %v18360_v4, %v14036_v51 }
 0x44b   :  { %9752 = vmatpush.bf16.msra.mxu1 %v16911_v20  ;;  %v15251_v44 = vor.u32 %v18672_v36, %v15250_v28  ;;  %v15186_v38 = vld [vmem:[#allocation13 + $0xf20] sm:$0xf]  ;;  %v13396_v20 = vld [vmem:[#allocation13 + $0x160] sm:$0xf0] }
 0x44c   :  { %v16722_v61 = vld [vmem:[#allocation13 + $0x1b20] sm:$0xf]  ;;  %9792 = vmatpush.bf16.msrb.mxu0 %v14291_v41  ;;  %v13399_v40 = vor.u32 %v18200_v50, %v13396_v20  ;;  %v18184_v41 = vld [vmem:[#allocation13 + $0xa4] sm:$0xf] }
 0x44d   :  { %9817 = vmatpush.bf16.msrb.mxu2 %v15379_v43  ;;  %v9575_v43 = vpop.f32.mrf.mxu3  ;;  %v19040_v48 = vld [vmem:[#allocation13 + $0x1b5c] sm:$0xf0]  ;;  %9831 = vmatpush.bf16.msrb.mxu3 %v15827_v33 }
 0x44e   :  { %v18656_v45 = vld [vmem:[#allocation13 + $0xf5c] sm:$0xf0]  ;;  %v16723_v59 = vor.u32 %v19040_v48, %v16722_v61  ;;  %v9586_v43 = vpop.f32.mrf.mxu0 }
 0x44f   :  { %9753 = vmatpush.bf16.msra.mxu1 %v16847_v32  ;;  %v15187_v0 = vor.u32 %v18656_v45, %v15186_v38  ;;  %v15122_v9 = vld [vmem:[#allocation13 + $0xea0] sm:$0xf]  ;;  %9793 = vmatmul.bf16.vlgmr.msrb.gmra.mxu0 %v19818_v15  ;;  %v20024_v47 = vadd.f32 %v9586_v43, %v20013_v8  ;;  %v14740_v43 = vld [vmem:[#allocation13 + $0xbe0] sm:$0xf0] }
 0x450   :  { %9837 = vmatpush.bf16.msra.mxu0 %v16787_v54  ;;  %v16658_v7 = vld [vmem:[#allocation13 + $0x1aa0] sm:$0xf]  ;;  %9832 = vmatmul.bf16.vlgmr.msrb.gmra.mxu3 %v19832_v55  ;;  %v9547_v54 = vpop.f32.mrf.mxu1 }
 0x451   :  { %9818 = vmatpush.bf16.msrb.mxu2 %v15315_v3  ;;  %9876 = vmatpush.bf16.msra.mxu3 %v14231_v56  ;;  %v13527_v3 = vor.u32 %v18232_v39, %v13524_v37  ;;  %v19024_v24 = vld [vmem:[#allocation13 + $0x1adc] sm:$0xf0]  ;;  %v13332_v56 = vld [vmem:[#allocation13 + $0xe0] sm:$0xf0]  ;;  %v9548_v38 = vadd.f32 %v9547_v54, %v20015_v1 }
 0x452   :  { %9754 = vmatmul.bf16.vlgmr.msra.gmra.mxu1 %v19845_v14  ;;  %v16659_v18 = vor.u32 %v19024_v24, %v16658_v7  ;;  %v15058_v63 = vld [vmem:[#allocation13 + $0xe20] sm:$0xf]  ;;  %v13335_v48 = vor.u32 %v18184_v41, %v13332_v56  ;;  %v18312_v1 = vld [vmem:[#allocation13 + $0x4a4] sm:$0xf] }
 0x453   :  { %9798 = vmatpush.bf16.msrb.mxu1 %v15251_v44  ;;  %v16594_v29 = vld [vmem:[#allocation13 + $0x1a20] sm:$0xf]  ;;  %v18328_v44 = vld [vmem:[#allocation13 + $0x524] sm:$0xf]  ;;  %v10596_v8 = vmax.f32 %v9548_v38, 0.0 }
 0x454   :  { %9819 = vmatmul.bf16.vlgmr.msrb.gmra.mxu2 %v19822_v6  ;;  %9838 = vmatpush.bf16.msra.mxu0 %v16723_v59  ;;  %v19008_v22 = vld [vmem:[#allocation13 + $0x1a5c] sm:$0xf0]  ;;  %v18168_v59 = vld [vmem:[#allocation13 + $0x24] sm:$0xf] }
 0x455   :  { %9863 = vmatpush.bf16.msra.mxu2 %v13719_v2  ;;  %v18640_v2 = vld [vmem:[#allocation13 + $0xedc] sm:$0xf0]  ;;  %9877 = vmatpush.bf16.msra.mxu3 %v14167_v12  ;;  %v16595_v42 = vor.u32 %v19008_v22, %v16594_v29  ;;  %v13844_v24 = vld [vmem:[#allocation13 + $0x4e0] sm:$0xf0]  ;;  %v20030_v11 = vpop.f32.mrf.mxu3 }
 0x456   :  { %v15123_v19 = vor.u32 %v18640_v2, %v15122_v9  ;;  %v18624_v23 = vld [vmem:[#allocation13 + $0xe5c] sm:$0xf0]  ;;  %v15764_v9 = vld [vmem:[#allocation13 + $0x13e0] sm:$0xf0]  ;;  %v20028_v2 = vpack.c.bf16 %v10596_v8, %v10595_v10  ;;  %v13847_v29 = vor.u32 %v18312_v1, %v13844_v24 }
 0x457   :  { %9799 = vmatpush.bf16.msrb.mxu1 %v15187_v0  ;;  %v15059_v28 = vor.u32 %v18624_v23, %v15058_v63  ;;  %v14994_v30 = vld [vmem:[#allocation13 + $0xda0] sm:$0xf]  ;;  %v20021_v34 = vpop.f32.mrf.mxu2  ;;  %v9588_v63 = vpop.f32.mrf.mxu0  ;;  %v18776_v22 = vld [vmem:[#allocation13 + $0x1324] sm:$0xf] }
 0x458   :  { %9839 = vmatpush.bf16.msra.mxu0 %v16659_v18  ;;  %v16530_v33 = vld [vmem:[#allocation13 + $0x19a0] sm:$0xf]  ;;  %v15700_v23 = vld [vmem:[#allocation13 + $0x1360] sm:$0xf0]  ;;  %v9549_v50 = vpop.f32.mrf.mxu1 }
 0x459   :  { %9864 = vmatpush.bf16.msra.mxu2 %v13655_v25  ;;  %9878 = vmatpush.bf16.msra.mxu3 %v14103_v17  ;;  %v13972_v25 = vld [vmem:[#allocation13 + $0x5e0] sm:$0xf0]  ;;  %v18992_v36 = vld [vmem:[#allocation13 + $0x19dc] sm:$0xf0]  ;;  %v13271_v17 = vor.u32 %v18168_v59, %v13268_v60 }
 0x45a   :  { %v18608_v52 = vld [vmem:[#allocation13 + $0xddc] sm:$0xf0]  ;;  %v13975_v32 = vor.u32 %v18344_v53, %v13972_v25  ;;  %v16531_v31 = vor.u32 %v18992_v36, %v16530_v33  ;;  %v18296_v25 = vld [vmem:[#allocation13 + $0x424] sm:$0xf] }
 0x45b   :  { %9800 = vmatpush.bf16.msrb.mxu1 %v15123_v19  ;;  %v14995_v61 = vor.u32 %v18608_v52, %v14994_v30  ;;  %v14930_v45 = vld [vmem:[#allocation13 + $0xd20] sm:$0xf]  ;;  %v18920_v33 = vld [vmem:[#allocation13 + $0x17a4] sm:$0xf]  ;;  %v15703_v52 = vor.u32 %v18776_v22, %v15700_v23 }
 0x45c   :  { %9840 = vmatpush.bf16.msra.mxu0 %v16595_v42  ;;  %v16466_v39 = vld [vmem:[#allocation13 + $0x1920] sm:$0xf]  ;;  %v16276_v36 = vld [vmem:[#allocation13 + $0x17e0] sm:$0xf0] }
 0x45d   :  { %9865 = vmatpush.bf16.msra.mxu2 %v13591_v46  ;;  %9879 = vmatpush.bf16.msra.mxu3 %v14039_v49  ;;  %v13908_v46 = vld [vmem:[#allocation13 + $0x560] sm:$0xf0]  ;;  %v18976_v37 = vld [vmem:[#allocation13 + $0x195c] sm:$0xf0]  ;;  %v16279_v38 = vor.u32 %v18920_v33, %v16276_v36 }
 0x45e   :  { %v18592_v12 = vld [vmem:[#allocation13 + $0xd5c] sm:$0xf0]  ;;  %v13911_v0 = vor.u32 %v18328_v44, %v13908_v46  ;;  %v16467_v7 = vor.u32 %v18976_v37, %v16466_v39  ;;  %v18536_v56 = vld [vmem:[#allocation13 + $0xba4] sm:$0xf] }
 0x45f   :  { %9801 = vmatpush.bf16.msrb.mxu1 %v15059_v28  ;;  %v14931_v13 = vor.u32 %v18592_v12, %v14930_v45  ;;  %v16402_v18 = vld [vmem:[#allocation13 + $0x18a0] sm:$0xf]  ;;  %v9614_v58 = vpop.f32.mrf.mxu2  ;;  %v13780_v28 = vld [vmem:[#allocation13 + $0x460] sm:$0xf0]  ;;  %v14743_v45 = vor.u32 %v18536_v56, %v14740_v43 }
 0x460   :  { %9841 = vmatpush.bf16.msra.mxu0 %v16531_v31  ;;  %v18960_v4 = vld [vmem:[#allocation13 + $0x18dc] sm:$0xf0]  ;;  %v18760_v31 = vld [vmem:[#allocation13 + $0x12a4] sm:$0xf] }
 0x461   :  { %9866 = vmatpush.bf16.msra.mxu2 %v13527_v3  ;;  %9880 = vmatpush.bf16.msra.mxu3 %v13975_v32  ;;  %v18792_v3 = vld [vmem:[#allocation13 + $0x13a4] sm:$0xf]  ;;  %v14866_v19 = vld [vmem:[#allocation13 + $0xca0] sm:$0xf]  ;;  %v16403_v20 = vor.u32 %v18960_v4, %v16402_v18  ;;  %v13783_v32 = vor.u32 %v18296_v25, %v13780_v28 }
 0x462   :  { %v15767_v51 = vor.u32 %v18792_v3, %v15764_v9  ;;  %v14802_v49 = vld [vmem:[#allocation13 + $0xc20] sm:$0xf]  ;;  %v15636_v44 = vld [vmem:[#allocation13 + $0x12e0] sm:$0xf0] }
 0x463   :  { %9802 = vmatpush.bf16.msrb.mxu1 %v14995_v61  ;;  %v18560_v42 = vld [vmem:[#allocation13 + $0xc5c] sm:$0xf0]  ;;  %v9627_v61 = vpop.f32.mrf.mxu3  ;;  %v18904_v39 = vld [vmem:[#allocation13 + $0x1724] sm:$0xf]  ;;  %v15639_v59 = vor.u32 %v18760_v31, %v15636_v44 }
 0x464   :  { %9842 = vmatpush.bf16.msra.mxu0 %v16467_v7  ;;  %v16338_v53 = vld [vmem:[#allocation13 + $0x1820] sm:$0xf]  ;;  %v16212_v37 = vld [vmem:[#allocation13 + $0x1760] sm:$0xf0] }
 0x465   :  { %9867 = vmatpush.bf16.msra.mxu2 %v13463_v21  ;;  %v18576_v21 = vld [vmem:[#allocation13 + $0xcdc] sm:$0xf0]  ;;  %9881 = vmatpush.bf16.msra.mxu3 %v13911_v0  ;;  %v18520_v10 = vld [vmem:[#allocation13 + $0xb24] sm:$0xf]  ;;  %v16215_v7 = vor.u32 %v18904_v39, %v16212_v37  ;;  %v3782_v39 = vperm.slane %v20007_v5, 7 }
 0x466   :  { %v18944_v30 = vld [vmem:[#allocation13 + $0x185c] sm:$0xf0]  ;;  %v14676_v8 = vld [vmem:[#allocation13 + $0xb60] sm:$0xf0] }
 0x467   :  { %9803 = vmatpush.bf16.msrb.mxu1 %v14931_v13  ;;  %v17298_v41 = vld [vmem:[#allocation13 + $0x1fa0] sm:$0xf]  ;;  %v16339_v46 = vor.u32 %v18944_v30, %v16338_v53  ;;  %v18744_v3 = vld [vmem:[#allocation13 + $0x1224] sm:$0xf]  ;;  %v14679_v1 = vor.u32 %v18520_v10, %v14676_v8 }
 0x468   :  { %v19184_v54 = vld [vmem:[#allocation13 + $0x1fdc] sm:$0xf0]  ;;  %9843 = vmatpush.bf16.msra.mxu0 %v16403_v20  ;;  %v15572_v9 = vld [vmem:[#allocation13 + $0x1260] sm:$0xf0] }
 0x469   :  { %9868 = vmatpush.bf16.msra.mxu2 %v13399_v40  ;;  %v14867_v40 = vor.u32 %v18576_v21, %v14866_v19  ;;  %9882 = vmatpush.bf16.msra.mxu3 %v13847_v29  ;;  %v17299_v12 = vor.u32 %v19184_v54, %v17298_v41  ;;  %v17234_v60 = vld [vmem:[#allocation13 + $0x1f20] sm:$0xf]  ;;  %v18888_v24 = vld [vmem:[#allocation13 + $0x16a4] sm:$0xf]  ;;  %v15575_v18 = vor.u32 %v18744_v3, %v15572_v9 }
 0x46a   :  { %v19168_v0 = vld [vmem:[#allocation13 + $0x1f5c] sm:$0xf0]  ;;  %v16148_v13 = vld [vmem:[#allocation13 + $0x16e0] sm:$0xf0] }
 0x46b   :  { %9804 = vmatpush.bf16.msrb.mxu1 %v14867_v40  ;;  %v17170_v4 = vld [vmem:[#allocation13 + $0x1ea0] sm:$0xf]  ;;  %v18504_v58 = vld [vmem:[#allocation13 + $0xaa4] sm:$0xf]  ;;  %v16151_v29 = vor.u32 %v18888_v24, %v16148_v13 }
 0x46c   :  { %9844 = vmatpush.bf16.msra.mxu0 %v16339_v46  ;;  %v19152_v19 = vld [vmem:[#allocation13 + $0x1edc] sm:$0xf0]  ;;  %v18728_v21 = vld [vmem:[#allocation13 + $0x11a4] sm:$0xf] }
 0x46d   :  { %9869 = vmatpush.bf16.msra.mxu2 %v13335_v48  ;;  %v14803_v48 = vor.u32 %v18560_v42, %v14802_v49  ;;  %9883 = vmatpush.bf16.msra.mxu3 %v13783_v32  ;;  %v15508_v63 = vld [vmem:[#allocation13 + $0x11e0] sm:$0xf0]  ;;  %v17171_v20 = vor.u32 %v19152_v19, %v17170_v4  ;;  %v17106_v42 = vld [vmem:[#allocation13 + $0x1e20] sm:$0xf]  ;;  %v18289_v4 = vld [vmem:[#allocation13 + $0x3e4] sm:$0xf0] }
 0x46e   :  { %v18872_v23 = vld [vmem:[#allocation13 + $0x1624] sm:$0xf]  ;;  %v15511_v49 = vor.u32 %v18728_v21, %v15508_v63  ;;  %v19136_v28 = vld [vmem:[#allocation13 + $0x1e5c] sm:$0xf0] }
 0x46f   :  { %9805 = vmatpush.bf16.msrb.mxu1 %v14803_v48  ;;  %9845 = vmatmul.bf16.vlgmr.msra.gmra.mxu0 %v19838_v27  ;;  %v16084_v50 = vld [vmem:[#allocation13 + $0x1660] sm:$0xf0]  ;;  %v17107_v56 = vor.u32 %v19136_v28, %v17106_v42  ;;  %v17042_v32 = vld [vmem:[#allocation13 + $0x1da0] sm:$0xf]  ;;  %v9638_v48 = vpop.f32.mrf.mxu0  ;;  %v9599_v37 = vpop.f32.mrf.mxu1 }
 0x470   :  { %9889 = vmatpush.bf16.msrb.mxu0 %v14743_v45  ;;  %9884 = vmatmul.bf16.vlgmr.msra.gmra.mxu3 %v19800_v62  ;;  %v18488_v53 = vld [vmem:[#allocation13 + $0xa24] sm:$0xf]  ;;  %v16087_v33 = vor.u32 %v18872_v23, %v16084_v50  ;;  %v19120_v46 = vld [vmem:[#allocation13 + $0x1ddc] sm:$0xf0]  ;;  %v9600_v10 = vadd.f32 %v9599_v37, %v20024_v47 }
 0x471   :  { %9870 = vmatpush.bf16.msra.mxu2 %v13271_v17  ;;  %9928 = vmatpush.bf16.msrb.mxu3 %v16279_v38  ;;  %v17235_v17 = vor.u32 %v19168_v0, %v17234_v60  ;;  %v14548_v25 = vld [vmem:[#allocation13 + $0xa60] sm:$0xf0]  ;;  %v17043_v8 = vor.u32 %v19120_v46, %v17042_v32  ;;  %v16978_v3 = vld [vmem:[#allocation13 + $0x1d20] sm:$0xf]  ;;  %v18417_v46 = vld [vmem:[#allocation13 + $0x7e4] sm:$0xf0] }
 0x472   :  { %9806 = vmatmul.bf16.vlgmr.msrb.gmra.mxu1 %v19814_v35  ;;  %v18712_v40 = vld [vmem:[#allocation13 + $0x1124] sm:$0xf]  ;;  %v14551_v36 = vor.u32 %v18488_v53, %v14548_v25  ;;  %v16914_v42 = vld [vmem:[#allocation13 + $0x1ca0] sm:$0xf] }
 0x473   :  { %9850 = vmatpush.bf16.msra.mxu1 %v17299_v12  ;;  %v15444_v30 = vld [vmem:[#allocation13 + $0x1160] sm:$0xf0]  ;;  %v9677_v63 = vpop.f32.mrf.mxu3  ;;  %v19088_v53 = vld [vmem:[#allocation13 + $0x1cdc] sm:$0xf0] }
 0x474   :  { %9871 = vmatmul.bf16.vlgmr.msra.gmra.mxu2 %v19805_v16  ;;  %9890 = vmatpush.bf16.msrb.mxu0 %v14679_v1  ;;  %v16020_v41 = vld [vmem:[#allocation13 + $0x15e0] sm:$0xf0]  ;;  %v15447_v43 = vor.u32 %v18712_v40, %v15444_v30  ;;  %v19104_v1 = vld [vmem:[#allocation13 + $0x1d5c] sm:$0xf0]  ;;  %v13658_v30 = vld [vmem:[#allocation13 + $0x328] sm:$0xf] }
 0x475   :  { %9915 = vmatpush.bf16.msrb.mxu2 %v15767_v51  ;;  %v14612_v51 = vld [vmem:[#allocation13 + $0xae0] sm:$0xf0]  ;;  %9929 = vmatpush.bf16.msrb.mxu3 %v16215_v7 }
 0x476   :  { %v14615_v22 = vor.u32 %v18504_v58, %v14612_v51  ;;  %v18472_v54 = vld [vmem:[#allocation13 + $0x9a4] sm:$0xf] }
 0x477   :  { %9851 = vmatpush.bf16.msra.mxu1 %v17235_v17  ;;  %v14484_v31 = vld [vmem:[#allocation13 + $0x9e0] sm:$0xf0]  ;;  %v9664_v44 = vpop.f32.mrf.mxu2  ;;  %v9613_v17 = vadd.f32 %v20021_v34, %v9600_v10  ;;  %v9640_v28 = vpop.f32.mrf.mxu0 }
 0x478   :  { %9891 = vmatpush.bf16.msrb.mxu0 %v14615_v22  ;;  %v18696_v38 = vld [vmem:[#allocation13 + $0x10a4] sm:$0xf]  ;;  %v14487_v12 = vor.u32 %v18472_v54, %v14484_v31  ;;  %v9665_v58 = vadd.f32 %v9664_v44, %v3782_v39  ;;  %v16915_v54 = vor.u32 %v19088_v53, %v16914_v42  ;;  %v14234_v44 = vld [vmem:[#allocation13 + $0x7a8] sm:$0xf] }
 0x479   :  { %9916 = vmatpush.bf16.msrb.mxu2 %v15703_v52  ;;  %9930 = vmatpush.bf16.msrb.mxu3 %v16151_v29  ;;  %v18856_v52 = vld [vmem:[#allocation13 + $0x15a4] sm:$0xf]  ;;  %v9626_v21 = vadd.f32 %v20030_v11, %v9613_v17  ;;  %v16979_v29 = vor.u32 %v19104_v1, %v16978_v3  ;;  %v18273_v11 = vld [vmem:[#allocation13 + $0x364] sm:$0xf0]  ;;  %v14235_v10 = vor.u32 %v18417_v46, %v14234_v44 }
 0x47a   :  { %v15380_v61 = vld [vmem:[#allocation13 + $0x10e0] sm:$0xf0]  ;;  %v16023_v45 = vor.u32 %v18856_v52, %v16020_v41  ;;  %v16850_v52 = vld [vmem:[#allocation13 + $0x1c20] sm:$0xf]  ;;  %v18225_v42 = vld [vmem:[#allocation13 + $0x1e4] sm:$0xf0] }
 0x47b   :  { %9852 = vmatpush.bf16.msra.mxu1 %v17171_v20  ;;  %v15956_v60 = vld [vmem:[#allocation13 + $0x1560] sm:$0xf0]  ;;  %v15383_v0 = vor.u32 %v18696_v38, %v15380_v61  ;;  %v20040_v20 = vadd.f32 %v9677_v63, %v9665_v58  ;;  %v20042_v25 = vadd.f32 %v9638_v48, %v9626_v21  ;;  %v19072_v41 = vld [vmem:[#allocation13 + $0x1c5c] sm:$0xf0]  ;;  %v13659_v38 = vor.u32 %v18273_v11, %v13658_v30  ;;  %v18241_v58 = vld [vmem:[#allocation13 + $0x264] sm:$0xf0] }
 0x47c   :  { %9892 = vmatpush.bf16.msrb.mxu0 %v14551_v36  ;;  %v18456_v9 = vld [vmem:[#allocation13 + $0x924] sm:$0xf]  ;;  %v18385_v21 = vld [vmem:[#allocation13 + $0x6e4] sm:$0xf0] }
 0x47d   :  { %9917 = vmatpush.bf16.msrb.mxu2 %v15639_v59  ;;  %9931 = vmatpush.bf16.msrb.mxu3 %v16087_v33  ;;  %v18840_v59 = vld [vmem:[#allocation13 + $0x1524] sm:$0xf]  ;;  %v9601_v33 = vpop.f32.mrf.mxu1  ;;  %v18369_v30 = vld [vmem:[#allocation13 + $0x664] sm:$0xf0] }
 0x47e   :  { %v14420_v7 = vld [vmem:[#allocation13 + $0x960] sm:$0xf0]  ;;  %v15959_v5 = vor.u32 %v18840_v59, %v15956_v60  ;;  %v18257_v59 = vld [vmem:[#allocation13 + $0x2e4] sm:$0xf0] }
 0x47f   :  { %9853 = vmatpush.bf16.msra.mxu1 %v17107_v56  ;;  %v18680_v24 = vld [vmem:[#allocation13 + $0x1024] sm:$0xf]  ;;  %v14423_v51 = vor.u32 %v18456_v9, %v14420_v7  ;;  %v9666_v34 = vpop.f32.mrf.mxu2  ;;  %v14170_v9 = vld [vmem:[#allocation13 + $0x728] sm:$0xf] }
 0x480   :  { %v15316_v13 = vld [vmem:[#allocation13 + $0x1060] sm:$0xf0]  ;;  %9893 = vmatpush.bf16.msrb.mxu0 %v14487_v12  ;;  %v13594_v12 = vld [vmem:[#allocation13 + $0x2a8] sm:$0xf] }
 0x481   :  { %9918 = vmatpush.bf16.msrb.mxu2 %v15575_v18  ;;  %9932 = vmatpush.bf16.msrb.mxu3 %v16023_v45  ;;  %v13722_v18 = vld [vmem:[#allocation13 + $0x3a8] sm:$0xf]  ;;  %v18824_v47 = vld [vmem:[#allocation13 + $0x14a4] sm:$0xf]  ;;  %v15319_v22 = vor.u32 %v18680_v24, %v15316_v13  ;;  %v13595_v24 = vor.u32 %v18257_v59, %v13594_v12 }
 0x482   :  { %v15892_v19 = vld [vmem:[#allocation13 + $0x14e0] sm:$0xf0]  ;;  %v18401_v7 = vld [vmem:[#allocation13 + $0x764] sm:$0xf0] }
 0x483   :  { %9854 = vmatpush.bf16.msra.mxu1 %v17043_v8  ;;  %v18440_v23 = vld [vmem:[#allocation13 + $0x8a4] sm:$0xf]  ;;  %v15895_v40 = vor.u32 %v18824_v47, %v15892_v19  ;;  %v9679_v8 = vpop.f32.mrf.mxu3  ;;  %v14106_v19 = vld [vmem:[#allocation13 + $0x6a8] sm:$0xf] }
 0x484   :  { %v14356_v50 = vld [vmem:[#allocation13 + $0x8e0] sm:$0xf0]  ;;  %9894 = vmatpush.bf16.msrb.mxu0 %v14423_v51  ;;  %v14171_v51 = vor.u32 %v18401_v7, %v14170_v9  ;;  %v14107_v53 = vor.u32 %v18385_v21, %v14106_v19  ;;  %v13978_v44 = vld [vmem:[#allocation13 + $0x5a8] sm:$0xf] }
 0x485   :  { %9919 = vmatpush.bf16.msrb.mxu2 %v15511_v49  ;;  %v13723_v49 = vor.u32 %v18289_v4, %v13722_v18  ;;  %9933 = vmatpush.bf16.msrb.mxu3 %v15959_v5  ;;  %v14359_v36 = vor.u32 %v18440_v23, %v14356_v50  ;;  %v18424_v56 = vld [vmem:[#allocation13 + $0x824] sm:$0xf]  ;;  %v13530_v4 = vld [vmem:[#allocation13 + $0x228] sm:$0xf] }
 0x486   :  { %v15828_v32 = vld [vmem:[#allocation13 + $0x1460] sm:$0xf0]  ;;  %v18353_v46 = vld [vmem:[#allocation13 + $0x5e4] sm:$0xf0] }
 0x487   :  { %9855 = vmatpush.bf16.msra.mxu1 %v16979_v29  ;;  %v14292_v31 = vld [vmem:[#allocation13 + $0x860] sm:$0xf0]  ;;  %v13531_v29 = vor.u32 %v18241_v58, %v13530_v4  ;;  %v13338_v59 = vld [vmem:[#allocation13 + $0xa8] sm:$0xf]  ;;  %v13979_v8 = vor.u32 %v18353_v46, %v13978_v44 }
 0x488   :  { %v18664_v61 = vld [vmem:[#allocation13 + $0xfa4] sm:$0xf]  ;;  %9895 = vmatpush.bf16.msrb.mxu0 %v14359_v36  ;;  %v14295_v60 = vor.u32 %v18424_v56, %v14292_v31  ;;  %v13914_v7 = vld [vmem:[#allocation13 + $0x528] sm:$0xf] }
 0x489   :  { %9920 = vmatpush.bf16.msrb.mxu2 %v15447_v43  ;;  %v18808_v43 = vld [vmem:[#allocation13 + $0x1424] sm:$0xf]  ;;  %9934 = vmatpush.bf16.msrb.mxu3 %v15895_v40  ;;  %v14042_v40 = vld [vmem:[#allocation13 + $0x628] sm:$0xf] }
 0x48a   :  { %v19048_v48 = vld [vmem:[#allocation13 + $0x1ba4] sm:$0xf]  ;;  %v15831_v39 = vor.u32 %v18808_v43, %v15828_v32  ;;  %v13402_v43 = vld [vmem:[#allocation13 + $0x128] sm:$0xf] }
 0x48b   :  { %v16788_v45 = vld [vmem:[#allocation13 + $0x1be0] sm:$0xf0]  ;;  %9856 = vmatpush.bf16.msra.mxu1 %v16915_v54  ;;  %v18209_v32 = vld [vmem:[#allocation13 + $0x164] sm:$0xf0]  ;;  %v14043_v54 = vor.u32 %v18369_v30, %v14042_v40 }
 0x48c   :  { %v15252_v37 = vld [vmem:[#allocation13 + $0xfe0] sm:$0xf0]  ;;  %v16791_v3 = vor.u32 %v19048_v48, %v16788_v45  ;;  %9896 = vmatpush.bf16.msrb.mxu0 %v14295_v60  ;;  %v18193_v60 = vld [vmem:[#allocation13 + $0xe4] sm:$0xf0] }
 0x48d   :  { %9921 = vmatpush.bf16.msrb.mxu2 %v15383_v0  ;;  %v16851_v0 = vor.u32 %v19072_v41, %v16850_v52  ;;  %v15255_v1 = vor.u32 %v18664_v61, %v15252_v37  ;;  %v18648_v13 = vld [vmem:[#allocation13 + $0xf24] sm:$0xf]  ;;  %9935 = vmatpush.bf16.msrb.mxu3 %v15831_v39  ;;  %v13403_v61 = vor.u32 %v18209_v32, %v13402_v43  ;;  %v15770_v19 = vld [vmem:[#allocation13 + $0x13a8] sm:$0xf] }
 0x48e   :  { %v19032_v17 = vld [vmem:[#allocation13 + $0x1b24] sm:$0xf]  ;;  %v18801_v21 = vld [vmem:[#allocation13 + $0x13e4] sm:$0xf0] }
 0x48f   :  { %v16724_v5 = vld [vmem:[#allocation13 + $0x1b60] sm:$0xf0]  ;;  %9857 = vmatpush.bf16.msra.mxu1 %v16851_v0  ;;  %9897 = vmatmul.bf16.vlgmr.msrb.gmra.mxu0 %v19818_v15  ;;  %v9651_v0 = vpop.f32.mrf.mxu1 }
 0x490   :  { %v15188_v18 = vld [vmem:[#allocation13 + $0xf60] sm:$0xf0]  ;;  %9941 = vmatpush.bf16.msra.mxu0 %v16791_v3  ;;  %v16727_v47 = vor.u32 %v19032_v17, %v16724_v5  ;;  %9936 = vmatmul.bf16.vlgmr.msrb.gmra.mxu3 %v19832_v55  ;;  %v13339_v17 = vor.u32 %v18193_v60, %v13338_v59 }
 0x491   :  { %9922 = vmatpush.bf16.msrb.mxu2 %v15319_v22  ;;  %9980 = vmatpush.bf16.msra.mxu3 %v14235_v10  ;;  %v15191_v63 = vor.u32 %v18648_v13, %v15188_v18  ;;  %v18632_v22 = vld [vmem:[#allocation13 + $0xea4] sm:$0xf]  ;;  %v9690_v10 = vpop.f32.mrf.mxu0 }
 0x492   :  { %v19016_v23 = vld [vmem:[#allocation13 + $0x1aa4] sm:$0xf]  ;;  %9858 = vmatmul.bf16.vlgmr.msra.gmra.mxu1 %v19845_v14  ;;  %v20051_v3 = vadd.f32 %v9690_v10, %v20040_v20  ;;  %v15642_v10 = vld [vmem:[#allocation13 + $0x12a8] sm:$0xf] }
 0x493   :  { %9902 = vmatpush.bf16.msrb.mxu1 %v15255_v1  ;;  %v16660_v50 = vld [vmem:[#allocation13 + $0x1ae0] sm:$0xf0]  ;;  %v18337_v1 = vld [vmem:[#allocation13 + $0x564] sm:$0xf0] }
 0x494   :  { %9923 = vmatmul.bf16.vlgmr.msrb.gmra.mxu2 %v19822_v6  ;;  %v15124_v34 = vld [vmem:[#allocation13 + $0xee0] sm:$0xf0]  ;;  %9942 = vmatpush.bf16.msra.mxu0 %v16727_v47  ;;  %v16663_v28 = vor.u32 %v19016_v23, %v16660_v50  ;;  %v18177_v47 = vld [vmem:[#allocation13 + $0x64] sm:$0xf0]  ;;  %v13915_v20 = vor.u32 %v18337_v1, %v13914_v7 }
 0x495   :  { %9967 = vmatpush.bf16.msra.mxu2 %v13723_v49  ;;  %v13466_v49 = vld [vmem:[#allocation13 + $0x1a8] sm:$0xf]  ;;  %9981 = vmatpush.bf16.msra.mxu3 %v14171_v51  ;;  %v15127_v11 = vor.u32 %v18632_v22, %v15124_v34  ;;  %v18616_v36 = vld [vmem:[#allocation13 + $0xe24] sm:$0xf] }
 0x496   :  { %v13467_v33 = vor.u32 %v18225_v42, %v13466_v49  ;;  %v19000_v52 = vld [vmem:[#allocation13 + $0x1a24] sm:$0xf]  ;;  %v13274_v51 = vld [vmem:[#allocation13 + $0x28] sm:$0xf] }
 0x497   :  { %9903 = vmatpush.bf16.msrb.mxu1 %v15191_v63  ;;  %v16596_v41 = vld [vmem:[#allocation13 + $0x1a60] sm:$0xf0]  ;;  %v20048_v37 = vpop.f32.mrf.mxu2  ;;  %v18321_v22 = vld [vmem:[#allocation13 + $0x4e4] sm:$0xf0]  ;;  %v13275_v50 = vor.u32 %v18177_v47, %v13274_v51 }
 0x498   :  { %v15060_v56 = vld [vmem:[#allocation13 + $0xe60] sm:$0xf0]  ;;  %9943 = vmatpush.bf16.msra.mxu0 %v16663_v28  ;;  %v16599_v31 = vor.u32 %v19000_v52, %v16596_v41  ;;  %v9653_v52 = vpop.f32.mrf.mxu1  ;;  %v14682_v51 = vld [vmem:[#allocation13 + $0xb28] sm:$0xf] }
 0x499   :  { %9968 = vmatpush.bf16.msra.mxu2 %v13659_v38  ;;  %9982 = vmatpush.bf16.msra.mxu3 %v14107_v53  ;;  %v15063_v38 = vor.u32 %v18616_v36, %v15060_v56  ;;  %v18600_v48 = vld [vmem:[#allocation13 + $0xda4] sm:$0xf]  ;;  %v15771_v53 = vor.u32 %v18801_v21, %v15770_v19  ;;  %v9692_v30 = vpop.f32.mrf.mxu0  ;;  %v18785_v36 = vld [vmem:[#allocation13 + $0x1364] sm:$0xf0] }
 0x49a   :  { %v18984_v45 = vld [vmem:[#allocation13 + $0x19a4] sm:$0xf]  ;;  %v18529_v47 = vld [vmem:[#allocation13 + $0xb64] sm:$0xf0] }
 0x49b   :  { %9904 = vmatpush.bf16.msrb.mxu1 %v15127_v11  ;;  %v16532_v39 = vld [vmem:[#allocation13 + $0x19e0] sm:$0xf0]  ;;  %v15578_v19 = vld [vmem:[#allocation13 + $0x1228] sm:$0xf] }
 0x49c   :  { %v14996_v12 = vld [vmem:[#allocation13 + $0xde0] sm:$0xf0]  ;;  %9944 = vmatpush.bf16.msra.mxu0 %v16599_v31  ;;  %v16535_v9 = vor.u32 %v18984_v45, %v16532_v39  ;;  %v18305_v31 = vld [vmem:[#allocation13 + $0x464] sm:$0xf0] }
 0x49d   :  { %9969 = vmatpush.bf16.msra.mxu2 %v13595_v24  ;;  %9983 = vmatpush.bf16.msra.mxu3 %v14043_v54  ;;  %v20054_v24 = vadd.f32 %v9651_v0, %v20042_v25  ;;  %v14999_v13 = vor.u32 %v18600_v48, %v14996_v12  ;;  %v18584_v5 = vld [vmem:[#allocation13 + $0xd24] sm:$0xf]  ;;  %v20056_v25 = vpop.f32.mrf.mxu3  ;;  %v13786_v54 = vld [vmem:[#allocation13 + $0x428] sm:$0xf] }
 0x49e   :  { %v18968_v18 = vld [vmem:[#allocation13 + $0x1924] sm:$0xf]  ;;  %v14746_v39 = vld [vmem:[#allocation13 + $0xba8] sm:$0xf]  ;;  %v13787_v59 = vor.u32 %v18305_v31, %v13786_v54 }
 0x49f   :  { %9905 = vmatpush.bf16.msrb.mxu1 %v15063_v38  ;;  %v16468_v4 = vld [vmem:[#allocation13 + $0x1960] sm:$0xf0]  ;;  %v9718_v42 = vpop.f32.mrf.mxu2  ;;  %v16282_v38 = vld [vmem:[#allocation13 + $0x17a8] sm:$0xf] }
 0x4a0   :  { %v14932_v58 = vld [vmem:[#allocation13 + $0xd60] sm:$0xf0]  ;;  %9945 = vmatpush.bf16.msra.mxu0 %v16535_v9  ;;  %v16471_v63 = vor.u32 %v18968_v18, %v16468_v4  ;;  %v18545_v12 = vld [vmem:[#allocation13 + $0xbe4] sm:$0xf0] }
 0x4a1   :  { %9970 = vmatpush.bf16.msra.mxu2 %v13531_v29  ;;  %9984 = vmatpush.bf16.msra.mxu3 %v13979_v8  ;;  %v13850_v29 = vld [vmem:[#allocation13 + $0x4a8] sm:$0xf]  ;;  %v14935_v23 = vor.u32 %v18584_v5, %v14932_v58  ;;  %v18952_v34 = vld [vmem:[#allocation13 + $0x18a4] sm:$0xf] }
 0x4a2   :  { %v16404_v49 = vld [vmem:[#allocation13 + $0x18e0] sm:$0xf0]  ;;  %v13851_v11 = vor.u32 %v18321_v22, %v13850_v29  ;;  %v18769_v8 = vld [vmem:[#allocation13 + $0x12e4] sm:$0xf0]  ;;  %v14683_v29 = vor.u32 %v18529_v47, %v14682_v51 }
 0x4a3   :  { %9906 = vmatpush.bf16.msrb.mxu1 %v14999_v13  ;;  %v18568_v28 = vld [vmem:[#allocation13 + $0xca4] sm:$0xf]  ;;  %v16407_v41 = vor.u32 %v18952_v34, %v16404_v49  ;;  %v14747_v13 = vor.u32 %v18545_v12, %v14746_v39  ;;  %v18913_v5 = vld [vmem:[#allocation13 + $0x1764] sm:$0xf0]  ;;  %v15643_v4 = vor.u32 %v18769_v8, %v15642_v10 }
 0x4a4   :  { %v14868_v40 = vld [vmem:[#allocation13 + $0xce0] sm:$0xf0]  ;;  %9946 = vmatpush.bf16.msra.mxu0 %v16471_v63  ;;  %v18753_v21 = vld [vmem:[#allocation13 + $0x1264] sm:$0xf0] }
 0x4a5   :  { %9971 = vmatpush.bf16.msra.mxu2 %v13467_v33  ;;  %9985 = vmatpush.bf16.msra.mxu3 %v13915_v20  ;;  %v15706_v33 = vld [vmem:[#allocation13 + $0x1328] sm:$0xf]  ;;  %v18552_v56 = vld [vmem:[#allocation13 + $0xc24] sm:$0xf]  ;;  %v14871_v44 = vor.u32 %v18568_v28, %v14868_v40  ;;  %v9731_v7 = vpop.f32.mrf.mxu3  ;;  %v15579_v34 = vor.u32 %v18753_v21, %v15578_v19 }
 0x4a6   :  { %v14804_v43 = vld [vmem:[#allocation13 + $0xc60] sm:$0xf0]  ;;  %v15707_v48 = vor.u32 %v18785_v36, %v15706_v33  ;;  %v16154_v22 = vld [vmem:[#allocation13 + $0x16a8] sm:$0xf] }
 0x4a7   :  { %v18936_v32 = vld [vmem:[#allocation13 + $0x1824] sm:$0xf]  ;;  %9907 = vmatpush.bf16.msrb.mxu1 %v14935_v23  ;;  %v14807_v1 = vor.u32 %v18552_v56, %v14804_v43  ;;  %v18897_v23 = vld [vmem:[#allocation13 + $0x16e4] sm:$0xf0] }
 0x4a8   :  { %v16340_v46 = vld [vmem:[#allocation13 + $0x1860] sm:$0xf0]  ;;  %9947 = vmatpush.bf16.msra.mxu0 %v16407_v41  ;;  %v14618_v42 = vld [vmem:[#allocation13 + $0xaa8] sm:$0xf] }
 0x4a9   :  { %9972 = vmatpush.bf16.msra.mxu2 %v13403_v61  ;;  %v18929_v61 = vld [vmem:[#allocation13 + $0x17e4] sm:$0xf0]  ;;  %v19176_v45 = vld [vmem:[#allocation13 + $0x1fa4] sm:$0xf]  ;;  %9986 = vmatpush.bf16.msra.mxu3 %v13851_v11  ;;  %v16343_v0 = vor.u32 %v18936_v32, %v16340_v46  ;;  %v16155_v11 = vor.u32 %v18897_v23, %v16154_v22 }
 0x4aa   :  { %v17300_v60 = vld [vmem:[#allocation13 + $0x1fe0] sm:$0xf0]  ;;  %v16283_v9 = vor.u32 %v18929_v61, %v16282_v38  ;;  %v15514_v40 = vld [vmem:[#allocation13 + $0x11a8] sm:$0xf] }
 0x4ab   :  { %9908 = vmatpush.bf16.msrb.mxu1 %v14871_v44  ;;  %v17303_v18 = vor.u32 %v19176_v45, %v17300_v60  ;;  %v19160_v58 = vld [vmem:[#allocation13 + $0x1f24] sm:$0xf]  ;;  %v18737_v30 = vld [vmem:[#allocation13 + $0x11e4] sm:$0xf0] }
 0x4ac   :  { %v17236_v20 = vld [vmem:[#allocation13 + $0x1f60] sm:$0xf0]  ;;  %9948 = vmatpush.bf16.msra.mxu0 %v16343_v0  ;;  %v16090_v36 = vld [vmem:[#allocation13 + $0x1628] sm:$0xf]  ;;  %v15515_v56 = vor.u32 %v18737_v30, %v15514_v40 }
 0x4ad   :  { %9973 = vmatpush.bf16.msra.mxu2 %v13339_v17  ;;  %v16218_v17 = vld [vmem:[#allocation13 + $0x1728] sm:$0xf]  ;;  %9987 = vmatpush.bf16.msra.mxu3 %v13787_v59  ;;  %v19144_v49 = vld [vmem:[#allocation13 + $0x1ea4] sm:$0xf] }
 0x4ae   :  { %v16219_v63 = vor.u32 %v18913_v5, %v16218_v17  ;;  %v17172_v28 = vld [vmem:[#allocation13 + $0x1ee0] sm:$0xf0]  ;;  %v18881_v52 = vld [vmem:[#allocation13 + $0x1664] sm:$0xf0] }
 0x4af   :  { %9909 = vmatpush.bf16.msrb.mxu1 %v14807_v1  ;;  %9949 = vmatmul.bf16.vlgmr.msra.gmra.mxu0 %v19838_v27  ;;  %v17175_v41 = vor.u32 %v19144_v49, %v17172_v28  ;;  %v19128_v43 = vld [vmem:[#allocation13 + $0x1e24] sm:$0xf]  ;;  %v14554_v32 = vld [vmem:[#allocation13 + $0xa28] sm:$0xf]  ;;  %v16091_v38 = vor.u32 %v18881_v52, %v16090_v36 }
 0x4b0   :  { %9993 = vmatpush.bf16.msrb.mxu0 %v14747_v13  ;;  %9988 = vmatmul.bf16.vlgmr.msra.gmra.mxu3 %v19800_v62  ;;  %v18497_v54 = vld [vmem:[#allocation13 + $0xa64] sm:$0xf0]  ;;  %v17108_v31 = vld [vmem:[#allocation13 + $0x1e60] sm:$0xf0]  ;;  %v9742_v13 = vpop.f32.mrf.mxu0 }
 0x4b1   :  { %9974 = vmatpush.bf16.msra.mxu2 %v13275_v50  ;;  %10032 = vmatpush.bf16.msrb.mxu3 %v16283_v9  ;;  %v17239_v50 = vor.u32 %v19160_v58, %v17236_v20  ;;  %v15450_v44 = vld [vmem:[#allocation13 + $0x1128] sm:$0xf]  ;;  %v17111_v12 = vor.u32 %v19128_v43, %v17108_v31  ;;  %v19112_v60 = vld [vmem:[#allocation13 + $0x1da4] sm:$0xf] }
 0x4b2   :  { %9910 = vmatmul.bf16.vlgmr.msrb.gmra.mxu1 %v19814_v35  ;;  %v18721_v46 = vld [vmem:[#allocation13 + $0x1164] sm:$0xf0]  ;;  %v17044_v9 = vld [vmem:[#allocation13 + $0x1de0] sm:$0xf0] }
 0x4b3   :  { %9954 = vmatpush.bf16.msra.mxu1 %v17303_v18  ;;  %v20062_v61 = vld [vmem:[#allocation14 + $0x8] sm:$0xff]  ;;  %v15451_v59 = vor.u32 %v18721_v46, %v15450_v44  ;;  %v9703_v18 = vpop.f32.mrf.mxu1  ;;  %v17047_v20 = vor.u32 %v19112_v60, %v17044_v9  ;;  %v19096_v21 = vld [vmem:[#allocation13 + $0x1d24] sm:$0xf] }
 0x4b4   :  { %9975 = vmatmul.bf16.vlgmr.msra.gmra.mxu2 %v19805_v16  ;;  %9994 = vmatpush.bf16.msrb.mxu0 %v14683_v29  ;;  %v16026_v45 = vld [vmem:[#allocation13 + $0x15a8] sm:$0xf]  ;;  %v3783_v5 = vperm.slane %v20062_v61, 0  ;;  %v9704_v47 = vadd.f32 %v9703_v18, %v20051_v3  ;;  %v16980_v22 = vld [vmem:[#allocation13 + $0x1d60] sm:$0xf0] }
 0x4b5   :  { %10019 = vmatpush.bf16.msrb.mxu2 %v15771_v53  ;;  %v18513_v53 = vld [vmem:[#allocation13 + $0xae4] sm:$0xf0]  ;;  %10033 = vmatpush.bf16.msrb.mxu3 %v16219_v63  ;;  %v16983_v36 = vor.u32 %v19096_v21, %v16980_v22  ;;  %v16916_v31 = vld [vmem:[#allocation13 + $0x1ce0] sm:$0xf0]  ;;  %v18393_v22 = vld [vmem:[#allocation13 + $0x72c] sm:$0xf] }
 0x4b6   :  { %v14619_v33 = vor.u32 %v18513_v53, %v14618_v42  ;;  %v18865_v39 = vld [vmem:[#allocation13 + $0x15e4] sm:$0xf0]  ;;  %v18281_v42 = vld [vmem:[#allocation13 + $0x3ac] sm:$0xf] }
 0x4b7   :  { %9955 = vmatpush.bf16.msra.mxu1 %v17239_v50  ;;  %v14490_v10 = vld [vmem:[#allocation13 + $0x9a8] sm:$0xf]  ;;  %v9768_v0 = vpop.f32.mrf.mxu2  ;;  %v16027_v17 = vor.u32 %v18865_v39, %v16026_v45  ;;  %v13724_v53 = vld [vmem:[#allocation13 + $0x3e8] sm:$0xf0] }
 0x4b8   :  { %9995 = vmatpush.bf16.msrb.mxu0 %v14619_v33  ;;  %v18481_v8 = vld [vmem:[#allocation13 + $0x9e4] sm:$0xf0]  ;;  %v9769_v28 = vadd.f32 %v9768_v0, %v3783_v5  ;;  %v9781_v33 = vpop.f32.mrf.mxu3  ;;  %v9744_v46 = vpop.f32.mrf.mxu0 }
 0x4b9   :  { %10020 = vmatpush.bf16.msrb.mxu2 %v15707_v48  ;;  %10034 = vmatpush.bf16.msrb.mxu3 %v16155_v11  ;;  %v14555_v48 = vor.u32 %v18497_v54, %v14554_v32  ;;  %v15386_v7 = vld [vmem:[#allocation13 + $0x10a8] sm:$0xf]  ;;  %v13727_v32 = vor.u32 %v18281_v42, %v13724_v53  ;;  %v19080_v54 = vld [vmem:[#allocation13 + $0x1ca4] sm:$0xf]  ;;  %v13468_v46 = vld [vmem:[#allocation13 + $0x1e8] sm:$0xf0] }
 0x4ba   :  { %v18705_v1 = vld [vmem:[#allocation13 + $0x10e4] sm:$0xf0]  ;;  %v20068_v43 = vadd.f32 %v9781_v33, %v9769_v28  ;;  %v16919_v0 = vor.u32 %v19080_v54, %v16916_v31  ;;  %v18377_v33 = vld [vmem:[#allocation13 + $0x6ac] sm:$0xf] }
 0x4bb   :  { %9956 = vmatpush.bf16.msra.mxu1 %v17175_v41  ;;  %v15962_v58 = vld [vmem:[#allocation13 + $0x1528] sm:$0xf]  ;;  %v15387_v19 = vor.u32 %v18705_v1, %v15386_v7  ;;  %v9705_v45 = vpop.f32.mrf.mxu1  ;;  %v18409_v7 = vld [vmem:[#allocation13 + $0x7ac] sm:$0xf] }
 0x4bc   :  { %9996 = vmatpush.bf16.msrb.mxu0 %v14555_v48  ;;  %v18849_v51 = vld [vmem:[#allocation13 + $0x1564] sm:$0xf0]  ;;  %v18265_v48 = vld [vmem:[#allocation13 + $0x32c] sm:$0xf] }
 0x4bd   :  { %10021 = vmatpush.bf16.msrb.mxu2 %v15643_v4  ;;  %10035 = vmatpush.bf16.msrb.mxu3 %v16091_v38  ;;  %v14491_v4 = vor.u32 %v18481_v8, %v14490_v10  ;;  %v14426_v63 = vld [vmem:[#allocation13 + $0x928] sm:$0xf]  ;;  %v15963_v49 = vor.u32 %v18849_v51, %v15962_v58  ;;  %v14236_v1 = vld [vmem:[#allocation13 + $0x7e8] sm:$0xf0] }
 0x4be   :  { %v18465_v29 = vld [vmem:[#allocation13 + $0x964] sm:$0xf0]  ;;  %v18249_v51 = vld [vmem:[#allocation13 + $0x2ac] sm:$0xf] }
 0x4bf   :  { %9957 = vmatpush.bf16.msra.mxu1 %v17111_v12  ;;  %v15322_v23 = vld [vmem:[#allocation13 + $0x1028] sm:$0xf]  ;;  %v14427_v40 = vor.u32 %v18465_v29, %v14426_v63  ;;  %v19064_v12 = vld [vmem:[#allocation13 + $0x1c24] sm:$0xf]  ;;  %v18217_v31 = vld [vmem:[#allocation13 + $0x1ac] sm:$0xf] }
 0x4c0   :  { %v18689_v50 = vld [vmem:[#allocation13 + $0x1064] sm:$0xf0]  ;;  %9997 = vmatpush.bf16.msrb.mxu0 %v14491_v4  ;;  %v9783_v21 = vpop.f32.mrf.mxu3  ;;  %v14044_v45 = vld [vmem:[#allocation13 + $0x668] sm:$0xf0] }
 0x4c1   :  { %10022 = vmatpush.bf16.msrb.mxu2 %v15579_v34  ;;  %v9717_v34 = vadd.f32 %v20048_v37, %v9704_v47  ;;  %10036 = vmatpush.bf16.msrb.mxu3 %v16027_v17  ;;  %v15898_v3 = vld [vmem:[#allocation13 + $0x14a8] sm:$0xf]  ;;  %v15323_v52 = vor.u32 %v18689_v50, %v15322_v23  ;;  %v9770_v37 = vpop.f32.mrf.mxu2  ;;  %v13596_v47 = vld [vmem:[#allocation13 + $0x2e8] sm:$0xf0] }
 0x4c2   :  { %v18833_v30 = vld [vmem:[#allocation13 + $0x14e4] sm:$0xf0]  ;;  %v14172_v23 = vld [vmem:[#allocation13 + $0x768] sm:$0xf0] }
 0x4c3   :  { %v9730_v11 = vadd.f32 %v20056_v25, %v9717_v34  ;;  %9958 = vmatpush.bf16.msra.mxu1 %v17047_v20  ;;  %v14362_v41 = vld [vmem:[#allocation13 + $0x8a8] sm:$0xf]  ;;  %v15899_v38 = vor.u32 %v18833_v30, %v15898_v3  ;;  %v13660_v25 = vld [vmem:[#allocation13 + $0x368] sm:$0xf0]  ;;  %v13599_v34 = vor.u32 %v18249_v51, %v13596_v47  ;;  %v14175_v30 = vor.u32 %v18393_v22, %v14172_v23 }
 0x4c4   :  { %9998 = vmatpush.bf16.msrb.mxu0 %v14427_v40  ;;  %v14298_v60 = vld [vmem:[#allocation13 + $0x828] sm:$0xf]  ;;  %v18233_v40 = vld [vmem:[#allocation13 + $0x22c] sm:$0xf] }
 0x4c5   :  { %10023 = vmatpush.bf16.msrb.mxu2 %v15515_v56  ;;  %v18449_v56 = vld [vmem:[#allocation13 + $0x8e4] sm:$0xf0]  ;;  %v20070_v44 = vadd.f32 %v9742_v13, %v9730_v11  ;;  %10037 = vmatpush.bf16.msrb.mxu3 %v15963_v49  ;;  %v13663_v13 = vor.u32 %v18265_v48, %v13660_v25  ;;  %v13532_v3 = vld [vmem:[#allocation13 + $0x268] sm:$0xf0] }
 0x4c6   :  { %v14363_v39 = vor.u32 %v18449_v56, %v14362_v41  ;;  %v15834_v10 = vld [vmem:[#allocation13 + $0x1428] sm:$0xf]  ;;  %v13535_v41 = vor.u32 %v18233_v40, %v13532_v3  ;;  %v18361_v25 = vld [vmem:[#allocation13 + $0x62c] sm:$0xf] }
 0x4c7   :  { %v18817_v8 = vld [vmem:[#allocation13 + $0x1464] sm:$0xf0]  ;;  %9959 = vmatpush.bf16.msra.mxu1 %v16983_v36  ;;  %v14108_v36 = vld [vmem:[#allocation13 + $0x6e8] sm:$0xf0] }
 0x4c8   :  { %v18433_v9 = vld [vmem:[#allocation13 + $0x864] sm:$0xf0]  ;;  %v15835_v4 = vor.u32 %v18817_v8, %v15834_v10  ;;  %9999 = vmatpush.bf16.msrb.mxu0 %v14363_v39  ;;  %v13340_v21 = vld [vmem:[#allocation13 + $0xe8] sm:$0xf0] }
 0x4c9   :  { %10024 = vmatpush.bf16.msrb.mxu2 %v15451_v59  ;;  %v16852_v59 = vld [vmem:[#allocation13 + $0x1c60] sm:$0xf0]  ;;  %v15258_v17 = vld [vmem:[#allocation13 + $0xfa8] sm:$0xf]  ;;  %10038 = vmatpush.bf16.msrb.mxu3 %v15899_v38  ;;  %v14299_v20 = vor.u32 %v18433_v9, %v14298_v60  ;;  %v14111_v38 = vor.u32 %v18377_v33, %v14108_v36  ;;  %v13404_v9 = vld [vmem:[#allocation13 + $0x168] sm:$0xf0] }
 0x4ca   :  { %v16794_v5 = vld [vmem:[#allocation13 + $0x1ba8] sm:$0xf]  ;;  %v16855_v63 = vor.u32 %v19064_v12, %v16852_v59  ;;  %v13471_v12 = vor.u32 %v18217_v31, %v13468_v46  ;;  %v18169_v33 = vld [vmem:[#allocation13 + $0x2c] sm:$0xf] }
 0x4cb   :  { %v19057_v18 = vld [vmem:[#allocation13 + $0x1be4] sm:$0xf0]  ;;  %9960 = vmatpush.bf16.msra.mxu1 %v16919_v0  ;;  %v18201_v0 = vld [vmem:[#allocation13 + $0x12c] sm:$0xf] }
 0x4cc   :  { %v18673_v58 = vld [vmem:[#allocation13 + $0xfe4] sm:$0xf0]  ;;  %v16795_v29 = vor.u32 %v19057_v18, %v16794_v5  ;;  %10000 = vmatpush.bf16.msrb.mxu0 %v14299_v20  ;;  %v13407_v18 = vor.u32 %v18201_v0, %v13404_v9  ;;  %v13276_v36 = vld [vmem:[#allocation13 + $0x68] sm:$0xf0] }
 0x4cd   :  { %10025 = vmatpush.bf16.msrb.mxu2 %v15387_v19  ;;  %v14239_v19 = vor.u32 %v18409_v7, %v14236_v1  ;;  %v15259_v50 = vor.u32 %v18673_v58, %v15258_v17  ;;  %v15194_v49 = vld [vmem:[#allocation13 + $0xf28] sm:$0xf]  ;;  %10039 = vmatpush.bf16.msrb.mxu3 %v15835_v4  ;;  %v14047_v7 = vor.u32 %v18361_v25, %v14044_v45  ;;  %v13980_v17 = vld [vmem:[#allocation13 + $0x5e8] sm:$0xf0] }
 0x4ce   :  { %v16730_v42 = vld [vmem:[#allocation13 + $0x1b28] sm:$0xf]  ;;  %v15708_v0 = vld [vmem:[#allocation13 + $0x1368] sm:$0xf0] }
 0x4cf   :  { %v19041_v53 = vld [vmem:[#allocation13 + $0x1b64] sm:$0xf0]  ;;  %9961 = vmatpush.bf16.msra.mxu1 %v16855_v63  ;;  %10001 = vmatmul.bf16.vlgmr.msrb.gmra.mxu0 %v19818_v15  ;;  %v9794_v63 = vpop.f32.mrf.mxu0  ;;  %v9755_v22 = vpop.f32.mrf.mxu1 }
 0x4d0   :  { %v18657_v28 = vld [vmem:[#allocation13 + $0xf64] sm:$0xf0]  ;;  %10045 = vmatpush.bf16.msra.mxu0 %v16795_v29  ;;  %v16731_v11 = vor.u32 %v19041_v53, %v16730_v42  ;;  %10040 = vmatmul.bf16.vlgmr.msrb.gmra.mxu3 %v19832_v55  ;;  %v20079_v23 = vadd.f32 %v9794_v63, %v20068_v43  ;;  %v9756_v42 = vadd.f32 %v9755_v22, %v20070_v44  ;;  %v18313_v44 = vld [vmem:[#allocation13 + $0x4ac] sm:$0xf] }
 0x4d1   :  { %10026 = vmatpush.bf16.msrb.mxu2 %v15323_v52  ;;  %10084 = vmatpush.bf16.msra.mxu3 %v14239_v19  ;;  %v15195_v52 = vor.u32 %v18657_v28, %v15194_v49  ;;  %v15130_v56 = vld [vmem:[#allocation13 + $0xea8] sm:$0xf]  ;;  %v18185_v19 = vld [vmem:[#allocation13 + $0xac] sm:$0xf] }
 0x4d2   :  { %v16666_v37 = vld [vmem:[#allocation13 + $0x1aa8] sm:$0xf]  ;;  %9962 = vmatmul.bf16.vlgmr.msra.gmra.mxu1 %v19845_v14  ;;  %v13916_v49 = vld [vmem:[#allocation13 + $0x568] sm:$0xf0]  ;;  %v13343_v28 = vor.u32 %v18185_v19, %v13340_v21  ;;  %v10598_v43 = vmax.f32 %v9756_v42, 0.0 }
 0x4d3   :  { %10006 = vmatpush.bf16.msrb.mxu1 %v15259_v50  ;;  %v18641_v54 = vld [vmem:[#allocation13 + $0xee4] sm:$0xf0]  ;;  %v20085_v46 = vpop.f32.mrf.mxu3  ;;  %v18537_v63 = vld [vmem:[#allocation13 + $0xbac] sm:$0xf] }
 0x4d4   :  { %10027 = vmatmul.bf16.vlgmr.msrb.gmra.mxu2 %v19822_v6  ;;  %10046 = vmatpush.bf16.msra.mxu0 %v16731_v11  ;;  %v15131_v39 = vor.u32 %v18641_v54, %v15130_v56  ;;  %v15066_v59 = vld [vmem:[#allocation13 + $0xe28] sm:$0xf]  ;;  %v18793_v56 = vld [vmem:[#allocation13 + $0x13ac] sm:$0xf] }
 0x4d5   :  { %10071 = vmatpush.bf16.msra.mxu2 %v13727_v32  ;;  %v19025_v32 = vld [vmem:[#allocation13 + $0x1ae4] sm:$0xf0]  ;;  %10085 = vmatpush.bf16.msra.mxu3 %v14175_v30  ;;  %v13852_v54 = vld [vmem:[#allocation13 + $0x4e8] sm:$0xf0] }
 0x4d6   :  { %v16667_v48 = vor.u32 %v19025_v32, %v16666_v37  ;;  %v16602_v60 = vld [vmem:[#allocation13 + $0x1a28] sm:$0xf]  ;;  %v15772_v37 = vld [vmem:[#allocation13 + $0x13e8] sm:$0xf0] }
 0x4d7   :  { %10007 = vmatpush.bf16.msrb.mxu1 %v15195_v52  ;;  %v19009_v10 = vld [vmem:[#allocation13 + $0x1a64] sm:$0xf0]  ;;  %v20076_v47 = vpop.f32.mrf.mxu2  ;;  %v10597_v52 = vmax.f32 %v20054_v24, 0.0  ;;  %v9757_v9 = vpop.f32.mrf.mxu1 }
 0x4d8   :  { %v18625_v8 = vld [vmem:[#allocation13 + $0xe64] sm:$0xf0]  ;;  %10047 = vmatpush.bf16.msra.mxu0 %v16667_v48  ;;  %v16603_v1 = vor.u32 %v19009_v10, %v16602_v60  ;;  %v13279_v48 = vor.u32 %v18169_v33, %v13276_v36  ;;  %v9796_v60 = vpop.f32.mrf.mxu0  ;;  %v13855_v10 = vor.u32 %v18313_v44, %v13852_v54  ;;  %v18873_v9 = vld [vmem:[#allocation13 + $0x162c] sm:$0xf] }
 0x4d9   :  { %10072 = vmatpush.bf16.msra.mxu2 %v13663_v13  ;;  %10086 = vmatpush.bf16.msra.mxu3 %v14111_v38  ;;  %v18345_v13 = vld [vmem:[#allocation13 + $0x5ac] sm:$0xf]  ;;  %v15067_v5 = vor.u32 %v18625_v8, %v15066_v59  ;;  %v15002_v4 = vld [vmem:[#allocation13 + $0xda8] sm:$0xf]  ;;  %v20083_v31 = vpack.c.bf16 %v10598_v43, %v10597_v52 }
 0x4da   :  { %v16538_v58 = vld [vmem:[#allocation13 + $0x19a8] sm:$0xf]  ;;  %v13983_v29 = vor.u32 %v18345_v13, %v13980_v17  ;;  %v18777_v8 = vld [vmem:[#allocation13 + $0x132c] sm:$0xf] }
 0x4db   :  { %10008 = vmatpush.bf16.msrb.mxu1 %v15131_v39  ;;  %v18993_v51 = vld [vmem:[#allocation13 + $0x19e4] sm:$0xf0]  ;;  %v15775_v39 = vor.u32 %v18793_v56, %v15772_v37  ;;  %v15711_v19 = vor.u32 %v18777_v8, %v15708_v0  ;;  %v18521_v43 = vld [vmem:[#allocation13 + $0xb2c] sm:$0xf] }
 0x4dc   :  { %v18609_v20 = vld [vmem:[#allocation13 + $0xde4] sm:$0xf0]  ;;  %10048 = vmatpush.bf16.msra.mxu0 %v16603_v1  ;;  %v16539_v50 = vor.u32 %v18993_v51, %v16538_v58  ;;  %v18921_v51 = vld [vmem:[#allocation13 + $0x17ac] sm:$0xf] }
 0x4dd   :  { %10073 = vmatpush.bf16.msra.mxu2 %v13599_v34  ;;  %10087 = vmatpush.bf16.msra.mxu3 %v14047_v7  ;;  %v18329_v34 = vld [vmem:[#allocation13 + $0x52c] sm:$0xf]  ;;  %v15003_v53 = vor.u32 %v18609_v20, %v15002_v4  ;;  %v14938_v40 = vld [vmem:[#allocation13 + $0xd28] sm:$0xf] }
 0x4de   :  { %v16474_v3 = vld [vmem:[#allocation13 + $0x1928] sm:$0xf]  ;;  %v16284_v20 = vld [vmem:[#allocation13 + $0x17e8] sm:$0xf0] }
 0x4df   :  { %10009 = vmatpush.bf16.msrb.mxu1 %v15067_v5  ;;  %v18977_v30 = vld [vmem:[#allocation13 + $0x1964] sm:$0xf0]  ;;  %v9822_v24 = vpop.f32.mrf.mxu2  ;;  %v18297_v5 = vld [vmem:[#allocation13 + $0x42c] sm:$0xf] }
 0x4e0   :  { %v18593_v11 = vld [vmem:[#allocation13 + $0xd64] sm:$0xf0]  ;;  %10049 = vmatpush.bf16.msra.mxu0 %v16539_v50  ;;  %v16475_v32 = vor.u32 %v18977_v30, %v16474_v3  ;;  %v18905_v30 = vld [vmem:[#allocation13 + $0x172c] sm:$0xf] }
 0x4e1   :  { %10074 = vmatpush.bf16.msra.mxu2 %v13535_v41  ;;  %10088 = vmatpush.bf16.msra.mxu3 %v13983_v29  ;;  %v13919_v41 = vor.u32 %v18329_v34, %v13916_v49  ;;  %v14939_v38 = vor.u32 %v18593_v11, %v14938_v40  ;;  %v16410_v25 = vld [vmem:[#allocation13 + $0x18a8] sm:$0xf]  ;;  %v14748_v29 = vld [vmem:[#allocation13 + $0xbe8] sm:$0xf0] }
 0x4e2   :  { %v18961_v45 = vld [vmem:[#allocation13 + $0x18e4] sm:$0xf0]  ;;  %v18761_v34 = vld [vmem:[#allocation13 + $0x12ac] sm:$0xf]  ;;  %v14751_v3 = vor.u32 %v18537_v63, %v14748_v29 }
 0x4e3   :  { %10010 = vmatpush.bf16.msrb.mxu1 %v15003_v53  ;;  %v18577_v59 = vld [vmem:[#allocation13 + $0xce4] sm:$0xf0]  ;;  %v16411_v7 = vor.u32 %v18961_v45, %v16410_v25  ;;  %v15644_v49 = vld [vmem:[#allocation13 + $0x12e8] sm:$0xf0]  ;;  %v16287_v53 = vor.u32 %v18921_v51, %v16284_v20 }
 0x4e4   :  { %10050 = vmatpush.bf16.msra.mxu0 %v16475_v32  ;;  %v14810_v1 = vld [vmem:[#allocation13 + $0xc28] sm:$0xf]  ;;  %v16220_v11 = vld [vmem:[#allocation13 + $0x1768] sm:$0xf0]  ;;  %v15647_v36 = vor.u32 %v18761_v34, %v15644_v49 }
 0x4e5   :  { %10075 = vmatpush.bf16.msra.mxu2 %v13471_v12  ;;  %v14874_v12 = vld [vmem:[#allocation13 + $0xca8] sm:$0xf]  ;;  %10089 = vmatpush.bf16.msra.mxu3 %v13919_v41  ;;  %v14684_v41 = vld [vmem:[#allocation13 + $0xb68] sm:$0xf0]  ;;  %v16223_v44 = vor.u32 %v18905_v30, %v16220_v11  ;;  %v3784_v11 = vperm.slane %v20062_v61, 1 }
 0x4e6   :  { %v18561_v13 = vld [vmem:[#allocation13 + $0xc64] sm:$0xf0]  ;;  %v14875_v4 = vor.u32 %v18577_v59, %v14874_v12  ;;  %v18745_v37 = vld [vmem:[#allocation13 + $0x122c] sm:$0xf]  ;;  %v14687_v54 = vor.u32 %v18521_v43, %v14684_v41 }
 0x4e7   :  { %v16346_v17 = vld [vmem:[#allocation13 + $0x1828] sm:$0xf]  ;;  %10011 = vmatpush.bf16.msrb.mxu1 %v14939_v38  ;;  %v14811_v40 = vor.u32 %v18561_v13, %v14810_v1  ;;  %v15580_v32 = vld [vmem:[#allocation13 + $0x1268] sm:$0xf0] }
 0x4e8   :  { %v18945_v58 = vld [vmem:[#allocation13 + $0x1864] sm:$0xf0]  ;;  %10051 = vmatpush.bf16.msra.mxu0 %v16411_v7  ;;  %v18889_v38 = vld [vmem:[#allocation13 + $0x16ac] sm:$0xf]  ;;  %v15583_v45 = vor.u32 %v18745_v37, %v15580_v32 }
 0x4e9   :  { %10076 = vmatpush.bf16.msra.mxu2 %v13407_v18  ;;  %v13788_v18 = vld [vmem:[#allocation13 + $0x468] sm:$0xf0]  ;;  %v17306_v21 = vld [vmem:[#allocation13 + $0x1fa8] sm:$0xf]  ;;  %10090 = vmatpush.bf16.msra.mxu3 %v13855_v10  ;;  %v16347_v42 = vor.u32 %v18945_v58, %v16346_v17 }
 0x4ea   :  { %v13791_v22 = vor.u32 %v18297_v5, %v13788_v18  ;;  %v19185_v50 = vld [vmem:[#allocation13 + $0x1fe4] sm:$0xf0]  ;;  %v14620_v12 = vld [vmem:[#allocation13 + $0xae8] sm:$0xf0] }
 0x4eb   :  { %10012 = vmatpush.bf16.msrb.mxu1 %v14875_v4  ;;  %v17307_v33 = vor.u32 %v19185_v50, %v17306_v21  ;;  %v17242_v52 = vld [vmem:[#allocation13 + $0x1f28] sm:$0xf]  ;;  %v18729_v60 = vld [vmem:[#allocation13 + $0x11ac] sm:$0xf] }
 0x4ec   :  { %v19169_v56 = vld [vmem:[#allocation13 + $0x1f64] sm:$0xf0]  ;;  %10052 = vmatpush.bf16.msra.mxu0 %v16347_v42  ;;  %v15516_v10 = vld [vmem:[#allocation13 + $0x11e8] sm:$0xf0] }
 0x4ed   :  { %10077 = vmatpush.bf16.msra.mxu2 %v13343_v28  ;;  %v9835_v28 = vpop.f32.mrf.mxu3  ;;  %10091 = vmatpush.bf16.msra.mxu3 %v13791_v22  ;;  %v17243_v25 = vor.u32 %v19169_v56, %v17242_v52  ;;  %v17178_v24 = vld [vmem:[#allocation13 + $0x1ea8] sm:$0xf]  ;;  %v16092_v7 = vld [vmem:[#allocation13 + $0x1668] sm:$0xf0]  ;;  %v15519_v13 = vor.u32 %v18729_v60, %v15516_v10 }
 0x4ee   :  { %v19153_v59 = vld [vmem:[#allocation13 + $0x1ee4] sm:$0xf0]  ;;  %v18489_v5 = vld [vmem:[#allocation13 + $0xa2c] sm:$0xf]  ;;  %v16095_v20 = vor.u32 %v18873_v9, %v16092_v7 }
 0x4ef   :  { %10013 = vmatpush.bf16.msrb.mxu1 %v14811_v40  ;;  %10053 = vmatmul.bf16.vlgmr.msra.gmra.mxu0 %v19838_v27  ;;  %v17179_v1 = vor.u32 %v19153_v59, %v17178_v24  ;;  %v17114_v17 = vld [vmem:[#allocation13 + $0x1e28] sm:$0xf]  ;;  %v14556_v18 = vld [vmem:[#allocation13 + $0xa68] sm:$0xf0]  ;;  %v13730_v24 = vld [vmem:[#allocation13 + $0x3b0] sm:$0xf] }
 0x4f0   :  { %10097 = vmatpush.bf16.msrb.mxu0 %v14751_v3  ;;  %10092 = vmatmul.bf16.vlgmr.msra.gmra.mxu3 %v19800_v62  ;;  %v19137_v4 = vld [vmem:[#allocation13 + $0x1e64] sm:$0xf0]  ;;  %v18713_v58 = vld [vmem:[#allocation13 + $0x112c] sm:$0xf]  ;;  %v9846_v3 = vpop.f32.mrf.mxu0 }
 0x4f1   :  { %10078 = vmatpush.bf16.msra.mxu2 %v13279_v48  ;;  %10136 = vmatpush.bf16.msrb.mxu3 %v16287_v53  ;;  %v16156_v48 = vld [vmem:[#allocation13 + $0x16e8] sm:$0xf0]  ;;  %v17115_v29 = vor.u32 %v19137_v4, %v17114_v17  ;;  %v17050_v50 = vld [vmem:[#allocation13 + $0x1da8] sm:$0xf] }
 0x4f2   :  { %10014 = vmatmul.bf16.vlgmr.msrb.gmra.mxu1 %v19814_v35  ;;  %v16159_v8 = vor.u32 %v18889_v38, %v16156_v48  ;;  %v15452_v51 = vld [vmem:[#allocation13 + $0x1168] sm:$0xf0]  ;;  %v19121_v53 = vld [vmem:[#allocation13 + $0x1de4] sm:$0xf0] }
 0x4f3   :  { %10058 = vmatpush.bf16.msra.mxu1 %v17307_v33  ;;  %v18857_v21 = vld [vmem:[#allocation13 + $0x15ac] sm:$0xf]  ;;  %v15455_v22 = vor.u32 %v18713_v58, %v15452_v51  ;;  %v9807_v33 = vpop.f32.mrf.mxu1  ;;  %v17051_v56 = vor.u32 %v19121_v53, %v17050_v50  ;;  %v16986_v32 = vld [vmem:[#allocation13 + $0x1d28] sm:$0xf]  ;;  %v14242_v53 = vld [vmem:[#allocation13 + $0x7b0] sm:$0xf] }
 0x4f4   :  { %10079 = vmatmul.bf16.vlgmr.msra.gmra.mxu2 %v19805_v16  ;;  %10098 = vmatpush.bf16.msrb.mxu0 %v14687_v54  ;;  %v16028_v63 = vld [vmem:[#allocation13 + $0x15e8] sm:$0xf0]  ;;  %v9808_v41 = vadd.f32 %v9807_v33, %v20079_v23  ;;  %v19105_v38 = vld [vmem:[#allocation13 + $0x1d64] sm:$0xf0] }
 0x4f5   :  { %10123 = vmatpush.bf16.msrb.mxu2 %v15775_v39  ;;  %v18505_v39 = vld [vmem:[#allocation13 + $0xaac] sm:$0xf]  ;;  %10137 = vmatpush.bf16.msrb.mxu3 %v16223_v44  ;;  %v16031_v30 = vor.u32 %v18857_v21, %v16028_v63  ;;  %v16858_v63 = vld [vmem:[#allocation13 + $0x1c28] sm:$0xf] }
 0x4f6   :  { %v14623_v0 = vor.u32 %v18505_v39, %v14620_v12  ;;  %v18473_v34 = vld [vmem:[#allocation13 + $0x9ac] sm:$0xf]  ;;  %v18290_v39 = vld [vmem:[#allocation13 + $0x3ec] sm:$0xf0] }
 0x4f7   :  { %10059 = vmatpush.bf16.msra.mxu1 %v17243_v25  ;;  %v14492_v49 = vld [vmem:[#allocation13 + $0x9e8] sm:$0xf0]  ;;  %v9872_v42 = vpop.f32.mrf.mxu2  ;;  %v13731_v17 = vor.u32 %v18290_v39, %v13730_v24 }
 0x4f8   :  { %10099 = vmatpush.bf16.msrb.mxu0 %v14623_v0  ;;  %v18697_v28 = vld [vmem:[#allocation13 + $0x10ac] sm:$0xf]  ;;  %v9873_v12 = vadd.f32 %v9872_v42, %v3784_v11  ;;  %v16987_v0 = vor.u32 %v19105_v38, %v16986_v32  ;;  %v9848_v58 = vpop.f32.mrf.mxu0  ;;  %v18402_v38 = vld [vmem:[#allocation13 + $0x76c] sm:$0xf0] }
 0x4f9   :  { %10124 = vmatpush.bf16.msrb.mxu2 %v15711_v19  ;;  %10138 = vmatpush.bf16.msrb.mxu3 %v16159_v8  ;;  %v14559_v19 = vor.u32 %v18489_v5, %v14556_v18  ;;  %v15388_v40 = vld [vmem:[#allocation13 + $0x10e8] sm:$0xf0]  ;;  %v9885_v8 = vpop.f32.mrf.mxu3  ;;  %v16922_v5 = vld [vmem:[#allocation13 + $0x1ca8] sm:$0xf] }
 0x4fa   :  { %v18841_v52 = vld [vmem:[#allocation13 + $0x152c] sm:$0xf]  ;;  %v15391_v37 = vor.u32 %v18697_v28, %v15388_v40  ;;  %v19089_v18 = vld [vmem:[#allocation13 + $0x1ce4] sm:$0xf0]  ;;  %v18418_v28 = vld [vmem:[#allocation13 + $0x7ec] sm:$0xf0] }
 0x4fb   :  { %10060 = vmatpush.bf16.msra.mxu1 %v17179_v1  ;;  %v15964_v43 = vld [vmem:[#allocation13 + $0x1568] sm:$0xf0] }
 0x4fc   :  { %10100 = vmatpush.bf16.msrb.mxu0 %v14559_v19  ;;  %v18457_v44 = vld [vmem:[#allocation13 + $0x92c] sm:$0xf]  ;;  %v15967_v61 = vor.u32 %v18841_v52, %v15964_v43  ;;  %v9809_v19 = vpop.f32.mrf.mxu1  ;;  %v13602_v52 = vld [vmem:[#allocation13 + $0x2b0] sm:$0xf] }
 0x4fd   :  { %10125 = vmatpush.bf16.msrb.mxu2 %v15647_v36  ;;  %10139 = vmatpush.bf16.msrb.mxu3 %v16095_v20  ;;  %v14495_v36 = vor.u32 %v18473_v34, %v14492_v49  ;;  %v14428_v54 = vld [vmem:[#allocation13 + $0x968] sm:$0xf0]  ;;  %v13666_v20 = vld [vmem:[#allocation13 + $0x330] sm:$0xf]  ;;  %v16923_v49 = vor.u32 %v19089_v18, %v16922_v5 }
 0x4fe   :  { %v18681_v48 = vld [vmem:[#allocation13 + $0x102c] sm:$0xf]  ;;  %v14431_v59 = vor.u32 %v18457_v44, %v14428_v54  ;;  %v18258_v43 = vld [vmem:[#allocation13 + $0x2ec] sm:$0xf0] }
 0x4ff   :  { %10061 = vmatpush.bf16.msra.mxu1 %v17115_v29  ;;  %v15324_v25 = vld [vmem:[#allocation13 + $0x1068] sm:$0xf0]  ;;  %v19073_v29 = vld [vmem:[#allocation13 + $0x1c64] sm:$0xf0]  ;;  %v14178_v54 = vld [vmem:[#allocation13 + $0x730] sm:$0xf] }
 0x500   :  { %10101 = vmatpush.bf16.msrb.mxu0 %v14495_v36  ;;  %v18825_v23 = vld [vmem:[#allocation13 + $0x14ac] sm:$0xf]  ;;  %v15327_v9 = vor.u32 %v18681_v48, %v15324_v25  ;;  %v16859_v32 = vor.u32 %v19073_v29, %v16858_v63  ;;  %v13603_v25 = vor.u32 %v18258_v43, %v13602_v52  ;;  %v13474_v5 = vld [vmem:[#allocation13 + $0x1b0] sm:$0xf] }
 0x501   :  { %10126 = vmatpush.bf16.msrb.mxu2 %v15583_v45  ;;  %v9821_v45 = vadd.f32 %v20076_v47, %v9808_v41  ;;  %10140 = vmatpush.bf16.msrb.mxu3 %v16031_v30  ;;  %v15900_v60 = vld [vmem:[#allocation13 + $0x14e8] sm:$0xf0]  ;;  %v9874_v47 = vpop.f32.mrf.mxu2  ;;  %v18226_v18 = vld [vmem:[#allocation13 + $0x1ec] sm:$0xf0] }
 0x502   :  { %v18441_v7 = vld [vmem:[#allocation13 + $0x8ac] sm:$0xf]  ;;  %v15903_v51 = vor.u32 %v18825_v23, %v15900_v60  ;;  %v14179_v23 = vor.u32 %v18402_v38, %v14178_v54 }
 0x503   :  { %v9834_v10 = vadd.f32 %v20085_v46, %v9821_v45  ;;  %10062 = vmatpush.bf16.msra.mxu1 %v17051_v56  ;;  %v14364_v1 = vld [vmem:[#allocation13 + $0x8e8] sm:$0xf0]  ;;  %v18274_v46 = vld [vmem:[#allocation13 + $0x36c] sm:$0xf0]  ;;  %v14243_v56 = vor.u32 %v18418_v28, %v14242_v53 }
 0x504   :  { %10102 = vmatpush.bf16.msrb.mxu0 %v14431_v59  ;;  %v14367_v21 = vor.u32 %v18441_v7, %v14364_v1  ;;  %v18809_v50 = vld [vmem:[#allocation13 + $0x142c] sm:$0xf]  ;;  %v13667_v40 = vor.u32 %v18274_v46, %v13666_v20  ;;  %v18242_v59 = vld [vmem:[#allocation13 + $0x26c] sm:$0xf0] }
 0x505   :  { %10127 = vmatpush.bf16.msrb.mxu2 %v15519_v13  ;;  %v20095_v13 = vadd.f32 %v9885_v8, %v9873_v12  ;;  %v20097_v4 = vadd.f32 %v9846_v3, %v9834_v10  ;;  %10141 = vmatpush.bf16.msrb.mxu3 %v15967_v61  ;;  %v15836_v34 = vld [vmem:[#allocation13 + $0x1468] sm:$0xf0]  ;;  %v13538_v12 = vld [vmem:[#allocation13 + $0x230] sm:$0xf] }
 0x506   :  { %v14300_v42 = vld [vmem:[#allocation13 + $0x868] sm:$0xf0]  ;;  %v15839_v33 = vor.u32 %v18809_v50, %v15836_v34  ;;  %v14114_v10 = vld [vmem:[#allocation13 + $0x6b0] sm:$0xf] }
 0x507   :  { %10063 = vmatpush.bf16.msra.mxu1 %v16987_v0  ;;  %v18665_v3 = vld [vmem:[#allocation13 + $0xfac] sm:$0xf]  ;;  %v18386_v8 = vld [vmem:[#allocation13 + $0x6ec] sm:$0xf0] }
 0x508   :  { %v19049_v30 = vld [vmem:[#allocation13 + $0x1bac] sm:$0xf]  ;;  %10103 = vmatpush.bf16.msrb.mxu0 %v14367_v21  ;;  %v14115_v58 = vor.u32 %v18386_v8, %v14114_v10  ;;  %v14050_v20 = vld [vmem:[#allocation13 + $0x630] sm:$0xf]  ;;  %v13475_v21 = vor.u32 %v18226_v18, %v13474_v5 }
 0x509   :  { %10128 = vmatpush.bf16.msrb.mxu2 %v15455_v22  ;;  %v18425_v22 = vld [vmem:[#allocation13 + $0x82c] sm:$0xf]  ;;  %10142 = vmatpush.bf16.msrb.mxu3 %v15903_v51  ;;  %v18370_v46 = vld [vmem:[#allocation13 + $0x66c] sm:$0xf0] }
 0x50a   :  { %v16796_v11 = vld [vmem:[#allocation13 + $0x1be8] sm:$0xf0]  ;;  %v14303_v41 = vor.u32 %v18425_v22, %v14300_v42  ;;  %v13410_v34 = vld [vmem:[#allocation13 + $0x130] sm:$0xf]  ;;  %v14051_v42 = vor.u32 %v18370_v46, %v14050_v20 }
 0x50b   :  { %v15260_v36 = vld [vmem:[#allocation13 + $0xfe8] sm:$0xf0]  ;;  %10064 = vmatpush.bf16.msra.mxu1 %v16923_v49  ;;  %v16799_v44 = vor.u32 %v19049_v30, %v16796_v11  ;;  %v18210_v49 = vld [vmem:[#allocation13 + $0x16c] sm:$0xf0] }
 0x50c   :  { %v15263_v48 = vor.u32 %v18665_v3, %v15260_v36  ;;  %v18649_v45 = vld [vmem:[#allocation13 + $0xf2c] sm:$0xf]  ;;  %10104 = vmatpush.bf16.msrb.mxu0 %v14303_v41  ;;  %v13986_v28 = vld [vmem:[#allocation13 + $0x5b0] sm:$0xf]  ;;  %v13411_v30 = vor.u32 %v18210_v49, %v13410_v34 }
 0x50d   :  { %10129 = vmatpush.bf16.msrb.mxu2 %v15391_v37  ;;  %v9887_v37 = vpop.f32.mrf.mxu3  ;;  %v19033_v61 = vld [vmem:[#allocation13 + $0x1b2c] sm:$0xf]  ;;  %10143 = vmatpush.bf16.msrb.mxu3 %v15839_v33  ;;  %v13346_v41 = vld [vmem:[#allocation13 + $0xb0] sm:$0xf] }
 0x50e   :  { %v16732_v24 = vld [vmem:[#allocation13 + $0x1b68] sm:$0xf0]  ;;  %v9898_v37 = vpop.f32.mrf.mxu0  ;;  %v18178_v10 = vld [vmem:[#allocation13 + $0x6c] sm:$0xf0] }
 0x50f   :  { %v15196_v39 = vld [vmem:[#allocation13 + $0xf68] sm:$0xf0]  ;;  %10065 = vmatpush.bf16.msra.mxu1 %v16859_v32  ;;  %v16735_v60 = vor.u32 %v19033_v61, %v16732_v24  ;;  %10105 = vmatmul.bf16.vlgmr.msrb.gmra.mxu0 %v19818_v15  ;;  %v20106_v54 = vadd.f32 %v9898_v37, %v20095_v13  ;;  %v15778_v8 = vld [vmem:[#allocation13 + $0x13b0] sm:$0xf] }
 0x510   :  { %10149 = vmatpush.bf16.msra.mxu0 %v16799_v44  ;;  %v15199_v0 = vor.u32 %v18649_v45, %v15196_v39  ;;  %v18633_v7 = vld [vmem:[#allocation13 + $0xeac] sm:$0xf]  ;;  %10144 = vmatmul.bf16.vlgmr.msrb.gmra.mxu3 %v19832_v55  ;;  %v9859_v44 = vpop.f32.mrf.mxu1 }
 0x511   :  { %10130 = vmatpush.bf16.msrb.mxu2 %v15327_v9  ;;  %10188 = vmatpush.bf16.msra.mxu3 %v14243_v56  ;;  %v13539_v9 = vor.u32 %v18242_v59, %v13538_v12  ;;  %v19017_v1 = vld [vmem:[#allocation13 + $0x1aac] sm:$0xf]  ;;  %v18194_v56 = vld [vmem:[#allocation13 + $0xec] sm:$0xf0]  ;;  %v20109_v45 = vadd.f32 %v9859_v44, %v20097_v4 }
 0x512   :  { %v16668_v47 = vld [vmem:[#allocation13 + $0x1ae8] sm:$0xf0]  ;;  %10066 = vmatmul.bf16.vlgmr.msra.gmra.mxu1 %v19845_v14  ;;  %v13347_v24 = vor.u32 %v18194_v56, %v13346_v41  ;;  %v18546_v41 = vld [vmem:[#allocation13 + $0xbec] sm:$0xf0] }
 0x513   :  { %10110 = vmatpush.bf16.msrb.mxu1 %v15263_v48  ;;  %v16671_v51 = vor.u32 %v19017_v1, %v16668_v47  ;;  %v18617_v63 = vld [vmem:[#allocation13 + $0xe2c] sm:$0xf]  ;;  %v13922_v48 = vld [vmem:[#allocation13 + $0x530] sm:$0xf] }
 0x514   :  { %10131 = vmatmul.bf16.vlgmr.msrb.gmra.mxu2 %v19822_v6  ;;  %10150 = vmatpush.bf16.msra.mxu0 %v16735_v60  ;;  %v19001_v29 = vld [vmem:[#allocation13 + $0x1a2c] sm:$0xf]  ;;  %v13282_v60 = vld [vmem:[#allocation13 + $0x30] sm:$0xf] }
 0x515   :  { %10175 = vmatpush.bf16.msra.mxu2 %v13731_v17  ;;  %v15132_v17 = vld [vmem:[#allocation13 + $0xee8] sm:$0xf0]  ;;  %10189 = vmatpush.bf16.msra.mxu3 %v14179_v23  ;;  %v18322_v1 = vld [vmem:[#allocation13 + $0x4ec] sm:$0xf0]  ;;  %v20111_v4 = vpop.f32.mrf.mxu3 }
 0x516   :  { %v15135_v19 = vor.u32 %v18633_v7, %v15132_v17  ;;  %v16604_v22 = vld [vmem:[#allocation13 + $0x1a68] sm:$0xf0]  ;;  %v13858_v7 = vld [vmem:[#allocation13 + $0x4b0] sm:$0xf]  ;;  %v13283_v17 = vor.u32 %v18178_v10, %v13282_v60 }
 0x517   :  { %10111 = vmatpush.bf16.msrb.mxu1 %v15199_v0  ;;  %v15068_v50 = vld [vmem:[#allocation13 + $0xe68] sm:$0xf0]  ;;  %v16607_v53 = vor.u32 %v19001_v29, %v16604_v22  ;;  %v20103_v52 = vpop.f32.mrf.mxu2  ;;  %v18802_v0 = vld [vmem:[#allocation13 + $0x13ec] sm:$0xf0] }
 0x518   :  { %10151 = vmatpush.bf16.msra.mxu0 %v16671_v51  ;;  %v15071_v3 = vor.u32 %v18617_v63, %v15068_v50  ;;  %v18601_v11 = vld [vmem:[#allocation13 + $0xdac] sm:$0xf]  ;;  %v15779_v51 = vor.u32 %v18802_v0, %v15778_v8  ;;  %v15714_v63 = vld [vmem:[#allocation13 + $0x1330] sm:$0xf]  ;;  %v9861_v22 = vpop.f32.mrf.mxu1 }
 0x519   :  { %10176 = vmatpush.bf16.msra.mxu2 %v13667_v40  ;;  %10190 = vmatpush.bf16.msra.mxu3 %v14115_v58  ;;  %v18354_v40 = vld [vmem:[#allocation13 + $0x5ec] sm:$0xf0]  ;;  %v18985_v33 = vld [vmem:[#allocation13 + $0x19ac] sm:$0xf] }
 0x51a   :  { %v16540_v36 = vld [vmem:[#allocation13 + $0x19e8] sm:$0xf0]  ;;  %v13987_v32 = vor.u32 %v18354_v40, %v13986_v28  ;;  %v18786_v29 = vld [vmem:[#allocation13 + $0x136c] sm:$0xf0] }
 0x51b   :  { %10112 = vmatpush.bf16.msrb.mxu1 %v15135_v19  ;;  %v15004_v43 = vld [vmem:[#allocation13 + $0xde8] sm:$0xf0]  ;;  %v16543_v38 = vor.u32 %v18985_v33, %v16540_v36  ;;  %v9900_v19 = vpop.f32.mrf.mxu0  ;;  %v18306_v28 = vld [vmem:[#allocation13 + $0x46c] sm:$0xf0]  ;;  %v15715_v33 = vor.u32 %v18786_v29, %v15714_v63 }
 0x51c   :  { %10152 = vmatpush.bf16.msra.mxu0 %v16607_v53  ;;  %v15007_v61 = vor.u32 %v18601_v11, %v15004_v43  ;;  %v18585_v39 = vld [vmem:[#allocation13 + $0xd2c] sm:$0xf]  ;;  %v13794_v53 = vld [vmem:[#allocation13 + $0x430] sm:$0xf] }
 0x51d   :  { %10177 = vmatpush.bf16.msra.mxu2 %v13603_v25  ;;  %10191 = vmatpush.bf16.msra.mxu3 %v14051_v42  ;;  %v18338_v25 = vld [vmem:[#allocation13 + $0x56c] sm:$0xf0]  ;;  %v18969_v12 = vld [vmem:[#allocation13 + $0x192c] sm:$0xf]  ;;  %v13795_v56 = vor.u32 %v18306_v28, %v13794_v53 }
 0x51e   :  { %v16476_v59 = vld [vmem:[#allocation13 + $0x1968] sm:$0xf0]  ;;  %v13923_v13 = vor.u32 %v18338_v25, %v13922_v48  ;;  %v18930_v11 = vld [vmem:[#allocation13 + $0x17ec] sm:$0xf0]  ;;  %v9939_v25 = vpop.f32.mrf.mxu3 }
 0x51f   :  { %10113 = vmatpush.bf16.msrb.mxu1 %v15071_v3  ;;  %v14940_v23 = vld [vmem:[#allocation13 + $0xd68] sm:$0xf0]  ;;  %v9926_v58 = vpop.f32.mrf.mxu2  ;;  %v14754_v43 = vld [vmem:[#allocation13 + $0xbb0] sm:$0xf] }
 0x520   :  { %10153 = vmatpush.bf16.msra.mxu0 %v16543_v38  ;;  %v14943_v47 = vor.u32 %v18585_v39, %v14940_v23  ;;  %v18953_v5 = vld [vmem:[#allocation13 + $0x18ac] sm:$0xf]  ;;  %v18770_v44 = vld [vmem:[#allocation13 + $0x12ec] sm:$0xf0] }
 0x521   :  { %10178 = vmatpush.bf16.msra.mxu2 %v13539_v9  ;;  %10192 = vmatpush.bf16.msra.mxu3 %v13987_v32  ;;  %v16479_v9 = vor.u32 %v18969_v12, %v16476_v59  ;;  %v16412_v18 = vld [vmem:[#allocation13 + $0x18e8] sm:$0xf0]  ;;  %v15650_v32 = vld [vmem:[#allocation13 + $0x12b0] sm:$0xf] }
 0x522   :  { %v18569_v20 = vld [vmem:[#allocation13 + $0xcac] sm:$0xf]  ;;  %v16415_v50 = vor.u32 %v18953_v5, %v16412_v18  ;;  %v16226_v39 = vld [vmem:[#allocation13 + $0x1730] sm:$0xf]  ;;  %v15651_v23 = vor.u32 %v18770_v44, %v15650_v32 }
 0x523   :  { %10114 = vmatpush.bf16.msrb.mxu1 %v15007_v61  ;;  %v14876_v46 = vld [vmem:[#allocation13 + $0xce8] sm:$0xf0]  ;;  %v18914_v12 = vld [vmem:[#allocation13 + $0x176c] sm:$0xf0] }
 0x524   :  { %10154 = vmatpush.bf16.msra.mxu0 %v16479_v9  ;;  %v18553_v34 = vld [vmem:[#allocation13 + $0xc2c] sm:$0xf]  ;;  %v14879_v40 = vor.u32 %v18569_v20, %v14876_v46  ;;  %v14690_v10 = vld [vmem:[#allocation13 + $0xb30] sm:$0xf] }
 0x525   :  { %10179 = vmatpush.bf16.msra.mxu2 %v13475_v21  ;;  %10193 = vmatpush.bf16.msra.mxu3 %v13923_v13  ;;  %v13859_v21 = vor.u32 %v18322_v1, %v13858_v7  ;;  %v14812_v49 = vld [vmem:[#allocation13 + $0xc68] sm:$0xf0]  ;;  %v18530_v13 = vld [vmem:[#allocation13 + $0xb6c] sm:$0xf0]  ;;  %v16227_v7 = vor.u32 %v18914_v12, %v16226_v39 }
 0x526   :  { %v18937_v42 = vld [vmem:[#allocation13 + $0x182c] sm:$0xf]  ;;  %v14815_v61 = vor.u32 %v18553_v34, %v14812_v49  ;;  %v15586_v0 = vld [vmem:[#allocation13 + $0x1230] sm:$0xf]  ;;  %v14691_v1 = vor.u32 %v18530_v13, %v14690_v10 }
 0x527   :  { %10115 = vmatpush.bf16.msrb.mxu1 %v14943_v47  ;;  %v16348_v3 = vld [vmem:[#allocation13 + $0x1868] sm:$0xf0]  ;;  %v18754_v9 = vld [vmem:[#allocation13 + $0x126c] sm:$0xf0] }
 0x528   :  { %v19177_v36 = vld [vmem:[#allocation13 + $0x1fac] sm:$0xf]  ;;  %10155 = vmatpush.bf16.msra.mxu0 %v16415_v50  ;;  %v16351_v38 = vor.u32 %v18937_v42, %v16348_v3  ;;  %v16162_v47 = vld [vmem:[#allocation13 + $0x16b0] sm:$0xf]  ;;  %v15587_v18 = vor.u32 %v18754_v9, %v15586_v0 }
 0x529   :  { %10180 = vmatpush.bf16.msra.mxu2 %v13411_v30  ;;  %v16290_v30 = vld [vmem:[#allocation13 + $0x17b0] sm:$0xf]  ;;  %10194 = vmatpush.bf16.msra.mxu3 %v13859_v21  ;;  %v17308_v37 = vld [vmem:[#allocation13 + $0x1fe8] sm:$0xf0] }
 0x52a   :  { %v16291_v48 = vor.u32 %v18930_v11, %v16290_v30  ;;  %v17311_v59 = vor.u32 %v19177_v36, %v17308_v37  ;;  %v19161_v60 = vld [vmem:[#allocation13 + $0x1f2c] sm:$0xf]  ;;  %v18514_v20 = vld [vmem:[#allocation13 + $0xaec] sm:$0xf0] }
 0x52b   :  { %10116 = vmatpush.bf16.msrb.mxu1 %v14879_v40  ;;  %v17244_v8 = vld [vmem:[#allocation13 + $0x1f68] sm:$0xf0]  ;;  %v15522_v19 = vld [vmem:[#allocation13 + $0x11b0] sm:$0xf] }
 0x52c   :  { %10156 = vmatpush.bf16.msra.mxu0 %v16351_v38  ;;  %v17247_v5 = vor.u32 %v19161_v60, %v17244_v8  ;;  %v19145_v58 = vld [vmem:[#allocation13 + $0x1eac] sm:$0xf]  ;;  %v18738_v21 = vld [vmem:[#allocation13 + $0x11ec] sm:$0xf0] }
 0x52d   :  { %10181 = vmatpush.bf16.msra.mxu2 %v13347_v24  ;;  %v14755_v24 = vor.u32 %v18546_v41, %v14754_v43  ;;  %10195 = vmatpush.bf16.msra.mxu3 %v13795_v56  ;;  %v17180_v46 = vld [vmem:[#allocation13 + $0x1ee8] sm:$0xf0]  ;;  %v16098_v22 = vld [vmem:[#allocation13 + $0x1630] sm:$0xf]  ;;  %v15523_v49 = vor.u32 %v18738_v21, %v15522_v19 }
 0x52e   :  { %v18882_v50 = vld [vmem:[#allocation13 + $0x166c] sm:$0xf0]  ;;  %v17183_v34 = vor.u32 %v19145_v58, %v17180_v46  ;;  %v19129_v42 = vld [vmem:[#allocation13 + $0x1e2c] sm:$0xf]  ;;  %v13732_v46 = vld [vmem:[#allocation13 + $0x3f0] sm:$0xf0] }
 0x52f   :  { %10117 = vmatpush.bf16.msrb.mxu1 %v14815_v61  ;;  %10157 = vmatmul.bf16.vlgmr.msra.gmra.mxu0 %v19838_v27  ;;  %v14562_v53 = vld [vmem:[#allocation13 + $0xa30] sm:$0xf]  ;;  %v17116_v40 = vld [vmem:[#allocation13 + $0x1e68] sm:$0xf0]  ;;  %v16099_v11 = vor.u32 %v18882_v50, %v16098_v22 }
 0x530   :  { %10201 = vmatpush.bf16.msrb.mxu0 %v14755_v24  ;;  %10196 = vmatmul.bf16.vlgmr.msra.gmra.mxu3 %v19800_v62  ;;  %v18498_v28 = vld [vmem:[#allocation13 + $0xa6c] sm:$0xf0]  ;;  %v17119_v41 = vor.u32 %v19129_v42, %v17116_v40  ;;  %v19113_v37 = vld [vmem:[#allocation13 + $0x1dac] sm:$0xf]  ;;  %v9950_v24 = vpop.f32.mrf.mxu0 }
 0x531   :  { %10182 = vmatpush.bf16.msra.mxu2 %v13283_v17  ;;  %10240 = vmatpush.bf16.msrb.mxu3 %v16291_v48  ;;  %v18898_v17 = vld [vmem:[#allocation13 + $0x16ec] sm:$0xf0]  ;;  %v17052_v48 = vld [vmem:[#allocation13 + $0x1de8] sm:$0xf0] }
 0x532   :  { %10118 = vmatmul.bf16.vlgmr.msrb.gmra.mxu1 %v19814_v35  ;;  %v16163_v63 = vor.u32 %v18898_v17, %v16162_v47  ;;  %v15458_v3 = vld [vmem:[#allocation13 + $0x1130] sm:$0xf]  ;;  %v20117_v12 = vld [vmem:[#allocation14 + $0x8] sm:$0xff]  ;;  %v17055_v0 = vor.u32 %v19113_v37, %v17052_v48 }
 0x533   :  { %10162 = vmatpush.bf16.msra.mxu1 %v17311_v59  ;;  %v18722_v30 = vld [vmem:[#allocation13 + $0x116c] sm:$0xf0]  ;;  %v3785_v59 = vperm.slane %v20117_v12, 2  ;;  %v16988_v17 = vld [vmem:[#allocation13 + $0x1d68] sm:$0xf0]  ;;  %v9989_v22 = vpop.f32.mrf.mxu3 }
 0x534   :  { %10183 = vmatmul.bf16.vlgmr.msra.gmra.mxu2 %v19805_v16  ;;  %10202 = vmatpush.bf16.msrb.mxu0 %v14691_v1  ;;  %v16034_v36 = vld [vmem:[#allocation13 + $0x15b0] sm:$0xf]  ;;  %v15459_v56 = vor.u32 %v18722_v30, %v15458_v3  ;;  %v19081_v40 = vld [vmem:[#allocation13 + $0x1cac] sm:$0xf] }
 0x535   :  { %10227 = vmatpush.bf16.msrb.mxu2 %v15779_v51  ;;  %v14626_v51 = vld [vmem:[#allocation13 + $0xab0] sm:$0xf]  ;;  %10241 = vmatpush.bf16.msrb.mxu3 %v16227_v7  ;;  %v19097_v7 = vld [vmem:[#allocation13 + $0x1d2c] sm:$0xf] }
 0x536   :  { %v14627_v29 = vor.u32 %v18514_v20, %v14626_v51  ;;  %v18866_v43 = vld [vmem:[#allocation13 + $0x15ec] sm:$0xf0]  ;;  %v18282_v20 = vld [vmem:[#allocation13 + $0x3b4] sm:$0xf]  ;;  %v16991_v50 = vor.u32 %v19097_v7, %v16988_v17  ;;  %v16924_v3 = vld [vmem:[#allocation13 + $0x1ce8] sm:$0xf0] }
 0x537   :  { %10163 = vmatpush.bf16.msra.mxu1 %v17247_v5  ;;  %v14498_v32 = vld [vmem:[#allocation13 + $0x9b0] sm:$0xf]  ;;  %v9976_v38 = vpop.f32.mrf.mxu2  ;;  %v16035_v39 = vor.u32 %v18866_v43, %v16034_v36  ;;  %v18266_v36 = vld [vmem:[#allocation13 + $0x334] sm:$0xf]  ;;  %v16860_v37 = vld [vmem:[#allocation13 + $0x1c68] sm:$0xf0]  ;;  %v16927_v48 = vor.u32 %v19081_v40, %v16924_v3 }
 0x538   :  { %10203 = vmatpush.bf16.msrb.mxu0 %v14627_v29  ;;  %v18482_v44 = vld [vmem:[#allocation13 + $0x9ec] sm:$0xf0]  ;;  %v9977_v19 = vadd.f32 %v9976_v38, %v3785_v59 }
 0x539   :  { %10228 = vmatpush.bf16.msrb.mxu2 %v15715_v33  ;;  %10242 = vmatpush.bf16.msrb.mxu3 %v16163_v63  ;;  %v14563_v33 = vor.u32 %v18498_v28, %v14562_v53  ;;  %v15394_v25 = vld [vmem:[#allocation13 + $0x10b0] sm:$0xf]  ;;  %v14499_v60 = vor.u32 %v18482_v44, %v14498_v32  ;;  %v13735_v28 = vor.u32 %v18282_v20, %v13732_v46 }
 0x53a   :  { %v18706_v61 = vld [vmem:[#allocation13 + $0x10ec] sm:$0xf0]  ;;  %v20123_v53 = vadd.f32 %v9989_v22, %v9977_v19 }
 0x53b   :  { %10164 = vmatpush.bf16.msra.mxu1 %v17183_v34  ;;  %v15970_v10 = vld [vmem:[#allocation13 + $0x1530] sm:$0xf]  ;;  %v15395_v9 = vor.u32 %v18706_v61, %v15394_v25  ;;  %v18410_v61 = vld [vmem:[#allocation13 + $0x7b4] sm:$0xf] }
 0x53c   :  { %10204 = vmatpush.bf16.msrb.mxu0 %v14563_v33  ;;  %v18850_v13 = vld [vmem:[#allocation13 + $0x156c] sm:$0xf0] }
 0x53d   :  { %10229 = vmatpush.bf16.msrb.mxu2 %v15651_v23  ;;  %10243 = vmatpush.bf16.msrb.mxu3 %v16099_v11  ;;  %v9911_v23 = vpop.f32.mrf.mxu1  ;;  %v14434_v1 = vld [vmem:[#allocation13 + $0x930] sm:$0xf]  ;;  %v15971_v51 = vor.u32 %v18850_v13, %v15970_v10  ;;  %v9952_v11 = vpop.f32.mrf.mxu0 }
 0x53e   :  { %v9912_v8 = vadd.f32 %v9911_v23, %v20106_v54  ;;  %v18466_v47 = vld [vmem:[#allocation13 + $0x96c] sm:$0xf0]  ;;  %v18218_v11 = vld [vmem:[#allocation13 + $0x1b4] sm:$0xf] }
 0x53f   :  { %10165 = vmatpush.bf16.msra.mxu1 %v17119_v41  ;;  %v15330_v5 = vld [vmem:[#allocation13 + $0x1030] sm:$0xf]  ;;  %v14435_v21 = vor.u32 %v18466_v47, %v14434_v1  ;;  %v9991_v1 = vpop.f32.mrf.mxu3 }
 0x540   :  { %v9925_v58 = vadd.f32 %v20103_v52, %v9912_v8  ;;  %10205 = vmatpush.bf16.msrb.mxu0 %v14499_v60  ;;  %v15906_v54 = vld [vmem:[#allocation13 + $0x14b0] sm:$0xf]  ;;  %v9978_v52 = vpop.f32.mrf.mxu2  ;;  %v18250_v8 = vld [vmem:[#allocation13 + $0x2b4] sm:$0xf] }
 0x541   :  { %10230 = vmatpush.bf16.msrb.mxu2 %v15587_v18  ;;  %v18690_v18 = vld [vmem:[#allocation13 + $0x106c] sm:$0xf0]  ;;  %10244 = vmatpush.bf16.msrb.mxu3 %v16035_v39  ;;  %v18186_v1 = vld [vmem:[#allocation13 + $0xb4] sm:$0xf] }
 0x542   :  { %v18834_v63 = vld [vmem:[#allocation13 + $0x14ec] sm:$0xf0]  ;;  %v9938_v29 = vadd.f32 %v20111_v4, %v9925_v58  ;;  %v15331_v34 = vor.u32 %v18690_v18, %v15330_v5  ;;  %v13668_v4 = vld [vmem:[#allocation13 + $0x370] sm:$0xf0] }
 0x543   :  { %10166 = vmatpush.bf16.msra.mxu1 %v17055_v0  ;;  %v18450_v42 = vld [vmem:[#allocation13 + $0x8ec] sm:$0xf0]  ;;  %v15907_v33 = vor.u32 %v18834_v63, %v15906_v54  ;;  %v13671_v39 = vor.u32 %v18266_v36, %v13668_v4  ;;  %v13604_v0 = vld [vmem:[#allocation13 + $0x2f0] sm:$0xf0] }
 0x544   :  { %v20125_v30 = vadd.f32 %v9950_v24, %v9938_v29  ;;  %10206 = vmatpush.bf16.msrb.mxu0 %v14435_v21  ;;  %v14306_v32 = vld [vmem:[#allocation13 + $0x830] sm:$0xf]  ;;  %v14244_v24 = vld [vmem:[#allocation13 + $0x7f0] sm:$0xf0] }
 0x545   :  { %10231 = vmatpush.bf16.msrb.mxu2 %v15523_v49  ;;  %v14370_v49 = vld [vmem:[#allocation13 + $0x8b0] sm:$0xf]  ;;  %10245 = vmatpush.bf16.msrb.mxu3 %v15971_v51  ;;  %v9913_v43 = vpop.f32.mrf.mxu1  ;;  %v14247_v7 = vor.u32 %v18410_v61, %v14244_v24  ;;  %v18394_v5 = vld [vmem:[#allocation13 + $0x734] sm:$0xf]  ;;  %v13607_v51 = vor.u32 %v18250_v8, %v13604_v0 }
 0x546   :  { %v14371_v41 = vor.u32 %v18450_v42, %v14370_v49  ;;  %v15842_v44 = vld [vmem:[#allocation13 + $0x1430] sm:$0xf]  ;;  %v14180_v18 = vld [vmem:[#allocation13 + $0x770] sm:$0xf0] }
 0x547   :  { %v18818_v38 = vld [vmem:[#allocation13 + $0x146c] sm:$0xf0]  ;;  %10167 = vmatpush.bf16.msra.mxu1 %v16991_v50  ;;  %v18234_v54 = vld [vmem:[#allocation13 + $0x234] sm:$0xf]  ;;  %v14183_v29 = vor.u32 %v18394_v5, %v14180_v18 }
 0x548   :  { %v18434_v25 = vld [vmem:[#allocation13 + $0x86c] sm:$0xf0]  ;;  %v15843_v10 = vor.u32 %v18818_v38, %v15842_v44  ;;  %10207 = vmatpush.bf16.msrb.mxu0 %v14371_v41  ;;  %v13540_v63 = vld [vmem:[#allocation13 + $0x270] sm:$0xf0] }
 0x549   :  { %10232 = vmatpush.bf16.msrb.mxu2 %v15459_v56  ;;  %v19065_v56 = vld [vmem:[#allocation13 + $0x1c2c] sm:$0xf]  ;;  %v15266_v59 = vld [vmem:[#allocation13 + $0xfb0] sm:$0xf]  ;;  %10246 = vmatpush.bf16.msrb.mxu3 %v15907_v33  ;;  %v18378_v50 = vld [vmem:[#allocation13 + $0x6b4] sm:$0xf]  ;;  %v13543_v42 = vor.u32 %v18234_v54, %v13540_v63 }
 0x54a   :  { %v16802_v23 = vld [vmem:[#allocation13 + $0x1bb0] sm:$0xf]  ;;  %v16863_v47 = vor.u32 %v19065_v56, %v16860_v37  ;;  %v13476_v33 = vld [vmem:[#allocation13 + $0x1f0] sm:$0xf0] }
 0x54b   :  { %v19058_v60 = vld [vmem:[#allocation13 + $0x1bec] sm:$0xf0]  ;;  %10168 = vmatpush.bf16.msra.mxu1 %v16927_v48  ;;  %v18362_v43 = vld [vmem:[#allocation13 + $0x634] sm:$0xf]  ;;  %v13479_v37 = vor.u32 %v18218_v11, %v13476_v33 }
 0x54c   :  { %v18674_v13 = vld [vmem:[#allocation13 + $0xfec] sm:$0xf0]  ;;  %v16803_v17 = vor.u32 %v19058_v60, %v16802_v23  ;;  %v14052_v41 = vld [vmem:[#allocation13 + $0x670] sm:$0xf0] }
 0x54d   :  { %10233 = vmatpush.bf16.msrb.mxu2 %v15395_v9  ;;  %v14307_v9 = vor.u32 %v18434_v25, %v14306_v32  ;;  %v15267_v58 = vor.u32 %v18674_v13, %v15266_v59  ;;  %v15202_v20 = vld [vmem:[#allocation13 + $0xf30] sm:$0xf]  ;;  %10247 = vmatpush.bf16.msrb.mxu3 %v15843_v10  ;;  %v18202_v25 = vld [vmem:[#allocation13 + $0x134] sm:$0xf]  ;;  %v14055_v24 = vor.u32 %v18362_v43, %v14052_v41 }
 0x54e   :  { %v16738_v46 = vld [vmem:[#allocation13 + $0x1b30] sm:$0xf]  ;;  %v13412_v61 = vld [vmem:[#allocation13 + $0x170] sm:$0xf0] }
 0x54f   :  { %v19042_v19 = vld [vmem:[#allocation13 + $0x1b6c] sm:$0xf0]  ;;  %10208 = vmatpush.bf16.msrb.mxu0 %v14307_v9  ;;  %10169 = vmatpush.bf16.msra.mxu1 %v16863_v47  ;;  %v18346_v59 = vld [vmem:[#allocation13 + $0x5b4] sm:$0xf]  ;;  %v13415_v10 = vor.u32 %v18202_v25, %v13412_v61  ;;  %v9963_v18 = vpop.f32.mrf.mxu1 }
 0x550   :  { %v18658_v21 = vld [vmem:[#allocation13 + $0xf6c] sm:$0xf0]  ;;  %v16739_v22 = vor.u32 %v19042_v19, %v16738_v46  ;;  %10248 = vmatmul.bf16.vlgmr.msrb.gmra.mxu3 %v19832_v55  ;;  %v13988_v23 = vld [vmem:[#allocation13 + $0x5f0] sm:$0xf0]  ;;  %v9964_v19 = vadd.f32 %v9963_v18, %v20125_v30 }
 0x551   :  { %10234 = vmatpush.bf16.msrb.mxu2 %v15331_v34  ;;  %10292 = vmatpush.bf16.msra.mxu3 %v14247_v7  ;;  %v14116_v34 = vld [vmem:[#allocation13 + $0x6f0] sm:$0xf0]  ;;  %v15203_v49 = vor.u32 %v18658_v21, %v15202_v20  ;;  %v15138_v52 = vld [vmem:[#allocation13 + $0xeb0] sm:$0xf]  ;;  %v13991_v5 = vor.u32 %v18346_v59, %v13988_v23 }
 0x552   :  { %v19026_v40 = vld [vmem:[#allocation13 + $0x1aec] sm:$0xf0]  ;;  %10209 = vmatmul.bf16.vlgmr.msrb.gmra.mxu0 %v19818_v15  ;;  %10170 = vmatmul.bf16.vlgmr.msra.gmra.mxu1 %v19845_v14  ;;  %v14119_v36 = vor.u32 %v18378_v50, %v14116_v34  ;;  %v13348_v47 = vld [vmem:[#allocation13 + $0xf0] sm:$0xf0] }
 0x553   :  { %10253 = vmatpush.bf16.msra.mxu0 %v16803_v17  ;;  %10214 = vmatpush.bf16.msrb.mxu1 %v15267_v58  ;;  %v18642_v3 = vld [vmem:[#allocation13 + $0xeec] sm:$0xf0]  ;;  %v10002_v17 = vpop.f32.mrf.mxu0  ;;  %v18330_v20 = vld [vmem:[#allocation13 + $0x534] sm:$0xf]  ;;  %v13351_v54 = vor.u32 %v18186_v1, %v13348_v47 }
 0x554   :  { %10235 = vmatmul.bf16.vlgmr.msrb.gmra.mxu2 %v19822_v6  ;;  %v15139_v56 = vor.u32 %v18642_v3, %v15138_v52  ;;  %v15074_v32 = vld [vmem:[#allocation13 + $0xe30] sm:$0xf]  ;;  %v20134_v58 = vadd.f32 %v10002_v17, %v20123_v53  ;;  %v13924_v46 = vld [vmem:[#allocation13 + $0x570] sm:$0xf0]  ;;  %v10600_v53 = vmax.f32 %v9964_v19, 0.0 }
 0x555   :  { %10279 = vmatpush.bf16.msra.mxu2 %v13735_v28  ;;  %v16674_v28 = vld [vmem:[#allocation13 + $0x1ab0] sm:$0xf]  ;;  %10293 = vmatpush.bf16.msra.mxu3 %v14183_v29  ;;  %v18170_v34 = vld [vmem:[#allocation13 + $0x34] sm:$0xf]  ;;  %v13927_v52 = vor.u32 %v18330_v20, %v13924_v46 }
 0x556   :  { %v16675_v4 = vor.u32 %v19026_v40, %v16674_v28  ;;  %v16610_v44 = vld [vmem:[#allocation13 + $0x1a30] sm:$0xf]  ;;  %v18794_v28 = vld [vmem:[#allocation13 + $0x13b4] sm:$0xf] }
 0x557   :  { %10254 = vmatpush.bf16.msra.mxu0 %v16739_v22  ;;  %10215 = vmatpush.bf16.msrb.mxu1 %v15203_v49  ;;  %v19010_v38 = vld [vmem:[#allocation13 + $0x1a6c] sm:$0xf0]  ;;  %v20131_v9 = vpop.f32.mrf.mxu2  ;;  %v13284_v49 = vld [vmem:[#allocation13 + $0x70] sm:$0xf0] }
 0x558   :  { %v18626_v48 = vld [vmem:[#allocation13 + $0xe6c] sm:$0xf0]  ;;  %v15780_v40 = vld [vmem:[#allocation13 + $0x13f0] sm:$0xf0]  ;;  %v13287_v43 = vor.u32 %v18170_v34, %v13284_v49 }
 0x559   :  { %10280 = vmatpush.bf16.msra.mxu2 %v13671_v39  ;;  %10294 = vmatpush.bf16.msra.mxu3 %v14119_v36  ;;  %v16611_v39 = vor.u32 %v19010_v38, %v16610_v44  ;;  %v15075_v60 = vor.u32 %v18626_v48, %v15074_v32  ;;  %v15010_v13 = vld [vmem:[#allocation13 + $0xdb0] sm:$0xf]  ;;  %v18314_v30 = vld [vmem:[#allocation13 + $0x4b4] sm:$0xf]  ;;  %v20140_v36 = vpop.f32.mrf.mxu3 }
 0x55a   :  { %v16546_v8 = vld [vmem:[#allocation13 + $0x19b0] sm:$0xf]  ;;  %v13860_v11 = vld [vmem:[#allocation13 + $0x4f0] sm:$0xf0] }
 0x55b   :  { %10255 = vmatpush.bf16.msra.mxu0 %v16675_v4  ;;  %10216 = vmatpush.bf16.msrb.mxu1 %v15139_v56  ;;  %v18994_v0 = vld [vmem:[#allocation13 + $0x19ec] sm:$0xf0]  ;;  %v10004_v38 = vpop.f32.mrf.mxu0  ;;  %v13863_v48 = vor.u32 %v18314_v30, %v13860_v11  ;;  %v18778_v25 = vld [vmem:[#allocation13 + $0x1334] sm:$0xf] }
 0x55c   :  { %v18610_v7 = vld [vmem:[#allocation13 + $0xdec] sm:$0xf0]  ;;  %v15716_v61 = vld [vmem:[#allocation13 + $0x1370] sm:$0xf0] }
 0x55d   :  { %10281 = vmatpush.bf16.msra.mxu2 %v13607_v51  ;;  %10295 = vmatpush.bf16.msra.mxu3 %v14055_v24  ;;  %v16547_v51 = vor.u32 %v18994_v0, %v16546_v8  ;;  %v15011_v21 = vor.u32 %v18610_v7, %v15010_v13  ;;  %v14946_v63 = vld [vmem:[#allocation13 + $0xd30] sm:$0xf]  ;;  %v9965_v24 = vpop.f32.mrf.mxu1  ;;  %v13796_v13 = vld [vmem:[#allocation13 + $0x470] sm:$0xf0]  ;;  %v15719_v47 = vor.u32 %v18778_v25, %v15716_v61 }
 0x55e   :  { %v16482_v29 = vld [vmem:[#allocation13 + $0x1930] sm:$0xf]  ;;  %v18922_v7 = vld [vmem:[#allocation13 + $0x17b4] sm:$0xf] }
 0x55f   :  { %10256 = vmatpush.bf16.msra.mxu0 %v16611_v39  ;;  %10217 = vmatpush.bf16.msrb.mxu1 %v15075_v60  ;;  %v18978_v22 = vld [vmem:[#allocation13 + $0x196c] sm:$0xf0]  ;;  %v16292_v1 = vld [vmem:[#allocation13 + $0x17f0] sm:$0xf0] }
 0x560   :  { %v18594_v50 = vld [vmem:[#allocation13 + $0xd6c] sm:$0xf0]  ;;  %v16483_v3 = vor.u32 %v18978_v22, %v16482_v29  ;;  %v14756_v18 = vld [vmem:[#allocation13 + $0xbf0] sm:$0xf0] }
 0x561   :  { %10282 = vmatpush.bf16.msra.mxu2 %v13543_v42  ;;  %v10599_v42 = vmax.f32 %v20109_v45, 0.0  ;;  %10296 = vmatpush.bf16.msra.mxu3 %v13991_v5  ;;  %v14947_v4 = vor.u32 %v18594_v50, %v14946_v63  ;;  %v16418_v41 = vld [vmem:[#allocation13 + $0x18b0] sm:$0xf]  ;;  %v10030_v45 = vpop.f32.mrf.mxu2  ;;  %v18538_v5 = vld [vmem:[#allocation13 + $0xbb4] sm:$0xf]  ;;  %v10043_v63 = vpop.f32.mrf.mxu3 }
 0x562   :  { %v18962_v56 = vld [vmem:[#allocation13 + $0x18ec] sm:$0xf0]  ;;  %v18762_v46 = vld [vmem:[#allocation13 + $0x12b4] sm:$0xf]  ;;  %v14759_v22 = vor.u32 %v18538_v5, %v14756_v18 }
 0x563   :  { %10257 = vmatpush.bf16.msra.mxu0 %v16547_v51  ;;  %v20138_v33 = vpack.c.bf16 %v10600_v53, %v10599_v42  ;;  %10218 = vmatpush.bf16.msrb.mxu1 %v15011_v21  ;;  %v14882_v32 = vld [vmem:[#allocation13 + $0xcb0] sm:$0xf]  ;;  %v16419_v39 = vor.u32 %v18962_v56, %v16418_v41  ;;  %v15652_v19 = vld [vmem:[#allocation13 + $0x12f0] sm:$0xf0] }
 0x564   :  { %v18578_v44 = vld [vmem:[#allocation13 + $0xcec] sm:$0xf0]  ;;  %v18906_v50 = vld [vmem:[#allocation13 + $0x1734] sm:$0xf]  ;;  %v15655_v42 = vor.u32 %v18762_v46, %v15652_v19 }
 0x565   :  { %10283 = vmatpush.bf16.msra.mxu2 %v13479_v37  ;;  %v15783_v37 = vor.u32 %v18794_v28, %v15780_v40  ;;  %10297 = vmatpush.bf16.msra.mxu3 %v13927_v52  ;;  %v14818_v59 = vld [vmem:[#allocation13 + $0xc30] sm:$0xf]  ;;  %v14883_v8 = vor.u32 %v18578_v44, %v14882_v32  ;;  %v16228_v34 = vld [vmem:[#allocation13 + $0x1770] sm:$0xf0] }
 0x566   :  { %v18562_v23 = vld [vmem:[#allocation13 + $0xc6c] sm:$0xf0]  ;;  %v18522_v52 = vld [vmem:[#allocation13 + $0xb34] sm:$0xf]  ;;  %v16231_v11 = vor.u32 %v18906_v50, %v16228_v34 }
 0x567   :  { %10258 = vmatpush.bf16.msra.mxu0 %v16483_v3  ;;  %v16354_v60 = vld [vmem:[#allocation13 + $0x1830] sm:$0xf]  ;;  %10219 = vmatpush.bf16.msrb.mxu1 %v14947_v4  ;;  %v14819_v29 = vor.u32 %v18562_v23, %v14818_v59  ;;  %v14692_v28 = vld [vmem:[#allocation13 + $0xb70] sm:$0xf0] }
 0x568   :  { %v18946_v0 = vld [vmem:[#allocation13 + $0x186c] sm:$0xf0]  ;;  %v18746_v3 = vld [vmem:[#allocation13 + $0x1234] sm:$0xf]  ;;  %v14695_v4 = vor.u32 %v18522_v52, %v14692_v28 }
 0x569   :  { %10284 = vmatpush.bf16.msra.mxu2 %v13415_v10  ;;  %v18298_v10 = vld [vmem:[#allocation13 + $0x434] sm:$0xf]  ;;  %v17314_v17 = vld [vmem:[#allocation13 + $0x1fb0] sm:$0xf]  ;;  %10298 = vmatpush.bf16.msra.mxu3 %v13863_v48  ;;  %v16355_v21 = vor.u32 %v18946_v0, %v16354_v60 }
 0x56a   :  { %v13799_v51 = vor.u32 %v18298_v10, %v13796_v13  ;;  %v19186_v20 = vld [vmem:[#allocation13 + $0x1fec] sm:$0xf0]  ;;  %v15588_v30 = vld [vmem:[#allocation13 + $0x1270] sm:$0xf0] }
 0x56b   :  { %10259 = vmatpush.bf16.msra.mxu0 %v16419_v39  ;;  %10220 = vmatpush.bf16.msrb.mxu1 %v14883_v8  ;;  %v17315_v49 = vor.u32 %v19186_v20, %v17314_v17  ;;  %v17250_v53 = vld [vmem:[#allocation13 + $0x1f30] sm:$0xf]  ;;  %v16164_v41 = vld [vmem:[#allocation13 + $0x16f0] sm:$0xf0]  ;;  %v15591_v45 = vor.u32 %v18746_v3, %v15588_v30 }
 0x56c   :  { %v19170_v40 = vld [vmem:[#allocation13 + $0x1f6c] sm:$0xf0]  ;;  %v18506_v32 = vld [vmem:[#allocation13 + $0xab4] sm:$0xf]  ;;  %v10054_v50 = vpop.f32.mrf.mxu0 }
 0x56d   :  { %10285 = vmatpush.bf16.msra.mxu2 %v13351_v54  ;;  %v16295_v54 = vor.u32 %v18922_v7, %v16292_v1  ;;  %10299 = vmatpush.bf16.msra.mxu3 %v13799_v51  ;;  %v17251_v56 = vor.u32 %v19170_v40, %v17250_v53  ;;  %v14628_v44 = vld [vmem:[#allocation13 + $0xaf0] sm:$0xf0]  ;;  %v19154_v38 = vld [vmem:[#allocation13 + $0x1eec] sm:$0xf0] }
 0x56e   :  { %v18730_v48 = vld [vmem:[#allocation13 + $0x11b4] sm:$0xf]  ;;  %v14631_v24 = vor.u32 %v18506_v32, %v14628_v44  ;;  %v17122_v10 = vld [vmem:[#allocation13 + $0x1e30] sm:$0xf]  ;;  %v13738_v32 = vld [vmem:[#allocation13 + $0x3b8] sm:$0xf] }
 0x56f   :  { %10260 = vmatpush.bf16.msra.mxu0 %v16355_v21  ;;  %10221 = vmatpush.bf16.msrb.mxu1 %v14819_v29  ;;  %v15524_v25 = vld [vmem:[#allocation13 + $0x11f0] sm:$0xf0]  ;;  %v19138_v0 = vld [vmem:[#allocation13 + $0x1e6c] sm:$0xf0]  ;;  %v18291_v44 = vld [vmem:[#allocation13 + $0x3f4] sm:$0xf0] }
 0x570   :  { %10300 = vmatmul.bf16.vlgmr.msra.gmra.mxu3 %v19800_v62  ;;  %v18874_v39 = vld [vmem:[#allocation13 + $0x1634] sm:$0xf]  ;;  %v15527_v60 = vor.u32 %v18730_v48, %v15524_v25  ;;  %v17123_v51 = vor.u32 %v19138_v0, %v17122_v10  ;;  %v17058_v46 = vld [vmem:[#allocation13 + $0x1db0] sm:$0xf] }
 0x571   :  { %10286 = vmatpush.bf16.msra.mxu2 %v13287_v43  ;;  %10344 = vmatpush.bf16.msrb.mxu3 %v16295_v54  ;;  %v18890_v43 = vld [vmem:[#allocation13 + $0x16b4] sm:$0xf]  ;;  %v19122_v63 = vld [vmem:[#allocation13 + $0x1dec] sm:$0xf0] }
 0x572   :  { %10261 = vmatmul.bf16.vlgmr.msra.gmra.mxu0 %v19838_v27  ;;  %10222 = vmatmul.bf16.vlgmr.msrb.gmra.mxu1 %v19814_v35  ;;  %v16167_v61 = vor.u32 %v18890_v43, %v16164_v41  ;;  %v16100_v59 = vld [vmem:[#allocation13 + $0x1670] sm:$0xf0]  ;;  %v17059_v3 = vor.u32 %v19122_v63, %v17058_v46  ;;  %v19106_v41 = vld [vmem:[#allocation13 + $0x1d6c] sm:$0xf0] }
 0x573   :  { %10305 = vmatpush.bf16.msrb.mxu0 %v14759_v22  ;;  %10266 = vmatpush.bf16.msra.mxu1 %v17315_v49  ;;  %v18490_v13 = vld [vmem:[#allocation13 + $0xa34] sm:$0xf]  ;;  %v3786_v49 = vperm.slane %v20117_v12, 3  ;;  %v19090_v0 = vld [vmem:[#allocation13 + $0x1cec] sm:$0xf0] }
 0x574   :  { %10287 = vmatmul.bf16.vlgmr.msra.gmra.mxu2 %v19805_v16  ;;  %v14564_v8 = vld [vmem:[#allocation13 + $0xa70] sm:$0xf0] }
 0x575   :  { %10331 = vmatpush.bf16.msrb.mxu2 %v15783_v37  ;;  %v17186_v37 = vld [vmem:[#allocation13 + $0x1eb0] sm:$0xf]  ;;  %10345 = vmatpush.bf16.msrb.mxu3 %v16231_v11  ;;  %v18714_v7 = vld [vmem:[#allocation13 + $0x1134] sm:$0xf]  ;;  %v14567_v17 = vor.u32 %v18490_v13, %v14564_v8  ;;  %v13739_v13 = vor.u32 %v18291_v44, %v13738_v32 }
 0x576   :  { %v17187_v23 = vor.u32 %v19154_v38, %v17186_v37  ;;  %v15460_v1 = vld [vmem:[#allocation13 + $0x1170] sm:$0xf0]  ;;  %v16994_v11 = vld [vmem:[#allocation13 + $0x1d30] sm:$0xf] }
 0x577   :  { %10306 = vmatpush.bf16.msrb.mxu0 %v14695_v4  ;;  %10267 = vmatpush.bf16.msra.mxu1 %v17251_v56  ;;  %v18858_v5 = vld [vmem:[#allocation13 + $0x15b4] sm:$0xf]  ;;  %v15463_v20 = vor.u32 %v18714_v7, %v15460_v1  ;;  %v10080_v54 = vpop.f32.mrf.mxu2  ;;  %v16930_v8 = vld [vmem:[#allocation13 + $0x1cb0] sm:$0xf]  ;;  %v10056_v1 = vpop.f32.mrf.mxu0 }
 0x578   :  { %v16036_v18 = vld [vmem:[#allocation13 + $0x15f0] sm:$0xf0]  ;;  %v10081_v38 = vadd.f32 %v10080_v54, %v3786_v49  ;;  %v16931_v54 = vor.u32 %v19090_v0, %v16930_v8  ;;  %v13482_v0 = vld [vmem:[#allocation13 + $0x1b8] sm:$0xf] }
 0x579   :  { %10332 = vmatpush.bf16.msrb.mxu2 %v15719_v47  ;;  %10346 = vmatpush.bf16.msrb.mxu3 %v16167_v61  ;;  %v16103_v47 = vor.u32 %v18874_v39, %v16100_v59  ;;  %v18474_v19 = vld [vmem:[#allocation13 + $0x9b4] sm:$0xf]  ;;  %v16039_v34 = vor.u32 %v18858_v5, %v16036_v18  ;;  %v16995_v39 = vor.u32 %v19106_v41, %v16994_v11  ;;  %v14186_v41 = vld [vmem:[#allocation13 + $0x738] sm:$0xf] }
 0x57a   :  { %v14500_v21 = vld [vmem:[#allocation13 + $0x9f0] sm:$0xf0]  ;;  %v18227_v1 = vld [vmem:[#allocation13 + $0x1f4] sm:$0xf0] }
 0x57b   :  { %10307 = vmatpush.bf16.msrb.mxu0 %v14631_v24  ;;  %10268 = vmatpush.bf16.msra.mxu1 %v17187_v23  ;;  %v18698_v29 = vld [vmem:[#allocation13 + $0x10b4] sm:$0xf]  ;;  %v14503_v53 = vor.u32 %v18474_v19, %v14500_v21  ;;  %v10093_v24 = vpop.f32.mrf.mxu3 }
 0x57c   :  { %v15396_v22 = vld [vmem:[#allocation13 + $0x10f0] sm:$0xf0]  ;;  %v20150_v10 = vadd.f32 %v10093_v24, %v10081_v38  ;;  %v14122_v24 = vld [vmem:[#allocation13 + $0x6b8] sm:$0xf] }
 0x57d   :  { %10333 = vmatpush.bf16.msrb.mxu2 %v15655_v42  ;;  %10347 = vmatpush.bf16.msrb.mxu3 %v16103_v47  ;;  %v10015_v42 = vpop.f32.mrf.mxu1  ;;  %v18842_v52 = vld [vmem:[#allocation13 + $0x1534] sm:$0xf]  ;;  %v15399_v30 = vor.u32 %v18698_v29, %v15396_v22  ;;  %v14250_v29 = vld [vmem:[#allocation13 + $0x7b8] sm:$0xf] }
 0x57e   :  { %v15972_v28 = vld [vmem:[#allocation13 + $0x1570] sm:$0xf0]  ;;  %v10016_v40 = vadd.f32 %v10015_v42, %v20134_v58  ;;  %v18419_v22 = vld [vmem:[#allocation13 + $0x7f4] sm:$0xf0] }
 0x57f   :  { %10308 = vmatpush.bf16.msrb.mxu0 %v14567_v17  ;;  %10269 = vmatpush.bf16.msra.mxu1 %v17123_v51  ;;  %v18458_v4 = vld [vmem:[#allocation13 + $0x934] sm:$0xf]  ;;  %v15975_v12 = vor.u32 %v18842_v52, %v15972_v28  ;;  %v13674_v17 = vld [vmem:[#allocation13 + $0x338] sm:$0xf]  ;;  %v16866_v51 = vld [vmem:[#allocation13 + $0x1c30] sm:$0xf] }
 0x580   :  { %v14436_v43 = vld [vmem:[#allocation13 + $0x970] sm:$0xf0]  ;;  %v10029_v37 = vadd.f32 %v20131_v9, %v10016_v40  ;;  %v10082_v9 = vpop.f32.mrf.mxu2  ;;  %v13610_v28 = vld [vmem:[#allocation13 + $0x2b8] sm:$0xf] }
 0x581   :  { %10334 = vmatpush.bf16.msrb.mxu2 %v15591_v45  ;;  %v18682_v56 = vld [vmem:[#allocation13 + $0x1034] sm:$0xf]  ;;  %10348 = vmatpush.bf16.msrb.mxu3 %v16039_v34  ;;  %v14439_v48 = vor.u32 %v18458_v4, %v14436_v43  ;;  %v18259_v40 = vld [vmem:[#allocation13 + $0x2f4] sm:$0xf0] }
 0x582   :  { %v15332_v45 = vld [vmem:[#allocation13 + $0x1070] sm:$0xf0]  ;;  %v10042_v61 = vadd.f32 %v20140_v36, %v10029_v37  ;;  %v18275_v36 = vld [vmem:[#allocation13 + $0x374] sm:$0xf0]  ;;  %v13611_v37 = vor.u32 %v18259_v40, %v13610_v28 }
 0x583   :  { %10309 = vmatpush.bf16.msrb.mxu0 %v14503_v53  ;;  %v18826_v58 = vld [vmem:[#allocation13 + $0x14b4] sm:$0xf]  ;;  %10270 = vmatpush.bf16.msra.mxu1 %v17059_v3  ;;  %v15335_v59 = vor.u32 %v18682_v56, %v15332_v45  ;;  %v10095_v11 = vpop.f32.mrf.mxu3  ;;  %v18403_v56 = vld [vmem:[#allocation13 + $0x774] sm:$0xf0] }
 0x584   :  { %v15908_v25 = vld [vmem:[#allocation13 + $0x14f0] sm:$0xf0]  ;;  %v20152_v7 = vadd.f32 %v10054_v50, %v10042_v61  ;;  %v13675_v50 = vor.u32 %v18275_v36, %v13674_v17  ;;  %v14058_v36 = vld [vmem:[#allocation13 + $0x638] sm:$0xf] }
 0x585   :  { %10335 = vmatpush.bf16.msrb.mxu2 %v15527_v60  ;;  %v18442_v23 = vld [vmem:[#allocation13 + $0x8b4] sm:$0xf]  ;;  %10349 = vmatpush.bf16.msrb.mxu3 %v15975_v12  ;;  %v15911_v47 = vor.u32 %v18826_v58, %v15908_v25  ;;  %v10017_v5 = vpop.f32.mrf.mxu1  ;;  %v18243_v58 = vld [vmem:[#allocation13 + $0x274] sm:$0xf0]  ;;  %v14187_v25 = vor.u32 %v18403_v56, %v14186_v41 }
 0x586   :  { %v14372_v60 = vld [vmem:[#allocation13 + $0x8f0] sm:$0xf0]  ;;  %v18371_v5 = vld [vmem:[#allocation13 + $0x674] sm:$0xf0] }
 0x587   :  { %10310 = vmatpush.bf16.msrb.mxu0 %v14439_v48  ;;  %v14375_v18 = vor.u32 %v18442_v23, %v14372_v60  ;;  %v18426_v46 = vld [vmem:[#allocation13 + $0x834] sm:$0xf]  ;;  %10271 = vmatpush.bf16.msra.mxu1 %v16995_v39  ;;  %v13546_v48 = vld [vmem:[#allocation13 + $0x238] sm:$0xf] }
 0x588   :  { %v18810_v19 = vld [vmem:[#allocation13 + $0x1434] sm:$0xf]  ;;  %v18387_v39 = vld [vmem:[#allocation13 + $0x6f4] sm:$0xf0]  ;;  %v13547_v23 = vor.u32 %v18243_v58, %v13546_v48 }
 0x589   :  { %10336 = vmatpush.bf16.msrb.mxu2 %v15463_v20  ;;  %v19074_v20 = vld [vmem:[#allocation13 + $0x1c6c] sm:$0xf0]  ;;  %v15844_v21 = vld [vmem:[#allocation13 + $0x1470] sm:$0xf0]  ;;  %10350 = vmatpush.bf16.msrb.mxu3 %v15911_v47  ;;  %v14123_v47 = vor.u32 %v18387_v39, %v14122_v24  ;;  %v18195_v11 = vld [vmem:[#allocation13 + $0xf4] sm:$0xf0] }
 0x58a   :  { %v14308_v63 = vld [vmem:[#allocation13 + $0x870] sm:$0xf0]  ;;  %v15847_v53 = vor.u32 %v18810_v19, %v15844_v21  ;;  %v16867_v4 = vor.u32 %v19074_v20, %v16866_v51  ;;  %v13483_v51 = vor.u32 %v18227_v1, %v13482_v0  ;;  %v13290_v24 = vld [vmem:[#allocation13 + $0x38] sm:$0xf] }
 0x58b   :  { %v18666_v34 = vld [vmem:[#allocation13 + $0xfb4] sm:$0xf]  ;;  %10311 = vmatpush.bf16.msrb.mxu0 %v14375_v18  ;;  %v14311_v3 = vor.u32 %v18426_v46, %v14308_v63  ;;  %10272 = vmatpush.bf16.msra.mxu1 %v16931_v54  ;;  %v13418_v54 = vld [vmem:[#allocation13 + $0x138] sm:$0xf] }
 0x58c   :  { %v19050_v49 = vld [vmem:[#allocation13 + $0x1bb4] sm:$0xf]  ;;  %v18211_v63 = vld [vmem:[#allocation13 + $0x174] sm:$0xf0] }
 0x58d   :  { %10337 = vmatpush.bf16.msrb.mxu2 %v15399_v30  ;;  %v16804_v42 = vld [vmem:[#allocation13 + $0x1bf0] sm:$0xf0]  ;;  %v14251_v30 = vor.u32 %v18419_v22, %v14250_v29  ;;  %10351 = vmatpush.bf16.msrb.mxu3 %v15847_v53  ;;  %v14059_v29 = vor.u32 %v18371_v5, %v14058_v36  ;;  %v18179_v39 = vld [vmem:[#allocation13 + $0x74] sm:$0xf0] }
 0x58e   :  { %v15268_v52 = vld [vmem:[#allocation13 + $0xff0] sm:$0xf0]  ;;  %v16807_v43 = vor.u32 %v19050_v49, %v16804_v42  ;;  %v13419_v42 = vor.u32 %v18211_v63, %v13418_v54  ;;  %v13291_v0 = vor.u32 %v18179_v39, %v13290_v24 }
 0x58f   :  { %v15271_v45 = vor.u32 %v18666_v34, %v15268_v52  ;;  %v18650_v12 = vld [vmem:[#allocation13 + $0xf34] sm:$0xf]  ;;  %10312 = vmatpush.bf16.msrb.mxu0 %v14311_v3  ;;  %10273 = vmatpush.bf16.msra.mxu1 %v16867_v4  ;;  %v18355_v34 = vld [vmem:[#allocation13 + $0x5f4] sm:$0xf0]  ;;  %v10106_v4 = vpop.f32.mrf.mxu0  ;;  %v10067_v41 = vpop.f32.mrf.mxu1 }
 0x590   :  { %v19034_v32 = vld [vmem:[#allocation13 + $0x1b34] sm:$0xf]  ;;  %10352 = vmatmul.bf16.vlgmr.msrb.gmra.mxu3 %v19832_v55  ;;  %v20161_v56 = vadd.f32 %v10106_v4, %v20150_v10 }
 0x591   :  { %10338 = vmatpush.bf16.msrb.mxu2 %v15335_v59  ;;  %v16740_v44 = vld [vmem:[#allocation13 + $0x1b70] sm:$0xf0]  ;;  %10396 = vmatpush.bf16.msra.mxu3 %v14251_v30  ;;  %v13354_v30 = vld [vmem:[#allocation13 + $0xb8] sm:$0xf] }
 0x592   :  { %v15204_v38 = vld [vmem:[#allocation13 + $0xf70] sm:$0xf0]  ;;  %v16743_v61 = vor.u32 %v19034_v32, %v16740_v44  ;;  %10313 = vmatmul.bf16.vlgmr.msrb.gmra.mxu0 %v19818_v15  ;;  %10274 = vmatmul.bf16.vlgmr.msra.gmra.mxu1 %v19845_v14  ;;  %v20164_v32 = vadd.f32 %v10067_v41, %v20152_v7  ;;  %v15658_v41 = vld [vmem:[#allocation13 + $0x12b8] sm:$0xf] }
 0x593   :  { %10357 = vmatpush.bf16.msra.mxu0 %v16807_v43  ;;  %10318 = vmatpush.bf16.msrb.mxu1 %v15271_v45  ;;  %v15207_v59 = vor.u32 %v18650_v12, %v15204_v38  ;;  %v18634_v60 = vld [vmem:[#allocation13 + $0xeb4] sm:$0xf]  ;;  %v18339_v12 = vld [vmem:[#allocation13 + $0x574] sm:$0xf0]  ;;  %v13355_v38 = vor.u32 %v18195_v11, %v13354_v30  ;;  %v20166_v7 = vpop.f32.mrf.mxu3 }
 0x594   :  { %10339 = vmatmul.bf16.vlgmr.msrb.gmra.mxu2 %v19822_v6  ;;  %v19018_v9 = vld [vmem:[#allocation13 + $0x1ab4] sm:$0xf]  ;;  %v14762_v30 = vld [vmem:[#allocation13 + $0xbb8] sm:$0xf] }
 0x595   :  { %10383 = vmatpush.bf16.msra.mxu2 %v13739_v13  ;;  %v16676_v13 = vld [vmem:[#allocation13 + $0x1af0] sm:$0xf0]  ;;  %10397 = vmatpush.bf16.msra.mxu3 %v14187_v25  ;;  %v18547_v11 = vld [vmem:[#allocation13 + $0xbf4] sm:$0xf0] }
 0x596   :  { %v15140_v8 = vld [vmem:[#allocation13 + $0xef0] sm:$0xf0]  ;;  %v16679_v17 = vor.u32 %v19018_v9, %v16676_v13  ;;  %v13866_v9 = vld [vmem:[#allocation13 + $0x4b8] sm:$0xf] }
 0x597   :  { %10358 = vmatpush.bf16.msra.mxu0 %v16743_v61  ;;  %10319 = vmatpush.bf16.msrb.mxu1 %v15207_v59  ;;  %v15143_v18 = vor.u32 %v18634_v60, %v15140_v8  ;;  %v18618_v20 = vld [vmem:[#allocation13 + $0xe34] sm:$0xf]  ;;  %v20158_v40 = vpop.f32.mrf.mxu2  ;;  %v15786_v59 = vld [vmem:[#allocation13 + $0x13b8] sm:$0xf] }
 0x598   :  { %v19002_v46 = vld [vmem:[#allocation13 + $0x1a34] sm:$0xf]  ;;  %v18323_v13 = vld [vmem:[#allocation13 + $0x4f4] sm:$0xf0] }
 0x599   :  { %10384 = vmatpush.bf16.msra.mxu2 %v13675_v50  ;;  %v16612_v19 = vld [vmem:[#allocation13 + $0x1a70] sm:$0xf0]  ;;  %10398 = vmatpush.bf16.msra.mxu3 %v14123_v47  ;;  %v13994_v50 = vld [vmem:[#allocation13 + $0x5b8] sm:$0xf] }
 0x59a   :  { %v15076_v21 = vld [vmem:[#allocation13 + $0xe70] sm:$0xf0]  ;;  %v16615_v22 = vor.u32 %v19002_v46, %v16612_v19  ;;  %v13995_v43 = vor.u32 %v18355_v34, %v13994_v50  ;;  %v15722_v46 = vld [vmem:[#allocation13 + $0x1338] sm:$0xf] }
 0x59b   :  { %10359 = vmatpush.bf16.msra.mxu0 %v16679_v17  ;;  %10320 = vmatpush.bf16.msrb.mxu1 %v15143_v18  ;;  %v15079_v49 = vor.u32 %v18618_v20, %v15076_v21  ;;  %v18602_v53 = vld [vmem:[#allocation13 + $0xdb4] sm:$0xf]  ;;  %v13867_v20 = vor.u32 %v18323_v13, %v13866_v9  ;;  %v18787_v19 = vld [vmem:[#allocation13 + $0x1374] sm:$0xf0]  ;;  %v10069_v21 = vpop.f32.mrf.mxu1 }
 0x59c   :  { %v18986_v52 = vld [vmem:[#allocation13 + $0x19b4] sm:$0xf]  ;;  %v13802_v50 = vld [vmem:[#allocation13 + $0x438] sm:$0xf] }
 0x59d   :  { %10385 = vmatpush.bf16.msra.mxu2 %v13611_v37  ;;  %v16548_v28 = vld [vmem:[#allocation13 + $0x19f0] sm:$0xf0]  ;;  %10399 = vmatpush.bf16.msra.mxu3 %v14059_v29  ;;  %v13930_v37 = vld [vmem:[#allocation13 + $0x538] sm:$0xf] }
 0x59e   :  { %v15012_v3 = vld [vmem:[#allocation13 + $0xdf0] sm:$0xf0]  ;;  %v16551_v45 = vor.u32 %v18986_v52, %v16548_v28  ;;  %v13931_v10 = vor.u32 %v18339_v12, %v13930_v37  ;;  %v18307_v34 = vld [vmem:[#allocation13 + $0x474] sm:$0xf0]  ;;  %v15723_v28 = vor.u32 %v18787_v19, %v15722_v46 }
 0x59f   :  { %10360 = vmatpush.bf16.msra.mxu0 %v16615_v22  ;;  %10321 = vmatpush.bf16.msrb.mxu1 %v15079_v49  ;;  %v15015_v44 = vor.u32 %v18602_v53, %v15012_v3  ;;  %v18586_v48 = vld [vmem:[#allocation13 + $0xd34] sm:$0xf]  ;;  %v10134_v17 = vpop.f32.mrf.mxu2  ;;  %v16298_v53 = vld [vmem:[#allocation13 + $0x17b8] sm:$0xf]  ;;  %v13803_v4 = vor.u32 %v18307_v34, %v13802_v50 }
 0x5a0   :  { %v18970_v58 = vld [vmem:[#allocation13 + $0x1934] sm:$0xf]  ;;  %v18931_v52 = vld [vmem:[#allocation13 + $0x17f4] sm:$0xf0] }
 0x5a1   :  { %10386 = vmatpush.bf16.msra.mxu2 %v13547_v23  ;;  %v16484_v25 = vld [vmem:[#allocation13 + $0x1970] sm:$0xf0]  ;;  %10400 = vmatpush.bf16.msra.mxu3 %v13995_v43  ;;  %v18803_v23 = vld [vmem:[#allocation13 + $0x13f4] sm:$0xf0]  ;;  %v16299_v12 = vor.u32 %v18931_v52, %v16298_v53 }
 0x5a2   :  { %v14948_v61 = vld [vmem:[#allocation13 + $0xd70] sm:$0xf0]  ;;  %v16487_v60 = vor.u32 %v18970_v58, %v16484_v25  ;;  %v15787_v36 = vor.u32 %v18803_v23, %v15786_v59  ;;  %v16234_v58 = vld [vmem:[#allocation13 + $0x1738] sm:$0xf] }
 0x5a3   :  { %10361 = vmatpush.bf16.msra.mxu0 %v16551_v45  ;;  %10322 = vmatpush.bf16.msrb.mxu1 %v15015_v44  ;;  %v14951_v8 = vor.u32 %v18586_v48, %v14948_v61  ;;  %v18954_v1 = vld [vmem:[#allocation13 + $0x18b4] sm:$0xf]  ;;  %v18771_v45 = vld [vmem:[#allocation13 + $0x12f4] sm:$0xf0]  ;;  %v10147_v44 = vpop.f32.mrf.mxu3  ;;  %v14763_v48 = vor.u32 %v18547_v11, %v14762_v30 }
 0x5a4   :  { %v16420_v47 = vld [vmem:[#allocation13 + $0x18f0] sm:$0xf0]  ;;  %v18915_v25 = vld [vmem:[#allocation13 + $0x1774] sm:$0xf0]  ;;  %v15659_v24 = vor.u32 %v18771_v45, %v15658_v41 }
 0x5a5   :  { %10387 = vmatpush.bf16.msra.mxu2 %v13483_v51  ;;  %v18570_v5 = vld [vmem:[#allocation13 + $0xcb4] sm:$0xf]  ;;  %v10108_v51 = vpop.f32.mrf.mxu0  ;;  %10401 = vmatpush.bf16.msra.mxu3 %v13931_v10  ;;  %v16423_v54 = vor.u32 %v18954_v1, %v16420_v47  ;;  %v14698_v10 = vld [vmem:[#allocation13 + $0xb38] sm:$0xf]  ;;  %v16235_v13 = vor.u32 %v18915_v25, %v16234_v58 }
 0x5a6   :  { %v14884_v18 = vld [vmem:[#allocation13 + $0xcf0] sm:$0xf0]  ;;  %v18531_v59 = vld [vmem:[#allocation13 + $0xb74] sm:$0xf0] }
 0x5a7   :  { %10362 = vmatpush.bf16.msra.mxu0 %v16487_v60  ;;  %v18554_v63 = vld [vmem:[#allocation13 + $0xc34] sm:$0xf]  ;;  %10323 = vmatpush.bf16.msrb.mxu1 %v14951_v8  ;;  %v14887_v49 = vor.u32 %v18570_v5, %v14884_v18  ;;  %v15594_v60 = vld [vmem:[#allocation13 + $0x1238] sm:$0xf]  ;;  %v14699_v8 = vor.u32 %v18531_v59, %v14698_v10 }
 0x5a8   :  { %v14820_v29 = vld [vmem:[#allocation13 + $0xc70] sm:$0xf0]  ;;  %v18755_v9 = vld [vmem:[#allocation13 + $0x1274] sm:$0xf0] }
 0x5a9   :  { %10388 = vmatpush.bf16.msra.mxu2 %v13419_v42  ;;  %v18938_v22 = vld [vmem:[#allocation13 + $0x1834] sm:$0xf]  ;;  %10402 = vmatpush.bf16.msra.mxu3 %v13867_v20  ;;  %v18899_v1 = vld [vmem:[#allocation13 + $0x16f4] sm:$0xf0]  ;;  %v15595_v17 = vor.u32 %v18755_v9, %v15594_v60 }
 0x5aa   :  { %v16356_v42 = vld [vmem:[#allocation13 + $0x1870] sm:$0xf0]  ;;  %v14634_v5 = vld [vmem:[#allocation13 + $0xab8] sm:$0xf] }
 0x5ab   :  { %v19178_v3 = vld [vmem:[#allocation13 + $0x1fb4] sm:$0xf]  ;;  %10363 = vmatpush.bf16.msra.mxu0 %v16423_v54  ;;  %v16359_v37 = vor.u32 %v18938_v22, %v16356_v42  ;;  %10324 = vmatpush.bf16.msrb.mxu1 %v14887_v49  ;;  %v18515_v18 = vld [vmem:[#allocation13 + $0xaf4] sm:$0xf0] }
 0x5ac   :  { %v17316_v43 = vld [vmem:[#allocation13 + $0x1ff0] sm:$0xf0]  ;;  %v15530_v20 = vld [vmem:[#allocation13 + $0x11b8] sm:$0xf]  ;;  %v14635_v21 = vor.u32 %v18515_v18, %v14634_v5 }
 0x5ad   :  { %10389 = vmatpush.bf16.msra.mxu2 %v13355_v38  ;;  %v14823_v38 = vor.u32 %v18554_v63, %v14820_v29  ;;  %v17319_v61 = vor.u32 %v19178_v3, %v17316_v43  ;;  %v19162_v39 = vld [vmem:[#allocation13 + $0x1f34] sm:$0xf]  ;;  %10403 = vmatpush.bf16.msra.mxu3 %v13803_v4  ;;  %v18739_v46 = vld [vmem:[#allocation13 + $0x11f4] sm:$0xf0]  ;;  %v10158_v58 = vpop.f32.mrf.mxu0 }
 0x5ae   :  { %v17252_v23 = vld [vmem:[#allocation13 + $0x1f70] sm:$0xf0]  ;;  %v16106_v54 = vld [vmem:[#allocation13 + $0x1638] sm:$0xf]  ;;  %v15531_v22 = vor.u32 %v18739_v46, %v15530_v20  ;;  %v13740_v20 = vld [vmem:[#allocation13 + $0x3f8] sm:$0xf0] }
 0x5af   :  { %10364 = vmatpush.bf16.msra.mxu0 %v16359_v37  ;;  %10325 = vmatpush.bf16.msrb.mxu1 %v14823_v38  ;;  %v17255_v47 = vor.u32 %v19162_v39, %v17252_v23  ;;  %v17188_v51 = vld [vmem:[#allocation13 + $0x1ef0] sm:$0xf0]  ;;  %v18883_v63 = vld [vmem:[#allocation13 + $0x1674] sm:$0xf0]  ;;  %v10119_v39 = vpop.f32.mrf.mxu1 }
 0x5b0   :  { %10404 = vmatmul.bf16.vlgmr.msra.gmra.mxu3 %v19800_v62  ;;  %v19130_v50 = vld [vmem:[#allocation13 + $0x1e34] sm:$0xf]  ;;  %v14570_v34 = vld [vmem:[#allocation13 + $0xa38] sm:$0xf]  ;;  %v10120_v60 = vadd.f32 %v10119_v39, %v20161_v56 }
 0x5b1   :  { %10390 = vmatpush.bf16.msra.mxu2 %v13291_v0  ;;  %10448 = vmatpush.bf16.msrb.mxu3 %v16299_v12  ;;  %v16170_v0 = vld [vmem:[#allocation13 + $0x16b8] sm:$0xf]  ;;  %v17124_v42 = vld [vmem:[#allocation13 + $0x1e70] sm:$0xf0] }
 0x5b2   :  { %10365 = vmatmul.bf16.vlgmr.msra.gmra.mxu0 %v19838_v27  ;;  %10326 = vmatmul.bf16.vlgmr.msrb.gmra.mxu1 %v19814_v35  ;;  %v16171_v19 = vor.u32 %v18899_v1, %v16170_v0  ;;  %v18499_v49 = vld [vmem:[#allocation13 + $0xa74] sm:$0xf0]  ;;  %v17127_v4 = vor.u32 %v19130_v50, %v17124_v42  ;;  %v19114_v41 = vld [vmem:[#allocation13 + $0x1db4] sm:$0xf]  ;;  %v10133_v5 = vadd.f32 %v20158_v40, %v10120_v60 }
 0x5b3   :  { %10409 = vmatpush.bf16.msrb.mxu0 %v14763_v48  ;;  %10370 = vmatpush.bf16.msra.mxu1 %v17319_v61  ;;  %v15466_v53 = vld [vmem:[#allocation13 + $0x1138] sm:$0xf]  ;;  %v14571_v3 = vor.u32 %v18499_v49, %v14570_v34  ;;  %v17060_v44 = vld [vmem:[#allocation13 + $0x1df0] sm:$0xf0]  ;;  %v20172_v61 = vld [vmem:[#allocation14 + $0x8] sm:$0xff] }
 0x5b4   :  { %10391 = vmatmul.bf16.vlgmr.msra.gmra.mxu2 %v19805_v16  ;;  %v18723_v52 = vld [vmem:[#allocation13 + $0x1174] sm:$0xf0]  ;;  %v17063_v9 = vor.u32 %v19114_v41, %v17060_v44  ;;  %v19066_v41 = vld [vmem:[#allocation13 + $0x1c34] sm:$0xf] }
 0x5b5   :  { %10435 = vmatpush.bf16.msrb.mxu2 %v15787_v36  ;;  %v19146_v36 = vld [vmem:[#allocation13 + $0x1eb4] sm:$0xf]  ;;  %10449 = vmatpush.bf16.msrb.mxu3 %v16235_v13  ;;  %v16042_v30 = vld [vmem:[#allocation13 + $0x15b8] sm:$0xf]  ;;  %v15467_v43 = vor.u32 %v18723_v52, %v15466_v53 }
 0x5b6   :  { %v17191_v29 = vor.u32 %v19146_v36, %v17188_v51  ;;  %v18867_v11 = vld [vmem:[#allocation13 + $0x15f4] sm:$0xf0]  ;;  %v18283_v51 = vld [vmem:[#allocation13 + $0x3bc] sm:$0xf]  ;;  %v19082_v53 = vld [vmem:[#allocation13 + $0x1cb4] sm:$0xf] }
 0x5b7   :  { %10410 = vmatpush.bf16.msrb.mxu0 %v14699_v8  ;;  %10371 = vmatpush.bf16.msra.mxu1 %v17255_v47  ;;  %v14506_v45 = vld [vmem:[#allocation13 + $0x9b8] sm:$0xf]  ;;  %v10184_v12 = vpop.f32.mrf.mxu2  ;;  %v16043_v25 = vor.u32 %v18867_v11, %v16042_v30  ;;  %v19098_v8 = vld [vmem:[#allocation13 + $0x1d34] sm:$0xf]  ;;  %v13743_v42 = vor.u32 %v18283_v51, %v13740_v20  ;;  %v18267_v11 = vld [vmem:[#allocation13 + $0x33c] sm:$0xf] }
 0x5b8   :  { %v18483_v37 = vld [vmem:[#allocation13 + $0x9f4] sm:$0xf0]  ;;  %v16996_v47 = vld [vmem:[#allocation13 + $0x1d70] sm:$0xf0] }
 0x5b9   :  { %10436 = vmatpush.bf16.msrb.mxu2 %v15723_v28  ;;  %10450 = vmatpush.bf16.msrb.mxu3 %v16171_v19  ;;  %v16107_v28 = vor.u32 %v18883_v63, %v16106_v54  ;;  %v15402_v38 = vld [vmem:[#allocation13 + $0x10b8] sm:$0xf]  ;;  %v14507_v10 = vor.u32 %v18483_v37, %v14506_v45  ;;  %v10146_v54 = vadd.f32 %v20166_v7, %v10133_v5  ;;  %v10197_v63 = vpop.f32.mrf.mxu3  ;;  %v16932_v52 = vld [vmem:[#allocation13 + $0x1cf0] sm:$0xf0]  ;;  %v13676_v7 = vld [vmem:[#allocation13 + $0x378] sm:$0xf0] }
 0x5ba   :  { %v18707_v48 = vld [vmem:[#allocation13 + $0x10f4] sm:$0xf0]  ;;  %v16868_v45 = vld [vmem:[#allocation13 + $0x1c70] sm:$0xf0]  ;;  %v14188_v5 = vld [vmem:[#allocation13 + $0x778] sm:$0xf0] }
 0x5bb   :  { %10411 = vmatpush.bf16.msrb.mxu0 %v14635_v21  ;;  %10372 = vmatpush.bf16.msra.mxu1 %v17191_v29  ;;  %v15978_v59 = vld [vmem:[#allocation13 + $0x1538] sm:$0xf]  ;;  %v15403_v13 = vor.u32 %v18707_v48, %v15402_v38  ;;  %v16999_v29 = vor.u32 %v19098_v8, %v16996_v47  ;;  %v16935_v38 = vor.u32 %v19082_v53, %v16932_v52 }
 0x5bc   :  { %v18851_v23 = vld [vmem:[#allocation13 + $0x1574] sm:$0xf0]  ;;  %v16871_v47 = vor.u32 %v19066_v41, %v16868_v45  ;;  %v14060_v41 = vld [vmem:[#allocation13 + $0x678] sm:$0xf0] }
 0x5bd   :  { %10437 = vmatpush.bf16.msrb.mxu2 %v15659_v24  ;;  %10451 = vmatpush.bf16.msrb.mxu3 %v16107_v28  ;;  %v3787_v24 = vperm.slane %v20172_v61, 4  ;;  %v14442_v0 = vld [vmem:[#allocation13 + $0x938] sm:$0xf]  ;;  %v15979_v18 = vor.u32 %v18851_v23, %v15978_v59  ;;  %v20180_v28 = vadd.f32 %v10158_v58, %v10146_v54  ;;  %v14252_v58 = vld [vmem:[#allocation13 + $0x7f8] sm:$0xf0] }
 0x5be   :  { %v18467_v1 = vld [vmem:[#allocation13 + $0x974] sm:$0xf0]  ;;  %v13548_v54 = vld [vmem:[#allocation13 + $0x278] sm:$0xf0] }
 0x5bf   :  { %10412 = vmatpush.bf16.msrb.mxu0 %v14571_v3  ;;  %10373 = vmatpush.bf16.msra.mxu1 %v17127_v4  ;;  %v18691_v36 = vld [vmem:[#allocation13 + $0x1074] sm:$0xf0]  ;;  %v10185_v46 = vadd.f32 %v10184_v12, %v3787_v24  ;;  %v14443_v19 = vor.u32 %v18467_v1, %v14442_v0  ;;  %v10186_v40 = vpop.f32.mrf.mxu2  ;;  %v10160_v3 = vpop.f32.mrf.mxu0  ;;  %v13679_v24 = vor.u32 %v18267_v11, %v13676_v7  ;;  %v13484_v11 = vld [vmem:[#allocation13 + $0x1f8] sm:$0xf0] }
 0x5c0   :  { %v15914_v56 = vld [vmem:[#allocation13 + $0x14b8] sm:$0xf]  ;;  %v10121_v4 = vpop.f32.mrf.mxu1 }
 0x5c1   :  { %10438 = vmatpush.bf16.msrb.mxu2 %v15595_v17  ;;  %v15338_v17 = vld [vmem:[#allocation13 + $0x1038] sm:$0xf]  ;;  %10452 = vmatpush.bf16.msrb.mxu3 %v16043_v25  ;;  %v20178_v49 = vadd.f32 %v10197_v63, %v10185_v46  ;;  %v18411_v25 = vld [vmem:[#allocation13 + $0x7bc] sm:$0xf]  ;;  %v10199_v1 = vpop.f32.mrf.mxu3 }
 0x5c2   :  { %v18835_v21 = vld [vmem:[#allocation13 + $0x14f4] sm:$0xf0]  ;;  %v14255_v0 = vor.u32 %v18411_v25, %v14252_v58  ;;  %v18203_v25 = vld [vmem:[#allocation13 + $0x13c] sm:$0xf] }
 0x5c3   :  { %10413 = vmatpush.bf16.msrb.mxu0 %v14507_v10  ;;  %10374 = vmatpush.bf16.msra.mxu1 %v17063_v9  ;;  %v14378_v50 = vld [vmem:[#allocation13 + $0x8b8] sm:$0xf]  ;;  %v15915_v30 = vor.u32 %v18835_v21, %v15914_v56  ;;  %v18251_v9 = vld [vmem:[#allocation13 + $0x2bc] sm:$0xf] }
 0x5c4   :  { %v18451_v34 = vld [vmem:[#allocation13 + $0x8f4] sm:$0xf0]  ;;  %v18235_v21 = vld [vmem:[#allocation13 + $0x23c] sm:$0xf] }
 0x5c5   :  { %10439 = vmatpush.bf16.msrb.mxu2 %v15531_v22  ;;  %v15339_v22 = vor.u32 %v18691_v36, %v15338_v17  ;;  %10453 = vmatpush.bf16.msrb.mxu3 %v15979_v18  ;;  %v14314_v37 = vld [vmem:[#allocation13 + $0x838] sm:$0xf]  ;;  %v18395_v36 = vld [vmem:[#allocation13 + $0x73c] sm:$0xf]  ;;  %v13551_v40 = vor.u32 %v18235_v21, %v13548_v54 }
 0x5c6   :  { %v15850_v12 = vld [vmem:[#allocation13 + $0x1438] sm:$0xf]  ;;  %v14191_v63 = vor.u32 %v18395_v36, %v14188_v5  ;;  %v13420_v58 = vld [vmem:[#allocation13 + $0x178] sm:$0xf0] }
 0x5c7   :  { %10414 = vmatpush.bf16.msrb.mxu0 %v14443_v19  ;;  %v18819_v44 = vld [vmem:[#allocation13 + $0x1474] sm:$0xf0]  ;;  %10375 = vmatpush.bf16.msra.mxu1 %v16999_v29 }
 0x5c8   :  { %v18435_v48 = vld [vmem:[#allocation13 + $0x874] sm:$0xf0]  ;;  %v15851_v23 = vor.u32 %v18819_v44, %v15850_v12 }
 0x5c9   :  { %10440 = vmatpush.bf16.msrb.mxu2 %v15467_v43  ;;  %v14379_v43 = vor.u32 %v18451_v34, %v14378_v50  ;;  %v15274_v39 = vld [vmem:[#allocation13 + $0xfb8] sm:$0xf]  ;;  %10454 = vmatpush.bf16.msrb.mxu3 %v15915_v30  ;;  %v14315_v8 = vor.u32 %v18435_v48, %v14314_v37  ;;  %v14124_v50 = vld [vmem:[#allocation13 + $0x6f8] sm:$0xf0] }
 0x5ca   :  { %v16810_v10 = vld [vmem:[#allocation13 + $0x1bb8] sm:$0xf]  ;;  %v18219_v30 = vld [vmem:[#allocation13 + $0x1bc] sm:$0xf] }
 0x5cb   :  { %v19059_v59 = vld [vmem:[#allocation13 + $0x1bf4] sm:$0xf0]  ;;  %10415 = vmatpush.bf16.msrb.mxu0 %v14379_v43  ;;  %10376 = vmatpush.bf16.msra.mxu1 %v16935_v38  ;;  %v18363_v43 = vld [vmem:[#allocation13 + $0x63c] sm:$0xf]  ;;  %v13487_v37 = vor.u32 %v18219_v30, %v13484_v11 }
 0x5cc   :  { %v18675_v60 = vld [vmem:[#allocation13 + $0xff4] sm:$0xf0]  ;;  %v16811_v17 = vor.u32 %v19059_v59, %v16810_v10  ;;  %v18347_v10 = vld [vmem:[#allocation13 + $0x5bc] sm:$0xf] }
 0x5cd   :  { %10441 = vmatpush.bf16.msrb.mxu2 %v15403_v13  ;;  %v13612_v13 = vld [vmem:[#allocation13 + $0x2f8] sm:$0xf0]  ;;  %v15275_v18 = vor.u32 %v18675_v60, %v15274_v39  ;;  %v15210_v20 = vld [vmem:[#allocation13 + $0xf38] sm:$0xf]  ;;  %10455 = vmatpush.bf16.msrb.mxu3 %v15851_v23  ;;  %v13423_v60 = vor.u32 %v18203_v25, %v13420_v58 }
 0x5ce   :  { %v13615_v51 = vor.u32 %v18251_v9, %v13612_v13  ;;  %v16746_v46 = vld [vmem:[#allocation13 + $0x1b38] sm:$0xf]  ;;  %v13996_v59 = vld [vmem:[#allocation13 + $0x5f8] sm:$0xf0] }
 0x5cf   :  { %v19043_v19 = vld [vmem:[#allocation13 + $0x1b74] sm:$0xf0]  ;;  %10416 = vmatpush.bf16.msrb.mxu0 %v14315_v8  ;;  %10377 = vmatpush.bf16.msra.mxu1 %v16871_v47  ;;  %v18187_v47 = vld [vmem:[#allocation13 + $0xbc] sm:$0xf]  ;;  %v10210_v36 = vpop.f32.mrf.mxu0  ;;  %v13999_v5 = vor.u32 %v18347_v10, %v13996_v59 }
 0x5d0   :  { %v18659_v56 = vld [vmem:[#allocation13 + $0xf74] sm:$0xf0]  ;;  %v16747_v29 = vor.u32 %v19043_v19, %v16746_v46  ;;  %10456 = vmatmul.bf16.vlgmr.msrb.gmra.mxu3 %v19832_v55  ;;  %v18331_v46 = vld [vmem:[#allocation13 + $0x53c] sm:$0xf] }
 0x5d1   :  { %10442 = vmatpush.bf16.msrb.mxu2 %v15339_v22  ;;  %10500 = vmatpush.bf16.msra.mxu3 %v14255_v0  ;;  %v18379_v22 = vld [vmem:[#allocation13 + $0x6bc] sm:$0xf]  ;;  %v15211_v34 = vor.u32 %v18659_v56, %v15210_v20  ;;  %v16682_v53 = vld [vmem:[#allocation13 + $0x1ab8] sm:$0xf] }
 0x5d2   :  { %v19027_v52 = vld [vmem:[#allocation13 + $0x1af4] sm:$0xf0]  ;;  %10417 = vmatmul.bf16.vlgmr.msrb.gmra.mxu0 %v19818_v15  ;;  %10378 = vmatmul.bf16.vlgmr.msra.gmra.mxu1 %v19845_v14  ;;  %v14127_v7 = vor.u32 %v18379_v22, %v14124_v50  ;;  %v13932_v19 = vld [vmem:[#allocation13 + $0x578] sm:$0xf0] }
 0x5d3   :  { %10461 = vmatpush.bf16.msra.mxu0 %v16811_v17  ;;  %10422 = vmatpush.bf16.msrb.mxu1 %v15275_v18  ;;  %v18643_v3 = vld [vmem:[#allocation13 + $0xef4] sm:$0xf0]  ;;  %v16683_v4 = vor.u32 %v19027_v52, %v16682_v53  ;;  %v13356_v17 = vld [vmem:[#allocation13 + $0xf8] sm:$0xf0]  ;;  %v10171_v18 = vpop.f32.mrf.mxu1  ;;  %v13935_v53 = vor.u32 %v18331_v46, %v13932_v19 }
 0x5d4   :  { %10443 = vmatmul.bf16.vlgmr.msrb.gmra.mxu2 %v19822_v6  ;;  %v15082_v12 = vld [vmem:[#allocation13 + $0xe38] sm:$0xf]  ;;  %v10172_v56 = vadd.f32 %v10171_v18, %v20180_v28  ;;  %v13359_v54 = vor.u32 %v18187_v47, %v13356_v17  ;;  %v18795_v52 = vld [vmem:[#allocation13 + $0x13bc] sm:$0xf] }
 0x5d5   :  { %10487 = vmatpush.bf16.msra.mxu2 %v13743_v42  ;;  %v15146_v42 = vld [vmem:[#allocation13 + $0xeb8] sm:$0xf]  ;;  %10501 = vmatpush.bf16.msra.mxu3 %v14191_v63  ;;  %v18315_v28 = vld [vmem:[#allocation13 + $0x4bc] sm:$0xf] }
 0x5d6   :  { %v15147_v45 = vor.u32 %v18643_v3, %v15146_v42  ;;  %v16618_v44 = vld [vmem:[#allocation13 + $0x1a38] sm:$0xf]  ;;  %v10601_v42 = vmax.f32 %v20164_v32, 0.0  ;;  %v15788_v3 = vld [vmem:[#allocation13 + $0x13f8] sm:$0xf0] }
 0x5d7   :  { %10462 = vmatpush.bf16.msra.mxu0 %v16747_v29  ;;  %10423 = vmatpush.bf16.msrb.mxu1 %v15211_v34  ;;  %v19011_v38 = vld [vmem:[#allocation13 + $0x1a74] sm:$0xf0]  ;;  %v20186_v0 = vpop.f32.mrf.mxu2  ;;  %v18171_v34 = vld [vmem:[#allocation13 + $0x3c] sm:$0xf] }
 0x5d8   :  { %v18627_v48 = vld [vmem:[#allocation13 + $0xe74] sm:$0xf0]  ;;  %v16619_v39 = vor.u32 %v19011_v38, %v16618_v44  ;;  %v13868_v11 = vld [vmem:[#allocation13 + $0x4f8] sm:$0xf0] }
 0x5d9   :  { %10488 = vmatpush.bf16.msra.mxu2 %v13679_v24  ;;  %10502 = vmatpush.bf16.msra.mxu3 %v14127_v7  ;;  %v14063_v24 = vor.u32 %v18363_v43, %v14060_v41  ;;  %v15083_v23 = vor.u32 %v18627_v48, %v15082_v12  ;;  %v15018_v9 = vld [vmem:[#allocation13 + $0xdb8] sm:$0xf]  ;;  %v15791_v12 = vor.u32 %v18795_v52, %v15788_v3  ;;  %v10212_v48 = vpop.f32.mrf.mxu0  ;;  %v18779_v58 = vld [vmem:[#allocation13 + $0x133c] sm:$0xf] }
 0x5da   :  { %v16554_v13 = vld [vmem:[#allocation13 + $0x19b8] sm:$0xf]  ;;  %v13871_v25 = vor.u32 %v18315_v28, %v13868_v11  ;;  %v18923_v47 = vld [vmem:[#allocation13 + $0x17bc] sm:$0xf] }
 0x5db   :  { %10463 = vmatpush.bf16.msra.mxu0 %v16683_v4  ;;  %10424 = vmatpush.bf16.msrb.mxu1 %v15147_v45  ;;  %v18995_v8 = vld [vmem:[#allocation13 + $0x19f4] sm:$0xf0]  ;;  %v20195_v4 = vpop.f32.mrf.mxu3  ;;  %v16300_v17 = vld [vmem:[#allocation13 + $0x17f8] sm:$0xf0] }
 0x5dc   :  { %v18611_v1 = vld [vmem:[#allocation13 + $0xdf4] sm:$0xf0]  ;;  %v16555_v20 = vor.u32 %v18995_v8, %v16554_v13  ;;  %v13804_v13 = vld [vmem:[#allocation13 + $0x478] sm:$0xf0] }
 0x5dd   :  { %10489 = vmatpush.bf16.msra.mxu2 %v13615_v51  ;;  %10503 = vmatpush.bf16.msra.mxu3 %v14063_v24  ;;  %v20189_v51 = vadd.f32 %v10210_v36, %v20178_v49  ;;  %v15019_v21 = vor.u32 %v18611_v1, %v15018_v9  ;;  %v14954_v63 = vld [vmem:[#allocation13 + $0xd38] sm:$0xf]  ;;  %v10602_v49 = vmax.f32 %v10172_v56, 0.0  ;;  %v15724_v24 = vld [vmem:[#allocation13 + $0x1378] sm:$0xf0] }
 0x5de   :  { %v16490_v29 = vld [vmem:[#allocation13 + $0x1938] sm:$0xf]  ;;  %v18299_v9 = vld [vmem:[#allocation13 + $0x43c] sm:$0xf]  ;;  %v15727_v36 = vor.u32 %v18779_v58, %v15724_v24 }
 0x5df   :  { %10464 = vmatpush.bf16.msra.mxu0 %v16619_v39  ;;  %10425 = vmatpush.bf16.msrb.mxu1 %v15083_v23  ;;  %v18979_v22 = vld [vmem:[#allocation13 + $0x1974] sm:$0xf0]  ;;  %v20193_v7 = vpack.c.bf16 %v10602_v49, %v10601_v42  ;;  %v10238_v32 = vpop.f32.mrf.mxu2  ;;  %v10173_v39 = vpop.f32.mrf.mxu1  ;;  %v18539_v18 = vld [vmem:[#allocation13 + $0xbbc] sm:$0xf]  ;;  %v13807_v46 = vor.u32 %v18299_v9, %v13804_v13 }
 0x5e0   :  { %v18595_v50 = vld [vmem:[#allocation13 + $0xd74] sm:$0xf0]  ;;  %v16491_v30 = vor.u32 %v18979_v22, %v16490_v29  ;;  %v18763_v56 = vld [vmem:[#allocation13 + $0x12bc] sm:$0xf] }
 0x5e1   :  { %10490 = vmatpush.bf16.msra.mxu2 %v13551_v40  ;;  %v13292_v40 = vld [vmem:[#allocation13 + $0x78] sm:$0xf0]  ;;  %10504 = vmatpush.bf16.msra.mxu3 %v13999_v5  ;;  %v14955_v43 = vor.u32 %v18595_v50, %v14954_v63  ;;  %v16426_v45 = vld [vmem:[#allocation13 + $0x18b8] sm:$0xf]  ;;  %v16303_v63 = vor.u32 %v18923_v47, %v16300_v17 }
 0x5e2   :  { %v13295_v41 = vor.u32 %v18171_v34, %v13292_v40  ;;  %v14890_v44 = vld [vmem:[#allocation13 + $0xcb8] sm:$0xf]  ;;  %v18907_v34 = vld [vmem:[#allocation13 + $0x173c] sm:$0xf] }
 0x5e3   :  { %10465 = vmatpush.bf16.msra.mxu0 %v16555_v20  ;;  %10426 = vmatpush.bf16.msrb.mxu1 %v15019_v21  ;;  %v18579_v38 = vld [vmem:[#allocation13 + $0xcf4] sm:$0xf0]  ;;  %v14764_v20 = vld [vmem:[#allocation13 + $0xbf8] sm:$0xf0]  ;;  %v10251_v29 = vpop.f32.mrf.mxu3 }
 0x5e4   :  { %v14826_v59 = vld [vmem:[#allocation13 + $0xc38] sm:$0xf]  ;;  %v14891_v8 = vor.u32 %v18579_v38, %v14890_v44  ;;  %v15660_v21 = vld [vmem:[#allocation13 + $0x12f8] sm:$0xf0]  ;;  %v14767_v50 = vor.u32 %v18539_v18, %v14764_v20 }
 0x5e5   :  { %10491 = vmatpush.bf16.msra.mxu2 %v13487_v37  ;;  %v18963_v37 = vld [vmem:[#allocation13 + $0x18f4] sm:$0xf0]  ;;  %10505 = vmatpush.bf16.msra.mxu3 %v13935_v53  ;;  %v16236_v40 = vld [vmem:[#allocation13 + $0x1778] sm:$0xf0]  ;;  %v15663_v49 = vor.u32 %v18763_v56, %v15660_v21 }
 0x5e6   :  { %v16427_v10 = vor.u32 %v18963_v37, %v16426_v45  ;;  %v18563_v23 = vld [vmem:[#allocation13 + $0xc74] sm:$0xf0]  ;;  %v18523_v52 = vld [vmem:[#allocation13 + $0xb3c] sm:$0xf] }
 0x5e7   :  { %10466 = vmatpush.bf16.msra.mxu0 %v16491_v30  ;;  %10427 = vmatpush.bf16.msrb.mxu1 %v14955_v43  ;;  %v18947_v1 = vld [vmem:[#allocation13 + $0x1874] sm:$0xf0]  ;;  %v14827_v22 = vor.u32 %v18563_v23, %v14826_v59  ;;  %v14700_v3 = vld [vmem:[#allocation13 + $0xb78] sm:$0xf0] }
 0x5e8   :  { %v17322_v5 = vld [vmem:[#allocation13 + $0x1fb8] sm:$0xf]  ;;  %v18747_v28 = vld [vmem:[#allocation13 + $0x123c] sm:$0xf]  ;;  %v14703_v43 = vor.u32 %v18523_v52, %v14700_v3 }
 0x5e9   :  { %10492 = vmatpush.bf16.msra.mxu2 %v13423_v60  ;;  %v16362_v60 = vld [vmem:[#allocation13 + $0x1838] sm:$0xf]  ;;  %10506 = vmatpush.bf16.msra.mxu3 %v13871_v25  ;;  %v15596_v11 = vld [vmem:[#allocation13 + $0x1278] sm:$0xf0] }
 0x5ea   :  { %v19187_v19 = vld [vmem:[#allocation13 + $0x1ff4] sm:$0xf0]  ;;  %v16172_v45 = vld [vmem:[#allocation13 + $0x16f8] sm:$0xf0]  ;;  %v15599_v32 = vor.u32 %v18747_v28, %v15596_v11 }
 0x5eb   :  { %10467 = vmatpush.bf16.msra.mxu0 %v16427_v10  ;;  %10428 = vmatpush.bf16.msrb.mxu1 %v14891_v8  ;;  %v17323_v42 = vor.u32 %v19187_v19, %v17322_v5  ;;  %v17258_v53 = vld [vmem:[#allocation13 + $0x1f38] sm:$0xf]  ;;  %v18507_v44 = vld [vmem:[#allocation13 + $0xabc] sm:$0xf] }
 0x5ec   :  { %v19171_v30 = vld [vmem:[#allocation13 + $0x1f74] sm:$0xf0]  ;;  %v14636_v38 = vld [vmem:[#allocation13 + $0xaf8] sm:$0xf0] }
 0x5ed   :  { %10493 = vmatpush.bf16.msra.mxu2 %v13359_v54  ;;  %v16363_v54 = vor.u32 %v18947_v1, %v16362_v60  ;;  %10507 = vmatpush.bf16.msra.mxu3 %v13807_v46  ;;  %v17259_v37 = vor.u32 %v19171_v30, %v17258_v53  ;;  %v19155_v48 = vld [vmem:[#allocation13 + $0x1ef4] sm:$0xf0]  ;;  %v18731_v25 = vld [vmem:[#allocation13 + $0x11bc] sm:$0xf]  ;;  %v14639_v39 = vor.u32 %v18507_v44, %v14636_v38 }
 0x5ee   :  { %v15532_v58 = vld [vmem:[#allocation13 + $0x11f8] sm:$0xf0]  ;;  %v17130_v9 = vld [vmem:[#allocation13 + $0x1e38] sm:$0xf] }
 0x5ef   :  { %10468 = vmatpush.bf16.msra.mxu0 %v16363_v54  ;;  %10429 = vmatpush.bf16.msrb.mxu1 %v14827_v22  ;;  %v18875_v10 = vld [vmem:[#allocation13 + $0x163c] sm:$0xf]  ;;  %v15535_v60 = vor.u32 %v18731_v25, %v15532_v58  ;;  %v19139_v1 = vld [vmem:[#allocation13 + $0x1e74] sm:$0xf0] }
 0x5f0   :  { %10508 = vmatmul.bf16.vlgmr.msra.gmra.mxu3 %v19800_v62  ;;  %v16108_v59 = vld [vmem:[#allocation13 + $0x1678] sm:$0xf0]  ;;  %v17131_v20 = vor.u32 %v19139_v1, %v17130_v9  ;;  %v17066_v19 = vld [vmem:[#allocation13 + $0x1db8] sm:$0xf] }
 0x5f1   :  { %10494 = vmatpush.bf16.msra.mxu2 %v13295_v41  ;;  %10552 = vmatpush.bf16.msrb.mxu3 %v16303_v63  ;;  %v18891_v41 = vld [vmem:[#allocation13 + $0x16bc] sm:$0xf]  ;;  %v16111_v17 = vor.u32 %v18875_v10, %v16108_v59  ;;  %v19123_v63 = vld [vmem:[#allocation13 + $0x1df4] sm:$0xf0] }
 0x5f2   :  { %10469 = vmatmul.bf16.vlgmr.msra.gmra.mxu0 %v19838_v27  ;;  %10430 = vmatmul.bf16.vlgmr.msrb.gmra.mxu1 %v19814_v35  ;;  %v16175_v24 = vor.u32 %v18891_v41, %v16172_v45  ;;  %v18491_v13 = vld [vmem:[#allocation13 + $0xa3c] sm:$0xf]  ;;  %v17067_v30 = vor.u32 %v19123_v63, %v17066_v19  ;;  %v17002_v11 = vld [vmem:[#allocation13 + $0x1d38] sm:$0xf] }
 0x5f3   :  { %10513 = vmatpush.bf16.msrb.mxu0 %v14767_v50  ;;  %10474 = vmatpush.bf16.msra.mxu1 %v17323_v42  ;;  %v14572_v8 = vld [vmem:[#allocation13 + $0xa78] sm:$0xf0]  ;;  %v10262_v50 = vpop.f32.mrf.mxu0  ;;  %v10223_v42 = vpop.f32.mrf.mxu1  ;;  %v19107_v41 = vld [vmem:[#allocation13 + $0x1d74] sm:$0xf0] }
 0x5f4   :  { %10495 = vmatmul.bf16.vlgmr.msra.gmra.mxu2 %v19805_v16  ;;  %v16239_v16 = vor.u32 %v18907_v34, %v16236_v40  ;;  %v18715_v62 = vld [vmem:[#allocation13 + $0x113c] sm:$0xf]  ;;  %v3788_v40 = vperm.slane %v20172_v61, 5  ;;  %v10224_v3 = vadd.f32 %v10223_v42, %v20189_v51  ;;  %v10301_v25 = vpop.f32.mrf.mxu3  ;;  %v17003_v58 = vor.u32 %v19107_v41, %v17002_v11  ;;  %v19091_v9 = vld [vmem:[#allocation13 + $0x1cf4] sm:$0xf0]  ;;  %v19202_v11 = vld [vmem:[#allocation16 + $0x70] sm:$0xff] }
 0x5f5   :  { %10539 = vmatpush.bf16.msrb.mxu2 %v15791_v12  ;;  %v17194_v12 = vld [vmem:[#allocation13 + $0x1eb8] sm:$0xf]  ;;  %v15468_v47 = vld [vmem:[#allocation13 + $0x1178] sm:$0xf0] }
 0x5f6   :  { %10553 = vmatpush.bf16.msrb.mxu3 %v16239_v16  ;;  %v17195_v23 = vor.u32 %v19155_v48, %v17194_v12  ;;  %v18859_v5 = vld [vmem:[#allocation13 + $0x15bc] sm:$0xf]  ;;  %v15471_v46 = vor.u32 %v18715_v62, %v15468_v47  ;;  %v19194_v47 = vld [vmem:[#allocation16 + $0x30] sm:$0xff]  ;;  %v19075_v19 = vld [vmem:[#allocation13 + $0x1c74] sm:$0xf0] }
 0x5f7   :  { %10514 = vmatpush.bf16.msrb.mxu0 %v14703_v43  ;;  %10475 = vmatpush.bf16.msra.mxu1 %v17259_v37  ;;  %v16044_v18 = vld [vmem:[#allocation13 + $0x15f8] sm:$0xf0]  ;;  %v10288_v54 = vpop.f32.mrf.mxu2 }
 0x5f8   :  { %v18475_v56 = vld [vmem:[#allocation13 + $0x9bc] sm:$0xf]  ;;  %v16047_v34 = vor.u32 %v18859_v5, %v16044_v18  ;;  %v10289_v12 = vadd.f32 %v10288_v54, %v3788_v40  ;;  %v16874_v18 = vld [vmem:[#allocation13 + $0x1c38] sm:$0xf] }
 0x5f9   :  { %10540 = vmatpush.bf16.msrb.mxu2 %v15727_v36  ;;  %v14575_v36 = vor.u32 %v18491_v13, %v14572_v8  ;;  %v14508_v21 = vld [vmem:[#allocation13 + $0x9f8] sm:$0xf0]  ;;  %v16875_v40 = vor.u32 %v19075_v19, %v16874_v18 }
 0x5fa   :  { %10554 = vmatpush.bf16.msrb.mxu3 %v16175_v24  ;;  %v18699_v29 = vld [vmem:[#allocation13 + $0x10bc] sm:$0xf]  ;;  %v20205_v59 = vadd.f32 %v10301_v25, %v10289_v12 }
 0x5fb   :  { %10515 = vmatpush.bf16.msrb.mxu0 %v14639_v39  ;;  %10476 = vmatpush.bf16.msra.mxu1 %v17195_v23  ;;  %v15404_v22 = vld [vmem:[#allocation13 + $0x10f8] sm:$0xf0]  ;;  %v10264_v8 = vpop.f32.mrf.mxu0  ;;  %v10225_v62 = vpop.f32.mrf.mxu1 }
 0x5fc   :  { %v18843_v53 = vld [vmem:[#allocation13 + $0x153c] sm:$0xf]  ;;  %v15407_v28 = vor.u32 %v18699_v29, %v15404_v22 }
 0x5fd   :  { %10541 = vmatpush.bf16.msrb.mxu2 %v15663_v49  ;;  %v14511_v49 = vor.u32 %v18475_v56, %v14508_v21  ;;  %v15980_v52 = vld [vmem:[#allocation13 + $0x1578] sm:$0xf0] }
 0x5fe   :  { %10555 = vmatpush.bf16.msrb.mxu3 %v16111_v17  ;;  %v18459_v16 = vld [vmem:[#allocation13 + $0x93c] sm:$0xf]  ;;  %v15983_v61 = vor.u32 %v18843_v53, %v15980_v52 }
 0x5ff   :  { %10516 = vmatpush.bf16.msrb.mxu0 %v14575_v36  ;;  %10477 = vmatpush.bf16.msra.mxu1 %v17131_v20  ;;  %v14444_v43 = vld [vmem:[#allocation13 + $0x978] sm:$0xf0]  ;;  %v10290_v23 = vpop.f32.mrf.mxu2 }
 0x600   :  { %v18683_v45 = vld [vmem:[#allocation13 + $0x103c] sm:$0xf]  ;;  %v14447_v44 = vor.u32 %v18459_v16, %v14444_v43  ;;  %v19192_v43 = vld [vmem:[#allocation16 + $0x20] sm:$0xff] }
 0x601   :  { %10542 = vmatpush.bf16.msrb.mxu2 %v15599_v32  ;;  %v15340_v37 = vld [vmem:[#allocation13 + $0x1078] sm:$0xf0]  ;;  %v10237_v32 = vadd.f32 %v20186_v0, %v10224_v3  ;;  %v19195_v0 = vld [vmem:[#allocation16 + $0x38] sm:$0xff] }
 0x602   :  { %10556 = vmatpush.bf16.msrb.mxu3 %v16047_v34  ;;  %v18827_v38 = vld [vmem:[#allocation13 + $0x14bc] sm:$0xf]  ;;  %v15343_v24 = vor.u32 %v18683_v45, %v15340_v37  ;;  %v10303_v34 = vpop.f32.mrf.mxu3 }
 0x603   :  { %10517 = vmatpush.bf16.msrb.mxu0 %v14511_v49  ;;  %v15916_v48 = vld [vmem:[#allocation13 + $0x14f8] sm:$0xf0]  ;;  %v10250_v51 = vadd.f32 %v20195_v4, %v10237_v32  ;;  %10478 = vmatpush.bf16.msra.mxu1 %v17067_v30  ;;  %v19227_v34 = vld [vmem:[#allocation16 + $0x138] sm:$0xff] }
 0x604   :  { %v18443_v39 = vld [vmem:[#allocation13 + $0x8bc] sm:$0xf]  ;;  %v15919_v1 = vor.u32 %v18827_v38, %v15916_v48  ;;  %v19191_v38 = vld [vmem:[#allocation16 + $0x18] sm:$0xff] }
 0x605   :  { %10543 = vmatpush.bf16.msrb.mxu2 %v15535_v60  ;;  %v14380_v10 = vld [vmem:[#allocation13 + $0x8f8] sm:$0xf0]  ;;  %v16938_v60 = vld [vmem:[#allocation13 + $0x1cb8] sm:$0xf]  ;;  %v20207_v13 = vadd.f32 %v10262_v50, %v10250_v51  ;;  %v19203_v50 = vld [vmem:[#allocation16 + $0x78] sm:$0xff] }
 0x606   :  { %10557 = vmatpush.bf16.msrb.mxu3 %v15983_v61  ;;  %v14383_v4 = vor.u32 %v18443_v39, %v14380_v10  ;;  %v18811_v17 = vld [vmem:[#allocation13 + $0x143c] sm:$0xf]  ;;  %v16939_v5 = vor.u32 %v19091_v9, %v16938_v60  ;;  %v19190_v39 = vld [vmem:[#allocation16 + $0x10] sm:$0xff] }
 0x607   :  { %10518 = vmatpush.bf16.msrb.mxu0 %v14447_v44  ;;  %v15852_v36 = vld [vmem:[#allocation13 + $0x1478] sm:$0xf0]  ;;  %10479 = vmatpush.bf16.msra.mxu1 %v17003_v58 }
 0x608   :  { %v18427_v20 = vld [vmem:[#allocation13 + $0x83c] sm:$0xf]  ;;  %v15855_v54 = vor.u32 %v18811_v17, %v15852_v36 }
 0x609   :  { %10544 = vmatpush.bf16.msrb.mxu2 %v15471_v46  ;;  %v14316_v46 = vld [vmem:[#allocation13 + $0x878] sm:$0xf0] }
 0x60a   :  { %v19051_v56 = vld [vmem:[#allocation13 + $0x1bbc] sm:$0xf]  ;;  %10558 = vmatpush.bf16.msrb.mxu3 %v15919_v1  ;;  %v14319_v22 = vor.u32 %v18427_v20, %v14316_v46  ;;  %v19199_v1 = vld [vmem:[#allocation16 + $0x58] sm:$0xff] }
 0x60b   :  { %v16812_v21 = vld [vmem:[#allocation13 + $0x1bf8] sm:$0xf0]  ;;  %10519 = vmatpush.bf16.msrb.mxu0 %v14383_v4  ;;  %10480 = vmatpush.bf16.msra.mxu1 %v16939_v5 }
 0x60c   :  { %v18667_v63 = vld [vmem:[#allocation13 + $0xfbc] sm:$0xf]  ;;  %v16815_v42 = vor.u32 %v19051_v56, %v16812_v21  ;;  %v19198_v56 = vld [vmem:[#allocation16 + $0x50] sm:$0xff] }
 0x60d   :  { %10545 = vmatpush.bf16.msrb.mxu2 %v15407_v28  ;;  %v15276_v29 = vld [vmem:[#allocation13 + $0xff8] sm:$0xf0] }
 0x60e   :  { %v15279_v49 = vor.u32 %v18667_v63, %v15276_v29  ;;  %v19193_v53 = vld [vmem:[#allocation16 + $0x28] sm:$0xff]  ;;  %10559 = vmatpush.bf16.msrb.mxu3 %v15855_v54  ;;  %v19188_v63 = vld [vmem:[#allocation16] sm:$0xff] }
 0x60f   :  { %v19035_v52 = vld [vmem:[#allocation13 + $0x1b3c] sm:$0xf]  ;;  %10520 = vmatpush.bf16.msrb.mxu0 %v14319_v22  ;;  %10481 = vmatpush.bf16.msra.mxu1 %v16875_v40  ;;  %v10314_v8 = vpop.f32.mrf.mxu0  ;;  %v10275_v62 = vpop.f32.mrf.mxu1  ;;  %v10899_v22 = vunpack.c.l.b16 %v19918_v57 }
 0x610   :  { %v16748_v3 = vld [vmem:[#allocation13 + $0x1b78] sm:$0xf0]  ;;  %v20216_v4 = vadd.f32 %v10314_v8, %v20205_v59  ;;  %v20219_v17 = vadd.f32 %v10275_v62, %v20207_v13 }
 0x611   :  { %10546 = vmatpush.bf16.msrb.mxu2 %v15343_v24  ;;  %v18651_v30 = vld [vmem:[#allocation13 + $0xf3c] sm:$0xf]  ;;  %10560 = vmatmul.bf16.vlgmr.msrb.gmra.mxu3 %v19832_v55 }
 0x612   :  { %v15212_v28 = vld [vmem:[#allocation13 + $0xf78] sm:$0xf0]  ;;  %11728 = vmatpush.bf16.msra.mxu3 %v19203_v50  ;;  %10521 = vmatmul.bf16.vlgmr.msrb.gmra.mxu0 %v19818_v15  ;;  %v19200_v15 = vld [vmem:[#allocation16 + $0x60] sm:$0xff] }
 0x613   :  { %10565 = vmatpush.bf16.msra.mxu0 %v16815_v42  ;;  %10526 = vmatpush.bf16.msrb.mxu1 %v15279_v49  ;;  %v15215_v16 = vor.u32 %v18651_v30, %v15212_v28  ;;  %v19019_v41 = vld [vmem:[#allocation13 + $0x1abc] sm:$0xf]  ;;  %v20221_v59 = vpop.f32.mrf.mxu3 }
 0x614   :  { %10547 = vmatmul.bf16.vlgmr.msrb.gmra.mxu2 %v19822_v6  ;;  %v16751_v6 = vor.u32 %v19035_v52, %v16748_v3  ;;  %v16684_v45 = vld [vmem:[#allocation13 + $0x1af8] sm:$0xf0]  ;;  %10482 = vmatmul.bf16.vlgmr.msra.gmra.mxu1 %v19845_v14 }
 0x615   :  { %11715 = vmatpush.bf16.msra.mxu2 %v19195_v0  ;;  %v18635_v37 = vld [vmem:[#allocation13 + $0xebc] sm:$0xf]  ;;  %v16687_v12 = vor.u32 %v19019_v41, %v16684_v45  ;;  %v19196_v45 = vld [vmem:[#allocation16 + $0x40] sm:$0xff] }
 0x616   :  { %v15148_v32 = vld [vmem:[#allocation13 + $0xef8] sm:$0xf0]  ;;  %11729 = vmatpush.bf16.msra.mxu3 %v19202_v11 }
 0x617   :  { %v19201_v61 = vld [vmem:[#allocation16 + $0x68] sm:$0xff]  ;;  %10566 = vmatpush.bf16.msra.mxu0 %v16751_v6  ;;  %10527 = vmatpush.bf16.msrb.mxu1 %v15215_v16  ;;  %v15151_v44 = vor.u32 %v18635_v37, %v15148_v32  ;;  %v20213_v0 = vpop.f32.mrf.mxu2  ;;  %v10316_v49 = vpop.f32.mrf.mxu0  ;;  %v10915_v6 = vpack.c.b16 %v10899_v22, %v10899_v22  ;;  %v19226_v16 = vld [vmem:[#allocation16 + $0x130] sm:$0xff]  ;;  %v19207_v22 = vld [vmem:[#allocation16 + $0x98] sm:$0xff] }
 0x618   :  { %v19003_v48 = vld [vmem:[#allocation13 + $0x1a3c] sm:$0xf]  ;;  %v10277_v52 = vpop.f32.mrf.mxu1 }
 0x619   :  { %11716 = vmatpush.bf16.msra.mxu2 %v19194_v47  ;;  %v16620_v51 = vld [vmem:[#allocation13 + $0x1a78] sm:$0xf0]  ;;  %v19230_v52 = vld [vmem:[#allocation16 + $0x150] sm:$0xff] }
 0x61a   :  { %v18619_v25 = vld [vmem:[#allocation13 + $0xe3c] sm:$0xf]  ;;  %11730 = vmatpush.bf16.msra.mxu3 %v19201_v61  ;;  %v16623_v55 = vor.u32 %v19003_v48, %v16620_v51  ;;  %v19211_v51 = vld [vmem:[#allocation16 + $0xb8] sm:$0xff] }
 0x61b   :  { %v15084_v58 = vld [vmem:[#allocation13 + $0xe78] sm:$0xf0]  ;;  %10567 = vmatpush.bf16.msra.mxu0 %v16687_v12  ;;  %10528 = vmatpush.bf16.msrb.mxu1 %v15151_v44  ;;  %v19235_v12 = vld [vmem:[#allocation16 + $0x178] sm:$0xff]  ;;  %v10900_v44 = vunpack.c.h.b16 %v19918_v57 }
 0x61c   :  { %v15087_v24 = vor.u32 %v18619_v25, %v15084_v58  ;;  %v18987_v10 = vld [vmem:[#allocation13 + $0x19bc] sm:$0xf] }
 0x61d   :  { %11717 = vmatpush.bf16.msra.mxu2 %v19193_v53  ;;  %v16556_v23 = vld [vmem:[#allocation13 + $0x19f8] sm:$0xf0] }
 0x61e   :  { %v18603_v60 = vld [vmem:[#allocation13 + $0xdbc] sm:$0xf]  ;;  %11731 = vmatpush.bf16.msra.mxu3 %v19200_v15  ;;  %v16559_v47 = vor.u32 %v18987_v10, %v16556_v23  ;;  %v19210_v10 = vld [vmem:[#allocation16 + $0xb0] sm:$0xff]  ;;  %v19224_v23 = vld [vmem:[#allocation16 + $0x120] sm:$0xff] }
 0x61f   :  { %v15020_v9 = vld [vmem:[#allocation13 + $0xdf8] sm:$0xf0]  ;;  %10568 = vmatpush.bf16.msra.mxu0 %v16623_v55  ;;  %10529 = vmatpush.bf16.msrb.mxu1 %v15087_v24  ;;  %v10342_v50 = vpop.f32.mrf.mxu2  ;;  %v19234_v24 = vld [vmem:[#allocation16 + $0x170] sm:$0xff] }
 0x620   :  { %v15023_v36 = vor.u32 %v18603_v60, %v15020_v9  ;;  %v19189_v5 = vld [vmem:[#allocation16 + $0x8] sm:$0xff] }
 0x621   :  { %11718 = vmatpush.bf16.msra.mxu2 %v19192_v43  ;;  %v18971_v18 = vld [vmem:[#allocation13 + $0x193c] sm:$0xf] }
 0x622   :  { %v16492_v20 = vld [vmem:[#allocation13 + $0x1978] sm:$0xf0]  ;;  %11732 = vmatpush.bf16.msra.mxu3 %v19199_v1 }
 0x623   :  { %v18587_v46 = vld [vmem:[#allocation13 + $0xd3c] sm:$0xf]  ;;  %10569 = vmatpush.bf16.msra.mxu0 %v16559_v47  ;;  %v16495_v21 = vor.u32 %v18971_v18, %v16492_v20  ;;  %10530 = vmatpush.bf16.msrb.mxu1 %v15023_v36  ;;  %v19223_v47 = vld [vmem:[#allocation16 + $0x118] sm:$0xff]  ;;  %v19232_v18 = vld [vmem:[#allocation16 + $0x160] sm:$0xff] }
 0x624   :  { %v14956_v19 = vld [vmem:[#allocation13 + $0xd78] sm:$0xf0]  ;;  %v19208_v20 = vld [vmem:[#allocation16 + $0xa0] sm:$0xff] }
 0x625   :  { %11719 = vmatpush.bf16.msra.mxu2 %v19191_v38  ;;  %v14959_v54 = vor.u32 %v18587_v46, %v14956_v19  ;;  %v18955_v13 = vld [vmem:[#allocation13 + $0x18bc] sm:$0xf]  ;;  %v10355_v38 = vpop.f32.mrf.mxu3  ;;  %v19222_v46 = vld [vmem:[#allocation16 + $0x110] sm:$0xff] }
 0x626   :  { %v16428_v29 = vld [vmem:[#allocation13 + $0x18f8] sm:$0xf0]  ;;  %11733 = vmatpush.bf16.msra.mxu3 %v19198_v56 }
 0x627   :  { %v18571_v40 = vld [vmem:[#allocation13 + $0xcbc] sm:$0xf]  ;;  %10570 = vmatpush.bf16.msra.mxu0 %v16495_v21  ;;  %v16431_v3 = vor.u32 %v18955_v13, %v16428_v29  ;;  %10531 = vmatpush.bf16.msrb.mxu1 %v14959_v54  ;;  %v19231_v54 = vld [vmem:[#allocation16 + $0x158] sm:$0xff] }
 0x628   :  { %v14892_v42 = vld [vmem:[#allocation13 + $0xcf8] sm:$0xf0] }
 0x629   :  { %11720 = vmatpush.bf16.msra.mxu2 %v19190_v39  ;;  %v19197_v53 = vld [vmem:[#allocation16 + $0x48] sm:$0xff]  ;;  %v14895_v30 = vor.u32 %v18571_v40, %v14892_v42  ;;  %v10916_v39 = vpack.c.b16 %v10900_v44, %v10900_v44 }
 0x62a   :  { %v18939_v28 = vld [vmem:[#allocation13 + $0x183c] sm:$0xf]  ;;  %11734 = vmatpush.bf16.msra.mxu3 %v19197_v53 }
 0x62b   :  { %v16364_v11 = vld [vmem:[#allocation13 + $0x1878] sm:$0xf0]  ;;  %10571 = vmatpush.bf16.msra.mxu0 %v16431_v3  ;;  %10532 = vmatpush.bf16.msrb.mxu1 %v14895_v30  ;;  %v19206_v30 = vld [vmem:[#allocation16 + $0x90] sm:$0xff] }
 0x62c   :  { %v18555_v43 = vld [vmem:[#allocation13 + $0xc3c] sm:$0xf]  ;;  %v16367_v61 = vor.u32 %v18939_v28, %v16364_v11 }
 0x62d   :  { %11721 = vmatpush.bf16.msra.mxu2 %v19189_v5  ;;  %v14828_v41 = vld [vmem:[#allocation13 + $0xc78] sm:$0xf0] }
 0x62e   :  { %v19179_v37 = vld [vmem:[#allocation13 + $0x1fbc] sm:$0xf]  ;;  %v14831_v48 = vor.u32 %v18555_v43, %v14828_v41  ;;  %11735 = vmatpush.bf16.msra.mxu3 %v19196_v45  ;;  %v19259_v45 = vld [vmem:[#allocation16 + $0x238] sm:$0xff] }
 0x62f   :  { %v17324_v32 = vld [vmem:[#allocation13 + $0x1ff8] sm:$0xf0]  ;;  %10572 = vmatpush.bf16.msra.mxu0 %v16367_v61  ;;  %v20227_v21 = vpop.f32.mrf.mxu0  ;;  %v10327_v29 = vpop.f32.mrf.mxu1 }
 0x630   :  { %v17327_v25 = vor.u32 %v19179_v37, %v17324_v32  ;;  %v19225_v58 = vld [vmem:[#allocation16 + $0x128] sm:$0xff]  ;;  %10533 = vmatpush.bf16.msrb.mxu1 %v14831_v48  ;;  %v10328_v50 = vadd.f32 %v10327_v29, %v20216_v4  ;;  %v19258_v48 = vld [vmem:[#allocation16 + $0x230] sm:$0xff]  ;;  %v19263_v29 = vld [vmem:[#allocation16 + $0x258] sm:$0xff] }
 0x631   :  { %11722 = vmatpush.bf16.msra.mxu2 %v19188_v63  ;;  %v19163_v15 = vld [vmem:[#allocation13 + $0x1f3c] sm:$0xf]  ;;  %11736 = vmatmul.bf16.vlgmr.msra.gmra.mxu3 %v10916_v39  ;;  %v20229_v63 = vld [vmem:[#allocation14 + $0x8] sm:$0xff]  ;;  %v10904_v39 = vunpack.c.h.b16 %v20028_v2 }
 0x632   :  { %v17260_v55 = vld [vmem:[#allocation13 + $0x1f78] sm:$0xf0]  ;;  %11780 = vmatpush.bf16.msrb.mxu3 %v19235_v12  ;;  %10573 = vmatmul.bf16.vlgmr.msra.gmra.mxu0 %v19838_v27  ;;  %v3789_v13 = vperm.slane %v20229_v63, 6  ;;  %v10341_v53 = vadd.f32 %v20213_v0, %v10328_v50 }
 0x633   :  { %11741 = vmatpush.bf16.msrb.mxu0 %v19211_v51  ;;  %v17263_v57 = vor.u32 %v19163_v15, %v17260_v55  ;;  %v19147_v60 = vld [vmem:[#allocation13 + $0x1ebc] sm:$0xf]  ;;  %10534 = vmatmul.bf16.vlgmr.msrb.gmra.mxu1 %v19814_v35  ;;  %v10405_v11 = vpop.f32.mrf.mxu3  ;;  %v19204_v15 = vld [vmem:[#allocation16 + $0x80] sm:$0xff]  ;;  %v19267_v55 = vld [vmem:[#allocation16 + $0x278] sm:$0xff] }
 0x634   :  { %11723 = vmatmul.bf16.vlgmr.msra.gmra.mxu2 %v10915_v6  ;;  %10578 = vmatpush.bf16.msra.mxu1 %v17327_v25  ;;  %v17196_v9 = vld [vmem:[#allocation13 + $0x1ef8] sm:$0xf0]  ;;  %v20235_v28 = vadd.f32 %v20221_v59, %v10341_v53  ;;  %v19220_v6 = vld [vmem:[#allocation16 + $0x100] sm:$0xff]  ;;  %v10603_v53 = vmax.f32 %v20219_v17, 0.0 }
 0x635   :  { %11767 = vmatpush.bf16.msrb.mxu2 %v19227_v34  ;;  %v19233_v8 = vld [vmem:[#allocation16 + $0x168] sm:$0xff]  ;;  %v17199_v62 = vor.u32 %v19147_v60, %v17196_v9  ;;  %v19219_v60 = vld [vmem:[#allocation16 + $0xf8] sm:$0xff] }
 0x636   :  { %11781 = vmatpush.bf16.msrb.mxu3 %v19234_v24  ;;  %v19209_v1 = vld [vmem:[#allocation16 + $0xa8] sm:$0xff]  ;;  %v10901_v24 = vunpack.c.l.b16 %v19973_v26 }
 0x637   :  { %11742 = vmatpush.bf16.msrb.mxu0 %v19210_v10  ;;  %v19131_v36 = vld [vmem:[#allocation13 + $0x1e3c] sm:$0xf]  ;;  %v10392_v19 = vpop.f32.mrf.mxu2  ;;  %v10368_v32 = vpop.f32.mrf.mxu0 }
 0x638   :  { %10579 = vmatpush.bf16.msra.mxu1 %v17263_v57  ;;  %v17132_v5 = vld [vmem:[#allocation13 + $0x1e78] sm:$0xf0]  ;;  %v10393_v3 = vadd.f32 %v10392_v19, %v3789_v13  ;;  %v10329_v12 = vpop.f32.mrf.mxu1  ;;  %v19240_v19 = vld [vmem:[#allocation16 + $0x1a0] sm:$0xff] }
 0x639   :  { %11768 = vmatpush.bf16.msrb.mxu2 %v19226_v16  ;;  %v17135_v27 = vor.u32 %v19131_v36, %v17132_v5  ;;  %v19115_v35 = vld [vmem:[#allocation13 + $0x1dbc] sm:$0xf]  ;;  %v10903_v16 = vunpack.c.l.b16 %v20028_v2  ;;  %v19218_v36 = vld [vmem:[#allocation16 + $0xf0] sm:$0xff]  ;;  %v19256_v2 = vld [vmem:[#allocation16 + $0x220] sm:$0xff] }
 0x63a   :  { %11782 = vmatpush.bf16.msrb.mxu3 %v19233_v8  ;;  %v17068_v56 = vld [vmem:[#allocation13 + $0x1df8] sm:$0xf0]  ;;  %v20238_v43 = vadd.f32 %v10405_v11, %v10393_v3  ;;  %v19266_v8 = vld [vmem:[#allocation16 + $0x270] sm:$0xff]  ;;  %v19260_v12 = vld [vmem:[#allocation16 + $0x240] sm:$0xff] }
 0x63b   :  { %11743 = vmatpush.bf16.msrb.mxu0 %v19209_v1  ;;  %v17071_v34 = vor.u32 %v19115_v35, %v17068_v56  ;;  %v19221_v40 = vld [vmem:[#allocation16 + $0x108] sm:$0xff]  ;;  %v10919_v38 = vpack.c.b16 %v10903_v16, %v10903_v16  ;;  %v10407_v10 = vpop.f32.mrf.mxu3  ;;  %v10917_v1 = vpack.c.b16 %v10901_v24, %v10901_v24  ;;  %v19216_v35 = vld [vmem:[#allocation16 + $0xe0] sm:$0xff]  ;;  %v19254_v56 = vld [vmem:[#allocation16 + $0x210] sm:$0xff] }
 0x63c   :  { %10580 = vmatpush.bf16.msra.mxu1 %v17199_v62  ;;  %v19099_v42 = vld [vmem:[#allocation13 + $0x1d3c] sm:$0xf]  ;;  %v10920_v62 = vpack.c.b16 %v10904_v39, %v10904_v39  ;;  %v19262_v3 = vld [vmem:[#allocation16 + $0x250] sm:$0xff] }
 0x63d   :  { %11769 = vmatpush.bf16.msrb.mxu2 %v19225_v58  ;;  %v17004_v49 = vld [vmem:[#allocation13 + $0x1d78] sm:$0xf0]  ;;  %v19228_v58 = vld [vmem:[#allocation16 + $0x140] sm:$0xff]  ;;  %v19214_v11 = vld [vmem:[#allocation16 + $0xd0] sm:$0xff] }
 0x63e   :  { %11783 = vmatpush.bf16.msrb.mxu3 %v19232_v18  ;;  %v17007_v4 = vor.u32 %v19099_v42, %v17004_v49  ;;  %v19083_v0 = vld [vmem:[#allocation13 + $0x1cbc] sm:$0xf]  ;;  %v19215_v42 = vld [vmem:[#allocation16 + $0xd8] sm:$0xff]  ;;  %v19298_v39 = vld [vmem:[#allocation16 + $0x370] sm:$0xff] }
 0x63f   :  { %11744 = vmatpush.bf16.msrb.mxu0 %v19208_v20  ;;  %v10394_v41 = vpop.f32.mrf.mxu2  ;;  %v16940_v37 = vld [vmem:[#allocation13 + $0x1cf8] sm:$0xf0] }
 0x640   :  { %10581 = vmatpush.bf16.msra.mxu1 %v17135_v27  ;;  %v19229_v61 = vld [vmem:[#allocation16 + $0x148] sm:$0xff]  ;;  %v16943_v44 = vor.u32 %v19083_v0, %v16940_v37  ;;  %v19255_v27 = vld [vmem:[#allocation16 + $0x218] sm:$0xff] }
 0x641   :  { %11770 = vmatpush.bf16.msrb.mxu2 %v19224_v23  ;;  %v19205_v59 = vld [vmem:[#allocation16 + $0x88] sm:$0xff]  ;;  %v19243_v23 = vld [vmem:[#allocation16 + $0x1b8] sm:$0xff] }
 0x642   :  { %11784 = vmatpush.bf16.msrb.mxu3 %v19231_v54  ;;  %v19067_v51 = vld [vmem:[#allocation13 + $0x1c3c] sm:$0xf] }
 0x643   :  { %11745 = vmatpush.bf16.msrb.mxu0 %v19207_v22  ;;  %v16876_v25 = vld [vmem:[#allocation13 + $0x1c78] sm:$0xf0] }
 0x644   :  { %10582 = vmatpush.bf16.msra.mxu1 %v17071_v34  ;;  %v16879_v57 = vor.u32 %v19067_v51, %v16876_v25  ;;  %v19257_v9 = vld [vmem:[#allocation16 + $0x228] sm:$0xff]  ;;  %v19239_v34 = vld [vmem:[#allocation16 + $0x198] sm:$0xff]  ;;  %v19212_v25 = vld [vmem:[#allocation16 + $0xc0] sm:$0xff] }
 0x645   :  { %11771 = vmatpush.bf16.msrb.mxu2 %v19223_v47  ;;  %v19242_v47 = vld [vmem:[#allocation16 + $0x1b0] sm:$0xff]  ;;  %v19265_v5 = vld [vmem:[#allocation16 + $0x268] sm:$0xff] }
 0x646   :  { %11785 = vmatpush.bf16.msrb.mxu3 %v19230_v52  ;;  %v19241_v18 = vld [vmem:[#allocation16 + $0x1a8] sm:$0xff] }
 0x647   :  { %11746 = vmatpush.bf16.msrb.mxu0 %v19206_v30  ;;  %v19217_v20 = vld [vmem:[#allocation16 + $0xe8] sm:$0xff] }
 0x648   :  { %10583 = vmatpush.bf16.msra.mxu1 %v17007_v4  ;;  %v19253_v49 = vld [vmem:[#allocation16 + $0x208] sm:$0xff]  ;;  %v19252_v4 = vld [vmem:[#allocation16 + $0x200] sm:$0xff] }
 0x649   :  { %11772 = vmatpush.bf16.msrb.mxu2 %v19222_v46  ;;  %v19264_v46 = vld [vmem:[#allocation16 + $0x260] sm:$0xff]  ;;  %v19261_v17 = vld [vmem:[#allocation16 + $0x248] sm:$0xff] }
 0x64a   :  { %11786 = vmatpush.bf16.msrb.mxu3 %v19229_v61  ;;  %v19237_v0 = vld [vmem:[#allocation16 + $0x188] sm:$0xff]  ;;  %v19290_v61 = vld [vmem:[#allocation16 + $0x330] sm:$0xff] }
 0x64b   :  { %11747 = vmatpush.bf16.msrb.mxu0 %v19205_v59  ;;  %v19213_v37 = vld [vmem:[#allocation16 + $0xc8] sm:$0xff]  ;;  %v19236_v59 = vld [vmem:[#allocation16 + $0x180] sm:$0xff] }
 0x64c   :  { %10584 = vmatpush.bf16.msra.mxu1 %v16943_v44  ;;  %v19299_v44 = vld [vmem:[#allocation16 + $0x378] sm:$0xff]  ;;  %v19289_v24 = vld [vmem:[#allocation16 + $0x328] sm:$0xff] }
 0x64d   :  { %11773 = vmatpush.bf16.msrb.mxu2 %v19221_v40 }
 0x64e   :  { %11787 = vmatpush.bf16.msrb.mxu3 %v19228_v58  ;;  %v19275_v58 = vld [vmem:[#allocation16 + $0x2b8] sm:$0xff] }
 0x64f   :  { %11748 = vmatpush.bf16.msrb.mxu0 %v19204_v15  ;;  %v10418_v13 = vpop.f32.mrf.mxu0  ;;  %v10379_v22 = vpop.f32.mrf.mxu1  ;;  %v10902_v15 = vunpack.c.h.b16 %v19973_v26  ;;  %v19297_v26 = vld [vmem:[#allocation16 + $0x368] sm:$0xff] }
 0x650   :  { %10585 = vmatpush.bf16.msra.mxu1 %v16879_v57  ;;  %v20248_v50 = vadd.f32 %v10418_v13, %v20238_v43  ;;  %v19291_v43 = vld [vmem:[#allocation16 + $0x338] sm:$0xff]  ;;  %v19285_v13 = vld [vmem:[#allocation16 + $0x308] sm:$0xff] }
 0x651   :  { %11774 = vmatpush.bf16.msrb.mxu2 %v19220_v6  ;;  %11788 = vmatmul.bf16.vlgmr.msrb.gmra.mxu3 %v10920_v62  ;;  %v10907_v6 = vunpack.c.l.b16 %v20138_v33  ;;  %v19287_v62 = vld [vmem:[#allocation16 + $0x318] sm:$0xff] }
 0x652   :  { %11832 = vmatpush.bf16.msra.mxu3 %v19267_v55  ;;  %11749 = vmatmul.bf16.vlgmr.msrb.gmra.mxu0 %v10917_v1  ;;  %v19251_v55 = vld [vmem:[#allocation16 + $0x1f8] sm:$0xff]  ;;  %v19249_v1 = vld [vmem:[#allocation16 + $0x1e8] sm:$0xff] }
 0x653   :  { %11793 = vmatpush.bf16.msra.mxu0 %v19243_v23  ;;  %10586 = vmatmul.bf16.vlgmr.msra.gmra.mxu1 %v19845_v14  ;;  %v10367_v14 = vadd.f32 %v20227_v21, %v20235_v28  ;;  %v19238_v21 = vld [vmem:[#allocation16 + $0x190] sm:$0xff]  ;;  %v20253_v28 = vpop.f32.mrf.mxu3  ;;  %v10923_v32 = vpack.c.b16 %v10907_v6, %v10907_v6  ;;  %v19269_v6 = vld [vmem:[#allocation16 + $0x288] sm:$0xff] }
 0x654   :  { %11775 = vmatmul.bf16.vlgmr.msrb.gmra.mxu2 %v10919_v38  ;;  %11754 = vmatpush.bf16.msrb.mxu1 %v19219_v60  ;;  %v10905_v38 = vunpack.c.l.b16 %v20083_v31  ;;  %v19274_v23 = vld [vmem:[#allocation16 + $0x2b0] sm:$0xff]  ;;  %v10918_v60 = vpack.c.b16 %v10902_v15, %v10902_v15  ;;  %v19307_v15 = vld [vmem:[#allocation16 + $0x3b8] sm:$0xff] }
 0x655   :  { %11819 = vmatpush.bf16.msra.mxu2 %v19259_v45  ;;  %v10380_v40 = vadd.f32 %v10379_v22, %v10367_v14  ;;  %v19247_v14 = vld [vmem:[#allocation16 + $0x1d8] sm:$0xff]  ;;  %v19294_v22 = vld [vmem:[#allocation16 + $0x350] sm:$0xff] }
 0x656   :  { %11833 = vmatpush.bf16.msra.mxu3 %v19266_v8  ;;  %v10921_v10 = vpack.c.b16 %v10905_v38, %v10905_v38  ;;  %v19273_v8 = vld [vmem:[#allocation16 + $0x2a8] sm:$0xff] }
 0x657   :  { %11794 = vmatpush.bf16.msra.mxu0 %v19242_v47  ;;  %v20243_v54 = vpop.f32.mrf.mxu2  ;;  %v10604_v52 = vmax.f32 %v10380_v40, 0.0  ;;  %v10420_v41 = vpop.f32.mrf.mxu0  ;;  %v19296_v47 = vld [vmem:[#allocation16 + $0x360] sm:$0xff]  ;;  %v19270_v40 = vld [vmem:[#allocation16 + $0x290] sm:$0xff]  ;;  %v19281_v38 = vld [vmem:[#allocation16 + $0x2e8] sm:$0xff] }
 0x658   :  { %11755 = vmatpush.bf16.msrb.mxu1 %v19218_v36  ;;  %v10381_v45 = vpop.f32.mrf.mxu1  ;;  %v19272_v36 = vld [vmem:[#allocation16 + $0x2a0] sm:$0xff] }
 0x659   :  { %11820 = vmatpush.bf16.msra.mxu2 %v19258_v48  ;;  %v20251_v30 = vpack.c.bf16 %v10604_v52, %v10603_v53  ;;  %v10908_v48 = vunpack.c.h.b16 %v20138_v33  ;;  %v19250_v33 = vld [vmem:[#allocation16 + $0x1f0] sm:$0xff]  ;;  %v19284_v53 = vld [vmem:[#allocation16 + $0x300] sm:$0xff]  ;;  %v10909_v45 = vunpack.c.l.b16 %v20193_v7 }
 0x65a   :  { %11834 = vmatpush.bf16.msra.mxu3 %v19265_v5  ;;  %v19286_v5 = vld [vmem:[#allocation16 + $0x310] sm:$0xff] }
 0x65b   :  { %11795 = vmatpush.bf16.msra.mxu0 %v19241_v18  ;;  %v10459_v51 = vpop.f32.mrf.mxu3  ;;  %v10924_v57 = vpack.c.b16 %v10908_v48, %v10908_v48  ;;  %v10912_v41 = vunpack.c.h.b16 %v20251_v30  ;;  %v19280_v48 = vld [vmem:[#allocation16 + $0x2e0] sm:$0xff] }
 0x65c   :  { %11756 = vmatpush.bf16.msrb.mxu1 %v19217_v20 }
 0x65d   :  { %11821 = vmatpush.bf16.msra.mxu2 %v19257_v9  ;;  %v19288_v9 = vld [vmem:[#allocation16 + $0x320] sm:$0xff] }
 0x65e   :  { %11835 = vmatpush.bf16.msra.mxu3 %v19264_v46  ;;  %v3790_v46 = vperm.slane %v20229_v63, 7 }
 0x65f   :  { %11796 = vmatpush.bf16.msra.mxu0 %v19240_v19  ;;  %v10446_v16 = vpop.f32.mrf.mxu2 }
 0x660   :  { %11757 = vmatpush.bf16.msrb.mxu1 %v19216_v35  ;;  %v19271_v35 = vld [vmem:[#allocation16 + $0x298] sm:$0xff] }
 0x661   :  { %11822 = vmatpush.bf16.msra.mxu2 %v19256_v2  ;;  %v19248_v2 = vld [vmem:[#allocation16 + $0x1e0] sm:$0xff] }
 0x662   :  { %11836 = vmatpush.bf16.msra.mxu3 %v19263_v29 }
 0x663   :  { %11797 = vmatpush.bf16.msra.mxu0 %v19239_v34 }
 0x664   :  { %11758 = vmatpush.bf16.msrb.mxu1 %v19215_v42 }
 0x665   :  { %11823 = vmatpush.bf16.msra.mxu2 %v19255_v27  ;;  %v19295_v27 = vld [vmem:[#allocation16 + $0x358] sm:$0xff] }
 0x666   :  { %11837 = vmatpush.bf16.msra.mxu3 %v19262_v3 }
 0x667   :  { %11798 = vmatpush.bf16.msra.mxu0 %v19238_v21 }
 0x668   :  { %11759 = vmatpush.bf16.msrb.mxu1 %v19214_v11  ;;  %v19293_v11 = vld [vmem:[#allocation16 + $0x348] sm:$0xff] }
 0x669   :  { %11824 = vmatpush.bf16.msra.mxu2 %v19254_v56 }
 0x66a   :  { %11838 = vmatpush.bf16.msra.mxu3 %v19261_v17  ;;  %v19268_v17 = vld [vmem:[#allocation16 + $0x280] sm:$0xff] }
 0x66b   :  { %11799 = vmatpush.bf16.msra.mxu0 %v19237_v0 }
 0x66c   :  { %11760 = vmatpush.bf16.msrb.mxu1 %v19213_v37  ;;  %v19244_v37 = vld [vmem:[#allocation16 + $0x1c0] sm:$0xff] }
 0x66d   :  { %11825 = vmatpush.bf16.msra.mxu2 %v19253_v49  ;;  %v19246_v49 = vld [vmem:[#allocation16 + $0x1d0] sm:$0xff] }
 0x66e   :  { %11839 = vmatpush.bf16.msra.mxu3 %v19260_v12  ;;  %v10928_v12 = vpack.c.b16 %v10912_v41, %v10912_v41 }
 0x66f   :  { %11800 = vmatpush.bf16.msra.mxu0 %v19236_v59  ;;  %v10470_v20 = vpop.f32.mrf.mxu0  ;;  %v10431_v19 = vpop.f32.mrf.mxu1  ;;  %v10925_v59 = vpack.c.b16 %v10909_v45, %v10909_v45 }
 0x670   :  { %11761 = vmatpush.bf16.msrb.mxu1 %v19212_v25  ;;  %v10432_v56 = vadd.f32 %v10431_v19, %v20248_v50  ;;  %v10911_v50 = vunpack.c.l.b16 %v20251_v30  ;;  %v19282_v30 = vld [vmem:[#allocation16 + $0x2f0] sm:$0xff]  ;;  %v19335_v19 = vld [vmem:[#allocation17] ss:$0 sm:$0xff] }
 0x671   :  { %11826 = vmatpush.bf16.msra.mxu2 %v19252_v4  ;;  %11840 = vmatmul.bf16.vlgmr.msra.gmra.mxu3 %v10924_v57 }
 0x672   :  { %11884 = vmatpush.bf16.msrb.mxu3 %v19299_v44  ;;  %11801 = vmatmul.bf16.vlgmr.msra.gmra.mxu0 %v10921_v10  ;;  %v10445_v29 = vadd.f32 %v20243_v54, %v10432_v56  ;;  %v10927_v16 = vpack.c.b16 %v10911_v50, %v10911_v50  ;;  %v19306_v10 = vld [vmem:[#allocation16 + $0x3b0] sm:$0xff]  ;;  %v19311_v56 = vld [vmem:[#allocation16 + $0x3d8] sm:$0xff]  ;;  %v19308_v50 = vld [vmem:[#allocation16 + $0x3c0] sm:$0xff] }
 0x673   :  { %11845 = vmatpush.bf16.msrb.mxu0 %v19275_v58  ;;  %11762 = vmatmul.bf16.vlgmr.msrb.gmra.mxu1 %v10918_v60  ;;  %v10509_v63 = vpop.f32.mrf.mxu3  ;;  %v19279_v58 = vld [vmem:[#allocation16 + $0x2d8] sm:$0xff]  ;;  %v19277_v60 = vld [vmem:[#allocation16 + $0x2c8] sm:$0xff] }
 0x674   :  { %11827 = vmatmul.bf16.vlgmr.msra.gmra.mxu2 %v10923_v32  ;;  %11806 = vmatpush.bf16.msra.mxu1 %v19251_v55  ;;  %v10458_v42 = vadd.f32 %v20253_v28, %v10445_v29  ;;  %v19245_v28 = vld [vmem:[#allocation16 + $0x1c8] sm:$0xff]  ;;  %v10906_v32 = vunpack.c.h.b16 %v20083_v31 }
 0x675   :  { %11871 = vmatpush.bf16.msrb.mxu2 %v19291_v43  ;;  %v19292_v43 = vld [vmem:[#allocation16 + $0x340] sm:$0xff] }
 0x676   :  { %11885 = vmatpush.bf16.msrb.mxu3 %v19298_v39  ;;  %v20266_v21 = vadd.f32 %v10470_v20, %v10458_v42  ;;  %v10922_v44 = vpack.c.b16 %v10906_v32, %v10906_v32  ;;  %v19312_v20 = vld [vmem:[#allocation16 + $0x3e0] sm:$0xff] }
 0x677   :  { %11846 = vmatpush.bf16.msrb.mxu0 %v19274_v23  ;;  %v10496_v18 = vpop.f32.mrf.mxu2  ;;  %v10472_v54 = vpop.f32.mrf.mxu0 }
 0x678   :  { %11807 = vmatpush.bf16.msra.mxu1 %v19250_v33  ;;  %v10497_v34 = vadd.f32 %v10496_v18, %v3790_v46  ;;  %v10433_v4 = vpop.f32.mrf.mxu1  ;;  %v19305_v33 = vld [vmem:[#allocation16 + $0x3a8] sm:$0xff]  ;;  %v19302_v18 = vld [vmem:[#allocation16 + $0x390] sm:$0xff] }
 0x679   :  { %11872 = vmatpush.bf16.msrb.mxu2 %v19290_v61  ;;  %v19283_v61 = vld [vmem:[#allocation16 + $0x2f8] sm:$0xff] }
 0x67a   :  { %11886 = vmatpush.bf16.msrb.mxu3 %v19297_v26  ;;  %v20264_v52 = vadd.f32 %v10509_v63, %v10497_v34  ;;  %v19276_v26 = vld [vmem:[#allocation16 + $0x2c0] sm:$0xff] }
 0x67b   :  { %11847 = vmatpush.bf16.msrb.mxu0 %v19273_v8  ;;  %v10511_v0 = vpop.f32.mrf.mxu3  ;;  %v10910_v8 = vunpack.c.h.b16 %v20193_v7  ;;  %v19301_v7 = vld [vmem:[#allocation16 + $0x388] sm:$0xff] }
 0x67c   :  { %11808 = vmatpush.bf16.msra.mxu1 %v19249_v1  ;;  %v19315_v1 = vld [vmem:[#allocation16 + $0x3f8] sm:$0xff] }
 0x67d   :  { %11873 = vmatpush.bf16.msrb.mxu2 %v19289_v24  ;;  %v19278_v24 = vld [vmem:[#allocation16 + $0x2d0] sm:$0xff] }
 0x67e   :  { %11887 = vmatpush.bf16.msrb.mxu3 %v19296_v47  ;;  %v10926_v47 = vpack.c.b16 %v10910_v8, %v10910_v8 }
 0x67f   :  { %11848 = vmatpush.bf16.msrb.mxu0 %v19272_v36  ;;  %v10498_v3 = vpop.f32.mrf.mxu2  ;;  %v19314_v36 = vld [vmem:[#allocation16 + $0x3f0] sm:$0xff] }
 0x680   :  { %11809 = vmatpush.bf16.msra.mxu1 %v19248_v2  ;;  %v19303_v2 = vld [vmem:[#allocation16 + $0x398] sm:$0xff] }
 0x681   :  { %11874 = vmatpush.bf16.msrb.mxu2 %v19288_v9 }
 0x682   :  { %11888 = vmatpush.bf16.msrb.mxu3 %v19295_v27 }
 0x683   :  { %11849 = vmatpush.bf16.msrb.mxu0 %v19271_v35 }
 0x684   :  { %11810 = vmatpush.bf16.msra.mxu1 %v19247_v14  ;;  %v19300_v14 = vld [vmem:[#allocation16 + $0x380] sm:$0xff] }
 0x685   :  { %11875 = vmatpush.bf16.msrb.mxu2 %v19287_v62  ;;  %v19304_v62 = vld [vmem:[#allocation16 + $0x3a0] sm:$0xff] }
 0x686   :  { %11889 = vmatpush.bf16.msrb.mxu3 %v19294_v22  ;;  %v19310_v22 = vld [vmem:[#allocation16 + $0x3d0] sm:$0xff] }
 0x687   :  { %11850 = vmatpush.bf16.msrb.mxu0 %v19270_v40 }
 0x688   :  { %11811 = vmatpush.bf16.msra.mxu1 %v19246_v49  ;;  %v19309_v49 = vld [vmem:[#allocation16 + $0x3c8] sm:$0xff] }
 0x689   :  { %11876 = vmatpush.bf16.msrb.mxu2 %v19286_v5  ;;  %v19313_v5 = vld [vmem:[#allocation16 + $0x3e8] sm:$0xff] }
 0x68a   :  { %11890 = vmatpush.bf16.msrb.mxu3 %v19293_v11 }
 0x68b   :  { %11851 = vmatpush.bf16.msrb.mxu0 %v19269_v6 }
 0x68c   :  { %11812 = vmatpush.bf16.msra.mxu1 %v19245_v28 }
 0x68d   :  { %11877 = vmatpush.bf16.msrb.mxu2 %v19285_v13 }
 0x68e   :  { %11891 = vmatpush.bf16.msrb.mxu3 %v19292_v43 }
 0x68f   :  { %11852 = vmatpush.bf16.msrb.mxu0 %v19268_v17  ;;  %v10522_v25 = vpop.f32.mrf.mxu0 }
 0x690   :  { %11813 = vmatpush.bf16.msra.mxu1 %v19244_v37  ;;  %v10523_v3 = vadd.f32 %v10522_v25, %v20264_v52 }
 0x691   :  { %11878 = vmatpush.bf16.msrb.mxu2 %v19284_v53  ;;  %11892 = vmatmul.bf16.vlgmr.msrb.gmra.mxu3 %v10928_v12  ;;  %v20273_v31 = vpop.f32.mrf.mxu1 }
 0x692   :  { %11853 = vmatmul.bf16.vlgmr.msrb.gmra.mxu0 %v10925_v59  ;;  %v10484_v28 = vadd.f32 %v20273_v31, %v20266_v21 }
 0x693   :  { %11814 = vmatmul.bf16.vlgmr.msra.gmra.mxu1 %v10922_v44  ;;  %11897 = vmatpush.bf16.msra.mxu0 %v19307_v15 }
 0x694   :  { %11879 = vmatmul.bf16.vlgmr.msrb.gmra.mxu2 %v10927_v16  ;;  %11858 = vmatpush.bf16.msrb.mxu1 %v19283_v61  ;;  %v10561_v55 = vpop.f32.mrf.mxu3  ;;  %v10605_v0 = vmax.f32 %v10484_v28, 0.0 }
 0x697   :  { %v20271_v51 = vpop.f32.mrf.mxu2  ;;  %v10524_v57 = vpop.f32.mrf.mxu0  ;;  %11898 = vmatpush.bf16.msra.mxu0 %v19306_v10 }
 0x698   :  { %11859 = vmatpush.bf16.msrb.mxu1 %v19282_v30 }
 0x699   :  { %v10485_v23 = vpop.f32.mrf.mxu1 }
 0x69b   :  { %11899 = vmatpush.bf16.msra.mxu0 %v19305_v33 }
 0x69c   :  { %11860 = vmatpush.bf16.msrb.mxu1 %v19281_v38  ;;  %v10563_v9 = vpop.f32.mrf.mxu3 }
 0x69f   :  { %v10550_v39 = vpop.f32.mrf.mxu2  ;;  %11900 = vmatpush.bf16.msra.mxu0 %v19304_v62 }
 0x6a0   :  { %11861 = vmatpush.bf16.msrb.mxu1 %v19280_v48 }
 0x6a3   :  { %11901 = vmatpush.bf16.msra.mxu0 %v19303_v2 }
 0x6a4   :  { %11862 = vmatpush.bf16.msrb.mxu1 %v19279_v58 }
 0x6a7   :  { %11902 = vmatpush.bf16.msra.mxu0 %v19302_v18 }
 0x6a8   :  { %11863 = vmatpush.bf16.msrb.mxu1 %v19278_v24 }
 0x6ab   :  { %11903 = vmatpush.bf16.msra.mxu0 %v19301_v7 }
 0x6ac   :  { %11864 = vmatpush.bf16.msrb.mxu1 %v19277_v60 }
 0x6af   :  { %v10574_v46 = vpop.f32.mrf.mxu0  ;;  %11904 = vmatpush.bf16.msra.mxu0 %v19300_v14 }
 0x6b0   :  { %11865 = vmatpush.bf16.msrb.mxu1 %v19276_v26  ;;  %v10535_v35 = vpop.f32.mrf.mxu1 }
 0x6b1   :  { %v10536_v54 = vadd.f32 %v10535_v35, %v10523_v3 }
 0x6b3   :  { %11866 = vmatmul.bf16.vlgmr.msrb.gmra.mxu1 %v10926_v47  ;;  %v10549_v11 = vadd.f32 %v20271_v51, %v10536_v54 }
 0x6b4   :  { %11910 = vmatpush.bf16.msra.mxu1 %v19315_v1  ;;  %v11737_v29 = vpop.f32.mrf.mxu3 }
 0x6b5   :  { %v10562_v4 = vadd.f32 %v10561_v55, %v10549_v11 }
 0x6b7   :  { %v11724_v27 = vpop.f32.mrf.mxu2  ;;  %v10576_v42 = vpop.f32.mrf.mxu0  ;;  %v10575_v16 = vadd.f32 %v10574_v46, %v10562_v4 }
 0x6b8   :  { %11911 = vmatpush.bf16.msra.mxu1 %v19314_v36  ;;  %v11725_v13 = vadd.f32 %v19335_v19, %v11724_v27  ;;  %v10537_v63 = vpop.f32.mrf.mxu1 }
 0x6ba   :  { %v11738_v34 = vadd.f32 %v11737_v29, %v11725_v13 }
 0x6bc   :  { %11912 = vmatpush.bf16.msra.mxu1 %v19313_v5  ;;  %v11739_v53 = vpop.f32.mrf.mxu3 }
 0x6bf   :  { %v11726_v40 = vpop.f32.mrf.mxu2 }
 0x6c0   :  { %11913 = vmatpush.bf16.msra.mxu1 %v19312_v20 }
 0x6c4   :  { %11914 = vmatpush.bf16.msra.mxu1 %v19311_v56 }
 0x6c8   :  { %11915 = vmatpush.bf16.msra.mxu1 %v19310_v22 }
 0x6cc   :  { %11916 = vmatpush.bf16.msra.mxu1 %v19309_v49 }
 0x6cf   :  { %v11750_v43 = vpop.f32.mrf.mxu0 }
 0x6d0   :  { %11917 = vmatpush.bf16.msra.mxu1 %v19308_v50  ;;  %v10587_v41 = vpop.f32.mrf.mxu1  ;;  %v11751_v17 = vadd.f32 %v11750_v43, %v11738_v34 }
 0x6d1   :  { %v10588_v45 = vadd.f32 %v10587_v41, %v10575_v16 }
 0x6d3   :  { %v10606_v37 = vmax.f32 %v10588_v45, 0.0 }
 0x6d4   :  { %v11789_v61 = vpop.f32.mrf.mxu3 }
 0x6d5   :  { %v10614_v32 = vpack.c.bf16 %v10606_v37, %v10605_v0 }
 0x6d7   :  { %v11776_v6 = vpop.f32.mrf.mxu2  ;;  %v10913_v52 = vunpack.c.l.b16 %v10614_v32  ;;  %v10914_v59 = vunpack.c.h.b16 %v10614_v32  ;;  %v11752_v44 = vpop.f32.mrf.mxu0 }
 0x6d8   :  { %v10589_v30 = vpop.f32.mrf.mxu1 }
 0x6d9   :  { %v10929_v38 = vpack.c.b16 %v10913_v52, %v10913_v52  ;;  %v10930_v48 = vpack.c.b16 %v10914_v59, %v10914_v59 }
 0x6db   :  { %11905 = vmatmul.bf16.vlgmr.msra.gmra.mxu0 %v10929_v38  ;;  %11918 = vmatmul.bf16.vlgmr.msra.gmra.mxu1 %v10930_v48 }
 0x6dc   :  { %v11791_v51 = vpop.f32.mrf.mxu3 }
 0x6df   :  { %v11778_v12 = vpop.f32.mrf.mxu2 }
 0x6ef   :  { %v11802_v25 = vpop.f32.mrf.mxu0 }
 0x6f0   :  { %v11763_v31 = vpop.f32.mrf.mxu1 }
 0x6f1   :  { %v11764_v58 = vadd.f32 %v11763_v31, %v11751_v17 }
 0x6f3   :  { %v11777_v15 = vadd.f32 %v11776_v6, %v11764_v58 }
 0x6f4   :  { %v11841_v24 = vpop.f32.mrf.mxu3 }
 0x6f5   :  { %v11790_v55 = vadd.f32 %v11789_v61, %v11777_v15 }
 0x6f7   :  { %v11828_v21 = vpop.f32.mrf.mxu2  ;;  %v11803_v10 = vadd.f32 %v11802_v25, %v11790_v55  ;;  %v11804_v57 = vpop.f32.mrf.mxu0 }
 0x6f8   :  { %v11765_v23 = vpop.f32.mrf.mxu1 }
 0x6fc   :  { %v11843_v60 = vpop.f32.mrf.mxu3 }
 0x6ff   :  { %v11830_v39 = vpop.f32.mrf.mxu2 }
 0x70f   :  { %v11854_v9 = vpop.f32.mrf.mxu0 }
 0x710   :  { %v11815_v26 = vpop.f32.mrf.mxu1 }
 0x711   :  { %v11816_v8 = vadd.f32 %v11815_v26, %v11803_v10 }
 0x713   :  { %v11829_v1 = vadd.f32 %v11828_v21, %v11816_v8 }
 0x714   :  { %v11893_v62 = vpop.f32.mrf.mxu3 }
 0x715   :  { %v11842_v47 = vadd.f32 %v11841_v24, %v11829_v1 }
 0x717   :  { %v11880_v33 = vpop.f32.mrf.mxu2  ;;  %v11855_v2 = vadd.f32 %v11854_v9, %v11842_v47  ;;  %v11856_v5 = vpop.f32.mrf.mxu0 }
 0x718   :  { %v11817_v18 = vpop.f32.mrf.mxu1 }
 0x71c   :  { %v11895_v20 = vpop.f32.mrf.mxu3 }
 0x71f   :  { %v11882_v36 = vpop.f32.mrf.mxu2 }
 0x730   :  { %v11867_v27 = vpop.f32.mrf.mxu1 }
 0x731   :  { %v11868_v46 = vadd.f32 %v11867_v27, %v11855_v2 }
 0x733   :  { %v11881_v7 = vadd.f32 %v11880_v33, %v11868_v46 }
 0x735   :  { %v11894_v19 = vadd.f32 %v11893_v62, %v11881_v7 }
 0x738   :  { %v11869_v35 = vpop.f32.mrf.mxu1 }
 0x758   :  { %v11906_v56 = vpop.f32.mrf.mxu0  ;;  %v11919_v14 = vpop.f32.mrf.mxu1 }
 0x759   :  { %v11907_v13 = vadd.f32 %v11906_v56, %v11894_v19 }
 0x75b   :  { %v11920_v29 = vadd.f32 %v11919_v14, %v11907_v13 }
 0x75d   :  { %11923 = vst [vmem:[%s20294_s11] sm:$0xff] %v11920_v29 }
 0x760   :  { %v11908_v22 = vpop.f32.mrf.mxu0  ;;  %v11921_v34 = vpop.f32.mrf.mxu1 }
 0x761   :  { %11928 = vsyncpa [#allocation4], 1 }
 0x762   :  { %11929 = vsyncpa [#allocation6], 1 }
 0x763   :  { %11930 = vsyncpa [#allocation9], 1 }
 0x764   :  { %11931 = vsyncpa [#allocation12], 1 }
 0x765   :  { %11932 = vsyncpa [#allocation15], 1 }
 0x766   :  { %11933 = vsyncpa [#allocation18], 1 }

</bundles_post_ra>
